<compile_context>
chip_gen: v7x
topology: tpu7x:2x2x1
jax: 0.10.0
libtpu: 0.0.40
codegen_flags: <defaults>
</compile_context>

<pallas_src>
import functools

import jax
import jax.numpy as jnp
from jax import lax
from jax.experimental import pallas as pl
from jax.experimental.pallas import tpu as pltpu


_TAPS = tuple((dy, dx) for dy in range(3) for dx in range(3))


def _layer_geometry(height, width, in_channels, conv_dim, num_conv):
    """Static per-layer geometry: stride 1 for k < num_conv-3, else stride 2."""
    strides, h_in, w_in, c_in = [], [], [], []
    h, w, c = height, width, in_channels
    for k in range(num_conv):
        s = 1 if k < num_conv - 3 else 2
        strides.append(s)
        h_in.append(h)
        w_in.append(w)
        c_in.append(c)
        h = (h - 1) // s + 1          # == floor((h + 2*1 - 3) / s) + 1
        w = (w - 1) // s + 1
        c = conv_dim
    return strides, h_in, w_in, c_in, h, w


def _pick_b_tile(batch):
    # Images (ROIs) per grid step.  Prefer >= 4 grid steps so the DMA/compute
    # pipeline stays alive and megacore can split the grid (v7x), while still
    # amortizing the fixed per-step cost over several ROIs when batch is large.
    for bt in (8, 4, 2):
        if batch % bt == 0 and batch // bt >= 4:
            return bt
    return 1


def _build_fused_head(batch, b_tile, height, width, in_channels, conv_dim,
                      num_conv, num_out, out_dtype):
    """Returns a pallas_call computing the whole HCR head.

    Input is the flattened, spatially zero-padded NHWC activation
    (batch, (H+2)*(W+2), Cin); output is (batch, hf*wf, num_heatmaps+num_offsets).
    """
    strides, h_in, w_in, c_in, h_fin, w_fin = _layer_geometry(
        height, width, in_channels, conv_dim, num_conv)

    # Flat-spatial geometry.  Layer k's (zero-padded) input lives in a
    # ((h_in+2)*(w_in+2), C) VMEM buffer with flat(y, x) = y*row_stride + x.
    row_stride = [w_in[k] + 2 for k in range(num_conv)]
    h_out = [(h_in[k] - 1) // strides[k] + 1 for k in range(num_conv)]
    w_out = [(w_in[k] - 1) // strides[k] + 1 for k in range(num_conv)]
    # Flat "output grid" extent per layer: result of flat position
    # q = oy*row_stride + ox (ox < w_out valid, the 2 trailing columns junk).
    m_k = [(h_out[k] - 1) * row_stride[k] + w_out[k] for k in range(num_conv)]
    obuf_rows = ((max(m_k) + 7) // 8) * 8

    n_inputs = 1 + 2 * num_conv + 2      # x, (w, b) per conv, pred w, pred b

    def kernel(*args):
        x_ref = args[0]                                       # (b_tile, HpWp0, Cin)
        conv_w = [args[1 + 2 * k] for k in range(num_conv)]   # (9, Cin_k, D)
        conv_b = [args[2 + 2 * k] for k in range(num_conv)]   # (1, D)
        wpred_ref = args[1 + 2 * num_conv]                    # (D, num_out)
        bpred_ref = args[2 + 2 * num_conv]                    # (1, num_out)
        o_ref = args[n_inputs]                                # (b_tile, hf*wf, num_out)
        pads = list(args[n_inputs + 1:n_inputs + num_conv])   # layer-(k+1) inputs
        obuf = args[n_inputs + num_conv]                      # flat conv accumulator
        f32 = jnp.float32

        # --- Zero only the 1-pixel padding ring of every intermediate
        # activation buffer, once per grid step (interiors are fully rewritten
        # for every image).  Deliberately NOT gated on program_id: with a
        # "parallel" grid each TensorCore owns its own scratch instance.
        for k in range(num_conv - 1):
            dst = pads[k]
            ho, wo = h_out[k], w_out[k]
            wq = wo + 2
            edge = jnp.zeros((wq + 1, conv_dim), f32)
            pair = jnp.zeros((2, conv_dim), f32)
            dst[pl.ds(0, wq + 1), :] = edge                    # top row + (1, 0)
            for r in range(1, ho):                             # (r, wq-1), (r+1, 0)
                dst[pl.ds((r + 1) * wq - 1, 2), :] = pair
            dst[pl.ds((ho + 1) * wq - 1, wq + 1), :] = edge    # (ho, wq-1) + bottom row

        for b in range(b_tile):                                # unrolled image loop
            for k in range(num_conv):
                s = strides[k]
                rs = row_stride[k]
                ho, wo = h_out[k], w_out[k]
                mk = m_k[k]
                w_taps = conv_w[k]
                bias = conv_b[k][...]                          # (1, D)

                # 9 accumulated per-tap matmuls over the whole flat output grid
                # (one MXU call per tap; contiguous / stride-2 flat-row slices,
                # no lane-axis concatenation, no selection matmul).
                for t, (dy, dx) in enumerate(_TAPS):
                    shift = dy * rs + dx
                    if s == 1:
                        idx = pl.ds(shift, mk)
                    else:   # stride 2: only even rows/cols of the stride-1 grid
                        idx = pl.ds(shift, mk, stride=s)
                    if k == 0:
                        lhs = x_ref[b, idx, :].astype(f32)
                    else:
                        lhs = pads[k - 1][idx, :]
                    contrib = jnp.dot(lhs, w_taps[t],
                                      preferred_element_type=f32)
                    if t == 0:
                        obuf[pl.ds(0, mk), :] = contrib
                    else:
                        obuf[pl.ds(0, mk), :] += contrib

                if k < num_conv - 1:
                    # bias + ReLU, then scatter the valid rows into the interior
                    # of the next layer's zero-padded flat buffer.
                    dst = pads[k]
                    wq = wo + 2
                    for oy in range(ho):
                        seg = obuf[pl.ds(oy * rs, wo), :]
                        seg = jnp.maximum(seg + bias, 0.0)
                        dst[pl.ds((oy + 1) * wq + 1, wo), :] = seg
                else:
                    # Last conv: gather the (hf*wf, D) activation, apply the
                    # merged 1x1 heatmap/offset predictor (no ReLU), and write
                    # the whole per-image output with one dense store.
                    rows = []
                    for oy in range(ho):
                        seg = obuf[pl.ds(oy * rs, wo), :]
                        rows.append(jnp.maximum(seg + bias, 0.0))
                    act = rows[0] if len(rows) == 1 else jnp.concatenate(rows, axis=0)
                    pred = jnp.dot(act, wpred_ref[...],
                                   preferred_element_type=f32) + bpred_ref[...]
                    o_ref[b, :, :] = pred.astype(o_ref.dtype)

    hpwp0 = (height + 2) * (width + 2)
    in_specs = [pl.BlockSpec((b_tile, hpwp0, in_channels), lambda i: (i, 0, 0))]
    for k in range(num_conv):
        in_specs.append(pl.BlockSpec((9, c_in[k], conv_dim), lambda i: (0, 0, 0)))
        in_specs.append(pl.BlockSpec((1, conv_dim), lambda i: (0, 0)))
    in_specs.append(pl.BlockSpec((conv_dim, num_out), lambda i: (0, 0)))
    in_specs.append(pl.BlockSpec((1, num_out), lambda i: (0, 0)))

    out_specs = pl.BlockSpec((b_tile, h_fin * w_fin, num_out), lambda i: (i, 0, 0))

    scratch_shapes = [
        pltpu.VMEM(((h_out[k] + 2) * (w_out[k] + 2), conv_dim), jnp.float32)
        for k in range(num_conv - 1)
    ]
    scratch_shapes.append(pltpu.VMEM((obuf_rows, conv_dim), jnp.float32))

    return pl.pallas_call(
        kernel,
        out_shape=jax.ShapeDtypeStruct((batch, h_fin * w_fin, num_out), out_dtype),
        grid=(batch // b_tile,),
        in_specs=in_specs,
        out_specs=out_specs,
        scratch_shapes=scratch_shapes,
        compiler_params=pltpu.CompilerParams(
            dimension_semantics=("parallel",)),   # split batch/ROI steps over TCs
    )


# ----------------------------------------------------------------------------
# Forward pass (matches HCRConvHead.forward; NCHW at the module boundary)
# ----------------------------------------------------------------------------
def hcr_conv_head_forward(x_nchw, params, num_conv):
    n, in_ch, h, w = x_nchw.shape
    conv_dim = params["convs"][0][0].shape[-1]
    num_heatmaps = params["heatmap"][0].shape[-1]
    num_offsets = params["offset"][0].shape[-1]
    num_out = num_heatmaps + num_offsets

    # NCHW -> NHWC, zero-pad the spatial ring once and flatten (H+2, W+2) so
    # the kernel can address conv taps as contiguous / strided flat-row slices.
    # (Pure layout plumbing; all heavy math runs inside the Pallas kernel.)
    x = jnp.transpose(x_nchw, (0, 2, 3, 1))
    x = jnp.pad(x, ((0, 0), (1, 1), (1, 1), (0, 0)))
    x = x.reshape(n, (h + 2) * (w + 2), in_ch)

    flat_args = [x]
    for wgt, b in params["convs"]:
        kh, kw, ci, co = wgt.shape                        # (3, 3, Cin, Cout), HWIO
        flat_args.append(wgt.reshape(kh * kw, ci, co))    # (9, Cin, Cout), tap-major
        flat_args.append(b.reshape(1, co))
    # Merge heatmap/offset 1x1 predictors into one matmul.
    w_pred = jnp.concatenate([params["heatmap"][0], params["offset"][0]], axis=1)
    b_pred = jnp.concatenate([params["heatmap"][1], params["offset"][1]], axis=0)
    flat_args.append(w_pred)
    flat_args.append(b_pred.reshape(1, num_out))

    b_tile = _pick_b_tile(n)
    fused = _build_fused_head(n, b_tile, h, w, in_ch, conv_dim, num_conv,
                              num_out, x_nchw.dtype)
    out = fused(*flat_args)                               # (N, hf*wf, num_out)

    _, _, _, _, h_fin, w_fin = _layer_geometry(h, w, in_ch, conv_dim, num_conv)
    out = out.reshape(n, h_fin, w_fin, num_out)
    out = jnp.transpose(out, (0, 3, 1, 2))                # -> NCHW
    return {"heatmap": out[:, :num_heatmaps],
            "offset": out[:, num_heatmaps:]}


# ----------------------------------------------------------------------------
# Parameter construction (mirrors the PyTorch __init__ shapes; HWIO weights)
# ----------------------------------------------------------------------------
def init_hcr_params(key, input_channels, conv_dims, num_conv,
                    num_heatmaps, num_offsets, dtype=jnp.float32):
    params = {"convs": []}
    cin = input_channels
    for _ in range(num_conv):
        key, kw, kb = jax.random.split(key, 3)
        # c2_msra_fill: kaiming_normal_(mode="fan_out") -> std = sqrt(2/(Cout*9))
        std = (2.0 / (conv_dims * 9)) ** 0.5
        w = std * jax.random.normal(kw, (3, 3, cin, conv_dims), dtype)
        # PyTorch init zeroes the biases; use small random ones here so the
        # bias path is actually exercised by the numerical check below.
        b = 0.1 * jax.random.normal(kb, (conv_dims,), dtype)
        params["convs"].append((w, b))
        cin = conv_dims
    key, kh, kb1, ko, kb2 = jax.random.split(key, 5)
    params["heatmap"] = (0.001 * jax.random.normal(kh, (conv_dims, num_heatmaps), dtype),
                         0.01 * jax.random.normal(kb1, (num_heatmaps,), dtype))
    params["offset"] = (0.001 * jax.random.normal(ko, (conv_dims, num_offsets), dtype),
                        0.01 * jax.random.normal(kb2, (num_offsets,), dtype))
    return params


# ----------------------------------------------------------------------------
# Pure-JAX reference (XLA convs) for a correctness check
# ----------------------------------------------------------------------------
def _reference_forward(x_nchw, params, num_conv):
    x = jnp.transpose(x_nchw, (0, 2, 3, 1))
    for k in range(num_conv):
        s = 1 if k < num_conv - 3 else 2
        w, b = params["convs"][k]
        x = lax.conv_general_dilated(
            x, w, (s, s), ((1, 1), (1, 1)),
            dimension_numbers=("NHWC", "HWIO", "NHWC"),
            precision=lax.Precision.HIGHEST)
        x = jax.nn.relu(x + b)
    hm_w, hm_b = params["heatmap"]
    of_w, of_b = params["offset"]
    hm = jnp.einsum("nhwc,co->nhwo", x, hm_w, precision=lax.Precision.HIGHEST) + hm_b
    of = jnp.einsum("nhwc,co->nhwo", x, of_w, precision=lax.Precision.HIGHEST) + of_b
    return {"heatmap": jnp.transpose(hm, (0, 3, 1, 2)),
            "offset": jnp.transpose(of, (0, 3, 1, 2))}


if __name__ == "__main__":
    # Config
    INPUT_CHANNELS = 4
    CONV_DIMS = 32
    NUM_CONV = 4
    NUM_KEYPOINTS = 8
    NUM_HEATMAPS = NUM_KEYPOINTS          # cls-agnostic
    NUM_OFFSETS = 2 * NUM_KEYPOINTS

    key = jax.random.PRNGKey(0)
    key, kx = jax.random.split(key)
    params = init_hcr_params(key, INPUT_CHANNELS, CONV_DIMS, NUM_CONV,
                             NUM_HEATMAPS, NUM_OFFSETS)

    fwd = jax.jit(functools.partial(hcr_conv_head_forward, num_conv=NUM_CONV))

    # batch=2 is the module-spec example; batch=16 also exercises the
    # multi-ROI path (B_tile=4, grid=4) that amortizes per-step overhead.
    for batch in (2, 16):
        kx, sub = jax.random.split(kx)
        x = jax.random.normal(sub, (batch, INPUT_CHANNELS, 16, 16), jnp.float32)
        out = jax.block_until_ready(fwd(x, params))

        # Spatial: 16 -(s1)-> 16 -(s2)-> 8 -(s2)-> 4 -(s2)-> 2
        assert out["heatmap"].shape == (batch, NUM_HEATMAPS, 2, 2), out["heatmap"].shape
        assert out["offset"].shape == (batch, NUM_OFFSETS, 2, 2), out["offset"].shape

        # Numerical check against the XLA reference.  The threshold is kept
        # deliberately conservative: the in-kernel MXU f32 dot pass count is
        # toolchain-dependent, while genuine indexing/fusion bugs show up as
        # O(1) relative errors, far above this bound (typical observed error
        # with full-f32 MXU passes is ~1e-6).
        ref = _reference_forward(x, params, NUM_CONV)
        for name in ("heatmap", "offset"):
            a, r = out[name], ref[name]
            err = float(jnp.max(jnp.abs(a - r)))
            scale = float(jnp.max(jnp.abs(r))) + 1e-8
            assert err <= 5e-2 * scale + 1e-5, (name, batch, err, scale)

    print("KERNEL_OK")
</pallas_src>

<mosaic_0001>
module attributes {stable_mosaic.version = 11 : i64} {
  func.func @kernel(%arg0: i32, %arg1: memref<1x324x4xf32, #tpu.memory_space<vmem>>, %arg2: memref<9x4x32xf32, #tpu.memory_space<vmem>>, %arg3: memref<1x32xf32, #tpu.memory_space<vmem>>, %arg4: memref<9x32x32xf32, #tpu.memory_space<vmem>>, %arg5: memref<1x32xf32, #tpu.memory_space<vmem>>, %arg6: memref<9x32x32xf32, #tpu.memory_space<vmem>>, %arg7: memref<1x32xf32, #tpu.memory_space<vmem>>, %arg8: memref<9x32x32xf32, #tpu.memory_space<vmem>>, %arg9: memref<1x32xf32, #tpu.memory_space<vmem>>, %arg10: memref<32x24xf32, #tpu.memory_space<vmem>>, %arg11: memref<1x24xf32, #tpu.memory_space<vmem>>, %arg12: memref<1x4x24xf32, #tpu.memory_space<vmem>>, %arg13: memref<324x32xf32, #tpu.memory_space<vmem>>, %arg14: memref<100x32xf32, #tpu.memory_space<vmem>>, %arg15: memref<36x32xf32, #tpu.memory_space<vmem>>, %arg16: memref<288x32xf32, #tpu.memory_space<vmem>>) attributes {dimension_semantics = [#tpu.dimension_semantics<parallel>], iteration_bounds = array<i64: 2>, scalar_prefetch = 0 : i64, scratch_operands = 4 : i64, tpu.core_type = #tpu.core_type<tc>, window_params = [{transform_indices = @transform_0, window_bounds = array<i64: 1, 324, 4>}, {pipeline_mode = #tpu.pipeline_mode<synchronous>, transform_indices = @transform_1, window_bounds = array<i64: 9, 4, 32>}, {pipeline_mode = #tpu.pipeline_mode<synchronous>, transform_indices = @transform_2, window_bounds = array<i64: 1, 32>}, {pipeline_mode = #tpu.pipeline_mode<synchronous>, transform_indices = @transform_3, window_bounds = array<i64: 9, 32, 32>}, {pipeline_mode = #tpu.pipeline_mode<synchronous>, transform_indices = @transform_4, window_bounds = array<i64: 1, 32>}, {pipeline_mode = #tpu.pipeline_mode<synchronous>, transform_indices = @transform_5, window_bounds = array<i64: 9, 32, 32>}, {pipeline_mode = #tpu.pipeline_mode<synchronous>, transform_indices = @transform_6, window_bounds = array<i64: 1, 32>}, {pipeline_mode = #tpu.pipeline_mode<synchronous>, transform_indices = @transform_7, window_bounds = array<i64: 9, 32, 32>}, {pipeline_mode = #tpu.pipeline_mode<synchronous>, transform_indices = @transform_8, window_bounds = array<i64: 1, 32>}, {pipeline_mode = #tpu.pipeline_mode<synchronous>, transform_indices = @transform_9, window_bounds = array<i64: 32, 24>}, {pipeline_mode = #tpu.pipeline_mode<synchronous>, transform_indices = @transform_10, window_bounds = array<i64: 1, 24>}, {transform_indices = @transform_11, window_bounds = array<i64: 1, 4, 24>}]} {
    %cst = arith.constant 0.000000e+00 : f32
    %0 = vector.broadcast %cst : f32 to vector<19x32xf32>
    %cst_0 = arith.constant 0.000000e+00 : f32
    %1 = vector.broadcast %cst_0 : f32 to vector<2x32xf32>
    %c0 = arith.constant 0 : index
    %c0_1 = arith.constant 0 : index
    %2 = vector.load %arg13[%c0, %c0_1] : memref<324x32xf32, #tpu.memory_space<vmem>>, vector<19x32xf32>
    tpu.vector_store %arg13[%c0, %c0_1], %0 {strides = array<i32>} : memref<324x32xf32, #tpu.memory_space<vmem>>, vector<19x32xf32>,
    %c35 = arith.constant 35 : index
    %c0_2 = arith.constant 0 : index
    %3 = vector.load %arg13[%c35, %c0_2] : memref<324x32xf32, #tpu.memory_space<vmem>>, vector<2x32xf32>
    tpu.vector_store %arg13[%c35, %c0_2], %1 {strides = array<i32>} : memref<324x32xf32, #tpu.memory_space<vmem>>, vector<2x32xf32>,
    %c53 = arith.constant 53 : index
    %c0_3 = arith.constant 0 : index
    %4 = vector.load %arg13[%c53, %c0_3] : memref<324x32xf32, #tpu.memory_space<vmem>>, vector<2x32xf32>
    tpu.vector_store %arg13[%c53, %c0_3], %1 {strides = array<i32>} : memref<324x32xf32, #tpu.memory_space<vmem>>, vector<2x32xf32>,
    %c71 = arith.constant 71 : index
    %c0_4 = arith.constant 0 : index
    %5 = vector.load %arg13[%c71, %c0_4] : memref<324x32xf32, #tpu.memory_space<vmem>>, vector<2x32xf32>
    tpu.vector_store %arg13[%c71, %c0_4], %1 {strides = array<i32>} : memref<324x32xf32, #tpu.memory_space<vmem>>, vector<2x32xf32>,
    %c89 = arith.constant 89 : index
    %c0_5 = arith.constant 0 : index
    %6 = vector.load %arg13[%c89, %c0_5] : memref<324x32xf32, #tpu.memory_space<vmem>>, vector<2x32xf32>
    tpu.vector_store %arg13[%c89, %c0_5], %1 {strides = array<i32>} : memref<324x32xf32, #tpu.memory_space<vmem>>, vector<2x32xf32>,
    %c107 = arith.constant 107 : index
    %c0_6 = arith.constant 0 : index
    %7 = vector.load %arg13[%c107, %c0_6] : memref<324x32xf32, #tpu.memory_space<vmem>>, vector<2x32xf32>
    tpu.vector_store %arg13[%c107, %c0_6], %1 {strides = array<i32>} : memref<324x32xf32, #tpu.memory_space<vmem>>, vector<2x32xf32>,
    %c125 = arith.constant 125 : index
    %c0_7 = arith.constant 0 : index
    %8 = vector.load %arg13[%c125, %c0_7] : memref<324x32xf32, #tpu.memory_space<vmem>>, vector<2x32xf32>
    tpu.vector_store %arg13[%c125, %c0_7], %1 {strides = array<i32>} : memref<324x32xf32, #tpu.memory_space<vmem>>, vector<2x32xf32>,
    %c143 = arith.constant 143 : index
    %c0_8 = arith.constant 0 : index
    %9 = vector.load %arg13[%c143, %c0_8] : memref<324x32xf32, #tpu.memory_space<vmem>>, vector<2x32xf32>
    tpu.vector_store %arg13[%c143, %c0_8], %1 {strides = array<i32>} : memref<324x32xf32, #tpu.memory_space<vmem>>, vector<2x32xf32>,
    %c161 = arith.constant 161 : index
    %c0_9 = arith.constant 0 : index
    %10 = vector.load %arg13[%c161, %c0_9] : memref<324x32xf32, #tpu.memory_space<vmem>>, vector<2x32xf32>
    tpu.vector_store %arg13[%c161, %c0_9], %1 {strides = array<i32>} : memref<324x32xf32, #tpu.memory_space<vmem>>, vector<2x32xf32>,
    %c179 = arith.constant 179 : index
    %c0_10 = arith.constant 0 : index
    %11 = vector.load %arg13[%c179, %c0_10] : memref<324x32xf32, #tpu.memory_space<vmem>>, vector<2x32xf32>
    tpu.vector_store %arg13[%c179, %c0_10], %1 {strides = array<i32>} : memref<324x32xf32, #tpu.memory_space<vmem>>, vector<2x32xf32>,
    %c197 = arith.constant 197 : index
    %c0_11 = arith.constant 0 : index
    %12 = vector.load %arg13[%c197, %c0_11] : memref<324x32xf32, #tpu.memory_space<vmem>>, vector<2x32xf32>
    tpu.vector_store %arg13[%c197, %c0_11], %1 {strides = array<i32>} : memref<324x32xf32, #tpu.memory_space<vmem>>, vector<2x32xf32>,
    %c215 = arith.constant 215 : index
    %c0_12 = arith.constant 0 : index
    %13 = vector.load %arg13[%c215, %c0_12] : memref<324x32xf32, #tpu.memory_space<vmem>>, vector<2x32xf32>
    tpu.vector_store %arg13[%c215, %c0_12], %1 {strides = array<i32>} : memref<324x32xf32, #tpu.memory_space<vmem>>, vector<2x32xf32>,
    %c233 = arith.constant 233 : index
    %c0_13 = arith.constant 0 : index
    %14 = vector.load %arg13[%c233, %c0_13] : memref<324x32xf32, #tpu.memory_space<vmem>>, vector<2x32xf32>
    tpu.vector_store %arg13[%c233, %c0_13], %1 {strides = array<i32>} : memref<324x32xf32, #tpu.memory_space<vmem>>, vector<2x32xf32>,
    %c251 = arith.constant 251 : index
    %c0_14 = arith.constant 0 : index
    %15 = vector.load %arg13[%c251, %c0_14] : memref<324x32xf32, #tpu.memory_space<vmem>>, vector<2x32xf32>
    tpu.vector_store %arg13[%c251, %c0_14], %1 {strides = array<i32>} : memref<324x32xf32, #tpu.memory_space<vmem>>, vector<2x32xf32>,
    %c269 = arith.constant 269 : index
    %c0_15 = arith.constant 0 : index
    %16 = vector.load %arg13[%c269, %c0_15] : memref<324x32xf32, #tpu.memory_space<vmem>>, vector<2x32xf32>
    tpu.vector_store %arg13[%c269, %c0_15], %1 {strides = array<i32>} : memref<324x32xf32, #tpu.memory_space<vmem>>, vector<2x32xf32>,
    %c287 = arith.constant 287 : index
    %c0_16 = arith.constant 0 : index
    %17 = vector.load %arg13[%c287, %c0_16] : memref<324x32xf32, #tpu.memory_space<vmem>>, vector<2x32xf32>
    tpu.vector_store %arg13[%c287, %c0_16], %1 {strides = array<i32>} : memref<324x32xf32, #tpu.memory_space<vmem>>, vector<2x32xf32>,
    %c305 = arith.constant 305 : index
    %c0_17 = arith.constant 0 : index
    %18 = vector.load %arg13[%c305, %c0_17] : memref<324x32xf32, #tpu.memory_space<vmem>>, vector<19x32xf32>
    tpu.vector_store %arg13[%c305, %c0_17], %0 {strides = array<i32>} : memref<324x32xf32, #tpu.memory_space<vmem>>, vector<19x32xf32>,
    %cst_18 = arith.constant 0.000000e+00 : f32
    %19 = vector.broadcast %cst_18 : f32 to vector<11x32xf32>
    %cst_19 = arith.constant 0.000000e+00 : f32
    %20 = vector.broadcast %cst_19 : f32 to vector<2x32xf32>
    %c0_20 = arith.constant 0 : index
    %c0_21 = arith.constant 0 : index
    %21 = vector.load %arg14[%c0_20, %c0_21] : memref<100x32xf32, #tpu.memory_space<vmem>>, vector<11x32xf32>
    tpu.vector_store %arg14[%c0_20, %c0_21], %19 {strides = array<i32>} : memref<100x32xf32, #tpu.memory_space<vmem>>, vector<11x32xf32>,
    %c19 = arith.constant 19 : index
    %c0_22 = arith.constant 0 : index
    %22 = vector.load %arg14[%c19, %c0_22] : memref<100x32xf32, #tpu.memory_space<vmem>>, vector<2x32xf32>
    tpu.vector_store %arg14[%c19, %c0_22], %20 {strides = array<i32>} : memref<100x32xf32, #tpu.memory_space<vmem>>, vector<2x32xf32>,
    %c29 = arith.constant 29 : index
    %c0_23 = arith.constant 0 : index
    %23 = vector.load %arg14[%c29, %c0_23] : memref<100x32xf32, #tpu.memory_space<vmem>>, vector<2x32xf32>
    tpu.vector_store %arg14[%c29, %c0_23], %20 {strides = array<i32>} : memref<100x32xf32, #tpu.memory_space<vmem>>, vector<2x32xf32>,
    %c39 = arith.constant 39 : index
    %c0_24 = arith.constant 0 : index
    %24 = vector.load %arg14[%c39, %c0_24] : memref<100x32xf32, #tpu.memory_space<vmem>>, vector<2x32xf32>
    tpu.vector_store %arg14[%c39, %c0_24], %20 {strides = array<i32>} : memref<100x32xf32, #tpu.memory_space<vmem>>, vector<2x32xf32>,
    %c49 = arith.constant 49 : index
    %c0_25 = arith.constant 0 : index
    %25 = vector.load %arg14[%c49, %c0_25] : memref<100x32xf32, #tpu.memory_space<vmem>>, vector<2x32xf32>
    tpu.vector_store %arg14[%c49, %c0_25], %20 {strides = array<i32>} : memref<100x32xf32, #tpu.memory_space<vmem>>, vector<2x32xf32>,
    %c59 = arith.constant 59 : index
    %c0_26 = arith.constant 0 : index
    %26 = vector.load %arg14[%c59, %c0_26] : memref<100x32xf32, #tpu.memory_space<vmem>>, vector<2x32xf32>
    tpu.vector_store %arg14[%c59, %c0_26], %20 {strides = array<i32>} : memref<100x32xf32, #tpu.memory_space<vmem>>, vector<2x32xf32>,
    %c69 = arith.constant 69 : index
    %c0_27 = arith.constant 0 : index
    %27 = vector.load %arg14[%c69, %c0_27] : memref<100x32xf32, #tpu.memory_space<vmem>>, vector<2x32xf32>
    tpu.vector_store %arg14[%c69, %c0_27], %20 {strides = array<i32>} : memref<100x32xf32, #tpu.memory_space<vmem>>, vector<2x32xf32>,
    %c79 = arith.constant 79 : index
    %c0_28 = arith.constant 0 : index
    %28 = vector.load %arg14[%c79, %c0_28] : memref<100x32xf32, #tpu.memory_space<vmem>>, vector<2x32xf32>
    tpu.vector_store %arg14[%c79, %c0_28], %20 {strides = array<i32>} : memref<100x32xf32, #tpu.memory_space<vmem>>, vector<2x32xf32>,
    %c89_29 = arith.constant 89 : index
    %c0_30 = arith.constant 0 : index
    %29 = vector.load %arg14[%c89_29, %c0_30] : memref<100x32xf32, #tpu.memory_space<vmem>>, vector<11x32xf32>
    tpu.vector_store %arg14[%c89_29, %c0_30], %19 {strides = array<i32>} : memref<100x32xf32, #tpu.memory_space<vmem>>, vector<11x32xf32>,
    %cst_31 = arith.constant 0.000000e+00 : f32
    %30 = vector.broadcast %cst_31 : f32 to vector<7x32xf32>
    %cst_32 = arith.constant 0.000000e+00 : f32
    %31 = vector.broadcast %cst_32 : f32 to vector<2x32xf32>
    %c0_33 = arith.constant 0 : index
    %c0_34 = arith.constant 0 : index
    %32 = vector.load %arg15[%c0_33, %c0_34] : memref<36x32xf32, #tpu.memory_space<vmem>>, vector<7x32xf32>
    tpu.vector_store %arg15[%c0_33, %c0_34], %30 {strides = array<i32>} : memref<36x32xf32, #tpu.memory_space<vmem>>, vector<7x32xf32>,
    %c11 = arith.constant 11 : index
    %c0_35 = arith.constant 0 : index
    %33 = vector.load %arg15[%c11, %c0_35] : memref<36x32xf32, #tpu.memory_space<vmem>>, vector<2x32xf32>
    tpu.vector_store %arg15[%c11, %c0_35], %31 {strides = array<i32>} : memref<36x32xf32, #tpu.memory_space<vmem>>, vector<2x32xf32>,
    %c17 = arith.constant 17 : index
    %c0_36 = arith.constant 0 : index
    %34 = vector.load %arg15[%c17, %c0_36] : memref<36x32xf32, #tpu.memory_space<vmem>>, vector<2x32xf32>
    tpu.vector_store %arg15[%c17, %c0_36], %31 {strides = array<i32>} : memref<36x32xf32, #tpu.memory_space<vmem>>, vector<2x32xf32>,
    %c23 = arith.constant 23 : index
    %c0_37 = arith.constant 0 : index
    %35 = vector.load %arg15[%c23, %c0_37] : memref<36x32xf32, #tpu.memory_space<vmem>>, vector<2x32xf32>
    tpu.vector_store %arg15[%c23, %c0_37], %31 {strides = array<i32>} : memref<36x32xf32, #tpu.memory_space<vmem>>, vector<2x32xf32>,
    %c29_38 = arith.constant 29 : index
    %c0_39 = arith.constant 0 : index
    %36 = vector.load %arg15[%c29_38, %c0_39] : memref<36x32xf32, #tpu.memory_space<vmem>>, vector<7x32xf32>
    tpu.vector_store %arg15[%c29_38, %c0_39], %30 {strides = array<i32>} : memref<36x32xf32, #tpu.memory_space<vmem>>, vector<7x32xf32>,
    %c0_40 = arith.constant 0 : index
    %c0_41 = arith.constant 0 : index
    %37 = vector.load %arg3[%c0_40, %c0_41] : memref<1x32xf32, #tpu.memory_space<vmem>>, vector<1x32xf32>
    %c0_42 = arith.constant 0 : index
    %c0_43 = arith.constant 0 : index
    %c0_44 = arith.constant 0 : index
    %38 = vector.load %arg1[%c0_42, %c0_43, %c0_44] : memref<1x324x4xf32, #tpu.memory_space<vmem>>, vector<1x286x4xf32>
    %39 = vector.shape_cast %38 : vector<1x286x4xf32> to vector<286x4xf32>
    %c0_45 = arith.constant 0 : index
    %c0_46 = arith.constant 0 : index
    %c0_47 = arith.constant 0 : index
    %40 = vector.load %arg2[%c0_45, %c0_46, %c0_47] : memref<9x4x32xf32, #tpu.memory_space<vmem>>, vector<1x4x32xf32>
    %41 = vector.shape_cast %40 : vector<1x4x32xf32> to vector<4x32xf32>
    %cst_48 = arith.constant dense<0.000000e+00> : vector<286x32xf32>
    %42 = tpu.matmul %39, %41, %cst_48 {dimension_numbers = #tpu.dot_dimension_numbers<[1], [0], [0], [1], [0, 0, 1, 1], [], []>} : vector<286x4xf32>, vector<4x32xf32>, vector<286x32xf32> -> vector<286x32xf32>
    %c0_49 = arith.constant 0 : index
    %c0_50 = arith.constant 0 : index
    %43 = vector.load %arg16[%c0_49, %c0_50] : memref<288x32xf32, #tpu.memory_space<vmem>>, vector<286x32xf32>
    tpu.vector_store %arg16[%c0_49, %c0_50], %42 {strides = array<i32>} : memref<288x32xf32, #tpu.memory_space<vmem>>, vector<286x32xf32>,
    %c0_51 = arith.constant 0 : index
    %c1 = arith.constant 1 : index
    %c0_52 = arith.constant 0 : index
    %44 = vector.load %arg1[%c0_51, %c1, %c0_52] : memref<1x324x4xf32, #tpu.memory_space<vmem>>, vector<1x286x4xf32>
    %45 = vector.shape_cast %44 : vector<1x286x4xf32> to vector<286x4xf32>
    %c1_53 = arith.constant 1 : index
    %c0_54 = arith.constant 0 : index
    %c0_55 = arith.constant 0 : index
    %46 = vector.load %arg2[%c1_53, %c0_54, %c0_55] : memref<9x4x32xf32, #tpu.memory_space<vmem>>, vector<1x4x32xf32>
    %47 = vector.shape_cast %46 : vector<1x4x32xf32> to vector<4x32xf32>
    %cst_56 = arith.constant dense<0.000000e+00> : vector<286x32xf32>
    %48 = tpu.matmul %45, %47, %cst_56 {dimension_numbers = #tpu.dot_dimension_numbers<[1], [0], [0], [1], [0, 0, 1, 1], [], []>} : vector<286x4xf32>, vector<4x32xf32>, vector<286x32xf32> -> vector<286x32xf32>
    %c0_57 = arith.constant 0 : index
    %c0_58 = arith.constant 0 : index
    %49 = vector.load %arg16[%c0_57, %c0_58] : memref<288x32xf32, #tpu.memory_space<vmem>>, vector<286x32xf32>
    %50 = arith.addf %49, %48 : vector<286x32xf32>
    %c0_59 = arith.constant 0 : index
    %c0_60 = arith.constant 0 : index
    %51 = vector.load %arg16[%c0_59, %c0_60] : memref<288x32xf32, #tpu.memory_space<vmem>>, vector<286x32xf32>
    tpu.vector_store %arg16[%c0_59, %c0_60], %50 {strides = array<i32>} : memref<288x32xf32, #tpu.memory_space<vmem>>, vector<286x32xf32>,
    %c0_61 = arith.constant 0 : index
    %c2 = arith.constant 2 : index
    %c0_62 = arith.constant 0 : index
    %52 = vector.load %arg1[%c0_61, %c2, %c0_62] : memref<1x324x4xf32, #tpu.memory_space<vmem>>, vector<1x286x4xf32>
    %53 = vector.shape_cast %52 : vector<1x286x4xf32> to vector<286x4xf32>
    %c2_63 = arith.constant 2 : index
    %c0_64 = arith.constant 0 : index
    %c0_65 = arith.constant 0 : index
    %54 = vector.load %arg2[%c2_63, %c0_64, %c0_65] : memref<9x4x32xf32, #tpu.memory_space<vmem>>, vector<1x4x32xf32>
    %55 = vector.shape_cast %54 : vector<1x4x32xf32> to vector<4x32xf32>
    %cst_66 = arith.constant dense<0.000000e+00> : vector<286x32xf32>
    %56 = tpu.matmul %53, %55, %cst_66 {dimension_numbers = #tpu.dot_dimension_numbers<[1], [0], [0], [1], [0, 0, 1, 1], [], []>} : vector<286x4xf32>, vector<4x32xf32>, vector<286x32xf32> -> vector<286x32xf32>
    %c0_67 = arith.constant 0 : index
    %c0_68 = arith.constant 0 : index
    %57 = vector.load %arg16[%c0_67, %c0_68] : memref<288x32xf32, #tpu.memory_space<vmem>>, vector<286x32xf32>
    %58 = arith.addf %57, %56 : vector<286x32xf32>
    %c0_69 = arith.constant 0 : index
    %c0_70 = arith.constant 0 : index
    %59 = vector.load %arg16[%c0_69, %c0_70] : memref<288x32xf32, #tpu.memory_space<vmem>>, vector<286x32xf32>
    tpu.vector_store %arg16[%c0_69, %c0_70], %58 {strides = array<i32>} : memref<288x32xf32, #tpu.memory_space<vmem>>, vector<286x32xf32>,
    %c0_71 = arith.constant 0 : index
    %c18 = arith.constant 18 : index
    %c0_72 = arith.constant 0 : index
    %60 = vector.load %arg1[%c0_71, %c18, %c0_72] : memref<1x324x4xf32, #tpu.memory_space<vmem>>, vector<1x286x4xf32>
    %61 = vector.shape_cast %60 : vector<1x286x4xf32> to vector<286x4xf32>
    %c3 = arith.constant 3 : index
    %c0_73 = arith.constant 0 : index
    %c0_74 = arith.constant 0 : index
    %62 = vector.load %arg2[%c3, %c0_73, %c0_74] : memref<9x4x32xf32, #tpu.memory_space<vmem>>, vector<1x4x32xf32>
    %63 = vector.shape_cast %62 : vector<1x4x32xf32> to vector<4x32xf32>
    %cst_75 = arith.constant dense<0.000000e+00> : vector<286x32xf32>
    %64 = tpu.matmul %61, %63, %cst_75 {dimension_numbers = #tpu.dot_dimension_numbers<[1], [0], [0], [1], [0, 0, 1, 1], [], []>} : vector<286x4xf32>, vector<4x32xf32>, vector<286x32xf32> -> vector<286x32xf32>
    %c0_76 = arith.constant 0 : index
    %c0_77 = arith.constant 0 : index
    %65 = vector.load %arg16[%c0_76, %c0_77] : memref<288x32xf32, #tpu.memory_space<vmem>>, vector<286x32xf32>
    %66 = arith.addf %65, %64 : vector<286x32xf32>
    %c0_78 = arith.constant 0 : index
    %c0_79 = arith.constant 0 : index
    %67 = vector.load %arg16[%c0_78, %c0_79] : memref<288x32xf32, #tpu.memory_space<vmem>>, vector<286x32xf32>
    tpu.vector_store %arg16[%c0_78, %c0_79], %66 {strides = array<i32>} : memref<288x32xf32, #tpu.memory_space<vmem>>, vector<286x32xf32>,
    %c0_80 = arith.constant 0 : index
    %c19_81 = arith.constant 19 : index
    %c0_82 = arith.constant 0 : index
    %68 = vector.load %arg1[%c0_80, %c19_81, %c0_82] : memref<1x324x4xf32, #tpu.memory_space<vmem>>, vector<1x286x4xf32>
    %69 = vector.shape_cast %68 : vector<1x286x4xf32> to vector<286x4xf32>
    %c4 = arith.constant 4 : index
    %c0_83 = arith.constant 0 : index
    %c0_84 = arith.constant 0 : index
    %70 = vector.load %arg2[%c4, %c0_83, %c0_84] : memref<9x4x32xf32, #tpu.memory_space<vmem>>, vector<1x4x32xf32>
    %71 = vector.shape_cast %70 : vector<1x4x32xf32> to vector<4x32xf32>
    %cst_85 = arith.constant dense<0.000000e+00> : vector<286x32xf32>
    %72 = tpu.matmul %69, %71, %cst_85 {dimension_numbers = #tpu.dot_dimension_numbers<[1], [0], [0], [1], [0, 0, 1, 1], [], []>} : vector<286x4xf32>, vector<4x32xf32>, vector<286x32xf32> -> vector<286x32xf32>
    %c0_86 = arith.constant 0 : index
    %c0_87 = arith.constant 0 : index
    %73 = vector.load %arg16[%c0_86, %c0_87] : memref<288x32xf32, #tpu.memory_space<vmem>>, vector<286x32xf32>
    %74 = arith.addf %73, %72 : vector<286x32xf32>
    %c0_88 = arith.constant 0 : index
    %c0_89 = arith.constant 0 : index
    %75 = vector.load %arg16[%c0_88, %c0_89] : memref<288x32xf32, #tpu.memory_space<vmem>>, vector<286x32xf32>
    tpu.vector_store %arg16[%c0_88, %c0_89], %74 {strides = array<i32>} : memref<288x32xf32, #tpu.memory_space<vmem>>, vector<286x32xf32>,
    %c0_90 = arith.constant 0 : index
    %c20 = arith.constant 20 : index
    %c0_91 = arith.constant 0 : index
    %76 = vector.load %arg1[%c0_90, %c20, %c0_91] : memref<1x324x4xf32, #tpu.memory_space<vmem>>, vector<1x286x4xf32>
    %77 = vector.shape_cast %76 : vector<1x286x4xf32> to vector<286x4xf32>
    %c5 = arith.constant 5 : index
    %c0_92 = arith.constant 0 : index
    %c0_93 = arith.constant 0 : index
    %78 = vector.load %arg2[%c5, %c0_92, %c0_93] : memref<9x4x32xf32, #tpu.memory_space<vmem>>, vector<1x4x32xf32>
    %79 = vector.shape_cast %78 : vector<1x4x32xf32> to vector<4x32xf32>
    %cst_94 = arith.constant dense<0.000000e+00> : vector<286x32xf32>
    %80 = tpu.matmul %77, %79, %cst_94 {dimension_numbers = #tpu.dot_dimension_numbers<[1], [0], [0], [1], [0, 0, 1, 1], [], []>} : vector<286x4xf32>, vector<4x32xf32>, vector<286x32xf32> -> vector<286x32xf32>
    %c0_95 = arith.constant 0 : index
    %c0_96 = arith.constant 0 : index
    %81 = vector.load %arg16[%c0_95, %c0_96] : memref<288x32xf32, #tpu.memory_space<vmem>>, vector<286x32xf32>
    %82 = arith.addf %81, %80 : vector<286x32xf32>
    %c0_97 = arith.constant 0 : index
    %c0_98 = arith.constant 0 : index
    %83 = vector.load %arg16[%c0_97, %c0_98] : memref<288x32xf32, #tpu.memory_space<vmem>>, vector<286x32xf32>
    tpu.vector_store %arg16[%c0_97, %c0_98], %82 {strides = array<i32>} : memref<288x32xf32, #tpu.memory_space<vmem>>, vector<286x32xf32>,
    %c0_99 = arith.constant 0 : index
    %c36 = arith.constant 36 : index
    %c0_100 = arith.constant 0 : index
    %84 = vector.load %arg1[%c0_99, %c36, %c0_100] : memref<1x324x4xf32, #tpu.memory_space<vmem>>, vector<1x286x4xf32>
    %85 = vector.shape_cast %84 : vector<1x286x4xf32> to vector<286x4xf32>
    %c6 = arith.constant 6 : index
    %c0_101 = arith.constant 0 : index
    %c0_102 = arith.constant 0 : index
    %86 = vector.load %arg2[%c6, %c0_101, %c0_102] : memref<9x4x32xf32, #tpu.memory_space<vmem>>, vector<1x4x32xf32>
    %87 = vector.shape_cast %86 : vector<1x4x32xf32> to vector<4x32xf32>
    %cst_103 = arith.constant dense<0.000000e+00> : vector<286x32xf32>
    %88 = tpu.matmul %85, %87, %cst_103 {dimension_numbers = #tpu.dot_dimension_numbers<[1], [0], [0], [1], [0, 0, 1, 1], [], []>} : vector<286x4xf32>, vector<4x32xf32>, vector<286x32xf32> -> vector<286x32xf32>
    %c0_104 = arith.constant 0 : index
    %c0_105 = arith.constant 0 : index
    %89 = vector.load %arg16[%c0_104, %c0_105] : memref<288x32xf32, #tpu.memory_space<vmem>>, vector<286x32xf32>
    %90 = arith.addf %89, %88 : vector<286x32xf32>
    %c0_106 = arith.constant 0 : index
    %c0_107 = arith.constant 0 : index
    %91 = vector.load %arg16[%c0_106, %c0_107] : memref<288x32xf32, #tpu.memory_space<vmem>>, vector<286x32xf32>
    tpu.vector_store %arg16[%c0_106, %c0_107], %90 {strides = array<i32>} : memref<288x32xf32, #tpu.memory_space<vmem>>, vector<286x32xf32>,
    %c0_108 = arith.constant 0 : index
    %c37 = arith.constant 37 : index
    %c0_109 = arith.constant 0 : index
    %92 = vector.load %arg1[%c0_108, %c37, %c0_109] : memref<1x324x4xf32, #tpu.memory_space<vmem>>, vector<1x286x4xf32>
    %93 = vector.shape_cast %92 : vector<1x286x4xf32> to vector<286x4xf32>
    %c7 = arith.constant 7 : index
    %c0_110 = arith.constant 0 : index
    %c0_111 = arith.constant 0 : index
    %94 = vector.load %arg2[%c7, %c0_110, %c0_111] : memref<9x4x32xf32, #tpu.memory_space<vmem>>, vector<1x4x32xf32>
    %95 = vector.shape_cast %94 : vector<1x4x32xf32> to vector<4x32xf32>
    %cst_112 = arith.constant dense<0.000000e+00> : vector<286x32xf32>
    %96 = tpu.matmul %93, %95, %cst_112 {dimension_numbers = #tpu.dot_dimension_numbers<[1], [0], [0], [1], [0, 0, 1, 1], [], []>} : vector<286x4xf32>, vector<4x32xf32>, vector<286x32xf32> -> vector<286x32xf32>
    %c0_113 = arith.constant 0 : index
    %c0_114 = arith.constant 0 : index
    %97 = vector.load %arg16[%c0_113, %c0_114] : memref<288x32xf32, #tpu.memory_space<vmem>>, vector<286x32xf32>
    %98 = arith.addf %97, %96 : vector<286x32xf32>
    %c0_115 = arith.constant 0 : index
    %c0_116 = arith.constant 0 : index
    %99 = vector.load %arg16[%c0_115, %c0_116] : memref<288x32xf32, #tpu.memory_space<vmem>>, vector<286x32xf32>
    tpu.vector_store %arg16[%c0_115, %c0_116], %98 {strides = array<i32>} : memref<288x32xf32, #tpu.memory_space<vmem>>, vector<286x32xf32>,
    %c0_117 = arith.constant 0 : index
    %c38 = arith.constant 38 : index
    %c0_118 = arith.constant 0 : index
    %100 = vector.load %arg1[%c0_117, %c38, %c0_118] : memref<1x324x4xf32, #tpu.memory_space<vmem>>, vector<1x286x4xf32>
    %101 = vector.shape_cast %100 : vector<1x286x4xf32> to vector<286x4xf32>
    %c8 = arith.constant 8 : index
    %c0_119 = arith.constant 0 : index
    %c0_120 = arith.constant 0 : index
    %102 = vector.load %arg2[%c8, %c0_119, %c0_120] : memref<9x4x32xf32, #tpu.memory_space<vmem>>, vector<1x4x32xf32>
    %103 = vector.shape_cast %102 : vector<1x4x32xf32> to vector<4x32xf32>
    %cst_121 = arith.constant dense<0.000000e+00> : vector<286x32xf32>
    %104 = tpu.matmul %101, %103, %cst_121 {dimension_numbers = #tpu.dot_dimension_numbers<[1], [0], [0], [1], [0, 0, 1, 1], [], []>} : vector<286x4xf32>, vector<4x32xf32>, vector<286x32xf32> -> vector<286x32xf32>
    %c0_122 = arith.constant 0 : index
    %c0_123 = arith.constant 0 : index
    %105 = vector.load %arg16[%c0_122, %c0_123] : memref<288x32xf32, #tpu.memory_space<vmem>>, vector<286x32xf32>
    %106 = arith.addf %105, %104 : vector<286x32xf32>
    %c0_124 = arith.constant 0 : index
    %c0_125 = arith.constant 0 : index
    %107 = vector.load %arg16[%c0_124, %c0_125] : memref<288x32xf32, #tpu.memory_space<vmem>>, vector<286x32xf32>
    tpu.vector_store %arg16[%c0_124, %c0_125], %106 {strides = array<i32>} : memref<288x32xf32, #tpu.memory_space<vmem>>, vector<286x32xf32>,
    %c0_126 = arith.constant 0 : index
    %c0_127 = arith.constant 0 : index
    %108 = vector.load %arg16[%c0_126, %c0_127] : memref<288x32xf32, #tpu.memory_space<vmem>>, vector<16x32xf32>
    %109 = vector.broadcast %37 : vector<1x32xf32> to vector<16x32xf32>
    %110 = arith.addf %108, %109 : vector<16x32xf32>
    %cst_128 = arith.constant 0.000000e+00 : f32
    %111 = vector.broadcast %cst_128 : f32 to vector<16x32xf32>
    %112 = arith.maximumf %110, %111 : vector<16x32xf32>
    %c19_129 = arith.constant 19 : index
    %c0_130 = arith.constant 0 : index
    %113 = vector.load %arg13[%c19_129, %c0_130] : memref<324x32xf32, #tpu.memory_space<vmem>>, vector<16x32xf32>
    tpu.vector_store %arg13[%c19_129, %c0_130], %112 {strides = array<i32>} : memref<324x32xf32, #tpu.memory_space<vmem>>, vector<16x32xf32>,
    %c18_131 = arith.constant 18 : index
    %c0_132 = arith.constant 0 : index
    %114 = vector.load %arg16[%c18_131, %c0_132] : memref<288x32xf32, #tpu.memory_space<vmem>>, vector<16x32xf32>
    %115 = vector.broadcast %37 : vector<1x32xf32> to vector<16x32xf32>
    %116 = arith.addf %114, %115 : vector<16x32xf32>
    %cst_133 = arith.constant 0.000000e+00 : f32
    %117 = vector.broadcast %cst_133 : f32 to vector<16x32xf32>
    %118 = arith.maximumf %116, %117 : vector<16x32xf32>
    %c37_134 = arith.constant 37 : index
    %c0_135 = arith.constant 0 : index
    %119 = vector.load %arg13[%c37_134, %c0_135] : memref<324x32xf32, #tpu.memory_space<vmem>>, vector<16x32xf32>
    tpu.vector_store %arg13[%c37_134, %c0_135], %118 {strides = array<i32>} : memref<324x32xf32, #tpu.memory_space<vmem>>, vector<16x32xf32>,
    %c36_136 = arith.constant 36 : index
    %c0_137 = arith.constant 0 : index
    %120 = vector.load %arg16[%c36_136, %c0_137] : memref<288x32xf32, #tpu.memory_space<vmem>>, vector<16x32xf32>
    %121 = vector.broadcast %37 : vector<1x32xf32> to vector<16x32xf32>
    %122 = arith.addf %120, %121 : vector<16x32xf32>
    %cst_138 = arith.constant 0.000000e+00 : f32
    %123 = vector.broadcast %cst_138 : f32 to vector<16x32xf32>
    %124 = arith.maximumf %122, %123 : vector<16x32xf32>
    %c55 = arith.constant 55 : index
    %c0_139 = arith.constant 0 : index
    %125 = vector.load %arg13[%c55, %c0_139] : memref<324x32xf32, #tpu.memory_space<vmem>>, vector<16x32xf32>
    tpu.vector_store %arg13[%c55, %c0_139], %124 {strides = array<i32>} : memref<324x32xf32, #tpu.memory_space<vmem>>, vector<16x32xf32>,
    %c54 = arith.constant 54 : index
    %c0_140 = arith.constant 0 : index
    %126 = vector.load %arg16[%c54, %c0_140] : memref<288x32xf32, #tpu.memory_space<vmem>>, vector<16x32xf32>
    %127 = vector.broadcast %37 : vector<1x32xf32> to vector<16x32xf32>
    %128 = arith.addf %126, %127 : vector<16x32xf32>
    %cst_141 = arith.constant 0.000000e+00 : f32
    %129 = vector.broadcast %cst_141 : f32 to vector<16x32xf32>
    %130 = arith.maximumf %128, %129 : vector<16x32xf32>
    %c73 = arith.constant 73 : index
    %c0_142 = arith.constant 0 : index
    %131 = vector.load %arg13[%c73, %c0_142] : memref<324x32xf32, #tpu.memory_space<vmem>>, vector<16x32xf32>
    tpu.vector_store %arg13[%c73, %c0_142], %130 {strides = array<i32>} : memref<324x32xf32, #tpu.memory_space<vmem>>, vector<16x32xf32>,
    %c72 = arith.constant 72 : index
    %c0_143 = arith.constant 0 : index
    %132 = vector.load %arg16[%c72, %c0_143] : memref<288x32xf32, #tpu.memory_space<vmem>>, vector<16x32xf32>
    %133 = vector.broadcast %37 : vector<1x32xf32> to vector<16x32xf32>
    %134 = arith.addf %132, %133 : vector<16x32xf32>
    %cst_144 = arith.constant 0.000000e+00 : f32
    %135 = vector.broadcast %cst_144 : f32 to vector<16x32xf32>
    %136 = arith.maximumf %134, %135 : vector<16x32xf32>
    %c91 = arith.constant 91 : index
    %c0_145 = arith.constant 0 : index
    %137 = vector.load %arg13[%c91, %c0_145] : memref<324x32xf32, #tpu.memory_space<vmem>>, vector<16x32xf32>
    tpu.vector_store %arg13[%c91, %c0_145], %136 {strides = array<i32>} : memref<324x32xf32, #tpu.memory_space<vmem>>, vector<16x32xf32>,
    %c90 = arith.constant 90 : index
    %c0_146 = arith.constant 0 : index
    %138 = vector.load %arg16[%c90, %c0_146] : memref<288x32xf32, #tpu.memory_space<vmem>>, vector<16x32xf32>
    %139 = vector.broadcast %37 : vector<1x32xf32> to vector<16x32xf32>
    %140 = arith.addf %138, %139 : vector<16x32xf32>
    %cst_147 = arith.constant 0.000000e+00 : f32
    %141 = vector.broadcast %cst_147 : f32 to vector<16x32xf32>
    %142 = arith.maximumf %140, %141 : vector<16x32xf32>
    %c109 = arith.constant 109 : index
    %c0_148 = arith.constant 0 : index
    %143 = vector.load %arg13[%c109, %c0_148] : memref<324x32xf32, #tpu.memory_space<vmem>>, vector<16x32xf32>
    tpu.vector_store %arg13[%c109, %c0_148], %142 {strides = array<i32>} : memref<324x32xf32, #tpu.memory_space<vmem>>, vector<16x32xf32>,
    %c108 = arith.constant 108 : index
    %c0_149 = arith.constant 0 : index
    %144 = vector.load %arg16[%c108, %c0_149] : memref<288x32xf32, #tpu.memory_space<vmem>>, vector<16x32xf32>
    %145 = vector.broadcast %37 : vector<1x32xf32> to vector<16x32xf32>
    %146 = arith.addf %144, %145 : vector<16x32xf32>
    %cst_150 = arith.constant 0.000000e+00 : f32
    %147 = vector.broadcast %cst_150 : f32 to vector<16x32xf32>
    %148 = arith.maximumf %146, %147 : vector<16x32xf32>
    %c127 = arith.constant 127 : index
    %c0_151 = arith.constant 0 : index
    %149 = vector.load %arg13[%c127, %c0_151] : memref<324x32xf32, #tpu.memory_space<vmem>>, vector<16x32xf32>
    tpu.vector_store %arg13[%c127, %c0_151], %148 {strides = array<i32>} : memref<324x32xf32, #tpu.memory_space<vmem>>, vector<16x32xf32>,
    %c126 = arith.constant 126 : index
    %c0_152 = arith.constant 0 : index
    %150 = vector.load %arg16[%c126, %c0_152] : memref<288x32xf32, #tpu.memory_space<vmem>>, vector<16x32xf32>
    %151 = vector.broadcast %37 : vector<1x32xf32> to vector<16x32xf32>
    %152 = arith.addf %150, %151 : vector<16x32xf32>
    %cst_153 = arith.constant 0.000000e+00 : f32
    %153 = vector.broadcast %cst_153 : f32 to vector<16x32xf32>
    %154 = arith.maximumf %152, %153 : vector<16x32xf32>
    %c145 = arith.constant 145 : index
    %c0_154 = arith.constant 0 : index
    %155 = vector.load %arg13[%c145, %c0_154] : memref<324x32xf32, #tpu.memory_space<vmem>>, vector<16x32xf32>
    tpu.vector_store %arg13[%c145, %c0_154], %154 {strides = array<i32>} : memref<324x32xf32, #tpu.memory_space<vmem>>, vector<16x32xf32>,
    %c144 = arith.constant 144 : index
    %c0_155 = arith.constant 0 : index
    %156 = vector.load %arg16[%c144, %c0_155] : memref<288x32xf32, #tpu.memory_space<vmem>>, vector<16x32xf32>
    %157 = vector.broadcast %37 : vector<1x32xf32> to vector<16x32xf32>
    %158 = arith.addf %156, %157 : vector<16x32xf32>
    %cst_156 = arith.constant 0.000000e+00 : f32
    %159 = vector.broadcast %cst_156 : f32 to vector<16x32xf32>
    %160 = arith.maximumf %158, %159 : vector<16x32xf32>
    %c163 = arith.constant 163 : index
    %c0_157 = arith.constant 0 : index
    %161 = vector.load %arg13[%c163, %c0_157] : memref<324x32xf32, #tpu.memory_space<vmem>>, vector<16x32xf32>
    tpu.vector_store %arg13[%c163, %c0_157], %160 {strides = array<i32>} : memref<324x32xf32, #tpu.memory_space<vmem>>, vector<16x32xf32>,
    %c162 = arith.constant 162 : index
    %c0_158 = arith.constant 0 : index
    %162 = vector.load %arg16[%c162, %c0_158] : memref<288x32xf32, #tpu.memory_space<vmem>>, vector<16x32xf32>
    %163 = vector.broadcast %37 : vector<1x32xf32> to vector<16x32xf32>
    %164 = arith.addf %162, %163 : vector<16x32xf32>
    %cst_159 = arith.constant 0.000000e+00 : f32
    %165 = vector.broadcast %cst_159 : f32 to vector<16x32xf32>
    %166 = arith.maximumf %164, %165 : vector<16x32xf32>
    %c181 = arith.constant 181 : index
    %c0_160 = arith.constant 0 : index
    %167 = vector.load %arg13[%c181, %c0_160] : memref<324x32xf32, #tpu.memory_space<vmem>>, vector<16x32xf32>
    tpu.vector_store %arg13[%c181, %c0_160], %166 {strides = array<i32>} : memref<324x32xf32, #tpu.memory_space<vmem>>, vector<16x32xf32>,
    %c180 = arith.constant 180 : index
    %c0_161 = arith.constant 0 : index
    %168 = vector.load %arg16[%c180, %c0_161] : memref<288x32xf32, #tpu.memory_space<vmem>>, vector<16x32xf32>
    %169 = vector.broadcast %37 : vector<1x32xf32> to vector<16x32xf32>
    %170 = arith.addf %168, %169 : vector<16x32xf32>
    %cst_162 = arith.constant 0.000000e+00 : f32
    %171 = vector.broadcast %cst_162 : f32 to vector<16x32xf32>
    %172 = arith.maximumf %170, %171 : vector<16x32xf32>
    %c199 = arith.constant 199 : index
    %c0_163 = arith.constant 0 : index
    %173 = vector.load %arg13[%c199, %c0_163] : memref<324x32xf32, #tpu.memory_space<vmem>>, vector<16x32xf32>
    tpu.vector_store %arg13[%c199, %c0_163], %172 {strides = array<i32>} : memref<324x32xf32, #tpu.memory_space<vmem>>, vector<16x32xf32>,
    %c198 = arith.constant 198 : index
    %c0_164 = arith.constant 0 : index
    %174 = vector.load %arg16[%c198, %c0_164] : memref<288x32xf32, #tpu.memory_space<vmem>>, vector<16x32xf32>
    %175 = vector.broadcast %37 : vector<1x32xf32> to vector<16x32xf32>
    %176 = arith.addf %174, %175 : vector<16x32xf32>
    %cst_165 = arith.constant 0.000000e+00 : f32
    %177 = vector.broadcast %cst_165 : f32 to vector<16x32xf32>
    %178 = arith.maximumf %176, %177 : vector<16x32xf32>
    %c217 = arith.constant 217 : index
    %c0_166 = arith.constant 0 : index
    %179 = vector.load %arg13[%c217, %c0_166] : memref<324x32xf32, #tpu.memory_space<vmem>>, vector<16x32xf32>
    tpu.vector_store %arg13[%c217, %c0_166], %178 {strides = array<i32>} : memref<324x32xf32, #tpu.memory_space<vmem>>, vector<16x32xf32>,
    %c216 = arith.constant 216 : index
    %c0_167 = arith.constant 0 : index
    %180 = vector.load %arg16[%c216, %c0_167] : memref<288x32xf32, #tpu.memory_space<vmem>>, vector<16x32xf32>
    %181 = vector.broadcast %37 : vector<1x32xf32> to vector<16x32xf32>
    %182 = arith.addf %180, %181 : vector<16x32xf32>
    %cst_168 = arith.constant 0.000000e+00 : f32
    %183 = vector.broadcast %cst_168 : f32 to vector<16x32xf32>
    %184 = arith.maximumf %182, %183 : vector<16x32xf32>
    %c235 = arith.constant 235 : index
    %c0_169 = arith.constant 0 : index
    %185 = vector.load %arg13[%c235, %c0_169] : memref<324x32xf32, #tpu.memory_space<vmem>>, vector<16x32xf32>
    tpu.vector_store %arg13[%c235, %c0_169], %184 {strides = array<i32>} : memref<324x32xf32, #tpu.memory_space<vmem>>, vector<16x32xf32>,
    %c234 = arith.constant 234 : index
    %c0_170 = arith.constant 0 : index
    %186 = vector.load %arg16[%c234, %c0_170] : memref<288x32xf32, #tpu.memory_space<vmem>>, vector<16x32xf32>
    %187 = vector.broadcast %37 : vector<1x32xf32> to vector<16x32xf32>
    %188 = arith.addf %186, %187 : vector<16x32xf32>
    %cst_171 = arith.constant 0.000000e+00 : f32
    %189 = vector.broadcast %cst_171 : f32 to vector<16x32xf32>
    %190 = arith.maximumf %188, %189 : vector<16x32xf32>
    %c253 = arith.constant 253 : index
    %c0_172 = arith.constant 0 : index
    %191 = vector.load %arg13[%c253, %c0_172] : memref<324x32xf32, #tpu.memory_space<vmem>>, vector<16x32xf32>
    tpu.vector_store %arg13[%c253, %c0_172], %190 {strides = array<i32>} : memref<324x32xf32, #tpu.memory_space<vmem>>, vector<16x32xf32>,
    %c252 = arith.constant 252 : index
    %c0_173 = arith.constant 0 : index
    %192 = vector.load %arg16[%c252, %c0_173] : memref<288x32xf32, #tpu.memory_space<vmem>>, vector<16x32xf32>
    %193 = vector.broadcast %37 : vector<1x32xf32> to vector<16x32xf32>
    %194 = arith.addf %192, %193 : vector<16x32xf32>
    %cst_174 = arith.constant 0.000000e+00 : f32
    %195 = vector.broadcast %cst_174 : f32 to vector<16x32xf32>
    %196 = arith.maximumf %194, %195 : vector<16x32xf32>
    %c271 = arith.constant 271 : index
    %c0_175 = arith.constant 0 : index
    %197 = vector.load %arg13[%c271, %c0_175] : memref<324x32xf32, #tpu.memory_space<vmem>>, vector<16x32xf32>
    tpu.vector_store %arg13[%c271, %c0_175], %196 {strides = array<i32>} : memref<324x32xf32, #tpu.memory_space<vmem>>, vector<16x32xf32>,
    %c270 = arith.constant 270 : index
    %c0_176 = arith.constant 0 : index
    %198 = vector.load %arg16[%c270, %c0_176] : memref<288x32xf32, #tpu.memory_space<vmem>>, vector<16x32xf32>
    %199 = vector.broadcast %37 : vector<1x32xf32> to vector<16x32xf32>
    %200 = arith.addf %198, %199 : vector<16x32xf32>
    %cst_177 = arith.constant 0.000000e+00 : f32
    %201 = vector.broadcast %cst_177 : f32 to vector<16x32xf32>
    %202 = arith.maximumf %200, %201 : vector<16x32xf32>
    %c289 = arith.constant 289 : index
    %c0_178 = arith.constant 0 : index
    %203 = vector.load %arg13[%c289, %c0_178] : memref<324x32xf32, #tpu.memory_space<vmem>>, vector<16x32xf32>
    tpu.vector_store %arg13[%c289, %c0_178], %202 {strides = array<i32>} : memref<324x32xf32, #tpu.memory_space<vmem>>, vector<16x32xf32>,
    %c0_179 = arith.constant 0 : index
    %c0_180 = arith.constant 0 : index
    %204 = vector.load %arg5[%c0_179, %c0_180] : memref<1x32xf32, #tpu.memory_space<vmem>>, vector<1x32xf32>
    %c0_181 = arith.constant 0 : index
    %c0_182 = arith.constant 0 : index
    %205 = tpu.strided_load %arg13[%c0_181, %c0_182] {strides = array<i32: 2, 1>} : memref<324x32xf32, #tpu.memory_space<vmem>>, vector<134x32xf32>
    %c0_183 = arith.constant 0 : index
    %c0_184 = arith.constant 0 : index
    %c0_185 = arith.constant 0 : index
    %206 = vector.load %arg4[%c0_183, %c0_184, %c0_185] : memref<9x32x32xf32, #tpu.memory_space<vmem>>, vector<1x32x32xf32>
    %207 = vector.shape_cast %206 : vector<1x32x32xf32> to vector<32x32xf32>
    %cst_186 = arith.constant dense<0.000000e+00> : vector<134x32xf32>
    %208 = tpu.matmul %205, %207, %cst_186 {dimension_numbers = #tpu.dot_dimension_numbers<[1], [0], [0], [1], [0, 0, 1, 1], [], []>} : vector<134x32xf32>, vector<32x32xf32>, vector<134x32xf32> -> vector<134x32xf32>
    %c0_187 = arith.constant 0 : index
    %c0_188 = arith.constant 0 : index
    %209 = vector.load %arg16[%c0_187, %c0_188] : memref<288x32xf32, #tpu.memory_space<vmem>>, vector<134x32xf32>
    tpu.vector_store %arg16[%c0_187, %c0_188], %208 {strides = array<i32>} : memref<288x32xf32, #tpu.memory_space<vmem>>, vector<134x32xf32>,
    %c1_189 = arith.constant 1 : index
    %c0_190 = arith.constant 0 : index
    %210 = tpu.strided_load %arg13[%c1_189, %c0_190] {strides = array<i32: 2, 1>} : memref<324x32xf32, #tpu.memory_space<vmem>>, vector<134x32xf32>
    %c1_191 = arith.constant 1 : index
    %c0_192 = arith.constant 0 : index
    %c0_193 = arith.constant 0 : index
    %211 = vector.load %arg4[%c1_191, %c0_192, %c0_193] : memref<9x32x32xf32, #tpu.memory_space<vmem>>, vector<1x32x32xf32>
    %212 = vector.shape_cast %211 : vector<1x32x32xf32> to vector<32x32xf32>
    %cst_194 = arith.constant dense<0.000000e+00> : vector<134x32xf32>
    %213 = tpu.matmul %210, %212, %cst_194 {dimension_numbers = #tpu.dot_dimension_numbers<[1], [0], [0], [1], [0, 0, 1, 1], [], []>} : vector<134x32xf32>, vector<32x32xf32>, vector<134x32xf32> -> vector<134x32xf32>
    %c0_195 = arith.constant 0 : index
    %c0_196 = arith.constant 0 : index
    %214 = vector.load %arg16[%c0_195, %c0_196] : memref<288x32xf32, #tpu.memory_space<vmem>>, vector<134x32xf32>
    %215 = arith.addf %214, %213 : vector<134x32xf32>
    %c0_197 = arith.constant 0 : index
    %c0_198 = arith.constant 0 : index
    %216 = vector.load %arg16[%c0_197, %c0_198] : memref<288x32xf32, #tpu.memory_space<vmem>>, vector<134x32xf32>
    tpu.vector_store %arg16[%c0_197, %c0_198], %215 {strides = array<i32>} : memref<288x32xf32, #tpu.memory_space<vmem>>, vector<134x32xf32>,
    %c2_199 = arith.constant 2 : index
    %c0_200 = arith.constant 0 : index
    %217 = tpu.strided_load %arg13[%c2_199, %c0_200] {strides = array<i32: 2, 1>} : memref<324x32xf32, #tpu.memory_space<vmem>>, vector<134x32xf32>
    %c2_201 = arith.constant 2 : index
    %c0_202 = arith.constant 0 : index
    %c0_203 = arith.constant 0 : index
    %218 = vector.load %arg4[%c2_201, %c0_202, %c0_203] : memref<9x32x32xf32, #tpu.memory_space<vmem>>, vector<1x32x32xf32>
    %219 = vector.shape_cast %218 : vector<1x32x32xf32> to vector<32x32xf32>
    %cst_204 = arith.constant dense<0.000000e+00> : vector<134x32xf32>
    %220 = tpu.matmul %217, %219, %cst_204 {dimension_numbers = #tpu.dot_dimension_numbers<[1], [0], [0], [1], [0, 0, 1, 1], [], []>} : vector<134x32xf32>, vector<32x32xf32>, vector<134x32xf32> -> vector<134x32xf32>
    %c0_205 = arith.constant 0 : index
    %c0_206 = arith.constant 0 : index
    %221 = vector.load %arg16[%c0_205, %c0_206] : memref<288x32xf32, #tpu.memory_space<vmem>>, vector<134x32xf32>
    %222 = arith.addf %221, %220 : vector<134x32xf32>
    %c0_207 = arith.constant 0 : index
    %c0_208 = arith.constant 0 : index
    %223 = vector.load %arg16[%c0_207, %c0_208] : memref<288x32xf32, #tpu.memory_space<vmem>>, vector<134x32xf32>
    tpu.vector_store %arg16[%c0_207, %c0_208], %222 {strides = array<i32>} : memref<288x32xf32, #tpu.memory_space<vmem>>, vector<134x32xf32>,
    %c18_209 = arith.constant 18 : index
    %c0_210 = arith.constant 0 : index
    %224 = tpu.strided_load %arg13[%c18_209, %c0_210] {strides = array<i32: 2, 1>} : memref<324x32xf32, #tpu.memory_space<vmem>>, vector<134x32xf32>
    %c3_211 = arith.constant 3 : index
    %c0_212 = arith.constant 0 : index
    %c0_213 = arith.constant 0 : index
    %225 = vector.load %arg4[%c3_211, %c0_212, %c0_213] : memref<9x32x32xf32, #tpu.memory_space<vmem>>, vector<1x32x32xf32>
    %226 = vector.shape_cast %225 : vector<1x32x32xf32> to vector<32x32xf32>
    %cst_214 = arith.constant dense<0.000000e+00> : vector<134x32xf32>
    %227 = tpu.matmul %224, %226, %cst_214 {dimension_numbers = #tpu.dot_dimension_numbers<[1], [0], [0], [1], [0, 0, 1, 1], [], []>} : vector<134x32xf32>, vector<32x32xf32>, vector<134x32xf32> -> vector<134x32xf32>
    %c0_215 = arith.constant 0 : index
    %c0_216 = arith.constant 0 : index
    %228 = vector.load %arg16[%c0_215, %c0_216] : memref<288x32xf32, #tpu.memory_space<vmem>>, vector<134x32xf32>
    %229 = arith.addf %228, %227 : vector<134x32xf32>
    %c0_217 = arith.constant 0 : index
    %c0_218 = arith.constant 0 : index
    %230 = vector.load %arg16[%c0_217, %c0_218] : memref<288x32xf32, #tpu.memory_space<vmem>>, vector<134x32xf32>
    tpu.vector_store %arg16[%c0_217, %c0_218], %229 {strides = array<i32>} : memref<288x32xf32, #tpu.memory_space<vmem>>, vector<134x32xf32>,
    %c19_219 = arith.constant 19 : index
    %c0_220 = arith.constant 0 : index
    %231 = tpu.strided_load %arg13[%c19_219, %c0_220] {strides = array<i32: 2, 1>} : memref<324x32xf32, #tpu.memory_space<vmem>>, vector<134x32xf32>
    %c4_221 = arith.constant 4 : index
    %c0_222 = arith.constant 0 : index
    %c0_223 = arith.constant 0 : index
    %232 = vector.load %arg4[%c4_221, %c0_222, %c0_223] : memref<9x32x32xf32, #tpu.memory_space<vmem>>, vector<1x32x32xf32>
    %233 = vector.shape_cast %232 : vector<1x32x32xf32> to vector<32x32xf32>
    %cst_224 = arith.constant dense<0.000000e+00> : vector<134x32xf32>
    %234 = tpu.matmul %231, %233, %cst_224 {dimension_numbers = #tpu.dot_dimension_numbers<[1], [0], [0], [1], [0, 0, 1, 1], [], []>} : vector<134x32xf32>, vector<32x32xf32>, vector<134x32xf32> -> vector<134x32xf32>
    %c0_225 = arith.constant 0 : index
    %c0_226 = arith.constant 0 : index
    %235 = vector.load %arg16[%c0_225, %c0_226] : memref<288x32xf32, #tpu.memory_space<vmem>>, vector<134x32xf32>
    %236 = arith.addf %235, %234 : vector<134x32xf32>
    %c0_227 = arith.constant 0 : index
    %c0_228 = arith.constant 0 : index
    %237 = vector.load %arg16[%c0_227, %c0_228] : memref<288x32xf32, #tpu.memory_space<vmem>>, vector<134x32xf32>
    tpu.vector_store %arg16[%c0_227, %c0_228], %236 {strides = array<i32>} : memref<288x32xf32, #tpu.memory_space<vmem>>, vector<134x32xf32>,
    %c20_229 = arith.constant 20 : index
    %c0_230 = arith.constant 0 : index
    %238 = tpu.strided_load %arg13[%c20_229, %c0_230] {strides = array<i32: 2, 1>} : memref<324x32xf32, #tpu.memory_space<vmem>>, vector<134x32xf32>
    %c5_231 = arith.constant 5 : index
    %c0_232 = arith.constant 0 : index
    %c0_233 = arith.constant 0 : index
    %239 = vector.load %arg4[%c5_231, %c0_232, %c0_233] : memref<9x32x32xf32, #tpu.memory_space<vmem>>, vector<1x32x32xf32>
    %240 = vector.shape_cast %239 : vector<1x32x32xf32> to vector<32x32xf32>
    %cst_234 = arith.constant dense<0.000000e+00> : vector<134x32xf32>
    %241 = tpu.matmul %238, %240, %cst_234 {dimension_numbers = #tpu.dot_dimension_numbers<[1], [0], [0], [1], [0, 0, 1, 1], [], []>} : vector<134x32xf32>, vector<32x32xf32>, vector<134x32xf32> -> vector<134x32xf32>
    %c0_235 = arith.constant 0 : index
    %c0_236 = arith.constant 0 : index
    %242 = vector.load %arg16[%c0_235, %c0_236] : memref<288x32xf32, #tpu.memory_space<vmem>>, vector<134x32xf32>
    %243 = arith.addf %242, %241 : vector<134x32xf32>
    %c0_237 = arith.constant 0 : index
    %c0_238 = arith.constant 0 : index
    %244 = vector.load %arg16[%c0_237, %c0_238] : memref<288x32xf32, #tpu.memory_space<vmem>>, vector<134x32xf32>
    tpu.vector_store %arg16[%c0_237, %c0_238], %243 {strides = array<i32>} : memref<288x32xf32, #tpu.memory_space<vmem>>, vector<134x32xf32>,
    %c36_239 = arith.constant 36 : index
    %c0_240 = arith.constant 0 : index
    %245 = tpu.strided_load %arg13[%c36_239, %c0_240] {strides = array<i32: 2, 1>} : memref<324x32xf32, #tpu.memory_space<vmem>>, vector<134x32xf32>
    %c6_241 = arith.constant 6 : index
    %c0_242 = arith.constant 0 : index
    %c0_243 = arith.constant 0 : index
    %246 = vector.load %arg4[%c6_241, %c0_242, %c0_243] : memref<9x32x32xf32, #tpu.memory_space<vmem>>, vector<1x32x32xf32>
    %247 = vector.shape_cast %246 : vector<1x32x32xf32> to vector<32x32xf32>
    %cst_244 = arith.constant dense<0.000000e+00> : vector<134x32xf32>
    %248 = tpu.matmul %245, %247, %cst_244 {dimension_numbers = #tpu.dot_dimension_numbers<[1], [0], [0], [1], [0, 0, 1, 1], [], []>} : vector<134x32xf32>, vector<32x32xf32>, vector<134x32xf32> -> vector<134x32xf32>
    %c0_245 = arith.constant 0 : index
    %c0_246 = arith.constant 0 : index
    %249 = vector.load %arg16[%c0_245, %c0_246] : memref<288x32xf32, #tpu.memory_space<vmem>>, vector<134x32xf32>
    %250 = arith.addf %249, %248 : vector<134x32xf32>
    %c0_247 = arith.constant 0 : index
    %c0_248 = arith.constant 0 : index
    %251 = vector.load %arg16[%c0_247, %c0_248] : memref<288x32xf32, #tpu.memory_space<vmem>>, vector<134x32xf32>
    tpu.vector_store %arg16[%c0_247, %c0_248], %250 {strides = array<i32>} : memref<288x32xf32, #tpu.memory_space<vmem>>, vector<134x32xf32>,
    %c37_249 = arith.constant 37 : index
    %c0_250 = arith.constant 0 : index
    %252 = tpu.strided_load %arg13[%c37_249, %c0_250] {strides = array<i32: 2, 1>} : memref<324x32xf32, #tpu.memory_space<vmem>>, vector<134x32xf32>
    %c7_251 = arith.constant 7 : index
    %c0_252 = arith.constant 0 : index
    %c0_253 = arith.constant 0 : index
    %253 = vector.load %arg4[%c7_251, %c0_252, %c0_253] : memref<9x32x32xf32, #tpu.memory_space<vmem>>, vector<1x32x32xf32>
    %254 = vector.shape_cast %253 : vector<1x32x32xf32> to vector<32x32xf32>
    %cst_254 = arith.constant dense<0.000000e+00> : vector<134x32xf32>
    %255 = tpu.matmul %252, %254, %cst_254 {dimension_numbers = #tpu.dot_dimension_numbers<[1], [0], [0], [1], [0, 0, 1, 1], [], []>} : vector<134x32xf32>, vector<32x32xf32>, vector<134x32xf32> -> vector<134x32xf32>
    %c0_255 = arith.constant 0 : index
    %c0_256 = arith.constant 0 : index
    %256 = vector.load %arg16[%c0_255, %c0_256] : memref<288x32xf32, #tpu.memory_space<vmem>>, vector<134x32xf32>
    %257 = arith.addf %256, %255 : vector<134x32xf32>
    %c0_257 = arith.constant 0 : index
    %c0_258 = arith.constant 0 : index
    %258 = vector.load %arg16[%c0_257, %c0_258] : memref<288x32xf32, #tpu.memory_space<vmem>>, vector<134x32xf32>
    tpu.vector_store %arg16[%c0_257, %c0_258], %257 {strides = array<i32>} : memref<288x32xf32, #tpu.memory_space<vmem>>, vector<134x32xf32>,
    %c38_259 = arith.constant 38 : index
    %c0_260 = arith.constant 0 : index
    %259 = tpu.strided_load %arg13[%c38_259, %c0_260] {strides = array<i32: 2, 1>} : memref<324x32xf32, #tpu.memory_space<vmem>>, vector<134x32xf32>
    %c8_261 = arith.constant 8 : index
    %c0_262 = arith.constant 0 : index
    %c0_263 = arith.constant 0 : index
    %260 = vector.load %arg4[%c8_261, %c0_262, %c0_263] : memref<9x32x32xf32, #tpu.memory_space<vmem>>, vector<1x32x32xf32>
    %261 = vector.shape_cast %260 : vector<1x32x32xf32> to vector<32x32xf32>
    %cst_264 = arith.constant dense<0.000000e+00> : vector<134x32xf32>
    %262 = tpu.matmul %259, %261, %cst_264 {dimension_numbers = #tpu.dot_dimension_numbers<[1], [0], [0], [1], [0, 0, 1, 1], [], []>} : vector<134x32xf32>, vector<32x32xf32>, vector<134x32xf32> -> vector<134x32xf32>
    %c0_265 = arith.constant 0 : index
    %c0_266 = arith.constant 0 : index
    %263 = vector.load %arg16[%c0_265, %c0_266] : memref<288x32xf32, #tpu.memory_space<vmem>>, vector<134x32xf32>
    %264 = arith.addf %263, %262 : vector<134x32xf32>
    %c0_267 = arith.constant 0 : index
    %c0_268 = arith.constant 0 : index
    %265 = vector.load %arg16[%c0_267, %c0_268] : memref<288x32xf32, #tpu.memory_space<vmem>>, vector<134x32xf32>
    tpu.vector_store %arg16[%c0_267, %c0_268], %264 {strides = array<i32>} : memref<288x32xf32, #tpu.memory_space<vmem>>, vector<134x32xf32>,
    %c0_269 = arith.constant 0 : index
    %c0_270 = arith.constant 0 : index
    %266 = vector.load %arg16[%c0_269, %c0_270] : memref<288x32xf32, #tpu.memory_space<vmem>>, vector<8x32xf32>
    %267 = vector.broadcast %204 : vector<1x32xf32> to vector<8x32xf32>
    %268 = arith.addf %266, %267 : vector<8x32xf32>
    %cst_271 = arith.constant 0.000000e+00 : f32
    %269 = vector.broadcast %cst_271 : f32 to vector<8x32xf32>
    %270 = arith.maximumf %268, %269 : vector<8x32xf32>
    %c11_272 = arith.constant 11 : index
    %c0_273 = arith.constant 0 : index
    %271 = vector.load %arg14[%c11_272, %c0_273] : memref<100x32xf32, #tpu.memory_space<vmem>>, vector<8x32xf32>
    tpu.vector_store %arg14[%c11_272, %c0_273], %270 {strides = array<i32>} : memref<100x32xf32, #tpu.memory_space<vmem>>, vector<8x32xf32>,
    %c18_274 = arith.constant 18 : index
    %c0_275 = arith.constant 0 : index
    %272 = vector.load %arg16[%c18_274, %c0_275] : memref<288x32xf32, #tpu.memory_space<vmem>>, vector<8x32xf32>
    %273 = vector.broadcast %204 : vector<1x32xf32> to vector<8x32xf32>
    %274 = arith.addf %272, %273 : vector<8x32xf32>
    %cst_276 = arith.constant 0.000000e+00 : f32
    %275 = vector.broadcast %cst_276 : f32 to vector<8x32xf32>
    %276 = arith.maximumf %274, %275 : vector<8x32xf32>
    %c21 = arith.constant 21 : index
    %c0_277 = arith.constant 0 : index
    %277 = vector.load %arg14[%c21, %c0_277] : memref<100x32xf32, #tpu.memory_space<vmem>>, vector<8x32xf32>
    tpu.vector_store %arg14[%c21, %c0_277], %276 {strides = array<i32>} : memref<100x32xf32, #tpu.memory_space<vmem>>, vector<8x32xf32>,
    %c36_278 = arith.constant 36 : index
    %c0_279 = arith.constant 0 : index
    %278 = vector.load %arg16[%c36_278, %c0_279] : memref<288x32xf32, #tpu.memory_space<vmem>>, vector<8x32xf32>
    %279 = vector.broadcast %204 : vector<1x32xf32> to vector<8x32xf32>
    %280 = arith.addf %278, %279 : vector<8x32xf32>
    %cst_280 = arith.constant 0.000000e+00 : f32
    %281 = vector.broadcast %cst_280 : f32 to vector<8x32xf32>
    %282 = arith.maximumf %280, %281 : vector<8x32xf32>
    %c31 = arith.constant 31 : index
    %c0_281 = arith.constant 0 : index
    %283 = vector.load %arg14[%c31, %c0_281] : memref<100x32xf32, #tpu.memory_space<vmem>>, vector<8x32xf32>
    tpu.vector_store %arg14[%c31, %c0_281], %282 {strides = array<i32>} : memref<100x32xf32, #tpu.memory_space<vmem>>, vector<8x32xf32>,
    %c54_282 = arith.constant 54 : index
    %c0_283 = arith.constant 0 : index
    %284 = vector.load %arg16[%c54_282, %c0_283] : memref<288x32xf32, #tpu.memory_space<vmem>>, vector<8x32xf32>
    %285 = vector.broadcast %204 : vector<1x32xf32> to vector<8x32xf32>
    %286 = arith.addf %284, %285 : vector<8x32xf32>
    %cst_284 = arith.constant 0.000000e+00 : f32
    %287 = vector.broadcast %cst_284 : f32 to vector<8x32xf32>
    %288 = arith.maximumf %286, %287 : vector<8x32xf32>
    %c41 = arith.constant 41 : index
    %c0_285 = arith.constant 0 : index
    %289 = vector.load %arg14[%c41, %c0_285] : memref<100x32xf32, #tpu.memory_space<vmem>>, vector<8x32xf32>
    tpu.vector_store %arg14[%c41, %c0_285], %288 {strides = array<i32>} : memref<100x32xf32, #tpu.memory_space<vmem>>, vector<8x32xf32>,
    %c72_286 = arith.constant 72 : index
    %c0_287 = arith.constant 0 : index
    %290 = vector.load %arg16[%c72_286, %c0_287] : memref<288x32xf32, #tpu.memory_space<vmem>>, vector<8x32xf32>
    %291 = vector.broadcast %204 : vector<1x32xf32> to vector<8x32xf32>
    %292 = arith.addf %290, %291 : vector<8x32xf32>
    %cst_288 = arith.constant 0.000000e+00 : f32
    %293 = vector.broadcast %cst_288 : f32 to vector<8x32xf32>
    %294 = arith.maximumf %292, %293 : vector<8x32xf32>
    %c51 = arith.constant 51 : index
    %c0_289 = arith.constant 0 : index
    %295 = vector.load %arg14[%c51, %c0_289] : memref<100x32xf32, #tpu.memory_space<vmem>>, vector<8x32xf32>
    tpu.vector_store %arg14[%c51, %c0_289], %294 {strides = array<i32>} : memref<100x32xf32, #tpu.memory_space<vmem>>, vector<8x32xf32>,
    %c90_290 = arith.constant 90 : index
    %c0_291 = arith.constant 0 : index
    %296 = vector.load %arg16[%c90_290, %c0_291] : memref<288x32xf32, #tpu.memory_space<vmem>>, vector<8x32xf32>
    %297 = vector.broadcast %204 : vector<1x32xf32> to vector<8x32xf32>
    %298 = arith.addf %296, %297 : vector<8x32xf32>
    %cst_292 = arith.constant 0.000000e+00 : f32
    %299 = vector.broadcast %cst_292 : f32 to vector<8x32xf32>
    %300 = arith.maximumf %298, %299 : vector<8x32xf32>
    %c61 = arith.constant 61 : index
    %c0_293 = arith.constant 0 : index
    %301 = vector.load %arg14[%c61, %c0_293] : memref<100x32xf32, #tpu.memory_space<vmem>>, vector<8x32xf32>
    tpu.vector_store %arg14[%c61, %c0_293], %300 {strides = array<i32>} : memref<100x32xf32, #tpu.memory_space<vmem>>, vector<8x32xf32>,
    %c108_294 = arith.constant 108 : index
    %c0_295 = arith.constant 0 : index
    %302 = vector.load %arg16[%c108_294, %c0_295] : memref<288x32xf32, #tpu.memory_space<vmem>>, vector<8x32xf32>
    %303 = vector.broadcast %204 : vector<1x32xf32> to vector<8x32xf32>
    %304 = arith.addf %302, %303 : vector<8x32xf32>
    %cst_296 = arith.constant 0.000000e+00 : f32
    %305 = vector.broadcast %cst_296 : f32 to vector<8x32xf32>
    %306 = arith.maximumf %304, %305 : vector<8x32xf32>
    %c71_297 = arith.constant 71 : index
    %c0_298 = arith.constant 0 : index
    %307 = vector.load %arg14[%c71_297, %c0_298] : memref<100x32xf32, #tpu.memory_space<vmem>>, vector<8x32xf32>
    tpu.vector_store %arg14[%c71_297, %c0_298], %306 {strides = array<i32>} : memref<100x32xf32, #tpu.memory_space<vmem>>, vector<8x32xf32>,
    %c126_299 = arith.constant 126 : index
    %c0_300 = arith.constant 0 : index
    %308 = vector.load %arg16[%c126_299, %c0_300] : memref<288x32xf32, #tpu.memory_space<vmem>>, vector<8x32xf32>
    %309 = vector.broadcast %204 : vector<1x32xf32> to vector<8x32xf32>
    %310 = arith.addf %308, %309 : vector<8x32xf32>
    %cst_301 = arith.constant 0.000000e+00 : f32
    %311 = vector.broadcast %cst_301 : f32 to vector<8x32xf32>
    %312 = arith.maximumf %310, %311 : vector<8x32xf32>
    %c81 = arith.constant 81 : index
    %c0_302 = arith.constant 0 : index
    %313 = vector.load %arg14[%c81, %c0_302] : memref<100x32xf32, #tpu.memory_space<vmem>>, vector<8x32xf32>
    tpu.vector_store %arg14[%c81, %c0_302], %312 {strides = array<i32>} : memref<100x32xf32, #tpu.memory_space<vmem>>, vector<8x32xf32>,
    %c0_303 = arith.constant 0 : index
    %c0_304 = arith.constant 0 : index
    %314 = vector.load %arg7[%c0_303, %c0_304] : memref<1x32xf32, #tpu.memory_space<vmem>>, vector<1x32xf32>
    %c0_305 = arith.constant 0 : index
    %c0_306 = arith.constant 0 : index
    %315 = tpu.strided_load %arg14[%c0_305, %c0_306] {strides = array<i32: 2, 1>} : memref<100x32xf32, #tpu.memory_space<vmem>>, vector<34x32xf32>
    %c0_307 = arith.constant 0 : index
    %c0_308 = arith.constant 0 : index
    %c0_309 = arith.constant 0 : index
    %316 = vector.load %arg6[%c0_307, %c0_308, %c0_309] : memref<9x32x32xf32, #tpu.memory_space<vmem>>, vector<1x32x32xf32>
    %317 = vector.shape_cast %316 : vector<1x32x32xf32> to vector<32x32xf32>
    %cst_310 = arith.constant dense<0.000000e+00> : vector<34x32xf32>
    %318 = tpu.matmul %315, %317, %cst_310 {dimension_numbers = #tpu.dot_dimension_numbers<[1], [0], [0], [1], [0, 0, 1, 1], [], []>} : vector<34x32xf32>, vector<32x32xf32>, vector<34x32xf32> -> vector<34x32xf32>
    %c0_311 = arith.constant 0 : index
    %c0_312 = arith.constant 0 : index
    %319 = vector.load %arg16[%c0_311, %c0_312] : memref<288x32xf32, #tpu.memory_space<vmem>>, vector<34x32xf32>
    tpu.vector_store %arg16[%c0_311, %c0_312], %318 {strides = array<i32>} : memref<288x32xf32, #tpu.memory_space<vmem>>, vector<34x32xf32>,
    %c1_313 = arith.constant 1 : index
    %c0_314 = arith.constant 0 : index
    %320 = tpu.strided_load %arg14[%c1_313, %c0_314] {strides = array<i32: 2, 1>} : memref<100x32xf32, #tpu.memory_space<vmem>>, vector<34x32xf32>
    %c1_315 = arith.constant 1 : index
    %c0_316 = arith.constant 0 : index
    %c0_317 = arith.constant 0 : index
    %321 = vector.load %arg6[%c1_315, %c0_316, %c0_317] : memref<9x32x32xf32, #tpu.memory_space<vmem>>, vector<1x32x32xf32>
    %322 = vector.shape_cast %321 : vector<1x32x32xf32> to vector<32x32xf32>
    %cst_318 = arith.constant dense<0.000000e+00> : vector<34x32xf32>
    %323 = tpu.matmul %320, %322, %cst_318 {dimension_numbers = #tpu.dot_dimension_numbers<[1], [0], [0], [1], [0, 0, 1, 1], [], []>} : vector<34x32xf32>, vector<32x32xf32>, vector<34x32xf32> -> vector<34x32xf32>
    %c0_319 = arith.constant 0 : index
    %c0_320 = arith.constant 0 : index
    %324 = vector.load %arg16[%c0_319, %c0_320] : memref<288x32xf32, #tpu.memory_space<vmem>>, vector<34x32xf32>
    %325 = arith.addf %324, %323 : vector<34x32xf32>
    %c0_321 = arith.constant 0 : index
    %c0_322 = arith.constant 0 : index
    %326 = vector.load %arg16[%c0_321, %c0_322] : memref<288x32xf32, #tpu.memory_space<vmem>>, vector<34x32xf32>
    tpu.vector_store %arg16[%c0_321, %c0_322], %325 {strides = array<i32>} : memref<288x32xf32, #tpu.memory_space<vmem>>, vector<34x32xf32>,
    %c2_323 = arith.constant 2 : index
    %c0_324 = arith.constant 0 : index
    %327 = tpu.strided_load %arg14[%c2_323, %c0_324] {strides = array<i32: 2, 1>} : memref<100x32xf32, #tpu.memory_space<vmem>>, vector<34x32xf32>
    %c2_325 = arith.constant 2 : index
    %c0_326 = arith.constant 0 : index
    %c0_327 = arith.constant 0 : index
    %328 = vector.load %arg6[%c2_325, %c0_326, %c0_327] : memref<9x32x32xf32, #tpu.memory_space<vmem>>, vector<1x32x32xf32>
    %329 = vector.shape_cast %328 : vector<1x32x32xf32> to vector<32x32xf32>
    %cst_328 = arith.constant dense<0.000000e+00> : vector<34x32xf32>
    %330 = tpu.matmul %327, %329, %cst_328 {dimension_numbers = #tpu.dot_dimension_numbers<[1], [0], [0], [1], [0, 0, 1, 1], [], []>} : vector<34x32xf32>, vector<32x32xf32>, vector<34x32xf32> -> vector<34x32xf32>
    %c0_329 = arith.constant 0 : index
    %c0_330 = arith.constant 0 : index
    %331 = vector.load %arg16[%c0_329, %c0_330] : memref<288x32xf32, #tpu.memory_space<vmem>>, vector<34x32xf32>
    %332 = arith.addf %331, %330 : vector<34x32xf32>
    %c0_331 = arith.constant 0 : index
    %c0_332 = arith.constant 0 : index
    %333 = vector.load %arg16[%c0_331, %c0_332] : memref<288x32xf32, #tpu.memory_space<vmem>>, vector<34x32xf32>
    tpu.vector_store %arg16[%c0_331, %c0_332], %332 {strides = array<i32>} : memref<288x32xf32, #tpu.memory_space<vmem>>, vector<34x32xf32>,
    %c10 = arith.constant 10 : index
    %c0_333 = arith.constant 0 : index
    %334 = tpu.strided_load %arg14[%c10, %c0_333] {strides = array<i32: 2, 1>} : memref<100x32xf32, #tpu.memory_space<vmem>>, vector<34x32xf32>
    %c3_334 = arith.constant 3 : index
    %c0_335 = arith.constant 0 : index
    %c0_336 = arith.constant 0 : index
    %335 = vector.load %arg6[%c3_334, %c0_335, %c0_336] : memref<9x32x32xf32, #tpu.memory_space<vmem>>, vector<1x32x32xf32>
    %336 = vector.shape_cast %335 : vector<1x32x32xf32> to vector<32x32xf32>
    %cst_337 = arith.constant dense<0.000000e+00> : vector<34x32xf32>
    %337 = tpu.matmul %334, %336, %cst_337 {dimension_numbers = #tpu.dot_dimension_numbers<[1], [0], [0], [1], [0, 0, 1, 1], [], []>} : vector<34x32xf32>, vector<32x32xf32>, vector<34x32xf32> -> vector<34x32xf32>
    %c0_338 = arith.constant 0 : index
    %c0_339 = arith.constant 0 : index
    %338 = vector.load %arg16[%c0_338, %c0_339] : memref<288x32xf32, #tpu.memory_space<vmem>>, vector<34x32xf32>
    %339 = arith.addf %338, %337 : vector<34x32xf32>
    %c0_340 = arith.constant 0 : index
    %c0_341 = arith.constant 0 : index
    %340 = vector.load %arg16[%c0_340, %c0_341] : memref<288x32xf32, #tpu.memory_space<vmem>>, vector<34x32xf32>
    tpu.vector_store %arg16[%c0_340, %c0_341], %339 {strides = array<i32>} : memref<288x32xf32, #tpu.memory_space<vmem>>, vector<34x32xf32>,
    %c11_342 = arith.constant 11 : index
    %c0_343 = arith.constant 0 : index
    %341 = tpu.strided_load %arg14[%c11_342, %c0_343] {strides = array<i32: 2, 1>} : memref<100x32xf32, #tpu.memory_space<vmem>>, vector<34x32xf32>
    %c4_344 = arith.constant 4 : index
    %c0_345 = arith.constant 0 : index
    %c0_346 = arith.constant 0 : index
    %342 = vector.load %arg6[%c4_344, %c0_345, %c0_346] : memref<9x32x32xf32, #tpu.memory_space<vmem>>, vector<1x32x32xf32>
    %343 = vector.shape_cast %342 : vector<1x32x32xf32> to vector<32x32xf32>
    %cst_347 = arith.constant dense<0.000000e+00> : vector<34x32xf32>
    %344 = tpu.matmul %341, %343, %cst_347 {dimension_numbers = #tpu.dot_dimension_numbers<[1], [0], [0], [1], [0, 0, 1, 1], [], []>} : vector<34x32xf32>, vector<32x32xf32>, vector<34x32xf32> -> vector<34x32xf32>
    %c0_348 = arith.constant 0 : index
    %c0_349 = arith.constant 0 : index
    %345 = vector.load %arg16[%c0_348, %c0_349] : memref<288x32xf32, #tpu.memory_space<vmem>>, vector<34x32xf32>
    %346 = arith.addf %345, %344 : vector<34x32xf32>
    %c0_350 = arith.constant 0 : index
    %c0_351 = arith.constant 0 : index
    %347 = vector.load %arg16[%c0_350, %c0_351] : memref<288x32xf32, #tpu.memory_space<vmem>>, vector<34x32xf32>
    tpu.vector_store %arg16[%c0_350, %c0_351], %346 {strides = array<i32>} : memref<288x32xf32, #tpu.memory_space<vmem>>, vector<34x32xf32>,
    %c12 = arith.constant 12 : index
    %c0_352 = arith.constant 0 : index
    %348 = tpu.strided_load %arg14[%c12, %c0_352] {strides = array<i32: 2, 1>} : memref<100x32xf32, #tpu.memory_space<vmem>>, vector<34x32xf32>
    %c5_353 = arith.constant 5 : index
    %c0_354 = arith.constant 0 : index
    %c0_355 = arith.constant 0 : index
    %349 = vector.load %arg6[%c5_353, %c0_354, %c0_355] : memref<9x32x32xf32, #tpu.memory_space<vmem>>, vector<1x32x32xf32>
    %350 = vector.shape_cast %349 : vector<1x32x32xf32> to vector<32x32xf32>
    %cst_356 = arith.constant dense<0.000000e+00> : vector<34x32xf32>
    %351 = tpu.matmul %348, %350, %cst_356 {dimension_numbers = #tpu.dot_dimension_numbers<[1], [0], [0], [1], [0, 0, 1, 1], [], []>} : vector<34x32xf32>, vector<32x32xf32>, vector<34x32xf32> -> vector<34x32xf32>
    %c0_357 = arith.constant 0 : index
    %c0_358 = arith.constant 0 : index
    %352 = vector.load %arg16[%c0_357, %c0_358] : memref<288x32xf32, #tpu.memory_space<vmem>>, vector<34x32xf32>
    %353 = arith.addf %352, %351 : vector<34x32xf32>
    %c0_359 = arith.constant 0 : index
    %c0_360 = arith.constant 0 : index
    %354 = vector.load %arg16[%c0_359, %c0_360] : memref<288x32xf32, #tpu.memory_space<vmem>>, vector<34x32xf32>
    tpu.vector_store %arg16[%c0_359, %c0_360], %353 {strides = array<i32>} : memref<288x32xf32, #tpu.memory_space<vmem>>, vector<34x32xf32>,
    %c20_361 = arith.constant 20 : index
    %c0_362 = arith.constant 0 : index
    %355 = tpu.strided_load %arg14[%c20_361, %c0_362] {strides = array<i32: 2, 1>} : memref<100x32xf32, #tpu.memory_space<vmem>>, vector<34x32xf32>
    %c6_363 = arith.constant 6 : index
    %c0_364 = arith.constant 0 : index
    %c0_365 = arith.constant 0 : index
    %356 = vector.load %arg6[%c6_363, %c0_364, %c0_365] : memref<9x32x32xf32, #tpu.memory_space<vmem>>, vector<1x32x32xf32>
    %357 = vector.shape_cast %356 : vector<1x32x32xf32> to vector<32x32xf32>
    %cst_366 = arith.constant dense<0.000000e+00> : vector<34x32xf32>
    %358 = tpu.matmul %355, %357, %cst_366 {dimension_numbers = #tpu.dot_dimension_numbers<[1], [0], [0], [1], [0, 0, 1, 1], [], []>} : vector<34x32xf32>, vector<32x32xf32>, vector<34x32xf32> -> vector<34x32xf32>
    %c0_367 = arith.constant 0 : index
    %c0_368 = arith.constant 0 : index
    %359 = vector.load %arg16[%c0_367, %c0_368] : memref<288x32xf32, #tpu.memory_space<vmem>>, vector<34x32xf32>
    %360 = arith.addf %359, %358 : vector<34x32xf32>
    %c0_369 = arith.constant 0 : index
    %c0_370 = arith.constant 0 : index
    %361 = vector.load %arg16[%c0_369, %c0_370] : memref<288x32xf32, #tpu.memory_space<vmem>>, vector<34x32xf32>
    tpu.vector_store %arg16[%c0_369, %c0_370], %360 {strides = array<i32>} : memref<288x32xf32, #tpu.memory_space<vmem>>, vector<34x32xf32>,
    %c21_371 = arith.constant 21 : index
    %c0_372 = arith.constant 0 : index
    %362 = tpu.strided_load %arg14[%c21_371, %c0_372] {strides = array<i32: 2, 1>} : memref<100x32xf32, #tpu.memory_space<vmem>>, vector<34x32xf32>
    %c7_373 = arith.constant 7 : index
    %c0_374 = arith.constant 0 : index
    %c0_375 = arith.constant 0 : index
    %363 = vector.load %arg6[%c7_373, %c0_374, %c0_375] : memref<9x32x32xf32, #tpu.memory_space<vmem>>, vector<1x32x32xf32>
    %364 = vector.shape_cast %363 : vector<1x32x32xf32> to vector<32x32xf32>
    %cst_376 = arith.constant dense<0.000000e+00> : vector<34x32xf32>
    %365 = tpu.matmul %362, %364, %cst_376 {dimension_numbers = #tpu.dot_dimension_numbers<[1], [0], [0], [1], [0, 0, 1, 1], [], []>} : vector<34x32xf32>, vector<32x32xf32>, vector<34x32xf32> -> vector<34x32xf32>
    %c0_377 = arith.constant 0 : index
    %c0_378 = arith.constant 0 : index
    %366 = vector.load %arg16[%c0_377, %c0_378] : memref<288x32xf32, #tpu.memory_space<vmem>>, vector<34x32xf32>
    %367 = arith.addf %366, %365 : vector<34x32xf32>
    %c0_379 = arith.constant 0 : index
    %c0_380 = arith.constant 0 : index
    %368 = vector.load %arg16[%c0_379, %c0_380] : memref<288x32xf32, #tpu.memory_space<vmem>>, vector<34x32xf32>
    tpu.vector_store %arg16[%c0_379, %c0_380], %367 {strides = array<i32>} : memref<288x32xf32, #tpu.memory_space<vmem>>, vector<34x32xf32>,
    %c22 = arith.constant 22 : index
    %c0_381 = arith.constant 0 : index
    %369 = tpu.strided_load %arg14[%c22, %c0_381] {strides = array<i32: 2, 1>} : memref<100x32xf32, #tpu.memory_space<vmem>>, vector<34x32xf32>
    %c8_382 = arith.constant 8 : index
    %c0_383 = arith.constant 0 : index
    %c0_384 = arith.constant 0 : index
    %370 = vector.load %arg6[%c8_382, %c0_383, %c0_384] : memref<9x32x32xf32, #tpu.memory_space<vmem>>, vector<1x32x32xf32>
    %371 = vector.shape_cast %370 : vector<1x32x32xf32> to vector<32x32xf32>
    %cst_385 = arith.constant dense<0.000000e+00> : vector<34x32xf32>
    %372 = tpu.matmul %369, %371, %cst_385 {dimension_numbers = #tpu.dot_dimension_numbers<[1], [0], [0], [1], [0, 0, 1, 1], [], []>} : vector<34x32xf32>, vector<32x32xf32>, vector<34x32xf32> -> vector<34x32xf32>
    %c0_386 = arith.constant 0 : index
    %c0_387 = arith.constant 0 : index
    %373 = vector.load %arg16[%c0_386, %c0_387] : memref<288x32xf32, #tpu.memory_space<vmem>>, vector<34x32xf32>
    %374 = arith.addf %373, %372 : vector<34x32xf32>
    %c0_388 = arith.constant 0 : index
    %c0_389 = arith.constant 0 : index
    %375 = vector.load %arg16[%c0_388, %c0_389] : memref<288x32xf32, #tpu.memory_space<vmem>>, vector<34x32xf32>
    tpu.vector_store %arg16[%c0_388, %c0_389], %374 {strides = array<i32>} : memref<288x32xf32, #tpu.memory_space<vmem>>, vector<34x32xf32>,
    %c0_390 = arith.constant 0 : index
    %c0_391 = arith.constant 0 : index
    %376 = vector.load %arg16[%c0_390, %c0_391] : memref<288x32xf32, #tpu.memory_space<vmem>>, vector<4x32xf32>
    %377 = vector.broadcast %314 : vector<1x32xf32> to vector<4x32xf32>
    %378 = arith.addf %376, %377 : vector<4x32xf32>
    %cst_392 = arith.constant 0.000000e+00 : f32
    %379 = vector.broadcast %cst_392 : f32 to vector<4x32xf32>
    %380 = arith.maximumf %378, %379 : vector<4x32xf32>
    %c7_393 = arith.constant 7 : index
    %c0_394 = arith.constant 0 : index
    %381 = vector.load %arg15[%c7_393, %c0_394] : memref<36x32xf32, #tpu.memory_space<vmem>>, vector<4x32xf32>
    tpu.vector_store %arg15[%c7_393, %c0_394], %380 {strides = array<i32>} : memref<36x32xf32, #tpu.memory_space<vmem>>, vector<4x32xf32>,
    %c10_395 = arith.constant 10 : index
    %c0_396 = arith.constant 0 : index
    %382 = vector.load %arg16[%c10_395, %c0_396] : memref<288x32xf32, #tpu.memory_space<vmem>>, vector<4x32xf32>
    %383 = vector.broadcast %314 : vector<1x32xf32> to vector<4x32xf32>
    %384 = arith.addf %382, %383 : vector<4x32xf32>
    %cst_397 = arith.constant 0.000000e+00 : f32
    %385 = vector.broadcast %cst_397 : f32 to vector<4x32xf32>
    %386 = arith.maximumf %384, %385 : vector<4x32xf32>
    %c13 = arith.constant 13 : index
    %c0_398 = arith.constant 0 : index
    %387 = vector.load %arg15[%c13, %c0_398] : memref<36x32xf32, #tpu.memory_space<vmem>>, vector<4x32xf32>
    tpu.vector_store %arg15[%c13, %c0_398], %386 {strides = array<i32>} : memref<36x32xf32, #tpu.memory_space<vmem>>, vector<4x32xf32>,
    %c20_399 = arith.constant 20 : index
    %c0_400 = arith.constant 0 : index
    %388 = vector.load %arg16[%c20_399, %c0_400] : memref<288x32xf32, #tpu.memory_space<vmem>>, vector<4x32xf32>
    %389 = vector.broadcast %314 : vector<1x32xf32> to vector<4x32xf32>
    %390 = arith.addf %388, %389 : vector<4x32xf32>
    %cst_401 = arith.constant 0.000000e+00 : f32
    %391 = vector.broadcast %cst_401 : f32 to vector<4x32xf32>
    %392 = arith.maximumf %390, %391 : vector<4x32xf32>
    %c19_402 = arith.constant 19 : index
    %c0_403 = arith.constant 0 : index
    %393 = vector.load %arg15[%c19_402, %c0_403] : memref<36x32xf32, #tpu.memory_space<vmem>>, vector<4x32xf32>
    tpu.vector_store %arg15[%c19_402, %c0_403], %392 {strides = array<i32>} : memref<36x32xf32, #tpu.memory_space<vmem>>, vector<4x32xf32>,
    %c30 = arith.constant 30 : index
    %c0_404 = arith.constant 0 : index
    %394 = vector.load %arg16[%c30, %c0_404] : memref<288x32xf32, #tpu.memory_space<vmem>>, vector<4x32xf32>
    %395 = vector.broadcast %314 : vector<1x32xf32> to vector<4x32xf32>
    %396 = arith.addf %394, %395 : vector<4x32xf32>
    %cst_405 = arith.constant 0.000000e+00 : f32
    %397 = vector.broadcast %cst_405 : f32 to vector<4x32xf32>
    %398 = arith.maximumf %396, %397 : vector<4x32xf32>
    %c25 = arith.constant 25 : index
    %c0_406 = arith.constant 0 : index
    %399 = vector.load %arg15[%c25, %c0_406] : memref<36x32xf32, #tpu.memory_space<vmem>>, vector<4x32xf32>
    tpu.vector_store %arg15[%c25, %c0_406], %398 {strides = array<i32>} : memref<36x32xf32, #tpu.memory_space<vmem>>, vector<4x32xf32>,
    %c0_407 = arith.constant 0 : index
    %c0_408 = arith.constant 0 : index
    %400 = vector.load %arg9[%c0_407, %c0_408] : memref<1x32xf32, #tpu.memory_space<vmem>>, vector<1x32xf32>
    %c0_409 = arith.constant 0 : index
    %c0_410 = arith.constant 0 : index
    %401 = tpu.strided_load %arg15[%c0_409, %c0_410] {strides = array<i32: 2, 1>} : memref<36x32xf32, #tpu.memory_space<vmem>>, vector<8x32xf32>
    %c0_411 = arith.constant 0 : index
    %c0_412 = arith.constant 0 : index
    %c0_413 = arith.constant 0 : index
    %402 = vector.load %arg8[%c0_411, %c0_412, %c0_413] : memref<9x32x32xf32, #tpu.memory_space<vmem>>, vector<1x32x32xf32>
    %403 = vector.shape_cast %402 : vector<1x32x32xf32> to vector<32x32xf32>
    %cst_414 = arith.constant dense<0.000000e+00> : vector<8x32xf32>
    %404 = tpu.matmul %401, %403, %cst_414 {dimension_numbers = #tpu.dot_dimension_numbers<[1], [0], [0], [1], [0, 0, 1, 1], [], []>} : vector<8x32xf32>, vector<32x32xf32>, vector<8x32xf32> -> vector<8x32xf32>
    %c0_415 = arith.constant 0 : index
    %c0_416 = arith.constant 0 : index
    %405 = vector.load %arg16[%c0_415, %c0_416] : memref<288x32xf32, #tpu.memory_space<vmem>>, vector<8x32xf32>
    tpu.vector_store %arg16[%c0_415, %c0_416], %404 {strides = array<i32>} : memref<288x32xf32, #tpu.memory_space<vmem>>, vector<8x32xf32>,
    %c1_417 = arith.constant 1 : index
    %c0_418 = arith.constant 0 : index
    %406 = tpu.strided_load %arg15[%c1_417, %c0_418] {strides = array<i32: 2, 1>} : memref<36x32xf32, #tpu.memory_space<vmem>>, vector<8x32xf32>
    %c1_419 = arith.constant 1 : index
    %c0_420 = arith.constant 0 : index
    %c0_421 = arith.constant 0 : index
    %407 = vector.load %arg8[%c1_419, %c0_420, %c0_421] : memref<9x32x32xf32, #tpu.memory_space<vmem>>, vector<1x32x32xf32>
    %408 = vector.shape_cast %407 : vector<1x32x32xf32> to vector<32x32xf32>
    %cst_422 = arith.constant dense<0.000000e+00> : vector<8x32xf32>
    %409 = tpu.matmul %406, %408, %cst_422 {dimension_numbers = #tpu.dot_dimension_numbers<[1], [0], [0], [1], [0, 0, 1, 1], [], []>} : vector<8x32xf32>, vector<32x32xf32>, vector<8x32xf32> -> vector<8x32xf32>
    %c0_423 = arith.constant 0 : index
    %c0_424 = arith.constant 0 : index
    %410 = vector.load %arg16[%c0_423, %c0_424] : memref<288x32xf32, #tpu.memory_space<vmem>>, vector<8x32xf32>
    %411 = arith.addf %410, %409 : vector<8x32xf32>
    %c0_425 = arith.constant 0 : index
    %c0_426 = arith.constant 0 : index
    %412 = vector.load %arg16[%c0_425, %c0_426] : memref<288x32xf32, #tpu.memory_space<vmem>>, vector<8x32xf32>
    tpu.vector_store %arg16[%c0_425, %c0_426], %411 {strides = array<i32>} : memref<288x32xf32, #tpu.memory_space<vmem>>, vector<8x32xf32>,
    %c2_427 = arith.constant 2 : index
    %c0_428 = arith.constant 0 : index
    %413 = tpu.strided_load %arg15[%c2_427, %c0_428] {strides = array<i32: 2, 1>} : memref<36x32xf32, #tpu.memory_space<vmem>>, vector<8x32xf32>
    %c2_429 = arith.constant 2 : index
    %c0_430 = arith.constant 0 : index
    %c0_431 = arith.constant 0 : index
    %414 = vector.load %arg8[%c2_429, %c0_430, %c0_431] : memref<9x32x32xf32, #tpu.memory_space<vmem>>, vector<1x32x32xf32>
    %415 = vector.shape_cast %414 : vector<1x32x32xf32> to vector<32x32xf32>
    %cst_432 = arith.constant dense<0.000000e+00> : vector<8x32xf32>
    %416 = tpu.matmul %413, %415, %cst_432 {dimension_numbers = #tpu.dot_dimension_numbers<[1], [0], [0], [1], [0, 0, 1, 1], [], []>} : vector<8x32xf32>, vector<32x32xf32>, vector<8x32xf32> -> vector<8x32xf32>
    %c0_433 = arith.constant 0 : index
    %c0_434 = arith.constant 0 : index
    %417 = vector.load %arg16[%c0_433, %c0_434] : memref<288x32xf32, #tpu.memory_space<vmem>>, vector<8x32xf32>
    %418 = arith.addf %417, %416 : vector<8x32xf32>
    %c0_435 = arith.constant 0 : index
    %c0_436 = arith.constant 0 : index
    %419 = vector.load %arg16[%c0_435, %c0_436] : memref<288x32xf32, #tpu.memory_space<vmem>>, vector<8x32xf32>
    tpu.vector_store %arg16[%c0_435, %c0_436], %418 {strides = array<i32>} : memref<288x32xf32, #tpu.memory_space<vmem>>, vector<8x32xf32>,
    %c6_437 = arith.constant 6 : index
    %c0_438 = arith.constant 0 : index
    %420 = tpu.strided_load %arg15[%c6_437, %c0_438] {strides = array<i32: 2, 1>} : memref<36x32xf32, #tpu.memory_space<vmem>>, vector<8x32xf32>
    %c3_439 = arith.constant 3 : index
    %c0_440 = arith.constant 0 : index
    %c0_441 = arith.constant 0 : index
    %421 = vector.load %arg8[%c3_439, %c0_440, %c0_441] : memref<9x32x32xf32, #tpu.memory_space<vmem>>, vector<1x32x32xf32>
    %422 = vector.shape_cast %421 : vector<1x32x32xf32> to vector<32x32xf32>
    %cst_442 = arith.constant dense<0.000000e+00> : vector<8x32xf32>
    %423 = tpu.matmul %420, %422, %cst_442 {dimension_numbers = #tpu.dot_dimension_numbers<[1], [0], [0], [1], [0, 0, 1, 1], [], []>} : vector<8x32xf32>, vector<32x32xf32>, vector<8x32xf32> -> vector<8x32xf32>
    %c0_443 = arith.constant 0 : index
    %c0_444 = arith.constant 0 : index
    %424 = vector.load %arg16[%c0_443, %c0_444] : memref<288x32xf32, #tpu.memory_space<vmem>>, vector<8x32xf32>
    %425 = arith.addf %424, %423 : vector<8x32xf32>
    %c0_445 = arith.constant 0 : index
    %c0_446 = arith.constant 0 : index
    %426 = vector.load %arg16[%c0_445, %c0_446] : memref<288x32xf32, #tpu.memory_space<vmem>>, vector<8x32xf32>
    tpu.vector_store %arg16[%c0_445, %c0_446], %425 {strides = array<i32>} : memref<288x32xf32, #tpu.memory_space<vmem>>, vector<8x32xf32>,
    %c7_447 = arith.constant 7 : index
    %c0_448 = arith.constant 0 : index
    %427 = tpu.strided_load %arg15[%c7_447, %c0_448] {strides = array<i32: 2, 1>} : memref<36x32xf32, #tpu.memory_space<vmem>>, vector<8x32xf32>
    %c4_449 = arith.constant 4 : index
    %c0_450 = arith.constant 0 : index
    %c0_451 = arith.constant 0 : index
    %428 = vector.load %arg8[%c4_449, %c0_450, %c0_451] : memref<9x32x32xf32, #tpu.memory_space<vmem>>, vector<1x32x32xf32>
    %429 = vector.shape_cast %428 : vector<1x32x32xf32> to vector<32x32xf32>
    %cst_452 = arith.constant dense<0.000000e+00> : vector<8x32xf32>
    %430 = tpu.matmul %427, %429, %cst_452 {dimension_numbers = #tpu.dot_dimension_numbers<[1], [0], [0], [1], [0, 0, 1, 1], [], []>} : vector<8x32xf32>, vector<32x32xf32>, vector<8x32xf32> -> vector<8x32xf32>
    %c0_453 = arith.constant 0 : index
    %c0_454 = arith.constant 0 : index
    %431 = vector.load %arg16[%c0_453, %c0_454] : memref<288x32xf32, #tpu.memory_space<vmem>>, vector<8x32xf32>
    %432 = arith.addf %431, %430 : vector<8x32xf32>
    %c0_455 = arith.constant 0 : index
    %c0_456 = arith.constant 0 : index
    %433 = vector.load %arg16[%c0_455, %c0_456] : memref<288x32xf32, #tpu.memory_space<vmem>>, vector<8x32xf32>
    tpu.vector_store %arg16[%c0_455, %c0_456], %432 {strides = array<i32>} : memref<288x32xf32, #tpu.memory_space<vmem>>, vector<8x32xf32>,
    %c8_457 = arith.constant 8 : index
    %c0_458 = arith.constant 0 : index
    %434 = tpu.strided_load %arg15[%c8_457, %c0_458] {strides = array<i32: 2, 1>} : memref<36x32xf32, #tpu.memory_space<vmem>>, vector<8x32xf32>
    %c5_459 = arith.constant 5 : index
    %c0_460 = arith.constant 0 : index
    %c0_461 = arith.constant 0 : index
    %435 = vector.load %arg8[%c5_459, %c0_460, %c0_461] : memref<9x32x32xf32, #tpu.memory_space<vmem>>, vector<1x32x32xf32>
    %436 = vector.shape_cast %435 : vector<1x32x32xf32> to vector<32x32xf32>
    %cst_462 = arith.constant dense<0.000000e+00> : vector<8x32xf32>
    %437 = tpu.matmul %434, %436, %cst_462 {dimension_numbers = #tpu.dot_dimension_numbers<[1], [0], [0], [1], [0, 0, 1, 1], [], []>} : vector<8x32xf32>, vector<32x32xf32>, vector<8x32xf32> -> vector<8x32xf32>
    %c0_463 = arith.constant 0 : index
    %c0_464 = arith.constant 0 : index
    %438 = vector.load %arg16[%c0_463, %c0_464] : memref<288x32xf32, #tpu.memory_space<vmem>>, vector<8x32xf32>
    %439 = arith.addf %438, %437 : vector<8x32xf32>
    %c0_465 = arith.constant 0 : index
    %c0_466 = arith.constant 0 : index
    %440 = vector.load %arg16[%c0_465, %c0_466] : memref<288x32xf32, #tpu.memory_space<vmem>>, vector<8x32xf32>
    tpu.vector_store %arg16[%c0_465, %c0_466], %439 {strides = array<i32>} : memref<288x32xf32, #tpu.memory_space<vmem>>, vector<8x32xf32>,
    %c12_467 = arith.constant 12 : index
    %c0_468 = arith.constant 0 : index
    %441 = tpu.strided_load %arg15[%c12_467, %c0_468] {strides = array<i32: 2, 1>} : memref<36x32xf32, #tpu.memory_space<vmem>>, vector<8x32xf32>
    %c6_469 = arith.constant 6 : index
    %c0_470 = arith.constant 0 : index
    %c0_471 = arith.constant 0 : index
    %442 = vector.load %arg8[%c6_469, %c0_470, %c0_471] : memref<9x32x32xf32, #tpu.memory_space<vmem>>, vector<1x32x32xf32>
    %443 = vector.shape_cast %442 : vector<1x32x32xf32> to vector<32x32xf32>
    %cst_472 = arith.constant dense<0.000000e+00> : vector<8x32xf32>
    %444 = tpu.matmul %441, %443, %cst_472 {dimension_numbers = #tpu.dot_dimension_numbers<[1], [0], [0], [1], [0, 0, 1, 1], [], []>} : vector<8x32xf32>, vector<32x32xf32>, vector<8x32xf32> -> vector<8x32xf32>
    %c0_473 = arith.constant 0 : index
    %c0_474 = arith.constant 0 : index
    %445 = vector.load %arg16[%c0_473, %c0_474] : memref<288x32xf32, #tpu.memory_space<vmem>>, vector<8x32xf32>
    %446 = arith.addf %445, %444 : vector<8x32xf32>
    %c0_475 = arith.constant 0 : index
    %c0_476 = arith.constant 0 : index
    %447 = vector.load %arg16[%c0_475, %c0_476] : memref<288x32xf32, #tpu.memory_space<vmem>>, vector<8x32xf32>
    tpu.vector_store %arg16[%c0_475, %c0_476], %446 {strides = array<i32>} : memref<288x32xf32, #tpu.memory_space<vmem>>, vector<8x32xf32>,
    %c13_477 = arith.constant 13 : index
    %c0_478 = arith.constant 0 : index
    %448 = tpu.strided_load %arg15[%c13_477, %c0_478] {strides = array<i32: 2, 1>} : memref<36x32xf32, #tpu.memory_space<vmem>>, vector<8x32xf32>
    %c7_479 = arith.constant 7 : index
    %c0_480 = arith.constant 0 : index
    %c0_481 = arith.constant 0 : index
    %449 = vector.load %arg8[%c7_479, %c0_480, %c0_481] : memref<9x32x32xf32, #tpu.memory_space<vmem>>, vector<1x32x32xf32>
    %450 = vector.shape_cast %449 : vector<1x32x32xf32> to vector<32x32xf32>
    %cst_482 = arith.constant dense<0.000000e+00> : vector<8x32xf32>
    %451 = tpu.matmul %448, %450, %cst_482 {dimension_numbers = #tpu.dot_dimension_numbers<[1], [0], [0], [1], [0, 0, 1, 1], [], []>} : vector<8x32xf32>, vector<32x32xf32>, vector<8x32xf32> -> vector<8x32xf32>
    %c0_483 = arith.constant 0 : index
    %c0_484 = arith.constant 0 : index
    %452 = vector.load %arg16[%c0_483, %c0_484] : memref<288x32xf32, #tpu.memory_space<vmem>>, vector<8x32xf32>
    %453 = arith.addf %452, %451 : vector<8x32xf32>
    %c0_485 = arith.constant 0 : index
    %c0_486 = arith.constant 0 : index
    %454 = vector.load %arg16[%c0_485, %c0_486] : memref<288x32xf32, #tpu.memory_space<vmem>>, vector<8x32xf32>
    tpu.vector_store %arg16[%c0_485, %c0_486], %453 {strides = array<i32>} : memref<288x32xf32, #tpu.memory_space<vmem>>, vector<8x32xf32>,
    %c14 = arith.constant 14 : index
    %c0_487 = arith.constant 0 : index
    %455 = tpu.strided_load %arg15[%c14, %c0_487] {strides = array<i32: 2, 1>} : memref<36x32xf32, #tpu.memory_space<vmem>>, vector<8x32xf32>
    %c8_488 = arith.constant 8 : index
    %c0_489 = arith.constant 0 : index
    %c0_490 = arith.constant 0 : index
    %456 = vector.load %arg8[%c8_488, %c0_489, %c0_490] : memref<9x32x32xf32, #tpu.memory_space<vmem>>, vector<1x32x32xf32>
    %457 = vector.shape_cast %456 : vector<1x32x32xf32> to vector<32x32xf32>
    %cst_491 = arith.constant dense<0.000000e+00> : vector<8x32xf32>
    %458 = tpu.matmul %455, %457, %cst_491 {dimension_numbers = #tpu.dot_dimension_numbers<[1], [0], [0], [1], [0, 0, 1, 1], [], []>} : vector<8x32xf32>, vector<32x32xf32>, vector<8x32xf32> -> vector<8x32xf32>
    %c0_492 = arith.constant 0 : index
    %c0_493 = arith.constant 0 : index
    %459 = vector.load %arg16[%c0_492, %c0_493] : memref<288x32xf32, #tpu.memory_space<vmem>>, vector<8x32xf32>
    %460 = arith.addf %459, %458 : vector<8x32xf32>
    %c0_494 = arith.constant 0 : index
    %c0_495 = arith.constant 0 : index
    %461 = vector.load %arg16[%c0_494, %c0_495] : memref<288x32xf32, #tpu.memory_space<vmem>>, vector<8x32xf32>
    tpu.vector_store %arg16[%c0_494, %c0_495], %460 {strides = array<i32>} : memref<288x32xf32, #tpu.memory_space<vmem>>, vector<8x32xf32>,
    %c0_496 = arith.constant 0 : index
    %c0_497 = arith.constant 0 : index
    %462 = vector.load %arg16[%c0_496, %c0_497] : memref<288x32xf32, #tpu.memory_space<vmem>>, vector<2x32xf32>
    %463 = vector.broadcast %400 : vector<1x32xf32> to vector<2x32xf32>
    %464 = arith.addf %462, %463 : vector<2x32xf32>
    %cst_498 = arith.constant 0.000000e+00 : f32
    %465 = vector.broadcast %cst_498 : f32 to vector<2x32xf32>
    %466 = arith.maximumf %464, %465 : vector<2x32xf32>
    %c6_499 = arith.constant 6 : index
    %c0_500 = arith.constant 0 : index
    %467 = vector.load %arg16[%c6_499, %c0_500] : memref<288x32xf32, #tpu.memory_space<vmem>>, vector<2x32xf32>
    %468 = vector.broadcast %400 : vector<1x32xf32> to vector<2x32xf32>
    %469 = arith.addf %467, %468 : vector<2x32xf32>
    %cst_501 = arith.constant 0.000000e+00 : f32
    %470 = vector.broadcast %cst_501 : f32 to vector<2x32xf32>
    %471 = arith.maximumf %469, %470 : vector<2x32xf32>
    %472 = tpu.concatenate %466, %471 in 0 : vector<2x32xf32>, vector<2x32xf32> -> vector<4x32xf32>
    %c0_502 = arith.constant 0 : index
    %c0_503 = arith.constant 0 : index
    %473 = vector.load %arg10[%c0_502, %c0_503] : memref<32x24xf32, #tpu.memory_space<vmem>>, vector<32x24xf32>
    %cst_504 = arith.constant dense<0.000000e+00> : vector<4x24xf32>
    %474 = tpu.matmul %472, %473, %cst_504 {dimension_numbers = #tpu.dot_dimension_numbers<[1], [0], [0], [1], [0, 0, 1, 1], [], []>} : vector<4x32xf32>, vector<32x24xf32>, vector<4x24xf32> -> vector<4x24xf32>
    %c0_505 = arith.constant 0 : index
    %c0_506 = arith.constant 0 : index
    %475 = vector.load %arg11[%c0_505, %c0_506] : memref<1x24xf32, #tpu.memory_space<vmem>>, vector<1x24xf32>
    %476 = vector.broadcast %475 : vector<1x24xf32> to vector<4x24xf32>
    %477 = arith.addf %474, %476 : vector<4x24xf32>
    %c0_507 = arith.constant 0 : index
    %c0_508 = arith.constant 0 : index
    %c0_509 = arith.constant 0 : index
    %478 = vector.load %arg12[%c0_507, %c0_508, %c0_509] : memref<1x4x24xf32, #tpu.memory_space<vmem>>, vector<1x4x24xf32>
    %479 = vector.shape_cast %478 : vector<1x4x24xf32> to vector<4x24xf32>
    %480 = vector.shape_cast %477 : vector<4x24xf32> to vector<1x4x24xf32>
    tpu.vector_store %arg12[%c0_507, %c0_508, %c0_509], %480 {strides = array<i32>} : memref<1x4x24xf32, #tpu.memory_space<vmem>>, vector<1x4x24xf32>,
    return
  }
  func.func @transform_0(%arg0: i32) -> (i32, i32, i32) {
    %c0_i32 = arith.constant 0 : i32
    %c0_i32_0 = arith.constant 0 : i32
    %c0_i32_1 = arith.constant 0 : i32
    return %arg0, %c0_i32, %c0_i32_0 : i32, i32, i32
  }
  func.func @transform_1(%arg0: i32) -> (i32, i32, i32) {
    %c0_i32 = arith.constant 0 : i32
    %c0_i32_0 = arith.constant 0 : i32
    %c0_i32_1 = arith.constant 0 : i32
    %c0_i32_2 = arith.constant 0 : i32
    return %c0_i32, %c0_i32_0, %c0_i32_1 : i32, i32, i32
  }
  func.func @transform_2(%arg0: i32) -> (i32, i32) {
    %c0_i32 = arith.constant 0 : i32
    %c0_i32_0 = arith.constant 0 : i32
    %c0_i32_1 = arith.constant 0 : i32
    return %c0_i32, %c0_i32_0 : i32, i32
  }
  func.func @transform_3(%arg0: i32) -> (i32, i32, i32) {
    %c0_i32 = arith.constant 0 : i32
    %c0_i32_0 = arith.constant 0 : i32
    %c0_i32_1 = arith.constant 0 : i32
    %c0_i32_2 = arith.constant 0 : i32
    return %c0_i32, %c0_i32_0, %c0_i32_1 : i32, i32, i32
  }
  func.func @transform_4(%arg0: i32) -> (i32, i32) {
    %c0_i32 = arith.constant 0 : i32
    %c0_i32_0 = arith.constant 0 : i32
    %c0_i32_1 = arith.constant 0 : i32
    return %c0_i32, %c0_i32_0 : i32, i32
  }
  func.func @transform_5(%arg0: i32) -> (i32, i32, i32) {
    %c0_i32 = arith.constant 0 : i32
    %c0_i32_0 = arith.constant 0 : i32
    %c0_i32_1 = arith.constant 0 : i32
    %c0_i32_2 = arith.constant 0 : i32
    return %c0_i32, %c0_i32_0, %c0_i32_1 : i32, i32, i32
  }
  func.func @transform_6(%arg0: i32) -> (i32, i32) {
    %c0_i32 = arith.constant 0 : i32
    %c0_i32_0 = arith.constant 0 : i32
    %c0_i32_1 = arith.constant 0 : i32
    return %c0_i32, %c0_i32_0 : i32, i32
  }
  func.func @transform_7(%arg0: i32) -> (i32, i32, i32) {
    %c0_i32 = arith.constant 0 : i32
    %c0_i32_0 = arith.constant 0 : i32
    %c0_i32_1 = arith.constant 0 : i32
    %c0_i32_2 = arith.constant 0 : i32
    return %c0_i32, %c0_i32_0, %c0_i32_1 : i32, i32, i32
  }
  func.func @transform_8(%arg0: i32) -> (i32, i32) {
    %c0_i32 = arith.constant 0 : i32
    %c0_i32_0 = arith.constant 0 : i32
    %c0_i32_1 = arith.constant 0 : i32
    return %c0_i32, %c0_i32_0 : i32, i32
  }
  func.func @transform_9(%arg0: i32) -> (i32, i32) {
    %c0_i32 = arith.constant 0 : i32
    %c0_i32_0 = arith.constant 0 : i32
    %c0_i32_1 = arith.constant 0 : i32
    return %c0_i32, %c0_i32_0 : i32, i32
  }
  func.func @transform_10(%arg0: i32) -> (i32, i32) {
    %c0_i32 = arith.constant 0 : i32
    %c0_i32_0 = arith.constant 0 : i32
    %c0_i32_1 = arith.constant 0 : i32
    return %c0_i32, %c0_i32_0 : i32, i32
  }
  func.func @transform_11(%arg0: i32) -> (i32, i32, i32) {
    %c0_i32 = arith.constant 0 : i32
    %c0_i32_0 = arith.constant 0 : i32
    %c0_i32_1 = arith.constant 0 : i32
    return %arg0, %c0_i32, %c0_i32_0 : i32, i32, i32
  }
}

</mosaic_0001>

<bundles_post_ra>
// kernel: hcr_conv_head_forward.1
= control target key start
LH: loop header
LB: loop body
LE: loop exit
PB: predicated region body
PF: predicated region fallthrough
CT: control target
= control target key end

     0   :  { %s12641_s17 = smov 0   ;;  %s15362_s0 = inlined_call_operand.vmem [shape: f32[2,324,4], index: 0, kind: input, shape index: {}]   ;;  %s15363_s1 = inlined_call_operand.vmem [shape: f32[9,4,32], index: 1, kind: input, shape index: {}]   ;;  %s15364_s2 = inlined_call_operand.vmem [shape: f32[1,32], index: 2, kind: input, shape index: {}]   ;;  %s15365_s3 = inlined_call_operand.vmem [shape: f32[9,32,32], index: 3, kind: input, shape index: {}]   ;;  %s15366_s4 = inlined_call_operand.vmem [shape: f32[1,32], index: 4, kind: input, shape index: {}]   ;;  %s15367_s5 = inlined_call_operand.vmem [shape: f32[9,32,32], index: 5, kind: input, shape index: {}]   ;;  %s15368_s6 = inlined_call_operand.vmem [shape: f32[1,32], index: 6, kind: input, shape index: {}]   ;;  %s15369_s7 = inlined_call_operand.vmem [shape: f32[9,32,32], index: 7, kind: input, shape index: {}]   ;;  %s15370_s8 = inlined_call_operand.vmem [shape: f32[1,32], index: 8, kind: input, shape index: {}]   ;;  %s15371_s9 = inlined_call_operand.vmem [shape: f32[32,24], index: 9, kind: input, shape index: {}]   ;;  %s15372_s10 = inlined_call_operand.vmem [shape: f32[1,24], index: 10, kind: input, shape index: {}]   ;;  %s15373_s11 = inlined_call_operand.vmem [shape: f32[2,4,24], index: 11, kind: output, shape index: {}]  }
   0x1 LB: > { %s9726_s18 = sadd.s32 4294967295, %s12576_s17   ;;  %p9730_p0 = scmp.ge.s32.totalorder %s12576_s17, 1  ;;  %s12576_s17 = sphi %s12641_s17, %s21_s17  }
   0x2   : > { %p337_p1 = scmp.lt.s32.totalorder %s12576_s17, 3 }
   0x4   : > { %p338_p2 = pnand %p9730_p0, %p337_p1 }
   0x5   : > { %v463_v0 = vld [vmem:[%s15363_s1] sm:$0xf] (!%p338_p2)  ;;  %vm573_vm0 = vcmask (!%p338_p2), 1043456   ;;  %p376_p3 = scmp.lt.s32.totalorder (!%p338_p2), %s9726_s18, 1  ;;  %v9808_v1 = vld [vmem:[%s15363_s1 + $0x8] sm:$0xf] (!%p338_p2) }
   0x6   : > { %341 = sbr.rel (%p338_p2) target bundleno = 1936 (0x790), region = 64  ;;  %11038 = vmatprep.subr.msk.mxu0 (!%p338_p2), %vm573_vm0, %v463_v0  ;;  %v9770_v2 = vld [vmem:[%s15363_s1 + $0x4] sm:$0xf] (!%p338_p2)  ;;  %v9846_v3 = vld [vmem:[%s15363_s1 + $0xc] sm:$0xf] (!%p338_p2)  ;;  %vm464_vm1 = vcmask (!%p338_p2), 31744  }
   0x7   : > { %11039 = vmatpush3.msk.msra.mxu0 (!%p338_p2), %vm573_vm0, %v463_v0  ;;  %11094 = vmatprep.subr.msk.mxu1 (!%p338_p2), %vm573_vm0, %v9770_v2  ;;  %v12683_v8 = vld [vmem:[%s15363_s1 + $0x10] sm:$0xf] (!%p338_p2)  ;;  %v12760_v43 = vld [vmem:[%s15363_s1 + $0x14] sm:$0xf] (!%p338_p2)  ;;  %vm385_vm2 = vcmask (!%p338_p2), 261120   ;;  %vm857_vm3 = vcmask (!%p338_p2), 259072  }
   0x8   : > { %11150 = vmatprep.subr.msk.mxu0 (!%p338_p2), %vm573_vm0, %v9808_v1  ;;  %11095 = vmatpush3.msk.msra.mxu1 (!%p338_p2), %vm573_vm0, %v9770_v2  ;;  %vm388_vm4 = vcmask (!%p338_p2), 256000   ;;  %vm12580_vm5 = vmmov (!%p338_p2), 0   ;;  %vm390_vm6 = vcmask (!%p338_p2), 254976   ;;  %vm420_vm7 = vcmask (!%p338_p2), 260096  }
   0x9   : > { %11206 = vmatprep.subr.msk.mxu1 (!%p338_p2), %vm573_vm0, %v9846_v3  ;;  %vm8812_vm8 = vcmask (!%p338_p2), 257024   ;;  %vm9585_vm9 = vcmask (!%p338_p2), 1041408   ;;  %vm9671_vm10 = vcmask (!%p338_p2), 191488  }
   0xd   : > { %s15375_s18 = smov (!%p376_p3, %s9726_s18), 1 }
   0xe   : > { %s12558_s27 = smul.u32 328, %s15375_s18  ;;  %s9732_s16 = sshll.u32 %s15375_s18, 2 }
   0xf   : > { %s384_s23 = scalar_lea.vmem %s15373_s11, %s9732_s16 }
  0x10   : > { %s12673_s30 = scalar_lea.vmem %s15362_s0, %s12558_s27 }
  0x11   : > { %v427_v4 = vld [vmem:[%s12673_s30] sm:$0xff]  ;;  %v428_v5 = vld [vmem:[%s12673_s30 + $0x8] sm:$0xff]  ;;  %v429_v6 = vld [vmem:[%s12673_s30 + $0x10] sm:$0xff] }
  0x12   : > { %11040 = vmatprep.mubr.msk.f32.mxu0 %vm464_vm1, %v427_v4  ;;  %v859_v7 = vld [vmem:[%s12673_s30 + $0x1] sm:$0xff]  ;;  %v860_v9 = vld [vmem:[%s12673_s30 + $0x9] sm:$0xff]  ;;  %v430_v10 = vld [vmem:[%s12673_s30 + $0x18] sm:$0xff] }
  0x13   : > { %11041 = vmatmul.mubr.msk.f32.vlgmr.msra.gmra.mrb[0].mxu0 %vm464_vm1, %v428_v5  ;;  %11096 = vmatprep.mubr.msk.f32.mxu1 %vm464_vm1, %v859_v7  ;;  %v861_v11 = vld [vmem:[%s12673_s30 + $0x11] sm:$0xff]  ;;  %v431_v12 = vld [vmem:[%s12673_s30 + $0x20] sm:$0xff]  ;;  %v432_v15 = vld [vmem:[%s12673_s30 + $0x28] sm:$0xff] }
  0x14   : > { %11151 = vmatpush3.msk.msra.mxu0 %vm573_vm0, %v9808_v1  ;;  %11043 = vmatprep.mubr.msk.f32.mxu0 %vm464_vm1, %v429_v6  ;;  %v862_v13 = vld [vmem:[%s12673_s30 + $0x19] sm:$0xff]  ;;  %v863_v14 = vld [vmem:[%s12673_s30 + $0x21] sm:$0xff]  ;;  %v433_v16 = vld [vmem:[%s12673_s30 + $0x30] sm:$0xff] }
  0x15   : > { %11097 = vmatmul.mubr.msk.f32.vlgmr.msra.gmra.mrb[0].mxu1 %vm464_vm1, %v860_v9  ;;  %11262 = vmatprep.subr.msk.mxu0 %vm573_vm0, %v12683_v8  ;;  %v864_v17 = vld [vmem:[%s12673_s30 + $0x29] sm:$0xff]  ;;  %v865_v18 = vld [vmem:[%s12673_s30 + $0x31] sm:$0xff]  ;;  %v435_v20 = vld [vmem:[%s12673_s30 + $0x40] sm:$0xff] }
  0x16   : > { %11099 = vmatprep.mubr.msk.f32.mxu1 %vm464_vm1, %v861_v11  ;;  %11207 = vmatpush3.msk.msra.mxu1 %vm573_vm0, %v9846_v3  ;;  %v434_v19 = vld [vmem:[%s12673_s30 + $0x38] sm:$0xff]  ;;  %v867_v22 = vld [vmem:[%s12673_s30 + $0x41] sm:$0xff]  ;;  %v437_v24 = vld [vmem:[%s12673_s30 + $0x50] sm:$0xff] }
  0x17   : > { %11044 = vmatmul.mubr.msk.f32.gmra.mrb[2].mxu0 %vm464_vm1, %v430_v10  ;;  %v866_v21 = vld [vmem:[%s12673_s30 + $0x39] sm:$0xff]  ;;  %v436_v23 = vld [vmem:[%s12673_s30 + $0x48] sm:$0xff]  ;;  %v869_v26 = vld [vmem:[%s12673_s30 + $0x51] sm:$0xff]  ;;  %11318 = vmatprep.subr.msk.mxu1 %vm573_vm0, %v12760_v43 }
  0x18   : > { %11046 = vmatprep.mubr.msk.f32.mxu0 %vm464_vm1, %v431_v12  ;;  %v868_v25 = vld [vmem:[%s12673_s30 + $0x49] sm:$0xff]  ;;  %v438_v27 = vld [vmem:[%s12673_s30 + $0x58] sm:$0xff]  ;;  %v439_v28 = vld [vmem:[%s12673_s30 + $0x60] sm:$0xff] }
  0x19   : > { %11100 = vmatmul.mubr.msk.f32.gmra.mrb[2].mxu1 %vm464_vm1, %v862_v13  ;;  %v870_v29 = vld [vmem:[%s12673_s30 + $0x59] sm:$0xff]  ;;  %v871_v30 = vld [vmem:[%s12673_s30 + $0x61] sm:$0xff]  ;;  %v441_v32 = vld [vmem:[%s12673_s30 + $0x70] sm:$0xff] }
  0x1a   : > { %11102 = vmatprep.mubr.msk.f32.mxu1 %vm464_vm1, %v863_v14  ;;  %v440_v31 = vld [vmem:[%s12673_s30 + $0x68] sm:$0xff]  ;;  %v873_v34 = vld [vmem:[%s12673_s30 + $0x71] sm:$0xff]  ;;  %v443_v36 = vld [vmem:[%s12673_s30 + $0x80] sm:$0xff] }
  0x1b   : > { %11047 = vmatmul.mubr.msk.f32.gmra.mrb[4].mxu0 %vm464_vm1, %v432_v15  ;;  %v872_v33 = vld [vmem:[%s12673_s30 + $0x69] sm:$0xff]  ;;  %v442_v35 = vld [vmem:[%s12673_s30 + $0x78] sm:$0xff]  ;;  %v875_v38 = vld [vmem:[%s12673_s30 + $0x81] sm:$0xff] }
  0x1c   : > { %11049 = vmatprep.mubr.msk.f32.mxu0 %vm464_vm1, %v433_v16  ;;  %v874_v37 = vld [vmem:[%s12673_s30 + $0x79] sm:$0xff]  ;;  %v444_v39 = vld [vmem:[%s12673_s30 + $0x88] sm:$0xff]  ;;  %v445_v40 = vld [vmem:[%s12673_s30 + $0x90] sm:$0xff] }
  0x1d   : > { %11103 = vmatmul.mubr.msk.f32.gmra.mrb[4].mxu1 %vm464_vm1, %v864_v17  ;;  %v876_v41 = vld [vmem:[%s12673_s30 + $0x89] sm:$0xff]  ;;  %v877_v42 = vld [vmem:[%s12673_s30 + $0x91] sm:$0xff]  ;;  %v447_v45 = vld [vmem:[%s12673_s30 + $0xa0] sm:$0xff] }
  0x1e   : > { %11105 = vmatprep.mubr.msk.f32.mxu1 %vm464_vm1, %v865_v18  ;;  %v446_v44 = vld [vmem:[%s12673_s30 + $0x98] sm:$0xff]  ;;  %v879_v47 = vld [vmem:[%s12673_s30 + $0xa1] sm:$0xff]  ;;  %v449_v49 = vld [vmem:[%s12673_s30 + $0xb0] sm:$0xff] }
  0x1f   : > { %11050 = vmatmul.mubr.msk.f32.gmra.mrb[6].mxu0 %vm464_vm1, %v434_v19  ;;  %v878_v46 = vld [vmem:[%s12673_s30 + $0x99] sm:$0xff]  ;;  %v448_v48 = vld [vmem:[%s12673_s30 + $0xa8] sm:$0xff]  ;;  %v881_v51 = vld [vmem:[%s12673_s30 + $0xb1] sm:$0xff] }
  0x20   : > { %11052 = vmatprep.mubr.msk.f32.mxu0 %vm464_vm1, %v435_v20  ;;  %v880_v50 = vld [vmem:[%s12673_s30 + $0xa9] sm:$0xff]  ;;  %v450_v52 = vld [vmem:[%s12673_s30 + $0xb8] sm:$0xff]  ;;  %v451_v53 = vld [vmem:[%s12673_s30 + $0xc0] sm:$0xff] }
  0x21   : > { %11106 = vmatmul.mubr.msk.f32.gmra.mrb[6].mxu1 %vm464_vm1, %v866_v21  ;;  %v882_v54 = vld [vmem:[%s12673_s30 + $0xb9] sm:$0xff]  ;;  %v883_v55 = vld [vmem:[%s12673_s30 + $0xc1] sm:$0xff]  ;;  %v453_v57 = vld [vmem:[%s12673_s30 + $0xd0] sm:$0xff] }
  0x22   : > { %11108 = vmatprep.mubr.msk.f32.mxu1 %vm464_vm1, %v867_v22  ;;  %v452_v56 = vld [vmem:[%s12673_s30 + $0xc8] sm:$0xff]  ;;  %v885_v59 = vld [vmem:[%s12673_s30 + $0xd1] sm:$0xff]  ;;  %v455_v61 = vld [vmem:[%s12673_s30 + $0xe0] sm:$0xff] }
  0x23   : > { %11053 = vmatmul.mubr.msk.f32.gmra.mrb[8].mxu0 %vm464_vm1, %v436_v23  ;;  %v884_v58 = vld [vmem:[%s12673_s30 + $0xc9] sm:$0xff]  ;;  %v454_v60 = vld [vmem:[%s12673_s30 + $0xd8] sm:$0xff]  ;;  %v887_v63 = vld [vmem:[%s12673_s30 + $0xe1] sm:$0xff] }
  0x24   : > { %11055 = vmatprep.mubr.msk.f32.mxu0 %vm464_vm1, %v437_v24  ;;  %v886_v62 = vld [vmem:[%s12673_s30 + $0xd9] sm:$0xff]  ;;  %v456_v0 = vld [vmem:[%s12673_s30 + $0xe8] sm:$0xff]  ;;  %v457_v1 = vld [vmem:[%s12673_s30 + $0xf0] sm:$0xff] }
  0x25   : > { %11109 = vmatmul.mubr.msk.f32.gmra.mrb[8].mxu1 %vm464_vm1, %v868_v25  ;;  %v888_v2 = vld [vmem:[%s12673_s30 + $0xe9] sm:$0xff]  ;;  %v889_v3 = vld [vmem:[%s12673_s30 + $0xf1] sm:$0xff]  ;;  %v459_v5 = vld [vmem:[%s12673_s30 + $0x100] sm:$0xff] }
  0x26   : > { %11111 = vmatprep.mubr.msk.f32.mxu1 %vm464_vm1, %v869_v26  ;;  %v458_v4 = vld [vmem:[%s12673_s30 + $0xf8] sm:$0xff]  ;;  %v891_v7 = vld [vmem:[%s12673_s30 + $0x101] sm:$0xff]  ;;  %v461_v10 = vld [vmem:[%s12673_s30 + $0x110] sm:$0xff] }
  0x27   : > { %11056 = vmatmul.mubr.msk.f32.gmra.mrb[10].mxu0 %vm464_vm1, %v438_v27  ;;  %v890_v6 = vld [vmem:[%s12673_s30 + $0xf9] sm:$0xff]  ;;  %v460_v9 = vld [vmem:[%s12673_s30 + $0x108] sm:$0xff]  ;;  %v893_v12 = vld [vmem:[%s12673_s30 + $0x111] sm:$0xff] }
  0x28   : > { %11058 = vmatprep.mubr.msk.f32.mxu0 %vm464_vm1, %v439_v28  ;;  %v892_v11 = vld [vmem:[%s12673_s30 + $0x109] sm:$0xff]  ;;  %v462_v13 = vld [vmem:[%s12673_s30 + $0x118] sm:$0x3f] }
  0x29   : > { %11112 = vmatmul.mubr.msk.f32.gmra.mrb[10].mxu1 %vm464_vm1, %v870_v29  ;;  %v1361_v14 = vld [vmem:[%s12673_s30 + $0x2] sm:$0xff]  ;;  %v894_v15 = vld [vmem:[%s12673_s30 + $0x119] sm:$0x3f]  ;;  %v1362_v16 = vld [vmem:[%s12673_s30 + $0xa] sm:$0xff] }
  0x2a   : > { %11114 = vmatprep.mubr.msk.f32.mxu1 %vm464_vm1, %v871_v30  ;;  %v1363_v17 = vld [vmem:[%s12673_s30 + $0x12] sm:$0xff]  ;;  %v1364_v19 = vld [vmem:[%s12673_s30 + $0x1a] sm:$0xff]  ;;  %v1365_v20 = vld [vmem:[%s12673_s30 + $0x22] sm:$0xff] }
  0x2b   : > { %11059 = vmatmul.mubr.msk.f32.gmra.mrb[12].mxu0 %vm464_vm1, %v440_v31  ;;  %v12843_v18 = vld [vmem:[%s15363_s1 + $0x18] sm:$0xf]  ;;  %v1366_v21 = vld [vmem:[%s12673_s30 + $0x2a] sm:$0xff]  ;;  %v1369_v24 = vld [vmem:[%s12673_s30 + $0x42] sm:$0xff] }
  0x2c   : > { %11061 = vmatprep.mubr.msk.f32.mxu0 %vm464_vm1, %v441_v32  ;;  %v1367_v22 = vld [vmem:[%s12673_s30 + $0x32] sm:$0xff]  ;;  %v1368_v23 = vld [vmem:[%s12673_s30 + $0x3a] sm:$0xff]  ;;  %v1370_v25 = vld [vmem:[%s12673_s30 + $0x4a] sm:$0xff] }
  0x2d   : > { %11115 = vmatmul.mubr.msk.f32.gmra.mrb[12].mxu1 %vm464_vm1, %v872_v33  ;;  %v1371_v26 = vld [vmem:[%s12673_s30 + $0x52] sm:$0xff]  ;;  %v1372_v27 = vld [vmem:[%s12673_s30 + $0x5a] sm:$0xff]  ;;  %v1373_v28 = vld [vmem:[%s12673_s30 + $0x62] sm:$0xff] }
  0x2e   : > { %11117 = vmatprep.mubr.msk.f32.mxu1 %vm464_vm1, %v873_v34  ;;  %v1374_v29 = vld [vmem:[%s12673_s30 + $0x6a] sm:$0xff]  ;;  %v1375_v30 = vld [vmem:[%s12673_s30 + $0x72] sm:$0xff]  ;;  %v1376_v31 = vld [vmem:[%s12673_s30 + $0x7a] sm:$0xff] }
  0x2f   : > { %11062 = vmatmul.mubr.msk.f32.gmra.mrb[14].mxu0 %vm464_vm1, %v442_v35  ;;  %v1377_v32 = vld [vmem:[%s12673_s30 + $0x82] sm:$0xff]  ;;  %v1378_v33 = vld [vmem:[%s12673_s30 + $0x8a] sm:$0xff]  ;;  %v1379_v34 = vld [vmem:[%s12673_s30 + $0x92] sm:$0xff] }
  0x30   : > { %11064 = vmatprep.mubr.msk.f32.mxu0 %vm464_vm1, %v443_v36  ;;  %v1380_v35 = vld [vmem:[%s12673_s30 + $0x9a] sm:$0xff]  ;;  %v1381_v36 = vld [vmem:[%s12673_s30 + $0xa2] sm:$0xff] }
  0x31   : > { %11118 = vmatmul.mubr.msk.f32.gmra.mrb[14].mxu1 %vm464_vm1, %v874_v37  ;;  %v1382_v37 = vld [vmem:[%s12673_s30 + $0xaa] sm:$0xff] }
  0x32   : > { %11120 = vmatprep.mubr.msk.f32.mxu1 %vm464_vm1, %v875_v38  ;;  %v1383_v38 = vld [vmem:[%s12673_s30 + $0xb2] sm:$0xff] }
  0x33   : > { %11065 = vmatmul.mubr.msk.f32.gmra.mrb[16].mxu0 %vm464_vm1, %v444_v39  ;;  %v1384_v39 = vld [vmem:[%s12673_s30 + $0xba] sm:$0xff] }
  0x34   : > { %11067 = vmatprep.mubr.msk.f32.mxu0 %vm464_vm1, %v445_v40  ;;  %v1385_v40 = vld [vmem:[%s12673_s30 + $0xc2] sm:$0xff] }
  0x35   : > { %11121 = vmatmul.mubr.msk.f32.gmra.mrb[16].mxu1 %vm464_vm1, %v876_v41  ;;  %v1386_v41 = vld [vmem:[%s12673_s30 + $0xca] sm:$0xff] }
  0x36   : > { %11123 = vmatprep.mubr.msk.f32.mxu1 %vm464_vm1, %v877_v42  ;;  %v1387_v42 = vld [vmem:[%s12673_s30 + $0xd2] sm:$0xff] }
  0x37   : > { %11068 = vmatmul.mubr.msk.f32.gmra.mrb[18].mxu0 %vm464_vm1, %v446_v44  ;;  %v1389_v44 = vld [vmem:[%s12673_s30 + $0xe2] sm:$0xff] }
  0x38   : > { %11070 = vmatprep.mubr.msk.f32.mxu0 %vm464_vm1, %v447_v45  ;;  %v1390_v45 = vld [vmem:[%s12673_s30 + $0xea] sm:$0xff] }
  0x39   : > { %11124 = vmatmul.mubr.msk.f32.gmra.mrb[18].mxu1 %vm464_vm1, %v878_v46  ;;  %v1391_v46 = vld [vmem:[%s12673_s30 + $0xf2] sm:$0xff] }
  0x3a   : > { %11126 = vmatprep.mubr.msk.f32.mxu1 %vm464_vm1, %v879_v47  ;;  %v1392_v47 = vld [vmem:[%s12673_s30 + $0xfa] sm:$0xff] }
  0x3b   : > { %11071 = vmatmul.mubr.msk.f32.gmra.mrb[20].mxu0 %vm464_vm1, %v448_v48  ;;  %v1393_v48 = vld [vmem:[%s12673_s30 + $0x102] sm:$0xff] }
  0x3c   : > { %11073 = vmatprep.mubr.msk.f32.mxu0 %vm464_vm1, %v449_v49  ;;  %v1394_v49 = vld [vmem:[%s12673_s30 + $0x10a] sm:$0xff] }
  0x3d   : > { %11127 = vmatmul.mubr.msk.f32.gmra.mrb[20].mxu1 %vm464_vm1, %v880_v50  ;;  %v1395_v50 = vld [vmem:[%s12673_s30 + $0x112] sm:$0xff] }
  0x3e   : > { %11129 = vmatprep.mubr.msk.f32.mxu1 %vm464_vm1, %v881_v51  ;;  %v1896_v51 = vld [vmem:[%s12673_s30 + $0x11a] sm:$0xff] }
  0x3f   : > { %11074 = vmatmul.mubr.msk.f32.gmra.mrb[22].mxu0 %vm464_vm1, %v450_v52  ;;  %v1897_v52 = vld [vmem:[%s12673_s30 + $0x122] sm:$0xff] }
  0x40   : > { %11076 = vmatprep.mubr.msk.f32.mxu0 %vm464_vm1, %v451_v53  ;;  %v1396_v53 = vld [vmem:[%s12673_s30 + $0x11a] sm:$0x3f] }
  0x41   : > { %11130 = vmatmul.mubr.msk.f32.gmra.mrb[22].mxu1 %vm464_vm1, %v882_v54  ;;  %v2365_v54 = vld [vmem:[%s12673_s30 + $0x13] sm:$0xff] }
  0x42   : > { %11132 = vmatprep.mubr.msk.f32.mxu1 %vm464_vm1, %v883_v55  ;;  %v1898_v55 = vld [vmem:[%s12673_s30 + $0x12a] sm:$0x3f] }
  0x43   : > { %11077 = vmatmul.mubr.msk.f32.gmra.mrb[24].mxu0 %vm464_vm1, %v452_v56  ;;  %v2867_v56 = vld [vmem:[%s12673_s30 + $0x14] sm:$0xff] }
  0x44   : > { %11079 = vmatprep.mubr.msk.f32.mxu0 %vm464_vm1, %v453_v57  ;;  %v2366_v57 = vld [vmem:[%s12673_s30 + $0x1b] sm:$0xff] }
  0x45   : > { %11133 = vmatmul.mubr.msk.f32.gmra.mrb[24].mxu1 %vm464_vm1, %v884_v58  ;;  %v2367_v58 = vld [vmem:[%s12673_s30 + $0x23] sm:$0xff] }
  0x46   : > { %11135 = vmatprep.mubr.msk.f32.mxu1 %vm464_vm1, %v885_v59  ;;  %v2868_v59 = vld [vmem:[%s12673_s30 + $0x1c] sm:$0xff] }
  0x47   : > { %11080 = vmatmul.mubr.msk.f32.gmra.mrb[26].mxu0 %vm464_vm1, %v454_v60  ;;  %v12974_v60 = vld [vmem:[%s15363_s1 + $0x20] sm:$0xf] }
  0x48   : > { %11082 = vmatprep.mubr.msk.f32.mxu0 %vm464_vm1, %v455_v61  ;;  %v12978_v61 = vld [vmem:[%s12673_s30 + $0x24] sm:$0xff] }
  0x49   : > { %11136 = vmatmul.mubr.msk.f32.gmra.mrb[26].mxu1 %vm464_vm1, %v886_v62  ;;  %v2368_v62 = vld [vmem:[%s12673_s30 + $0x2b] sm:$0xff] }
  0x4a   : > { %11138 = vmatprep.mubr.msk.f32.mxu1 %vm464_vm1, %v887_v63  ;;  %v2369_v63 = vld [vmem:[%s12673_s30 + $0x33] sm:$0xff] }
  0x4b   : > { %11083 = vmatmul.mubr.msk.f32.gmra.mrb[28].mxu0 %vm464_vm1, %v456_v0  ;;  %v12991_v0 = vld [vmem:[%s12673_s30 + $0x2c] sm:$0xff] }
  0x4c   : > { %11085 = vmatprep.mubr.msk.f32.mxu0 %vm464_vm1, %v457_v1  ;;  %v12997_v1 = vld [vmem:[%s12673_s30 + $0x34] sm:$0xff] }
  0x4d   : > { %11139 = vmatmul.mubr.msk.f32.gmra.mrb[28].mxu1 %vm464_vm1, %v888_v2  ;;  %v2370_v2 = vld [vmem:[%s12673_s30 + $0x3b] sm:$0xff] }
  0x4e   : > { %11141 = vmatprep.mubr.msk.f32.mxu1 %vm464_vm1, %v889_v3  ;;  %v2371_v3 = vld [vmem:[%s12673_s30 + $0x43] sm:$0xff] }
  0x4f   : > { %11086 = vmatmul.mubr.msk.f32.gmra.mrb[30].mxu0 %vm464_vm1, %v458_v4  ;;  %v13007_v4 = vld [vmem:[%s12673_s30 + $0x3c] sm:$0xff] }
  0x50   : > { %11088 = vmatprep.mubr.msk.f32.mxu0 %vm464_vm1, %v459_v5  ;;  %v13011_v5 = vld [vmem:[%s12673_s30 + $0x44] sm:$0xff] }
  0x51   : > { %11142 = vmatmul.mubr.msk.f32.gmra.mrb[30].mxu1 %vm464_vm1, %v890_v6  ;;  %v2372_v6 = vld [vmem:[%s12673_s30 + $0x4b] sm:$0xff] }
  0x52   : > { %11144 = vmatprep.mubr.msk.f32.mxu1 %vm464_vm1, %v891_v7  ;;  %v2373_v7 = vld [vmem:[%s12673_s30 + $0x53] sm:$0xff] }
  0x53   : > { %11089 = vmatmul.mubr.msk.f32.gmra.mrb[32].mxu0 %vm464_vm1, %v460_v9  ;;  %v13021_v9 = vld [vmem:[%s12673_s30 + $0x4c] sm:$0xff] }
  0x54   : > { %11091 = vmatprep.mubr.msk.f32.mxu0 %vm464_vm1, %v461_v10  ;;  %v13025_v10 = vld [vmem:[%s12673_s30 + $0x54] sm:$0xff] }
  0x55   : > { %11145 = vmatmul.mubr.msk.f32.gmra.mrb[32].mxu1 %vm464_vm1, %v892_v11  ;;  %v2374_v11 = vld [vmem:[%s12673_s30 + $0x5b] sm:$0xff] }
  0x56   : > { %11147 = vmatprep.mubr.msk.f32.mxu1 %vm464_vm1, %v893_v12  ;;  %v2375_v12 = vld [vmem:[%s12673_s30 + $0x63] sm:$0xff] }
  0x57   : > { %11092 = vmatmul.mubr.msk.f32.gmra.mrb[34].mxu0 %vm464_vm1, %v462_v13  ;;  %v13035_v13 = vld [vmem:[%s12673_s30 + $0x5c] sm:$0xff] }
  0x58   : > { %11152 = vmatprep.mubr.msk.f32.mxu0 %vm464_vm1, %v1361_v14  ;;  %v13039_v14 = vld [vmem:[%s12673_s30 + $0x64] sm:$0xff] }
  0x59   : > { %11148 = vmatmul.mubr.msk.f32.gmra.mrb[34].mxu1 %vm464_vm1, %v894_v15  ;;  %v2376_v15 = vld [vmem:[%s12673_s30 + $0x6b] sm:$0xff] }
  0x5a   : > { %11208 = vmatprep.mubr.msk.f32.mxu1 %vm464_vm1, %v1363_v17 }
  0x5b   : > { %11153 = vmatmul.mubr.msk.f32.vlgmr.msra.gmra.mrb[36].mxu0 %vm464_vm1, %v1362_v16  ;;  %v2377_v16 = vld [vmem:[%s12673_s30 + $0x73] sm:$0xff] }
  0x5c   : > { %11263 = vmatpush3.msk.msra.mxu0 %vm573_vm0, %v12683_v8  ;;  %11155 = vmatprep.mubr.msk.f32.mxu0 %vm464_vm1, %v1363_v17  ;;  %v12861_v8 = vld [vmem:[%s15363_s1 + $0x1c] sm:$0xf]  ;;  %v13049_v17 = vld [vmem:[%s12673_s30 + $0x6c] sm:$0xff] }
  0x5d   : > { %11209 = vmatmul.mubr.msk.f32.vlgmr.msra.gmra.mrb[36].mxu1 %vm464_vm1, %v1364_v19  ;;  %11374 = vmatprep.subr.msk.mxu0 %vm573_vm0, %v12843_v18 }
  0x5e   : > { %11211 = vmatprep.mubr.msk.f32.mxu1 %vm464_vm1, %v1365_v20  ;;  %11319 = vmatpush3.msk.msra.mxu1 %vm573_vm0, %v12760_v43  ;;  %v1388_v43 = vld [vmem:[%s12673_s30 + $0xda] sm:$0xff] }
  0x5f   : > { %11156 = vmatmul.mubr.msk.f32.gmra.mrb[38].mxu0 %vm464_vm1, %v1364_v19  ;;  %11430 = vmatprep.subr.msk.mxu1 %vm573_vm0, %v12861_v8  ;;  %v2378_v19 = vld [vmem:[%s12673_s30 + $0x7b] sm:$0xff] }
  0x60   : > { %11158 = vmatprep.mubr.msk.f32.mxu0 %vm464_vm1, %v1365_v20  ;;  %v2379_v20 = vld [vmem:[%s12673_s30 + $0x83] sm:$0xff] }
  0x61   : > { %11212 = vmatmul.mubr.msk.f32.gmra.mrb[38].mxu1 %vm464_vm1, %v1366_v21 }
  0x62   : > { %11214 = vmatprep.mubr.msk.f32.mxu1 %vm464_vm1, %v1367_v22 }
  0x63   : > { %11159 = vmatmul.mubr.msk.f32.gmra.mrb[40].mxu0 %vm464_vm1, %v1366_v21  ;;  %v13067_v21 = vld [vmem:[%s12673_s30 + $0x84] sm:$0xff] }
  0x64   : > { %11161 = vmatprep.mubr.msk.f32.mxu0 %vm464_vm1, %v1367_v22  ;;  %v2380_v22 = vld [vmem:[%s12673_s30 + $0x8b] sm:$0xff] }
  0x65   : > { %11215 = vmatmul.mubr.msk.f32.gmra.mrb[40].mxu1 %vm464_vm1, %v1368_v23 }
  0x66   : > { %11217 = vmatprep.mubr.msk.f32.mxu1 %vm464_vm1, %v1369_v24 }
  0x67   : > { %11162 = vmatmul.mubr.msk.f32.gmra.mrb[42].mxu0 %vm464_vm1, %v1368_v23  ;;  %v2381_v23 = vld [vmem:[%s12673_s30 + $0x93] sm:$0xff] }
  0x68   : > { %11164 = vmatprep.mubr.msk.f32.mxu0 %vm464_vm1, %v1369_v24  ;;  %v13077_v24 = vld [vmem:[%s12673_s30 + $0x8c] sm:$0xff] }
  0x69   : > { %11218 = vmatmul.mubr.msk.f32.gmra.mrb[42].mxu1 %vm464_vm1, %v1370_v25 }
  0x6a   : > { %11220 = vmatprep.mubr.msk.f32.mxu1 %vm464_vm1, %v1371_v26 }
  0x6b   : > { %11165 = vmatmul.mubr.msk.f32.gmra.mrb[44].mxu0 %vm464_vm1, %v1370_v25  ;;  %v13081_v25 = vld [vmem:[%s12673_s30 + $0x94] sm:$0xff] }
  0x6c   : > { %11167 = vmatprep.mubr.msk.f32.mxu0 %vm464_vm1, %v1371_v26  ;;  %v2382_v26 = vld [vmem:[%s12673_s30 + $0x9b] sm:$0xff] }
  0x6d   : > { %11221 = vmatmul.mubr.msk.f32.gmra.mrb[44].mxu1 %vm464_vm1, %v1372_v27 }
  0x6e   : > { %11223 = vmatprep.mubr.msk.f32.mxu1 %vm464_vm1, %v1373_v28 }
  0x6f   : > { %11168 = vmatmul.mubr.msk.f32.gmra.mrb[46].mxu0 %vm464_vm1, %v1372_v27  ;;  %v2383_v27 = vld [vmem:[%s12673_s30 + $0xa3] sm:$0xff] }
  0x70   : > { %11170 = vmatprep.mubr.msk.f32.mxu0 %vm464_vm1, %v1373_v28  ;;  %v13091_v28 = vld [vmem:[%s12673_s30 + $0x9c] sm:$0xff] }
  0x71   : > { %11224 = vmatmul.mubr.msk.f32.gmra.mrb[46].mxu1 %vm464_vm1, %v1374_v29 }
  0x72   : > { %11226 = vmatprep.mubr.msk.f32.mxu1 %vm464_vm1, %v1375_v30 }
  0x73   : > { %11171 = vmatmul.mubr.msk.f32.gmra.mrb[48].mxu0 %vm464_vm1, %v1374_v29  ;;  %v13095_v29 = vld [vmem:[%s12673_s30 + $0xa4] sm:$0xff] }
  0x74   : > { %11173 = vmatprep.mubr.msk.f32.mxu0 %vm464_vm1, %v1375_v30  ;;  %v2384_v30 = vld [vmem:[%s12673_s30 + $0xab] sm:$0xff] }
  0x75   : > { %11227 = vmatmul.mubr.msk.f32.gmra.mrb[48].mxu1 %vm464_vm1, %v1376_v31 }
  0x76   : > { %11229 = vmatprep.mubr.msk.f32.mxu1 %vm464_vm1, %v1377_v32 }
  0x77   : > { %11174 = vmatmul.mubr.msk.f32.gmra.mrb[50].mxu0 %vm464_vm1, %v1376_v31  ;;  %v2385_v31 = vld [vmem:[%s12673_s30 + $0xb3] sm:$0xff] }
  0x78   : > { %11176 = vmatprep.mubr.msk.f32.mxu0 %vm464_vm1, %v1377_v32  ;;  %v13105_v32 = vld [vmem:[%s12673_s30 + $0xac] sm:$0xff] }
  0x79   : > { %11230 = vmatmul.mubr.msk.f32.gmra.mrb[50].mxu1 %vm464_vm1, %v1378_v33 }
  0x7a   : > { %11232 = vmatprep.mubr.msk.f32.mxu1 %vm464_vm1, %v1379_v34 }
  0x7b   : > { %11177 = vmatmul.mubr.msk.f32.gmra.mrb[52].mxu0 %vm464_vm1, %v1378_v33  ;;  %v13109_v33 = vld [vmem:[%s12673_s30 + $0xb4] sm:$0xff] }
  0x7c   : > { %11179 = vmatprep.mubr.msk.f32.mxu0 %vm464_vm1, %v1379_v34  ;;  %v2386_v34 = vld [vmem:[%s12673_s30 + $0xbb] sm:$0xff] }
  0x7d   : > { %11233 = vmatmul.mubr.msk.f32.gmra.mrb[52].mxu1 %vm464_vm1, %v1380_v35 }
  0x7e   : > { %11235 = vmatprep.mubr.msk.f32.mxu1 %vm464_vm1, %v1381_v36 }
  0x7f   : > { %11180 = vmatmul.mubr.msk.f32.gmra.mrb[54].mxu0 %vm464_vm1, %v1380_v35  ;;  %v2387_v35 = vld [vmem:[%s12673_s30 + $0xc3] sm:$0xff] }
  0x80   : > { %11182 = vmatprep.mubr.msk.f32.mxu0 %vm464_vm1, %v1381_v36  ;;  %v13119_v36 = vld [vmem:[%s12673_s30 + $0xbc] sm:$0xff] }
  0x81   : > { %11236 = vmatmul.mubr.msk.f32.gmra.mrb[54].mxu1 %vm464_vm1, %v1382_v37 }
  0x82   : > { %11238 = vmatprep.mubr.msk.f32.mxu1 %vm464_vm1, %v1383_v38 }
  0x83   : > { %11183 = vmatmul.mubr.msk.f32.gmra.mrb[56].mxu0 %vm464_vm1, %v1382_v37  ;;  %v13123_v37 = vld [vmem:[%s12673_s30 + $0xc4] sm:$0xff] }
  0x84   : > { %11185 = vmatprep.mubr.msk.f32.mxu0 %vm464_vm1, %v1383_v38  ;;  %v2388_v38 = vld [vmem:[%s12673_s30 + $0xcb] sm:$0xff] }
  0x85   : > { %11239 = vmatmul.mubr.msk.f32.gmra.mrb[56].mxu1 %vm464_vm1, %v1384_v39 }
  0x86   : > { %11241 = vmatprep.mubr.msk.f32.mxu1 %vm464_vm1, %v1385_v40 }
  0x87   : > { %11186 = vmatmul.mubr.msk.f32.gmra.mrb[58].mxu0 %vm464_vm1, %v1384_v39  ;;  %v2389_v39 = vld [vmem:[%s12673_s30 + $0xd3] sm:$0xff] }
  0x88   : > { %11188 = vmatprep.mubr.msk.f32.mxu0 %vm464_vm1, %v1385_v40  ;;  %v13133_v40 = vld [vmem:[%s12673_s30 + $0xcc] sm:$0xff] }
  0x89   : > { %11242 = vmatmul.mubr.msk.f32.gmra.mrb[58].mxu1 %vm464_vm1, %v1386_v41 }
  0x8a   : > { %11244 = vmatprep.mubr.msk.f32.mxu1 %vm464_vm1, %v1387_v42 }
  0x8b   : > { %11189 = vmatmul.mubr.msk.f32.gmra.mrb[60].mxu0 %vm464_vm1, %v1386_v41  ;;  %v13137_v41 = vld [vmem:[%s12673_s30 + $0xd4] sm:$0xff] }
  0x8c   : > { %11191 = vmatprep.mubr.msk.f32.mxu0 %vm464_vm1, %v1387_v42  ;;  %v2390_v42 = vld [vmem:[%s12673_s30 + $0xdb] sm:$0xff] }
  0x8d   : > { %11245 = vmatmul.mubr.msk.f32.gmra.mrb[60].mxu1 %vm464_vm1, %v1388_v43 }
  0x8e   : > { %11247 = vmatprep.mubr.msk.f32.mxu1 %vm464_vm1, %v1389_v44 }
  0x8f   : > { %11192 = vmatmul.mubr.msk.f32.gmra.mrb[62].mxu0 %vm464_vm1, %v1388_v43  ;;  %v2391_v43 = vld [vmem:[%s12673_s30 + $0xe3] sm:$0xff] }
  0x90   : > { %11194 = vmatprep.mubr.msk.f32.mxu0 %vm464_vm1, %v1389_v44  ;;  %v13147_v44 = vld [vmem:[%s12673_s30 + $0xdc] sm:$0xff] }
  0x91   : > { %11248 = vmatmul.mubr.msk.f32.gmra.mrb[62].mxu1 %vm464_vm1, %v1390_v45 }
  0x92   : > { %11250 = vmatprep.mubr.msk.f32.mxu1 %vm464_vm1, %v1391_v46 }
  0x93   : > { %11195 = vmatmul.mubr.msk.f32.gmra.mrb[64].mxu0 %vm464_vm1, %v1390_v45  ;;  %v13151_v45 = vld [vmem:[%s12673_s30 + $0xe4] sm:$0xff] }
  0x94   : > { %11197 = vmatprep.mubr.msk.f32.mxu0 %vm464_vm1, %v1391_v46  ;;  %v2392_v46 = vld [vmem:[%s12673_s30 + $0xeb] sm:$0xff] }
  0x95   : > { %11251 = vmatmul.mubr.msk.f32.gmra.mrb[64].mxu1 %vm464_vm1, %v1392_v47 }
  0x96   : > { %11253 = vmatprep.mubr.msk.f32.mxu1 %vm464_vm1, %v1393_v48 }
  0x97   : > { %11198 = vmatmul.mubr.msk.f32.gmra.mrb[66].mxu0 %vm464_vm1, %v1392_v47  ;;  %v2393_v47 = vld [vmem:[%s12673_s30 + $0xf3] sm:$0xff] }
  0x98   : > { %11200 = vmatprep.mubr.msk.f32.mxu0 %vm464_vm1, %v1393_v48  ;;  %v13161_v48 = vld [vmem:[%s12673_s30 + $0xec] sm:$0xff] }
  0x99   : > { %11254 = vmatmul.mubr.msk.f32.gmra.mrb[66].mxu1 %vm464_vm1, %v1394_v49 }
  0x9a   : > { %11256 = vmatprep.mubr.msk.f32.mxu1 %vm464_vm1, %v1395_v50 }
  0x9b   : > { %11201 = vmatmul.mubr.msk.f32.gmra.mrb[68].mxu0 %vm464_vm1, %v1394_v49  ;;  %v13165_v49 = vld [vmem:[%s12673_s30 + $0xf4] sm:$0xff] }
  0x9c   : > { %11203 = vmatprep.mubr.msk.f32.mxu0 %vm464_vm1, %v1395_v50  ;;  %v2394_v50 = vld [vmem:[%s12673_s30 + $0xfb] sm:$0xff] }
  0x9d   : > { %11257 = vmatmul.mubr.msk.f32.gmra.mrb[68].mxu1 %vm464_vm1, %v1896_v51  ;;  %v2395_v51 = vld [vmem:[%s12673_s30 + $0x103] sm:$0xff] }
  0x9e   : > { %11259 = vmatprep.mubr.msk.f32.mxu1 %vm464_vm1, %v1897_v52  ;;  %v13175_v52 = vld [vmem:[%s12673_s30 + $0xfc] sm:$0xff] }
  0x9f   : > { %11204 = vmatmul.mubr.msk.f32.gmra.mrb[70].mxu0 %vm464_vm1, %v1396_v53  ;;  %v13179_v53 = vld [vmem:[%s12673_s30 + $0x104] sm:$0xff] }
  0xa0   : > { %11264 = vmatprep.mubr.msk.f32.mxu0 %vm464_vm1, %v2365_v54  ;;  %v2396_v54 = vld [vmem:[%s12673_s30 + $0x10b] sm:$0xff] }
  0xa1   : > { %11260 = vmatmul.mubr.msk.f32.gmra.mrb[70].mxu1 %vm464_vm1, %v1898_v55  ;;  %v2397_v55 = vld [vmem:[%s12673_s30 + $0x113] sm:$0xff] }
  0xa2   : > { %11320 = vmatprep.mubr.msk.f32.mxu1 %vm464_vm1, %v2867_v56  ;;  %v13189_v56 = vld [vmem:[%s12673_s30 + $0x10c] sm:$0xff] }
  0xa3   : > { %11265 = vmatmul.mubr.msk.f32.vlgmr.msra.gmra.mrb[72].mxu0 %vm464_vm1, %v2366_v57  ;;  %v13193_v57 = vld [vmem:[%s12673_s30 + $0x114] sm:$0xff] }
  0xa4   : > { %11375 = vmatpush3.msk.msra.mxu0 %vm573_vm0, %v12843_v18  ;;  %11267 = vmatprep.mubr.msk.f32.mxu0 %vm464_vm1, %v2367_v58  ;;  %v13053_v18 = vld [vmem:[%s12673_s30 + $0x74] sm:$0xff] }
  0xa5   : > { %11321 = vmatmul.mubr.msk.f32.vlgmr.msra.gmra.mrb[72].mxu1 %vm464_vm1, %v2868_v59  ;;  %11486 = vmatprep.subr.msk.mxu0 %vm573_vm0, %v12974_v60  ;;  %v2398_v58 = vld [vmem:[%s12673_s30 + $0x11b] sm:$0xff]  ;;  %v2399_v59 = vld [vmem:[%s12673_s30 + $0x123] sm:$0xff] }
  0xa6   : > { %11323 = vmatprep.mubr.msk.f32.mxu1 %vm464_vm1, %v12978_v61  ;;  %11431 = vmatpush3.msk.msra.mxu1 %vm573_vm0, %v12861_v8  ;;  %v13063_v8 = vld [vmem:[%s12673_s30 + $0x7c] sm:$0xff] }
  0xa7   : > { %11268 = vmatmul.mubr.msk.f32.gmra.mrb[74].mxu0 %vm464_vm1, %v2368_v62  ;;  %v13203_v62 = vld [vmem:[%s12673_s30 + $0x11c] sm:$0xff] }
  0xa8   : > { %11270 = vmatprep.mubr.msk.f32.mxu0 %vm464_vm1, %v2369_v63  ;;  %v13207_v63 = vld [vmem:[%s12673_s30 + $0x124] sm:$0xff] }
  0xa9   : > { %11324 = vmatmul.mubr.msk.f32.gmra.mrb[74].mxu1 %vm464_vm1, %v12991_v0 }
  0xaa   : > { %11326 = vmatprep.mubr.msk.f32.mxu1 %vm464_vm1, %v12997_v1 }
  0xab   : > { %11271 = vmatmul.mubr.msk.f32.gmra.mrb[76].mxu0 %vm464_vm1, %v2370_v2  ;;  %v2400_v2 = vld [vmem:[%s12673_s30 + $0x12b] sm:$0x3f] }
  0xac   : > { %11273 = vmatprep.mubr.msk.f32.mxu0 %vm464_vm1, %v2371_v3 }
  0xad   : > { %11327 = vmatmul.mubr.msk.f32.gmra.mrb[76].mxu1 %vm464_vm1, %v13007_v4 }
  0xae   : > { %11329 = vmatprep.mubr.msk.f32.mxu1 %vm464_vm1, %v13011_v5 }
  0xaf   : > { %11274 = vmatmul.mubr.msk.f32.gmra.mrb[78].mxu0 %vm464_vm1, %v2372_v6  ;;  %v2902_v6 = vld [vmem:[%s12673_s30 + $0x12c] sm:$0x3f] }
  0xb0   : > { %11276 = vmatprep.mubr.msk.f32.mxu0 %vm464_vm1, %v2373_v7 }
  0xb1   : > { %11330 = vmatmul.mubr.msk.f32.gmra.mrb[78].mxu1 %vm464_vm1, %v13021_v9 }
  0xb2   : > { %11332 = vmatprep.mubr.msk.f32.mxu1 %vm464_vm1, %v13025_v10 }
  0xb3   : > { %11277 = vmatmul.mubr.msk.f32.gmra.mrb[80].mxu0 %vm464_vm1, %v2374_v11  ;;  %v3871_v11 = vld [vmem:[%s12673_s30 + $0x25] sm:$0xff] }
  0xb4   : > { %11279 = vmatprep.mubr.msk.f32.mxu0 %vm464_vm1, %v2375_v12 }
  0xb5   : > { %11333 = vmatmul.mubr.msk.f32.gmra.mrb[80].mxu1 %vm464_vm1, %v13035_v13 }
  0xb6   : > { %11335 = vmatprep.mubr.msk.f32.mxu1 %vm464_vm1, %v13039_v14 }
  0xb7   : > { %11280 = vmatmul.mubr.msk.f32.gmra.mrb[82].mxu0 %vm464_vm1, %v2376_v15 }
  0xb8   : > { %11282 = vmatprep.mubr.msk.f32.mxu0 %vm464_vm1, %v2377_v16 }
  0xb9   : > { %11336 = vmatmul.mubr.msk.f32.gmra.mrb[82].mxu1 %vm464_vm1, %v13049_v17 }
  0xba   : > { %11338 = vmatprep.mubr.msk.f32.mxu1 %vm464_vm1, %v13053_v18 }
  0xbb   : > { %11283 = vmatmul.mubr.msk.f32.gmra.mrb[84].mxu0 %vm464_vm1, %v2378_v19  ;;  %v3872_v19 = vld [vmem:[%s12673_s30 + $0x2d] sm:$0xff] }
  0xbc   : > { %11285 = vmatprep.mubr.msk.f32.mxu0 %vm464_vm1, %v2379_v20 }
  0xbd   : > { %11339 = vmatmul.mubr.msk.f32.gmra.mrb[84].mxu1 %vm464_vm1, %v13063_v8 }
  0xbe   : > { %11341 = vmatprep.mubr.msk.f32.mxu1 %vm464_vm1, %v13067_v21 }
  0xbf   : > { %11286 = vmatmul.mubr.msk.f32.gmra.mrb[86].mxu0 %vm464_vm1, %v2380_v22  ;;  %v3873_v22 = vld [vmem:[%s12673_s30 + $0x35] sm:$0xff] }
  0xc0   : > { %11288 = vmatprep.mubr.msk.f32.mxu0 %vm464_vm1, %v2381_v23 }
  0xc1   : > { %11342 = vmatmul.mubr.msk.f32.gmra.mrb[86].mxu1 %vm464_vm1, %v13077_v24 }
  0xc2   : > { %11344 = vmatprep.mubr.msk.f32.mxu1 %vm464_vm1, %v13081_v25 }
  0xc3   : > { %11289 = vmatmul.mubr.msk.f32.gmra.mrb[88].mxu0 %vm464_vm1, %v2382_v26 }
  0xc4   : > { %11291 = vmatprep.mubr.msk.f32.mxu0 %vm464_vm1, %v2383_v27 }
  0xc5   : > { %11345 = vmatmul.mubr.msk.f32.gmra.mrb[88].mxu1 %vm464_vm1, %v13091_v28 }
  0xc6   : > { %11347 = vmatprep.mubr.msk.f32.mxu1 %vm464_vm1, %v13095_v29 }
  0xc7   : > { %11292 = vmatmul.mubr.msk.f32.gmra.mrb[90].mxu0 %vm464_vm1, %v2384_v30  ;;  %v3874_v30 = vld [vmem:[%s12673_s30 + $0x3d] sm:$0xff] }
  0xc8   : > { %11294 = vmatprep.mubr.msk.f32.mxu0 %vm464_vm1, %v2385_v31 }
  0xc9   : > { %11348 = vmatmul.mubr.msk.f32.gmra.mrb[90].mxu1 %vm464_vm1, %v13105_v32 }
  0xca   : > { %11350 = vmatprep.mubr.msk.f32.mxu1 %vm464_vm1, %v13109_v33 }
  0xcb   : > { %11295 = vmatmul.mubr.msk.f32.gmra.mrb[92].mxu0 %vm464_vm1, %v2386_v34 }
  0xcc   : > { %11297 = vmatprep.mubr.msk.f32.mxu0 %vm464_vm1, %v2387_v35 }
  0xcd   : > { %11351 = vmatmul.mubr.msk.f32.gmra.mrb[92].mxu1 %vm464_vm1, %v13119_v36 }
  0xce   : > { %11353 = vmatprep.mubr.msk.f32.mxu1 %vm464_vm1, %v13123_v37 }
  0xcf   : > { %11298 = vmatmul.mubr.msk.f32.gmra.mrb[94].mxu0 %vm464_vm1, %v2388_v38 }
  0xd0   : > { %11300 = vmatprep.mubr.msk.f32.mxu0 %vm464_vm1, %v2389_v39 }
  0xd1   : > { %11354 = vmatmul.mubr.msk.f32.gmra.mrb[94].mxu1 %vm464_vm1, %v13133_v40 }
  0xd2   : > { %11356 = vmatprep.mubr.msk.f32.mxu1 %vm464_vm1, %v13137_v41 }
  0xd3   : > { %11301 = vmatmul.mubr.msk.f32.gmra.mrb[96].mxu0 %vm464_vm1, %v2390_v42 }
  0xd4   : > { %11303 = vmatprep.mubr.msk.f32.mxu0 %vm464_vm1, %v2391_v43 }
  0xd5   : > { %11357 = vmatmul.mubr.msk.f32.gmra.mrb[96].mxu1 %vm464_vm1, %v13147_v44 }
  0xd6   : > { %11359 = vmatprep.mubr.msk.f32.mxu1 %vm464_vm1, %v13151_v45 }
  0xd7   : > { %11304 = vmatmul.mubr.msk.f32.gmra.mrb[98].mxu0 %vm464_vm1, %v2392_v46 }
  0xd8   : > { %11306 = vmatprep.mubr.msk.f32.mxu0 %vm464_vm1, %v2393_v47 }
  0xd9   : > { %11360 = vmatmul.mubr.msk.f32.gmra.mrb[98].mxu1 %vm464_vm1, %v13161_v48 }
  0xda   : > { %11362 = vmatprep.mubr.msk.f32.mxu1 %vm464_vm1, %v13165_v49 }
  0xdb   : > { %11307 = vmatmul.mubr.msk.f32.gmra.mrb[100].mxu0 %vm464_vm1, %v2394_v50 }
  0xdc   : > { %11309 = vmatprep.mubr.msk.f32.mxu0 %vm464_vm1, %v2395_v51 }
  0xdd   : > { %11363 = vmatmul.mubr.msk.f32.gmra.mrb[100].mxu1 %vm464_vm1, %v13175_v52 }
  0xde   : > { %11365 = vmatprep.mubr.msk.f32.mxu1 %vm464_vm1, %v13179_v53 }
  0xdf   : > { %11310 = vmatmul.mubr.msk.f32.gmra.mrb[102].mxu0 %vm464_vm1, %v2396_v54 }
  0xe0   : > { %11312 = vmatprep.mubr.msk.f32.mxu0 %vm464_vm1, %v2397_v55 }
  0xe1   : > { %11366 = vmatmul.mubr.msk.f32.gmra.mrb[102].mxu1 %vm464_vm1, %v13189_v56 }
  0xe2   : > { %11368 = vmatprep.mubr.msk.f32.mxu1 %vm464_vm1, %v13193_v57 }
  0xe3   : > { %11313 = vmatmul.mubr.msk.f32.gmra.mrb[104].mxu0 %vm464_vm1, %v2398_v58 }
  0xe4   : > { %11315 = vmatprep.mubr.msk.f32.mxu0 %vm464_vm1, %v2399_v59 }
  0xe5   : > { %11369 = vmatmul.mubr.msk.f32.gmra.mrb[104].mxu1 %vm464_vm1, %v13203_v62 }
  0xe6   : > { %v11042_v3 = vpop.f32.mrb[0].mxu0  ;;  %11371 = vmatprep.mubr.msk.f32.mxu1 %vm464_vm1, %v13207_v63 }
  0xe7   : > { %823 = vst.msk [vmem:[#allocation5 + $0x8] sm:$0xff] %vm385_vm2, %v11042_v3  ;;  %v643_v7 = vpop.f32.mrb[1].mxu0  ;;  %11316 = vmatmul.mubr.msk.f32.gmra.mrb[106].mxu0 %vm464_vm1, %v2400_v2 }
  0xe8   : > { %822 = vst.msk [vmem:[#allocation5] sm:$0xff] %vm385_vm2, %v643_v7  ;;  %11376 = vmatprep.mubr.msk.f32.mxu0 %vm464_vm1, %v12978_v61  ;;  %v11098_v12 = vpop.f32.mrb[0].mxu1 }
  0xe9   : > { %v1074_v15 = vpop.f32.mrb[1].mxu1  ;;  %11372 = vmatmul.mubr.msk.f32.gmra.mrb[106].mxu1 %vm464_vm1, %v2902_v6 }
  0xea   : > { %v11045_v16 = vpop.f32.mrb[2].mxu0  ;;  %11432 = vmatprep.mubr.msk.f32.mxu1 %vm464_vm1, %v3871_v11 }
  0xeb   : > { %825 = vst.msk [vmem:[#allocation5 + $0x18] sm:$0xff] %vm385_vm2, %v11045_v16  ;;  %v653_v20 = vpop.f32.mrb[3].mxu0  ;;  %11377 = vmatmul.mubr.msk.f32.vlgmr.msra.gmra.mrb[108].mxu0 %vm464_vm1, %v12991_v0 }
  0xec   : > { %824 = vst.msk [vmem:[#allocation5 + $0x10] sm:$0xff] %vm385_vm2, %v653_v20  ;;  %11487 = vmatpush3.msk.msra.mxu0 %vm573_vm0, %v12974_v60  ;;  %11379 = vmatprep.mubr.msk.f32.mxu0 %vm464_vm1, %v12997_v1  ;;  %v11101_v61 = vpop.f32.mrb[2].mxu1  ;;  %v3875_v60 = vld [vmem:[%s12673_s30 + $0x45] sm:$0xff] }
  0xed   : > { %v1084_v23 = vpop.f32.mrb[3].mxu1  ;;  %11433 = vmatmul.mubr.msk.f32.vlgmr.msra.gmra.mrb[108].mxu1 %vm464_vm1, %v3872_v19 }
  0xee   : > { %v11048_v26 = vpop.f32.mrb[4].mxu0  ;;  %v1254_v27 = vld [vmem:[#allocation5 + $0x8] sm:$0xff]  ;;  %11435 = vmatprep.mubr.msk.f32.mxu1 %vm464_vm1, %v3873_v22 }
  0xef   : > { %827 = vst.msk [vmem:[#allocation5 + $0x28] sm:$0xff] %vm385_vm2, %v11048_v26  ;;  %v1290_v0 = vadd.f32 %v11098_v12, %v1254_v27  ;;  %v663_v31 = vpop.f32.mrb[5].mxu0  ;;  %v1253_v34 = vld [vmem:[#allocation5] sm:$0xff]  ;;  %11380 = vmatmul.mubr.msk.f32.gmra.mrb[110].mxu0 %vm464_vm1, %v13007_v4  ;;  %v3876_v4 = vld [vmem:[%s12673_s30 + $0x4d] sm:$0xff] }
  0xf0   : > { %826 = vst.msk [vmem:[#allocation5 + $0x20] sm:$0xff] %vm385_vm2, %v663_v31  ;;  %v1289_v1 = vadd.f32 %v1253_v34, %v1074_v15  ;;  %11382 = vmatprep.mubr.msk.f32.mxu0 %vm464_vm1, %v13011_v5  ;;  %v11104_v35 = vpop.f32.mrb[4].mxu1  ;;  %v3877_v5 = vld [vmem:[%s12673_s30 + $0x55] sm:$0xff] }
  0xf1   : > { %1326 = vst.msk [vmem:[#allocation5 + $0x8] sm:$0xff] %vm385_vm2, %v1290_v0  ;;  %v1094_v38 = vpop.f32.mrb[5].mxu1  ;;  %11436 = vmatmul.mubr.msk.f32.gmra.mrb[110].mxu1 %vm464_vm1, %v3874_v30 }
  0xf2   : > { %1325 = vst.msk [vmem:[#allocation5] sm:$0xff] %vm385_vm2, %v1289_v1  ;;  %v11051_v39 = vpop.f32.mrb[6].mxu0  ;;  %v1256_v42 = vld [vmem:[#allocation5 + $0x18] sm:$0xff]  ;;  %11438 = vmatprep.mubr.msk.f32.mxu1 %vm464_vm1, %v3875_v60 }
  0xf3   : > { %829 = vst.msk [vmem:[#allocation5 + $0x38] sm:$0xff] %vm385_vm2, %v11051_v39  ;;  %v1292_v43 = vadd.f32 %v11101_v61, %v1256_v42  ;;  %v673_v46 = vpop.f32.mrb[7].mxu0  ;;  %v1255_v47 = vld [vmem:[#allocation5 + $0x10] sm:$0xff]  ;;  %11383 = vmatmul.mubr.msk.f32.gmra.mrb[112].mxu0 %vm464_vm1, %v13021_v9  ;;  %v3878_v9 = vld [vmem:[%s12673_s30 + $0x5d] sm:$0xff] }
  0xf4   : > { %828 = vst.msk [vmem:[#allocation5 + $0x30] sm:$0xff] %vm385_vm2, %v673_v46  ;;  %v1291_v50 = vadd.f32 %v1255_v47, %v1084_v23  ;;  %11385 = vmatprep.mubr.msk.f32.mxu0 %vm464_vm1, %v13025_v10  ;;  %v11107_v51 = vpop.f32.mrb[6].mxu1  ;;  %v3879_v10 = vld [vmem:[%s12673_s30 + $0x65] sm:$0xff] }
  0xf5   : > { %1328 = vst.msk [vmem:[#allocation5 + $0x18] sm:$0xff] %vm385_vm2, %v1292_v43  ;;  %v1104_v54 = vpop.f32.mrb[7].mxu1  ;;  %11439 = vmatmul.mubr.msk.f32.gmra.mrb[112].mxu1 %vm464_vm1, %v3876_v4 }
  0xf6   : > { %1327 = vst.msk [vmem:[#allocation5 + $0x10] sm:$0xff] %vm385_vm2, %v1291_v50  ;;  %v11054_v55 = vpop.f32.mrb[8].mxu0  ;;  %v1258_v58 = vld [vmem:[#allocation5 + $0x28] sm:$0xff]  ;;  %11441 = vmatprep.mubr.msk.f32.mxu1 %vm464_vm1, %v3877_v5 }
  0xf7   : > { %831 = vst.msk [vmem:[#allocation5 + $0x48] sm:$0xff] %vm385_vm2, %v11054_v55  ;;  %v1294_v59 = vadd.f32 %v11104_v35, %v1258_v58  ;;  %v683_v2 = vpop.f32.mrb[9].mxu0  ;;  %v1257_v3 = vld [vmem:[#allocation5 + $0x20] sm:$0xff]  ;;  %11386 = vmatmul.mubr.msk.f32.gmra.mrb[114].mxu0 %vm464_vm1, %v13035_v13  ;;  %v3880_v13 = vld [vmem:[%s12673_s30 + $0x6d] sm:$0xff] }
  0xf8   : > { %830 = vst.msk [vmem:[#allocation5 + $0x40] sm:$0xff] %vm385_vm2, %v683_v2  ;;  %v1293_v6 = vadd.f32 %v1257_v3, %v1094_v38  ;;  %11388 = vmatprep.mubr.msk.f32.mxu0 %vm464_vm1, %v13039_v14  ;;  %v11110_v7 = vpop.f32.mrb[8].mxu1  ;;  %v3881_v14 = vld [vmem:[%s12673_s30 + $0x75] sm:$0xff] }
  0xf9   : > { %1330 = vst.msk [vmem:[#allocation5 + $0x28] sm:$0xff] %vm385_vm2, %v1294_v59  ;;  %v1114_v11 = vpop.f32.mrb[9].mxu1  ;;  %11442 = vmatmul.mubr.msk.f32.gmra.mrb[114].mxu1 %vm464_vm1, %v3878_v9 }
  0xfa   : > { %1329 = vst.msk [vmem:[#allocation5 + $0x20] sm:$0xff] %vm385_vm2, %v1293_v6  ;;  %v11057_v12 = vpop.f32.mrb[10].mxu0  ;;  %v1260_v15 = vld [vmem:[#allocation5 + $0x38] sm:$0xff]  ;;  %11444 = vmatprep.mubr.msk.f32.mxu1 %vm464_vm1, %v3879_v10 }
  0xfb   : > { %833 = vst.msk [vmem:[#allocation5 + $0x58] sm:$0xff] %vm385_vm2, %v11057_v12  ;;  %v1296_v16 = vadd.f32 %v11107_v51, %v1260_v15  ;;  %v693_v19 = vpop.f32.mrb[11].mxu0  ;;  %v1259_v20 = vld [vmem:[#allocation5 + $0x30] sm:$0xff]  ;;  %11389 = vmatmul.mubr.msk.f32.gmra.mrb[116].mxu0 %vm464_vm1, %v13049_v17  ;;  %v3882_v17 = vld [vmem:[%s12673_s30 + $0x7d] sm:$0xff] }
  0xfc   : > { %832 = vst.msk [vmem:[#allocation5 + $0x50] sm:$0xff] %vm385_vm2, %v693_v19  ;;  %v1295_v22 = vadd.f32 %v1259_v20, %v1104_v54  ;;  %11391 = vmatprep.mubr.msk.f32.mxu0 %vm464_vm1, %v13053_v18  ;;  %v11113_v61 = vpop.f32.mrb[10].mxu1  ;;  %v3883_v18 = vld [vmem:[%s12673_s30 + $0x85] sm:$0xff] }
  0xfd   : > { %1332 = vst.msk [vmem:[#allocation5 + $0x38] sm:$0xff] %vm385_vm2, %v1296_v16  ;;  %v1124_v23 = vpop.f32.mrb[11].mxu1  ;;  %11445 = vmatmul.mubr.msk.f32.gmra.mrb[116].mxu1 %vm464_vm1, %v3880_v13 }
  0xfe   : > { %1331 = vst.msk [vmem:[#allocation5 + $0x30] sm:$0xff] %vm385_vm2, %v1295_v22  ;;  %v11060_v26 = vpop.f32.mrb[12].mxu0  ;;  %v1262_v27 = vld [vmem:[#allocation5 + $0x48] sm:$0xff]  ;;  %11447 = vmatprep.mubr.msk.f32.mxu1 %vm464_vm1, %v3881_v14 }
  0xff   : > { %835 = vst.msk [vmem:[#allocation5 + $0x68] sm:$0xff] %vm385_vm2, %v11060_v26  ;;  %v1298_v30 = vadd.f32 %v11110_v7, %v1262_v27  ;;  %v703_v0 = vpop.f32.mrb[13].mxu0  ;;  %v1261_v31 = vld [vmem:[#allocation5 + $0x40] sm:$0xff]  ;;  %11392 = vmatmul.mubr.msk.f32.gmra.mrb[118].mxu0 %vm464_vm1, %v13063_v8  ;;  %v3884_v8 = vld [vmem:[%s12673_s30 + $0x8d] sm:$0xff] }
 0x100   : > { %834 = vst.msk [vmem:[#allocation5 + $0x60] sm:$0xff] %vm385_vm2, %v703_v0  ;;  %v1297_v34 = vadd.f32 %v1261_v31, %v1114_v11  ;;  %11394 = vmatprep.mubr.msk.f32.mxu0 %vm464_vm1, %v13067_v21  ;;  %v11116_v60 = vpop.f32.mrb[12].mxu1  ;;  %v3885_v21 = vld [vmem:[%s12673_s30 + $0x95] sm:$0xff] }
 0x101   : > { %1334 = vst.msk [vmem:[#allocation5 + $0x48] sm:$0xff] %vm385_vm2, %v1298_v30  ;;  %v1134_v1 = vpop.f32.mrb[13].mxu1  ;;  %11448 = vmatmul.mubr.msk.f32.gmra.mrb[118].mxu1 %vm464_vm1, %v3882_v17 }
 0x102   : > { %1333 = vst.msk [vmem:[#allocation5 + $0x40] sm:$0xff] %vm385_vm2, %v1297_v34  ;;  %v11063_v35 = vpop.f32.mrb[14].mxu0  ;;  %v1264_v38 = vld [vmem:[#allocation5 + $0x58] sm:$0xff]  ;;  %11450 = vmatprep.mubr.msk.f32.mxu1 %vm464_vm1, %v3883_v18 }
 0x103   : > { %837 = vst.msk [vmem:[#allocation5 + $0x78] sm:$0xff] %vm385_vm2, %v11063_v35  ;;  %v1300_v39 = vadd.f32 %v11113_v61, %v1264_v38  ;;  %v713_v42 = vpop.f32.mrb[15].mxu0  ;;  %v1263_v4 = vld [vmem:[#allocation5 + $0x50] sm:$0xff]  ;;  %11395 = vmatmul.mubr.msk.f32.gmra.mrb[120].mxu0 %vm464_vm1, %v13077_v24  ;;  %v3886_v24 = vld [vmem:[%s12673_s30 + $0x9d] sm:$0xff] }
 0x104   : > { %836 = vst.msk [vmem:[#allocation5 + $0x70] sm:$0xff] %vm385_vm2, %v713_v42  ;;  %v1299_v43 = vadd.f32 %v1263_v4, %v1124_v23  ;;  %11397 = vmatprep.mubr.msk.f32.mxu0 %vm464_vm1, %v13081_v25  ;;  %v11119_v46 = vpop.f32.mrb[14].mxu1  ;;  %v3887_v25 = vld [vmem:[%s12673_s30 + $0xa5] sm:$0xff] }
 0x105   : > { %1336 = vst.msk [vmem:[#allocation5 + $0x58] sm:$0xff] %vm385_vm2, %v1300_v39  ;;  %v1144_v47 = vpop.f32.mrb[15].mxu1  ;;  %11451 = vmatmul.mubr.msk.f32.gmra.mrb[120].mxu1 %vm464_vm1, %v3884_v8 }
 0x106   : > { %1335 = vst.msk [vmem:[#allocation5 + $0x50] sm:$0xff] %vm385_vm2, %v1299_v43  ;;  %v11066_v5 = vpop.f32.mrb[16].mxu0  ;;  %v1266_v50 = vld [vmem:[#allocation5 + $0x68] sm:$0xff]  ;;  %11453 = vmatprep.mubr.msk.f32.mxu1 %vm464_vm1, %v3885_v21 }
 0x107   : > { %839 = vst.msk [vmem:[#allocation5 + $0x88] sm:$0xff] %vm385_vm2, %v11066_v5  ;;  %v1302_v51 = vadd.f32 %v11116_v60, %v1266_v50  ;;  %v723_v54 = vpop.f32.mrb[17].mxu0  ;;  %v1265_v55 = vld [vmem:[#allocation5 + $0x60] sm:$0xff]  ;;  %11398 = vmatmul.mubr.msk.f32.gmra.mrb[122].mxu0 %vm464_vm1, %v13091_v28  ;;  %v3888_v28 = vld [vmem:[%s12673_s30 + $0xad] sm:$0xff] }
 0x108   : > { %838 = vst.msk [vmem:[#allocation5 + $0x80] sm:$0xff] %vm385_vm2, %v723_v54  ;;  %v1301_v58 = vadd.f32 %v1265_v55, %v1134_v1  ;;  %11400 = vmatprep.mubr.msk.f32.mxu0 %vm464_vm1, %v13095_v29  ;;  %v11122_v9 = vpop.f32.mrb[16].mxu1  ;;  %v3889_v29 = vld [vmem:[%s12673_s30 + $0xb5] sm:$0xff] }
 0x109   : > { %1338 = vst.msk [vmem:[#allocation5 + $0x68] sm:$0xff] %vm385_vm2, %v1302_v51  ;;  %v1154_v59 = vpop.f32.mrb[17].mxu1  ;;  %11454 = vmatmul.mubr.msk.f32.gmra.mrb[122].mxu1 %vm464_vm1, %v3886_v24 }
 0x10a   : > { %1337 = vst.msk [vmem:[#allocation5 + $0x60] sm:$0xff] %vm385_vm2, %v1301_v58  ;;  %v11069_v2 = vpop.f32.mrb[18].mxu0  ;;  %v1268_v3 = vld [vmem:[#allocation5 + $0x78] sm:$0xff]  ;;  %11456 = vmatprep.mubr.msk.f32.mxu1 %vm464_vm1, %v3887_v25 }
 0x10b   : > { %841 = vst.msk [vmem:[#allocation5 + $0x98] sm:$0xff] %vm385_vm2, %v11069_v2  ;;  %v1304_v10 = vadd.f32 %v11119_v46, %v1268_v3  ;;  %v733_v6 = vpop.f32.mrb[19].mxu0  ;;  %v1267_v7 = vld [vmem:[#allocation5 + $0x70] sm:$0xff]  ;;  %11401 = vmatmul.mubr.msk.f32.gmra.mrb[124].mxu0 %vm464_vm1, %v13105_v32  ;;  %v3890_v32 = vld [vmem:[%s12673_s30 + $0xbd] sm:$0xff] }
 0x10c   : > { %840 = vst.msk [vmem:[#allocation5 + $0x90] sm:$0xff] %vm385_vm2, %v733_v6  ;;  %v1303_v11 = vadd.f32 %v1267_v7, %v1144_v47  ;;  %11403 = vmatprep.mubr.msk.f32.mxu0 %vm464_vm1, %v13109_v33  ;;  %v11125_v12 = vpop.f32.mrb[18].mxu1  ;;  %v3891_v33 = vld [vmem:[%s12673_s30 + $0xc5] sm:$0xff] }
 0x10d   : > { %1340 = vst.msk [vmem:[#allocation5 + $0x78] sm:$0xff] %vm385_vm2, %v1304_v10  ;;  %v1164_v15 = vpop.f32.mrb[19].mxu1  ;;  %11457 = vmatmul.mubr.msk.f32.gmra.mrb[124].mxu1 %vm464_vm1, %v3888_v28 }
 0x10e   : > { %1339 = vst.msk [vmem:[#allocation5 + $0x70] sm:$0xff] %vm385_vm2, %v1303_v11  ;;  %v11072_v13 = vpop.f32.mrb[20].mxu0  ;;  %v1270_v16 = vld [vmem:[#allocation5 + $0x88] sm:$0xff]  ;;  %11459 = vmatprep.mubr.msk.f32.mxu1 %vm464_vm1, %v3889_v29 }
 0x10f   : > { %843 = vst.msk [vmem:[#allocation5 + $0xa8] sm:$0xff] %vm385_vm2, %v11072_v13  ;;  %v1306_v19 = vadd.f32 %v11122_v9, %v1270_v16  ;;  %v743_v20 = vpop.f32.mrb[21].mxu0  ;;  %v1269_v14 = vld [vmem:[#allocation5 + $0x80] sm:$0xff]  ;;  %11404 = vmatmul.mubr.msk.f32.gmra.mrb[126].mxu0 %vm464_vm1, %v13119_v36  ;;  %v3892_v36 = vld [vmem:[%s12673_s30 + $0xcd] sm:$0xff] }
 0x110   : > { %842 = vst.msk [vmem:[#allocation5 + $0xa0] sm:$0xff] %vm385_vm2, %v743_v20  ;;  %v1305_v22 = vadd.f32 %v1269_v14, %v1154_v59  ;;  %11406 = vmatprep.mubr.msk.f32.mxu0 %vm464_vm1, %v13123_v37  ;;  %v11128_v61 = vpop.f32.mrb[20].mxu1  ;;  %v3893_v37 = vld [vmem:[%s12673_s30 + $0xd5] sm:$0xff]  ;;  %v3903_v20 = vld [vmem:[%s12673_s30 + $0x125] sm:$0xff] }
 0x111   : > { %1342 = vst.msk [vmem:[#allocation5 + $0x88] sm:$0xff] %vm385_vm2, %v1306_v19  ;;  %v1174_v23 = vpop.f32.mrb[21].mxu1  ;;  %11460 = vmatmul.mubr.msk.f32.gmra.mrb[126].mxu1 %vm464_vm1, %v3890_v32 }
 0x112   : > { %1341 = vst.msk [vmem:[#allocation5 + $0x80] sm:$0xff] %vm385_vm2, %v1305_v22  ;;  %v11075_v26 = vpop.f32.mrb[22].mxu0  ;;  %v1272_v27 = vld [vmem:[#allocation5 + $0x98] sm:$0xff]  ;;  %11462 = vmatprep.mubr.msk.f32.mxu1 %vm464_vm1, %v3891_v33 }
 0x113   : > { %845 = vst.msk [vmem:[#allocation5 + $0xb8] sm:$0xff] %vm385_vm2, %v11075_v26  ;;  %v1308_v17 = vadd.f32 %v11125_v12, %v1272_v27  ;;  %v753_v30 = vpop.f32.mrb[23].mxu0  ;;  %v1271_v0 = vld [vmem:[#allocation5 + $0x90] sm:$0xff]  ;;  %11407 = vmatmul.mubr.msk.f32.gmra.mrb[128].mxu0 %vm464_vm1, %v13133_v40  ;;  %v3894_v40 = vld [vmem:[%s12673_s30 + $0xdd] sm:$0xff] }
 0x114   : > { %844 = vst.msk [vmem:[#allocation5 + $0xb0] sm:$0xff] %vm385_vm2, %v753_v30  ;;  %v1307_v31 = vadd.f32 %v1271_v0, %v1164_v15  ;;  %11409 = vmatprep.mubr.msk.f32.mxu0 %vm464_vm1, %v13137_v41  ;;  %v11131_v18 = vpop.f32.mrb[22].mxu1  ;;  %v3895_v41 = vld [vmem:[%s12673_s30 + $0xe5] sm:$0xff]  ;;  %v3904_v27 = vld [vmem:[%s12673_s30 + $0x12d] sm:$0xff]  ;;  %v3905_v30 = vld [vmem:[%s12673_s30 + $0x135] sm:$0xff] }
 0x115   : > { %1344 = vst.msk [vmem:[#allocation5 + $0x98] sm:$0xff] %vm385_vm2, %v1308_v17  ;;  %v1184_v34 = vpop.f32.mrb[23].mxu1  ;;  %11463 = vmatmul.mubr.msk.f32.gmra.mrb[128].mxu1 %vm464_vm1, %v3892_v36  ;;  %v3402_v33 = vld [vmem:[%s12673_s30 + $0x12c] sm:$0xff] }
 0x116   : > { %1343 = vst.msk [vmem:[#allocation5 + $0x90] sm:$0xff] %vm385_vm2, %v1307_v31  ;;  %v11078_v60 = vpop.f32.mrb[24].mxu0  ;;  %v1274_v1 = vld [vmem:[#allocation5 + $0xa8] sm:$0xff]  ;;  %11465 = vmatprep.mubr.msk.f32.mxu1 %vm464_vm1, %v3893_v37 }
 0x117   : > { %847 = vst.msk [vmem:[#allocation5 + $0xc8] sm:$0xff] %vm385_vm2, %v11078_v60  ;;  %v1310_v35 = vadd.f32 %v11128_v61, %v1274_v1  ;;  %v763_v38 = vpop.f32.mrb[25].mxu0  ;;  %v1273_v8 = vld [vmem:[#allocation5 + $0xa0] sm:$0xff]  ;;  %11410 = vmatmul.mubr.msk.f32.gmra.mrb[130].mxu0 %vm464_vm1, %v13147_v44  ;;  %v3896_v44 = vld [vmem:[%s12673_s30 + $0xed] sm:$0xff] }
 0x118   : > { %846 = vst.msk [vmem:[#allocation5 + $0xc0] sm:$0xff] %vm385_vm2, %v763_v38  ;;  %v1309_v39 = vadd.f32 %v1273_v8, %v1174_v23  ;;  %11412 = vmatprep.mubr.msk.f32.mxu0 %vm464_vm1, %v13151_v45  ;;  %v11134_v42 = vpop.f32.mrb[24].mxu1  ;;  %v3897_v45 = vld [vmem:[%s12673_s30 + $0xf5] sm:$0xff] }
 0x119   : > { %1346 = vst.msk [vmem:[#allocation5 + $0xa8] sm:$0xff] %vm385_vm2, %v1310_v35  ;;  %v1194_v4 = vpop.f32.mrb[25].mxu1  ;;  %11466 = vmatmul.mubr.msk.f32.gmra.mrb[130].mxu1 %vm464_vm1, %v3894_v40  ;;  %v3403_v61 = vld [vmem:[%s12673_s30 + $0x134] sm:$0xff]  ;;  %v3404_v37 = vld [vmem:[%s12673_s30 + $0x13c] sm:$0x3f] }
 0x11a   : > { %1345 = vst.msk [vmem:[#allocation5 + $0xa0] sm:$0xff] %vm385_vm2, %v1309_v39  ;;  %v11081_v21 = vpop.f32.mrb[26].mxu0  ;;  %v1276_v43 = vld [vmem:[#allocation5 + $0xb8] sm:$0xff]  ;;  %11468 = vmatprep.mubr.msk.f32.mxu1 %vm464_vm1, %v3895_v41  ;;  %v1756_v40 = vld [vmem:[#allocation5 + $0x8] sm:$0xff] }
 0x11b   : > { %849 = vst.msk [vmem:[#allocation5 + $0xd8] sm:$0xff] %vm385_vm2, %v11081_v21  ;;  %v1312_v46 = vadd.f32 %v11131_v18, %v1276_v43  ;;  %v773_v47 = vpop.f32.mrb[27].mxu0  ;;  %v1275_v5 = vld [vmem:[#allocation5 + $0xb0] sm:$0xff]  ;;  %11413 = vmatmul.mubr.msk.f32.gmra.mrb[132].mxu0 %vm464_vm1, %v13161_v48  ;;  %v3898_v48 = vld [vmem:[%s12673_s30 + $0xfd] sm:$0xff] }
 0x11c   : > { %848 = vst.msk [vmem:[#allocation5 + $0xd0] sm:$0xff] %vm385_vm2, %v773_v47  ;;  %v1311_v50 = vadd.f32 %v1275_v5, %v1184_v34  ;;  %11415 = vmatprep.mubr.msk.f32.mxu0 %vm464_vm1, %v13165_v49  ;;  %v11137_v24 = vpop.f32.mrb[26].mxu1  ;;  %v3899_v49 = vld [vmem:[%s12673_s30 + $0x105] sm:$0xff]  ;;  %v3906_v35 = vld [vmem:[%s12673_s30 + $0x13d] sm:$0x3f]  ;;  %v4374_v43 = vld [vmem:[%s12673_s30 + $0x2e] sm:$0xff] }
 0x11d   : > { %1348 = vst.msk [vmem:[#allocation5 + $0xb8] sm:$0xff] %vm385_vm2, %v1312_v46  ;;  %v1204_v51 = vpop.f32.mrb[27].mxu1  ;;  %11469 = vmatmul.mubr.msk.f32.gmra.mrb[132].mxu1 %vm464_vm1, %v3896_v44  ;;  %v4373_v18 = vld [vmem:[%s12673_s30 + $0x26] sm:$0xff]  ;;  %v4375_v46 = vld [vmem:[%s12673_s30 + $0x36] sm:$0xff] }
 0x11e   : > { %1347 = vst.msk [vmem:[#allocation5 + $0xb0] sm:$0xff] %vm385_vm2, %v1311_v50  ;;  %v11084_v54 = vpop.f32.mrb[28].mxu0  ;;  %v1278_v55 = vld [vmem:[#allocation5 + $0xc8] sm:$0xff]  ;;  %11471 = vmatprep.mubr.msk.f32.mxu1 %vm464_vm1, %v3897_v45  ;;  %v1758_v50 = vld [vmem:[#allocation5 + $0x18] sm:$0xff] }
 0x11f   : > { %851 = vst.msk [vmem:[#allocation5 + $0xe8] sm:$0xff] %vm385_vm2, %v11084_v54  ;;  %v1314_v25 = vadd.f32 %v11134_v42, %v1278_v55  ;;  %v783_v58 = vpop.f32.mrb[29].mxu0  ;;  %v1277_v9 = vld [vmem:[#allocation5 + $0xc0] sm:$0xff]  ;;  %11416 = vmatmul.mubr.msk.f32.gmra.mrb[134].mxu0 %vm464_vm1, %v13175_v52  ;;  %v3900_v52 = vld [vmem:[%s12673_s30 + $0x10d] sm:$0xff] }
 0x120   : > { %850 = vst.msk [vmem:[#allocation5 + $0xe0] sm:$0xff] %vm385_vm2, %v783_v58  ;;  %v1313_v59 = vadd.f32 %v1277_v9, %v1194_v4  ;;  %11418 = vmatprep.mubr.msk.f32.mxu0 %vm464_vm1, %v13179_v53  ;;  %v11140_v2 = vpop.f32.mrb[28].mxu1  ;;  %v3901_v53 = vld [vmem:[%s12673_s30 + $0x115] sm:$0xff]  ;;  %v4376_v9 = vld [vmem:[%s12673_s30 + $0x3e] sm:$0xff] }
 0x121   : > { %1350 = vst.msk [vmem:[#allocation5 + $0xc8] sm:$0xff] %vm385_vm2, %v1314_v25  ;;  %v1214_v3 = vpop.f32.mrb[29].mxu1  ;;  %11472 = vmatmul.mubr.msk.f32.gmra.mrb[134].mxu1 %vm464_vm1, %v3898_v48  ;;  %v1755_v42 = vld [vmem:[#allocation5] sm:$0xff]  ;;  %v1757_v48 = vld [vmem:[#allocation5 + $0x10] sm:$0xff] }
 0x122   : > { %1349 = vst.msk [vmem:[#allocation5 + $0xc0] sm:$0xff] %vm385_vm2, %v1313_v59  ;;  %v11087_v28 = vpop.f32.mrb[30].mxu0  ;;  %v1280_v10 = vld [vmem:[#allocation5 + $0xd8] sm:$0xff]  ;;  %11474 = vmatprep.mubr.msk.f32.mxu1 %vm464_vm1, %v3899_v49  ;;  %v4377_v59 = vld [vmem:[%s12673_s30 + $0x46] sm:$0xff] }
 0x123   : > { %853 = vst.msk [vmem:[#allocation5 + $0xf8] sm:$0xff] %vm385_vm2, %v11087_v28  ;;  %v1316_v6 = vadd.f32 %v11137_v24, %v1280_v10  ;;  %v793_v7 = vpop.f32.mrb[31].mxu0  ;;  %v1279_v29 = vld [vmem:[#allocation5 + $0xd0] sm:$0xff]  ;;  %11419 = vmatmul.mubr.msk.f32.gmra.mrb[136].mxu0 %vm464_vm1, %v13189_v56  ;;  %v3902_v56 = vld [vmem:[%s12673_s30 + $0x11d] sm:$0xff] }
 0x124   : > { %852 = vst.msk [vmem:[#allocation5 + $0xf0] sm:$0xff] %vm385_vm2, %v793_v7  ;;  %v1315_v11 = vadd.f32 %v1279_v29, %v1204_v51  ;;  %11421 = vmatprep.mubr.msk.f32.mxu0 %vm464_vm1, %v13193_v57  ;;  %v11143_v12 = vpop.f32.mrb[30].mxu1  ;;  %v1760_v28 = vld [vmem:[#allocation5 + $0x28] sm:$0xff] }
 0x125   : > { %1352 = vst.msk [vmem:[#allocation5 + $0xd8] sm:$0xff] %vm385_vm2, %v1316_v6  ;;  %v1224_v15 = vpop.f32.mrb[31].mxu1  ;;  %11475 = vmatmul.mubr.msk.f32.gmra.mrb[136].mxu1 %vm464_vm1, %v3900_v52  ;;  %v1759_v6 = vld [vmem:[#allocation5 + $0x20] sm:$0xff] }
 0x126   : > { %1351 = vst.msk [vmem:[#allocation5 + $0xd0] sm:$0xff] %vm385_vm2, %v1315_v11  ;;  %v11090_v13 = vpop.f32.mrb[32].mxu0  ;;  %v1282_v16 = vld [vmem:[#allocation5 + $0xe8] sm:$0xff]  ;;  %11477 = vmatprep.mubr.msk.f32.mxu1 %vm464_vm1, %v3901_v53  ;;  %v4378_v53 = vld [vmem:[%s12673_s30 + $0x4e] sm:$0xff] }
 0x127   : > { %855 = vst.msk [vmem:[#allocation5 + $0x108] sm:$0xff] %vm385_vm2, %v11090_v13  ;;  %v1318_v32 = vadd.f32 %v11140_v2, %v1282_v16  ;;  %v803_v19 = vpop.f32.mrb[33].mxu0  ;;  %v1281_v57 = vld [vmem:[#allocation5 + $0xe0] sm:$0xff]  ;;  %11422 = vmatmul.mubr.msk.f32.gmra.mrb[138].mxu0 %vm464_vm1, %v13203_v62 }
 0x128   : > { %854 = vst.msk [vmem:[#allocation5 + $0x100] sm:$0xff] %vm385_vm2, %v803_v19  ;;  %v1317_v14 = vadd.f32 %v1281_v57, %v1214_v3  ;;  %11424 = vmatprep.mubr.msk.f32.mxu0 %vm464_vm1, %v13207_v63  ;;  %v11146_v22 = vpop.f32.mrb[32].mxu1  ;;  %v4379_v13 = vld [vmem:[%s12673_s30 + $0x56] sm:$0xff] }
 0x129   : > { %1354 = vst.msk [vmem:[#allocation5 + $0xe8] sm:$0xff] %vm385_vm2, %v1318_v32  ;;  %v1234_v23 = vpop.f32.mrb[33].mxu1  ;;  %11478 = vmatmul.mubr.msk.f32.gmra.mrb[138].mxu1 %vm464_vm1, %v3902_v56  ;;  %v1762_v19 = vld [vmem:[#allocation5 + $0x38] sm:$0xff] }
 0x12a   : > { %1353 = vst.msk [vmem:[#allocation5 + $0xe0] sm:$0xff] %vm385_vm2, %v1317_v14  ;;  %v11093_v62 = vpop.f32.mrb[34].mxu0  ;;  %v1284_v26 = vld [vmem:[#allocation5 + $0xf8] sm:$0xff]  ;;  %11480 = vmatprep.mubr.msk.f32.mxu1 %vm464_vm1, %v3903_v20  ;;  %v1761_v14 = vld [vmem:[#allocation5 + $0x30] sm:$0xff] }
 0x12b   : > { %858 = vst.msk [vmem:[#allocation5 + $0x118] sm:$0x3f] %vm857_vm3, %v11093_v62  ;;  %v1320_v63 = vadd.f32 %v11143_v12, %v1284_v26  ;;  %v813_v36 = vpop.f32.mrb[35].mxu0  ;;  %v1283_v17 = vld [vmem:[#allocation5 + $0xf0] sm:$0xff]  ;;  %11425 = vmatmul.mubr.msk.f32.gmra.mrb[140].mxu0 %vm464_vm1, %v3402_v33 }
 0x12c   : > { %856 = vst.msk [vmem:[#allocation5 + $0x110] sm:$0xff] %vm385_vm2, %v813_v36  ;;  %v1319_v0 = vadd.f32 %v1283_v17, %v1224_v15  ;;  %11427 = vmatprep.mubr.msk.f32.mxu0 %vm464_vm1, %v3403_v61  ;;  %v11149_v31 = vpop.f32.mrb[34].mxu1  ;;  %v4380_v61 = vld [vmem:[%s12673_s30 + $0x5e] sm:$0xff] }
 0x12d   : > { %1356 = vst.msk [vmem:[#allocation5 + $0xf8] sm:$0xff] %vm385_vm2, %v1320_v63  ;;  %v1244_v34 = vpop.f32.mrb[35].mxu1  ;;  %11481 = vmatmul.mubr.msk.f32.gmra.mrb[140].mxu1 %vm464_vm1, %v3904_v27  ;;  %v4381_v27 = vld [vmem:[%s12673_s30 + $0x66] sm:$0xff] }
 0x12e   : > { %1355 = vst.msk [vmem:[#allocation5 + $0xf0] sm:$0xff] %vm385_vm2, %v1319_v0  ;;  %v1286_v60 = vld [vmem:[#allocation5 + $0x108] sm:$0xff]  ;;  %v11154_v1 = vpop.f32.mrb[36].mxu0  ;;  %11483 = vmatprep.mubr.msk.f32.mxu1 %vm464_vm1, %v3905_v30 }
 0x12f   : > { %v1322_v38 = vadd.f32 %v11146_v22, %v1286_v60  ;;  %v1792_v8 = vadd.f32 %v11154_v1, %v1756_v40  ;;  %v1285_v41 = vld [vmem:[#allocation5 + $0x100] sm:$0xff]  ;;  %v1576_v39 = vpop.f32.mrb[37].mxu0  ;;  %11428 = vmatmul.mubr.msk.f32.gmra.mrb[142].mxu0 %vm464_vm1, %v3404_v37  ;;  %v1764_v30 = vld [vmem:[#allocation5 + $0x48] sm:$0xff]  ;;  %v4382_v60 = vld [vmem:[%s12673_s30 + $0x6e] sm:$0xff] }
 0x130   : > { %v1321_v4 = vadd.f32 %v1285_v41, %v1234_v23  ;;  %v1791_v21 = vadd.f32 %v1755_v42, %v1576_v39  ;;  %11488 = vmatprep.mubr.msk.f32.mxu0 %vm464_vm1, %v4373_v18  ;;  %v11210_v44 = vpop.f32.mrb[36].mxu1  ;;  %v1766_v42 = vld [vmem:[#allocation5 + $0x58] sm:$0xff] }
 0x131   : > { %1358 = vst.msk [vmem:[#allocation5 + $0x108] sm:$0xff] %vm385_vm2, %v1322_v38  ;;  %1828 = vst.msk [vmem:[#allocation5 + $0x8] sm:$0xff] %vm385_vm2, %v1792_v8  ;;  %v2078_v47 = vpop.f32.mrb[37].mxu1  ;;  %11484 = vmatmul.mubr.msk.f32.gmra.mrb[142].mxu1 %vm464_vm1, %v3906_v35  ;;  %v4383_v38 = vld [vmem:[%s12673_s30 + $0x76] sm:$0xff] }
 0x132   : > { %1357 = vst.msk [vmem:[#allocation5 + $0x100] sm:$0xff] %vm385_vm2, %v1321_v4  ;;  %1827 = vst.msk [vmem:[#allocation5] sm:$0xff] %vm385_vm2, %v1791_v21  ;;  %v1288_v5 = vld [vmem:[#allocation5 + $0x118] sm:$0x3f]  ;;  %v11157_v45 = vpop.f32.mrb[38].mxu0 }
 0x133   : > { %v1324_v24 = vadd.f32 %v11149_v31, %v1288_v5  ;;  %v1794_v51 = vadd.f32 %v11157_v45, %v1758_v50  ;;  %v1287_v54 = vld [vmem:[#allocation5 + $0x110] sm:$0xff]  ;;  %v1586_v55 = vpop.f32.mrb[39].mxu0  ;;  %11489 = vmatmul.mubr.msk.f32.vlgmr.msra.gmra.mrb[144].mxu0 %vm464_vm1, %v4374_v43  ;;  %v1763_v31 = vld [vmem:[#allocation5 + $0x40] sm:$0xff] }
 0x134   : > { %v1323_v25 = vadd.f32 %v1287_v54, %v1244_v34  ;;  %v1793_v58 = vadd.f32 %v1757_v48, %v1586_v55  ;;  %11491 = vmatprep.mubr.msk.f32.mxu0 %vm464_vm1, %v4375_v46  ;;  %v11213_v49 = vpop.f32.mrb[38].mxu1  ;;  %v1765_v43 = vld [vmem:[#allocation5 + $0x50] sm:$0xff]  ;;  %v1768_v48 = vld [vmem:[#allocation5 + $0x68] sm:$0xff] }
 0x135   : > { %1360 = vst.msk [vmem:[#allocation5 + $0x118] sm:$0x3f] %vm857_vm3, %v1324_v24  ;;  %v2088_v2 = vpop.f32.mrb[39].mxu1  ;;  %v4385_v24 = vld [vmem:[%s12673_s30 + $0x86] sm:$0xff] }
 0x136   : > { %1830 = vst.msk [vmem:[#allocation5 + $0x18] sm:$0xff] %vm385_vm2, %v1794_v51  ;;  %1359 = vst.msk [vmem:[#allocation5 + $0x110] sm:$0xff] %vm385_vm2, %v1323_v25  ;;  %v11160_v3 = vpop.f32.mrb[40].mxu0 }
 0x137   : > { %1829 = vst.msk [vmem:[#allocation5 + $0x10] sm:$0xff] %vm385_vm2, %v1793_v58  ;;  %v1796_v10 = vadd.f32 %v11160_v3, %v1760_v28  ;;  %v1596_v52 = vpop.f32.mrb[41].mxu0  ;;  %11492 = vmatmul.mubr.msk.f32.gmra.mrb[146].mxu0 %vm464_vm1, %v4376_v9  ;;  %v1767_v9 = vld [vmem:[#allocation5 + $0x60] sm:$0xff] }
 0x138   : > { %v1795_v7 = vadd.f32 %v1759_v6, %v1596_v52  ;;  %v2258_v29 = vld [vmem:[#allocation5 + $0x8] sm:$0xff]  ;;  %11494 = vmatprep.mubr.msk.f32.mxu0 %vm464_vm1, %v4377_v59  ;;  %v11216_v11 = vpop.f32.mrb[40].mxu1  ;;  %v4387_v52 = vld [vmem:[%s12673_s30 + $0x96] sm:$0xff] }
 0x139   : > { %1832 = vst.msk [vmem:[#allocation5 + $0x28] sm:$0xff] %vm385_vm2, %v1796_v10  ;;  %v2294_v12 = vadd.f32 %v11210_v44, %v2258_v29  ;;  %v2257_v15 = vld [vmem:[#allocation5] sm:$0xff]  ;;  %v2098_v16 = vpop.f32.mrb[41].mxu1 }
 0x13a   : > { %1831 = vst.msk [vmem:[#allocation5 + $0x20] sm:$0xff] %vm385_vm2, %v1795_v7  ;;  %v2293_v56 = vadd.f32 %v2257_v15, %v2078_v47  ;;  %v11163_v32 = vpop.f32.mrb[42].mxu0  ;;  %v4384_v47 = vld [vmem:[%s12673_s30 + $0x7e] sm:$0xff]  ;;  %v1769_v15 = vld [vmem:[#allocation5 + $0x70] sm:$0xff] }
 0x13b   : > { %2330 = vst.msk [vmem:[#allocation5 + $0x8] sm:$0xff] %vm385_vm2, %v2294_v12  ;;  %v1798_v57 = vadd.f32 %v11163_v32, %v1762_v19  ;;  %v1606_v20 = vpop.f32.mrb[43].mxu0  ;;  %11495 = vmatmul.mubr.msk.f32.gmra.mrb[148].mxu0 %vm464_vm1, %v4378_v53  ;;  %v1770_v53 = vld [vmem:[#allocation5 + $0x78] sm:$0xff] }
 0x13c   : > { %2329 = vst.msk [vmem:[#allocation5] sm:$0xff] %vm385_vm2, %v2293_v56  ;;  %v1797_v33 = vadd.f32 %v1761_v14, %v1606_v20  ;;  %11497 = vmatprep.mubr.msk.f32.mxu0 %vm464_vm1, %v4379_v13  ;;  %v11219_v23 = vpop.f32.mrb[42].mxu1  ;;  %v4388_v56 = vld [vmem:[%s12673_s30 + $0x9e] sm:$0xff]  ;;  %v4389_v20 = vld [vmem:[%s12673_s30 + $0xa6] sm:$0xff] }
 0x13d   : > { %v2260_v22 = vld [vmem:[#allocation5 + $0x18] sm:$0xff]  ;;  %1834 = vst.msk [vmem:[#allocation5 + $0x38] sm:$0xff] %vm385_vm2, %v1798_v57  ;;  %v2108_v63 = vpop.f32.mrb[43].mxu1 }
 0x13e   : > { %v2296_v62 = vadd.f32 %v11213_v49, %v2260_v22  ;;  %v2259_v26 = vld [vmem:[#allocation5 + $0x10] sm:$0xff]  ;;  %1833 = vst.msk [vmem:[#allocation5 + $0x30] sm:$0xff] %vm385_vm2, %v1797_v33  ;;  %v11166_v17 = vpop.f32.mrb[44].mxu0 }
 0x13f   : > { %v2295_v36 = vadd.f32 %v2259_v26, %v2088_v2  ;;  %v1800_v0 = vadd.f32 %v11166_v17, %v1764_v30  ;;  %v1616_v37 = vpop.f32.mrb[45].mxu0  ;;  %11498 = vmatmul.mubr.msk.f32.gmra.mrb[150].mxu0 %vm464_vm1, %v4380_v61  ;;  %v4386_v2 = vld [vmem:[%s12673_s30 + $0x8e] sm:$0xff]  ;;  %v1772_v61 = vld [vmem:[#allocation5 + $0x88] sm:$0xff]  ;;  %v1771_v26 = vld [vmem:[#allocation5 + $0x80] sm:$0xff] }
 0x140   : > { %2332 = vst.msk [vmem:[#allocation5 + $0x18] sm:$0xff] %vm385_vm2, %v2296_v62  ;;  %v1799_v18 = vadd.f32 %v1763_v31, %v1616_v37  ;;  %v2262_v34 = vld [vmem:[#allocation5 + $0x28] sm:$0xff]  ;;  %11500 = vmatprep.mubr.msk.f32.mxu0 %vm464_vm1, %v4381_v27  ;;  %v11222_v1 = vpop.f32.mrb[44].mxu1  ;;  %v4391_v37 = vld [vmem:[%s12673_s30 + $0xb6] sm:$0xff] }
 0x141   : > { %2331 = vst.msk [vmem:[#allocation5 + $0x10] sm:$0xff] %vm385_vm2, %v2295_v36  ;;  %1836 = vst.msk [vmem:[#allocation5 + $0x48] sm:$0xff] %vm385_vm2, %v1800_v0  ;;  %v2298_v40 = vadd.f32 %v11216_v11, %v2262_v34  ;;  %v2261_v35 = vld [vmem:[#allocation5 + $0x20] sm:$0xff]  ;;  %v2118_v8 = vpop.f32.mrb[45].mxu1  ;;  %v4390_v36 = vld [vmem:[%s12673_s30 + $0xae] sm:$0xff] }
 0x142   : > { %1835 = vst.msk [vmem:[#allocation5 + $0x40] sm:$0xff] %vm385_vm2, %v1799_v18  ;;  %v2297_v41 = vadd.f32 %v2261_v35, %v2098_v16  ;;  %v11169_v39 = vpop.f32.mrb[46].mxu0  ;;  %v1773_v35 = vld [vmem:[#allocation5 + $0x90] sm:$0xff] }
 0x143   : > { %2334 = vst.msk [vmem:[#allocation5 + $0x28] sm:$0xff] %vm385_vm2, %v2298_v40  ;;  %v1802_v4 = vadd.f32 %v11169_v39, %v1766_v42  ;;  %v1626_v21 = vpop.f32.mrb[47].mxu0  ;;  %11501 = vmatmul.mubr.msk.f32.gmra.mrb[152].mxu0 %vm464_vm1, %v4382_v60  ;;  %v1774_v60 = vld [vmem:[#allocation5 + $0x98] sm:$0xff] }
 0x144   : > { %2333 = vst.msk [vmem:[#allocation5 + $0x20] sm:$0xff] %vm385_vm2, %v2297_v41  ;;  %v1801_v44 = vadd.f32 %v1765_v43, %v1626_v21  ;;  %v2264_v46 = vld [vmem:[#allocation5 + $0x38] sm:$0xff]  ;;  %11503 = vmatprep.mubr.msk.f32.mxu0 %vm464_vm1, %v4383_v38  ;;  %v11225_v5 = vpop.f32.mrb[46].mxu1  ;;  %v4392_v41 = vld [vmem:[%s12673_s30 + $0xbe] sm:$0xff]  ;;  %v4393_v21 = vld [vmem:[%s12673_s30 + $0xc6] sm:$0xff] }
 0x145   : > { %1838 = vst.msk [vmem:[#allocation5 + $0x58] sm:$0xff] %vm385_vm2, %v1802_v4  ;;  %v2300_v45 = vadd.f32 %v11219_v23, %v2264_v46  ;;  %v2263_v50 = vld [vmem:[#allocation5 + $0x30] sm:$0xff]  ;;  %v2128_v51 = vpop.f32.mrb[47].mxu1 }
 0x146   : > { %1837 = vst.msk [vmem:[#allocation5 + $0x50] sm:$0xff] %vm385_vm2, %v1801_v44  ;;  %v2299_v54 = vadd.f32 %v2263_v50, %v2108_v63  ;;  %v11172_v55 = vpop.f32.mrb[48].mxu0  ;;  %v1775_v50 = vld [vmem:[#allocation5 + $0xa0] sm:$0xff] }
 0x147   : > { %2336 = vst.msk [vmem:[#allocation5 + $0x38] sm:$0xff] %vm385_vm2, %v2300_v45  ;;  %v1804_v25 = vadd.f32 %v11172_v55, %v1768_v48  ;;  %v1636_v58 = vpop.f32.mrb[49].mxu0  ;;  %11504 = vmatmul.mubr.msk.f32.gmra.mrb[154].mxu0 %vm464_vm1, %v4384_v47  ;;  %v1776_v47 = vld [vmem:[#allocation5 + $0xa8] sm:$0xff]  ;;  %v4395_v55 = vld [vmem:[%s12673_s30 + $0xd6] sm:$0xff] }
 0x148   : > { %2335 = vst.msk [vmem:[#allocation5 + $0x30] sm:$0xff] %vm385_vm2, %v2299_v54  ;;  %v1803_v49 = vadd.f32 %v1767_v9, %v1636_v58  ;;  %v2266_v59 = vld [vmem:[#allocation5 + $0x48] sm:$0xff]  ;;  %11506 = vmatprep.mubr.msk.f32.mxu0 %vm464_vm1, %v4385_v24  ;;  %v11228_v3 = vpop.f32.mrb[48].mxu1  ;;  %v4394_v54 = vld [vmem:[%s12673_s30 + $0xce] sm:$0xff] }
 0x149   : > { %1840 = vst.msk [vmem:[#allocation5 + $0x68] sm:$0xff] %vm385_vm2, %v1804_v25  ;;  %v2302_v28 = vadd.f32 %v11222_v1, %v2266_v59  ;;  %v2265_v10 = vld [vmem:[#allocation5 + $0x40] sm:$0xff]  ;;  %v2138_v6 = vpop.f32.mrb[49].mxu1  ;;  %v5043_v59 = vld [vmem:[%s15365_s3] sm:$0xff] }
 0x14a   : > { %1839 = vst.msk [vmem:[#allocation5 + $0x60] sm:$0xff] %vm385_vm2, %v1803_v49  ;;  %v2301_v7 = vadd.f32 %v2265_v10, %v2118_v8  ;;  %v11175_v29 = vpop.f32.mrb[50].mxu0  ;;  %v12578_v49 = vmov 0.0|0.0   ;;  %v1778_v10 = vld [vmem:[#allocation5 + $0xb8] sm:$0xff] }
 0x14b   : > { %2338 = vst.msk [vmem:[#allocation5 + $0x48] sm:$0xff] %vm385_vm2, %v2302_v28  ;;  %v1806_v11 = vadd.f32 %v11175_v29, %v1770_v53  ;;  %v1646_v12 = vpop.f32.mrb[51].mxu0  ;;  %11507 = vmatmul.mubr.msk.f32.gmra.mrb[156].mxu0 %vm464_vm1, %v4386_v2  ;;  %12390 = vmatprep.subr.bf16.mxu1 %v12578_v49  ;;  %v5044_v2 = vld [vmem:[%s15365_s3 + $0x8] sm:$0xff] }
 0x14c   : > { %2337 = vst.msk [vmem:[#allocation5 + $0x40] sm:$0xff] %vm385_vm2, %v2301_v7  ;;  %v1805_v13 = vadd.f32 %v1769_v15, %v1646_v12  ;;  %v2268_v16 = vld [vmem:[#allocation5 + $0x58] sm:$0xff]  ;;  %11509 = vmatprep.mubr.msk.f32.mxu0 %vm464_vm1, %v4387_v52  ;;  %v11231_v32 = vpop.f32.mrb[50].mxu1  ;;  %12402 = vmatprep.subr.bf16.mxu0 %v12578_v49  ;;  %v12391_v52 = vpack.c.bf16 %v5044_v2, %v5043_v59  ;;  %v1777_v29 = vld [vmem:[#allocation5 + $0xb0] sm:$0xff]  ;;  %v4396_v12 = vld [vmem:[%s12673_s30 + $0xde] sm:$0xff] }
 0x14d   : > { %1842 = vst.msk [vmem:[#allocation5 + $0x78] sm:$0xff] %vm385_vm2, %v1806_v11  ;;  %v2304_v19 = vadd.f32 %v11225_v5, %v2268_v16  ;;  %v2267_v57 = vld [vmem:[#allocation5 + $0x50] sm:$0xff]  ;;  %v2148_v14 = vpop.f32.mrb[51].mxu1 }
 0x14e   : > { %1841 = vst.msk [vmem:[#allocation5 + $0x70] sm:$0xff] %vm385_vm2, %v1805_v13  ;;  %v2303_v33 = vadd.f32 %v2267_v57, %v2128_v51  ;;  %v11178_v22 = vpop.f32.mrb[52].mxu0  ;;  %12392 = vmatpush3.bf16.msra.mxu1 %v12391_v52  ;;  %v1785_v2 = vld [vmem:[#allocation5 + $0xf0] sm:$0xff] }
 0x14f   : > { %2340 = vst.msk [vmem:[#allocation5 + $0x58] sm:$0xff] %vm385_vm2, %v2304_v19  ;;  %v1808_v23 = vadd.f32 %v11178_v22, %v1772_v61  ;;  %v1656_v62 = vpop.f32.mrb[53].mxu0  ;;  %11510 = vmatmul.mubr.msk.f32.gmra.mrb[158].mxu0 %vm464_vm1, %v4388_v56  ;;  %v4397_v56 = vld [vmem:[%s12673_s30 + $0xe6] sm:$0xff]  ;;  %12393 = vmatprep.subr.bf16.mxu1 %v12578_v49  ;;  %v1779_v22 = vld [vmem:[#allocation5 + $0xc0] sm:$0xff] }
 0x150   : > { %2339 = vst.msk [vmem:[#allocation5 + $0x50] sm:$0xff] %vm385_vm2, %v2303_v33  ;;  %v1807_v27 = vadd.f32 %v1771_v26, %v1656_v62  ;;  %v2270_v63 = vld [vmem:[#allocation5 + $0x68] sm:$0xff]  ;;  %11512 = vmatprep.mubr.msk.f32.mxu0 %vm464_vm1, %v4389_v20  ;;  %v11234_v17 = vpop.f32.mrb[52].mxu1  ;;  %v4398_v62 = vld [vmem:[%s12673_s30 + $0xee] sm:$0xff] }
 0x151   : > { %1844 = vst.msk [vmem:[#allocation5 + $0x88] sm:$0xff] %vm385_vm2, %v1808_v23  ;;  %v2306_v30 = vadd.f32 %v11228_v3, %v2270_v63  ;;  %v2269_v0 = vld [vmem:[#allocation5 + $0x60] sm:$0xff]  ;;  %v2158_v31 = vpop.f32.mrb[53].mxu1  ;;  %v1780_v20 = vld [vmem:[#allocation5 + $0xc8] sm:$0xff] }
 0x152   : > { %1843 = vst.msk [vmem:[#allocation5 + $0x80] sm:$0xff] %vm385_vm2, %v1807_v27  ;;  %v2305_v18 = vadd.f32 %v2269_v0, %v2138_v6  ;;  %v11181_v34 = vpop.f32.mrb[54].mxu0 }
 0x153   : > { %2342 = vst.msk [vmem:[#allocation5 + $0x68] sm:$0xff] %vm385_vm2, %v2306_v30  ;;  %v1810_v1 = vadd.f32 %v11181_v34, %v1774_v60  ;;  %v1666_v40 = vpop.f32.mrb[55].mxu0  ;;  %11513 = vmatmul.mubr.msk.f32.gmra.mrb[160].mxu0 %vm464_vm1, %v4390_v36  ;;  %v4399_v36 = vld [vmem:[%s12673_s30 + $0xf6] sm:$0xff]  ;;  %v1781_v34 = vld [vmem:[#allocation5 + $0xd0] sm:$0xff] }
 0x154   : > { %2341 = vst.msk [vmem:[#allocation5 + $0x60] sm:$0xff] %vm385_vm2, %v2305_v18  ;;  %v1809_v38 = vadd.f32 %v1773_v35, %v1666_v40  ;;  %v2272_v8 = vld [vmem:[#allocation5 + $0x78] sm:$0xff]  ;;  %11515 = vmatprep.mubr.msk.f32.mxu0 %vm464_vm1, %v4391_v37  ;;  %v11237_v39 = vpop.f32.mrb[54].mxu1  ;;  %v4400_v40 = vld [vmem:[%s12673_s30 + $0xfe] sm:$0xff] }
 0x155   : > { %1846 = vst.msk [vmem:[#allocation5 + $0x98] sm:$0xff] %vm385_vm2, %v1810_v1  ;;  %v2308_v42 = vadd.f32 %v11231_v32, %v2272_v8  ;;  %v2271_v4 = vld [vmem:[#allocation5 + $0x70] sm:$0xff]  ;;  %v2168_v43 = vpop.f32.mrb[55].mxu1  ;;  %v1782_v37 = vld [vmem:[#allocation5 + $0xd8] sm:$0xff] }
 0x156   : > { %1845 = vst.msk [vmem:[#allocation5 + $0x90] sm:$0xff] %vm385_vm2, %v1809_v38  ;;  %v2307_v44 = vadd.f32 %v2271_v4, %v2148_v14  ;;  %v11184_v46 = vpop.f32.mrb[56].mxu0 }
 0x157   : > { %2344 = vst.msk [vmem:[#allocation5 + $0x78] sm:$0xff] %vm385_vm2, %v2308_v42  ;;  %v1812_v5 = vadd.f32 %v11184_v46, %v1776_v47  ;;  %v1676_v45 = vpop.f32.mrb[57].mxu0  ;;  %11516 = vmatmul.mubr.msk.f32.gmra.mrb[162].mxu0 %vm464_vm1, %v4392_v41  ;;  %v4401_v41 = vld [vmem:[%s12673_s30 + $0x106] sm:$0xff]  ;;  %v1783_v46 = vld [vmem:[#allocation5 + $0xe0] sm:$0xff] }
 0x158   : > { %2343 = vst.msk [vmem:[#allocation5 + $0x70] sm:$0xff] %vm385_vm2, %v2307_v44  ;;  %v1811_v24 = vadd.f32 %v1775_v50, %v1676_v45  ;;  %v2274_v51 = vld [vmem:[#allocation5 + $0x88] sm:$0xff]  ;;  %11518 = vmatprep.mubr.msk.f32.mxu0 %vm464_vm1, %v4393_v21  ;;  %v11240_v48 = vpop.f32.mrb[56].mxu1  ;;  %v4402_v45 = vld [vmem:[%s12673_s30 + $0x10e] sm:$0xff] }
 0x159   : > { %1848 = vst.msk [vmem:[#allocation5 + $0xa8] sm:$0xff] %vm385_vm2, %v1812_v5  ;;  %v2310_v25 = vadd.f32 %v11234_v17, %v2274_v51  ;;  %v2273_v58 = vld [vmem:[#allocation5 + $0x80] sm:$0xff]  ;;  %v2178_v9 = vpop.f32.mrb[57].mxu1  ;;  %v1784_v21 = vld [vmem:[#allocation5 + $0xe8] sm:$0xff] }
 0x15a   : > { %1847 = vst.msk [vmem:[#allocation5 + $0xa0] sm:$0xff] %vm385_vm2, %v1811_v24  ;;  %v2309_v3 = vadd.f32 %v2273_v58, %v2158_v31  ;;  %v11187_v28 = vpop.f32.mrb[58].mxu0  ;;  %v1786_v58 = vld [vmem:[#allocation5 + $0xf8] sm:$0xff] }
 0x15b   : > { %2346 = vst.msk [vmem:[#allocation5 + $0x88] sm:$0xff] %vm385_vm2, %v2310_v25  ;;  %v1814_v6 = vadd.f32 %v11187_v28, %v1778_v10  ;;  %v1686_v7 = vpop.f32.mrb[59].mxu0  ;;  %11519 = vmatmul.mubr.msk.f32.gmra.mrb[164].mxu0 %vm464_vm1, %v4394_v54  ;;  %v4403_v54 = vld [vmem:[%s12673_s30 + $0x116] sm:$0xff]  ;;  %v4404_v10 = vld [vmem:[%s12673_s30 + $0x11e] sm:$0xff] }
 0x15c   : > { %2345 = vst.msk [vmem:[#allocation5 + $0x80] sm:$0xff] %vm385_vm2, %v2309_v3  ;;  %v1813_v53 = vadd.f32 %v1777_v29, %v1686_v7  ;;  %v2276_v11 = vld [vmem:[#allocation5 + $0x98] sm:$0xff]  ;;  %11521 = vmatprep.mubr.msk.f32.mxu0 %vm464_vm1, %v4395_v55  ;;  %v11243_v15 = vpop.f32.mrb[58].mxu1  ;;  %v4405_v29 = vld [vmem:[%s12673_s30 + $0x126] sm:$0xff] }
 0x15d   : > { %1850 = vst.msk [vmem:[#allocation5 + $0xb8] sm:$0xff] %vm385_vm2, %v1814_v6  ;;  %v2312_v13 = vadd.f32 %v11237_v39, %v2276_v11  ;;  %v2275_v16 = vld [vmem:[#allocation5 + $0x90] sm:$0xff]  ;;  %v2188_v32 = vpop.f32.mrb[59].mxu1 }
 0x15e   : > { %1849 = vst.msk [vmem:[#allocation5 + $0xb0] sm:$0xff] %vm385_vm2, %v1813_v53  ;;  %v2311_v19 = vadd.f32 %v2275_v16, %v2168_v43  ;;  %v11190_v57 = vpop.f32.mrb[60].mxu0 }
 0x15f   : > { %2348 = vst.msk [vmem:[#allocation5 + $0x98] sm:$0xff] %vm385_vm2, %v2312_v13  ;;  %v1816_v14 = vadd.f32 %v11190_v57, %v1780_v20  ;;  %v1696_v33 = vpop.f32.mrb[61].mxu0  ;;  %11522 = vmatmul.mubr.msk.f32.gmra.mrb[166].mxu0 %vm464_vm1, %v4396_v12  ;;  %v4406_v57 = vld [vmem:[%s12673_s30 + $0x12e] sm:$0xff] }
 0x160   : > { %2347 = vst.msk [vmem:[#allocation5 + $0x90] sm:$0xff] %vm385_vm2, %v2311_v19  ;;  %v1815_v61 = vadd.f32 %v1779_v22, %v1696_v33  ;;  %v2278_v23 = vld [vmem:[#allocation5 + $0xa8] sm:$0xff]  ;;  %11524 = vmatprep.mubr.msk.f32.mxu0 %vm464_vm1, %v4397_v56  ;;  %v11246_v26 = vpop.f32.mrb[60].mxu1  ;;  %v1787_v56 = vld [vmem:[#allocation5 + $0x100] sm:$0xff] }
 0x161   : > { %1852 = vst.msk [vmem:[#allocation5 + $0xc8] sm:$0xff] %vm385_vm2, %v1816_v14  ;;  %v2314_v27 = vadd.f32 %v11240_v48, %v2278_v23  ;;  %v2277_v63 = vld [vmem:[#allocation5 + $0xa0] sm:$0xff]  ;;  %v2198_v17 = vpop.f32.mrb[61].mxu1 }
 0x162   : > { %1851 = vst.msk [vmem:[#allocation5 + $0xc0] sm:$0xff] %vm385_vm2, %v1815_v61  ;;  %v2313_v30 = vadd.f32 %v2277_v63, %v2178_v9  ;;  %v11193_v0 = vpop.f32.mrb[62].mxu0  ;;  %v4407_v22 = vld [vmem:[%s12673_s30 + $0x136] sm:$0xff] }
 0x163   : > { %2350 = vst.msk [vmem:[#allocation5 + $0xa8] sm:$0xff] %vm385_vm2, %v2314_v27  ;;  %v1818_v31 = vadd.f32 %v11193_v0, %v1782_v37  ;;  %v1706_v18 = vpop.f32.mrb[63].mxu0  ;;  %11525 = vmatmul.mubr.msk.f32.gmra.mrb[168].mxu0 %vm464_vm1, %v4398_v62  ;;  %v4408_v0 = vld [vmem:[%s12673_s30 + $0x13e] sm:$0x3f] }
 0x164   : > { %2349 = vst.msk [vmem:[#allocation5 + $0xa0] sm:$0xff] %vm385_vm2, %v2313_v30  ;;  %v1817_v60 = vadd.f32 %v1781_v34, %v1706_v18  ;;  %v2280_v1 = vld [vmem:[#allocation5 + $0xb8] sm:$0xff]  ;;  %11527 = vmatprep.mubr.msk.f32.mxu0 %vm464_vm1, %v4399_v36  ;;  %v11249_v35 = vpop.f32.mrb[62].mxu1  ;;  %v1789_v36 = vld [vmem:[#allocation5 + $0x110] sm:$0xff] }
 0x165   : > { %1854 = vst.msk [vmem:[#allocation5 + $0xd8] sm:$0xff] %vm385_vm2, %v1818_v31  ;;  %v2316_v38 = vadd.f32 %v11243_v15, %v2280_v1  ;;  %v2279_v8 = vld [vmem:[#allocation5 + $0xb0] sm:$0xff]  ;;  %v2208_v39 = vpop.f32.mrb[63].mxu1  ;;  %v1788_v15 = vld [vmem:[#allocation5 + $0x108] sm:$0xff] }
 0x166   : > { %1853 = vst.msk [vmem:[#allocation5 + $0xd0] sm:$0xff] %vm385_vm2, %v1817_v60  ;;  %v2315_v42 = vadd.f32 %v2279_v8, %v2188_v32  ;;  %v11196_v4 = vpop.f32.mrb[64].mxu0  ;;  %v2759_v8 = vld [vmem:[#allocation5] sm:$0xff] }
 0x167   : > { %2352 = vst.msk [vmem:[#allocation5 + $0xb8] sm:$0xff] %vm385_vm2, %v2316_v38  ;;  %v1820_v43 = vadd.f32 %v11196_v4, %v1784_v21  ;;  %v1716_v44 = vpop.f32.mrb[65].mxu0  ;;  %11528 = vmatmul.mubr.msk.f32.gmra.mrb[170].mxu0 %vm464_vm1, %v4400_v40  ;;  %v2760_v40 = vld [vmem:[#allocation5 + $0x8] sm:$0xff] }
 0x168   : > { %2351 = vst.msk [vmem:[#allocation5 + $0xb0] sm:$0xff] %vm385_vm2, %v2315_v42  ;;  %v1819_v47 = vadd.f32 %v1783_v46, %v1716_v44  ;;  %v2282_v5 = vld [vmem:[#allocation5 + $0xc8] sm:$0xff]  ;;  %11530 = vmatprep.mubr.msk.f32.mxu0 %vm464_vm1, %v4401_v41  ;;  %v11252_v50 = vpop.f32.mrb[64].mxu1 }
 0x169   : > { %1856 = vst.msk [vmem:[#allocation5 + $0xe8] sm:$0xff] %vm385_vm2, %v1820_v43  ;;  %v2318_v24 = vadd.f32 %v11246_v26, %v2282_v5  ;;  %v2281_v51 = vld [vmem:[#allocation5 + $0xc0] sm:$0xff]  ;;  %v2218_v55 = vpop.f32.mrb[65].mxu1  ;;  %v1790_v26 = vld [vmem:[#allocation5 + $0x118] sm:$0x3f] }
 0x16a   : > { %1855 = vst.msk [vmem:[#allocation5 + $0xe0] sm:$0xff] %vm385_vm2, %v1819_v47  ;;  %v2317_v48 = vadd.f32 %v2281_v51, %v2198_v17  ;;  %v11199_v25 = vpop.f32.mrb[66].mxu0  ;;  %v2762_v47 = vld [vmem:[#allocation5 + $0x18] sm:$0xff] }
 0x16b   : > { %2354 = vst.msk [vmem:[#allocation5 + $0xc8] sm:$0xff] %vm385_vm2, %v2318_v24  ;;  %v1822_v9 = vadd.f32 %v11199_v25, %v1786_v58  ;;  %v1726_v59 = vpop.f32.mrb[67].mxu0  ;;  %11531 = vmatmul.mubr.msk.f32.gmra.mrb[172].mxu0 %vm464_vm1, %v4402_v45  ;;  %v5045_v58 = vld [vmem:[%s15365_s3 + $0x10] sm:$0xff] }
 0x16c   : > { %2353 = vst.msk [vmem:[#allocation5 + $0xc0] sm:$0xff] %vm385_vm2, %v2317_v48  ;;  %v1821_v3 = vadd.f32 %v1785_v2, %v1726_v59  ;;  %v2284_v28 = vld [vmem:[#allocation5 + $0xd8] sm:$0xff]  ;;  %11533 = vmatprep.mubr.msk.f32.mxu0 %vm464_vm1, %v4403_v54  ;;  %v11255_v52 = vpop.f32.mrb[66].mxu1 }
 0x16d   : > { %1858 = vst.msk [vmem:[#allocation5 + $0xf8] sm:$0xff] %vm385_vm2, %v1822_v9  ;;  %v2320_v6 = vadd.f32 %v11249_v35, %v2284_v28  ;;  %v2283_v7 = vld [vmem:[#allocation5 + $0xd0] sm:$0xff]  ;;  %v2228_v53 = vpop.f32.mrb[67].mxu1  ;;  %v5046_v9 = vld [vmem:[%s15365_s3 + $0x18] sm:$0xff] }
 0x16e   : > { %1857 = vst.msk [vmem:[#allocation5 + $0xf0] sm:$0xff] %vm385_vm2, %v1821_v3  ;;  %v2319_v11 = vadd.f32 %v2283_v7, %v2208_v39  ;;  %v11202_v12 = vpop.f32.mrb[68].mxu0  ;;  %v2764_v3 = vld [vmem:[#allocation5 + $0x28] sm:$0xff]  ;;  %v12394_v28 = vpack.c.bf16 %v5046_v9, %v5045_v58 }
 0x16f   : > { %2356 = vst.msk [vmem:[#allocation5 + $0xd8] sm:$0xff] %vm385_vm2, %v2320_v6  ;;  %v1824_v13 = vadd.f32 %v11202_v12, %v1788_v15  ;;  %v1736_v16 = vpop.f32.mrb[69].mxu0  ;;  %11534 = vmatmul.mubr.msk.f32.gmra.mrb[174].mxu0 %vm464_vm1, %v4404_v10  ;;  %v2763_v6 = vld [vmem:[#allocation5 + $0x20] sm:$0xff] }
 0x170   : > { %2355 = vst.msk [vmem:[#allocation5 + $0xd0] sm:$0xff] %vm385_vm2, %v2319_v11  ;;  %v1823_v32 = vadd.f32 %v1787_v56, %v1736_v16  ;;  %v2286_v19 = vld [vmem:[#allocation5 + $0xe8] sm:$0xff]  ;;  %11536 = vmatprep.mubr.msk.f32.mxu0 %vm464_vm1, %v4405_v29  ;;  %v11258_v20 = vpop.f32.mrb[68].mxu1  ;;  %12395 = vmatpush3.bf16.msra.mxu1 %v12394_v28  ;;  %v2766_v56 = vld [vmem:[#allocation5 + $0x38] sm:$0xff] }
 0x171   : > { %1860 = vst.msk [vmem:[#allocation5 + $0x108] sm:$0xff] %vm385_vm2, %v1824_v13  ;;  %v2322_v14 = vadd.f32 %v11252_v50, %v2286_v19  ;;  %v2285_v33 = vld [vmem:[#allocation5 + $0xe0] sm:$0xff]  ;;  %v2238_v61 = vpop.f32.mrb[69].mxu1  ;;  %v2761_v50 = vld [vmem:[#allocation5 + $0x10] sm:$0xff]  ;;  %12396 = vmatprep.subr.bf16.mxu1 %v12578_v49  ;;  %v2774_v28 = vld [vmem:[#allocation5 + $0x78] sm:$0xff] }
 0x172   : > { %1859 = vst.msk [vmem:[#allocation5 + $0x100] sm:$0xff] %vm385_vm2, %v1823_v32  ;;  %v2321_v23 = vadd.f32 %v2285_v33, %v2218_v55  ;;  %v11205_v62 = vpop.f32.mrb[70].mxu0 }
 0x173   : > { %2358 = vst.msk [vmem:[#allocation5 + $0xe8] sm:$0xff] %vm385_vm2, %v2322_v14  ;;  %v1826_v27 = vadd.f32 %v11205_v62, %v1790_v26  ;;  %v1746_v63 = vpop.f32.mrb[71].mxu0  ;;  %11537 = vmatmul.mubr.msk.f32.gmra.mrb[176].mxu0 %vm464_vm1, %v4406_v57  ;;  %v2765_v57 = vld [vmem:[#allocation5 + $0x30] sm:$0xff] }
 0x174   : > { %2357 = vst.msk [vmem:[#allocation5 + $0xe0] sm:$0xff] %vm385_vm2, %v2321_v23  ;;  %v1825_v17 = vadd.f32 %v1789_v36, %v1746_v63  ;;  %v2288_v30 = vld [vmem:[#allocation5 + $0xf8] sm:$0xff]  ;;  %11539 = vmatprep.mubr.msk.f32.mxu0 %vm464_vm1, %v4407_v22  ;;  %v11261_v37 = vpop.f32.mrb[70].mxu1 }
 0x175   : > { %1862 = vst.msk [vmem:[#allocation5 + $0x118] sm:$0x3f] %vm857_vm3, %v1826_v27  ;;  %v2324_v31 = vadd.f32 %v11255_v52, %v2288_v30  ;;  %v2287_v18 = vld [vmem:[#allocation5 + $0xf0] sm:$0xff]  ;;  %v2248_v34 = vpop.f32.mrb[71].mxu1  ;;  %v2768_v27 = vld [vmem:[#allocation5 + $0x48] sm:$0xff] }
 0x176   : > { %1861 = vst.msk [vmem:[#allocation5 + $0x110] sm:$0xff] %vm385_vm2, %v1825_v17  ;;  %v2323_v60 = vadd.f32 %v2287_v18, %v2228_v53  ;;  %v11266_v1 = vpop.f32.mrb[72].mxu0  ;;  %v2767_v17 = vld [vmem:[#allocation5 + $0x40] sm:$0xff] }
 0x177   : > { %2360 = vst.msk [vmem:[#allocation5 + $0xf8] sm:$0xff] %vm385_vm2, %v2324_v31  ;;  %v2796_v35 = vadd.f32 %v11266_v1, %v2760_v40  ;;  %v2580_v38 = vpop.f32.mrb[73].mxu0  ;;  %11540 = vmatmul.mubr.msk.f32.gmra.mrb[178].mxu0 %vm464_vm1, %v4408_v0  ;;  %v2770_v40 = vld [vmem:[#allocation5 + $0x58] sm:$0xff] }
 0x178   : > { %2359 = vst.msk [vmem:[#allocation5 + $0xf0] sm:$0xff] %vm385_vm2, %v2323_v60  ;;  %v2795_v41 = vadd.f32 %v2759_v8, %v2580_v38  ;;  %v2290_v39 = vld [vmem:[#allocation5 + $0x108] sm:$0xff]  ;;  %v11322_v42 = vpop.f32.mrb[72].mxu1  ;;  %v2769_v8 = vld [vmem:[#allocation5 + $0x50] sm:$0xff] }
 0x179   : > { %2832 = vst.msk [vmem:[#allocation5 + $0x8] sm:$0xff] %vm385_vm2, %v2796_v35  ;;  %v2326_v4 = vadd.f32 %v11258_v20, %v2290_v39  ;;  %v2289_v21 = vld [vmem:[#allocation5 + $0x100] sm:$0xff]  ;;  %v3082_v43 = vpop.f32.mrb[73].mxu1 }
 0x17a   : > { %2831 = vst.msk [vmem:[#allocation5] sm:$0xff] %vm385_vm2, %v2795_v41  ;;  %v2325_v44 = vadd.f32 %v2289_v21, %v2238_v61  ;;  %v11269_v46 = vpop.f32.mrb[74].mxu0 }
 0x17b   : > { %2362 = vst.msk [vmem:[#allocation5 + $0x108] sm:$0xff] %vm385_vm2, %v2326_v4  ;;  %v2798_v5 = vadd.f32 %v11269_v46, %v2762_v47  ;;  %v2590_v45 = vpop.f32.mrb[75].mxu0  ;;  %v2772_v47 = vld [vmem:[#allocation5 + $0x68] sm:$0xff] }
 0x17c   : > { %2361 = vst.msk [vmem:[#allocation5 + $0x100] sm:$0xff] %vm385_vm2, %v2325_v44  ;;  %v2797_v24 = vadd.f32 %v2761_v50, %v2590_v45  ;;  %v2292_v51 = vld [vmem:[#allocation5 + $0x118] sm:$0x3f]  ;;  %v11325_v54 = vpop.f32.mrb[74].mxu1  ;;  %v2771_v50 = vld [vmem:[#allocation5 + $0x60] sm:$0xff] }
 0x17d   : > { %2834 = vst.msk [vmem:[#allocation5 + $0x18] sm:$0xff] %vm385_vm2, %v2798_v5  ;;  %v2328_v55 = vadd.f32 %v11261_v37, %v2292_v51  ;;  %v2291_v48 = vld [vmem:[#allocation5 + $0x110] sm:$0xff]  ;;  %v3092_v25 = vpop.f32.mrb[75].mxu1 }
 0x17e   : > { %2833 = vst.msk [vmem:[#allocation5 + $0x10] sm:$0xff] %vm385_vm2, %v2797_v24  ;;  %v2327_v59 = vadd.f32 %v2291_v48, %v2248_v34  ;;  %v11272_v2 = vpop.f32.mrb[76].mxu0  ;;  %v10114_v48 = vld [vmem:[%s15365_s3 + $0x48] sm:$0xff] }
 0x17f   : > { %2364 = vst.msk [vmem:[#allocation5 + $0x118] sm:$0x3f] %vm857_vm3, %v2328_v55  ;;  %v2800_v10 = vadd.f32 %v11272_v2, %v2764_v3  ;;  %v2600_v52 = vpop.f32.mrb[77].mxu0  ;;  %v10113_v55 = vld [vmem:[%s15365_s3 + $0x40] sm:$0xff] }
 0x180   : > { %2363 = vst.msk [vmem:[#allocation5 + $0x110] sm:$0xff] %vm385_vm2, %v2327_v59  ;;  %v2799_v7 = vadd.f32 %v2763_v6, %v2600_v52  ;;  %v3262_v29 = vld [vmem:[#allocation5 + $0x8] sm:$0xff]  ;;  %v11328_v53 = vpop.f32.mrb[76].mxu1  ;;  %v12403_v59 = vpack.c.bf16 %v10114_v48, %v10113_v55 }
 0x181   : > { %2836 = vst.msk [vmem:[#allocation5 + $0x28] sm:$0xff] %vm385_vm2, %v2800_v10  ;;  %v3298_v11 = vadd.f32 %v11322_v42, %v3262_v29  ;;  %v3261_v12 = vld [vmem:[#allocation5] sm:$0xff]  ;;  %v3102_v15 = vpop.f32.mrb[77].mxu1  ;;  %v12579_v10 = vmov 0.0  }
 0x182   : > { %2835 = vst.msk [vmem:[#allocation5 + $0x20] sm:$0xff] %vm385_vm2, %v2799_v7  ;;  %v3297_v13 = vadd.f32 %v3261_v12, %v3082_v43  ;;  %v11275_v16 = vpop.f32.mrb[78].mxu0  ;;  %386 = vst.msk [vmem:[#allocation2] sm:$0xff] %vm385_vm2, %v12579_v10  ;;  %v2773_v7 = vld [vmem:[#allocation5 + $0x70] sm:$0xff]  ;;  %12404 = vmatpush3.bf16.msra.mxu0 %v12403_v59  ;;  %v10115_v12 = vld [vmem:[%s15365_s3 + $0x50] sm:$0xff]  ;;  %11550 = vmatprep.mubr.msk.f32.mxu1 %vm12580_vm5, %v12579_v10 }
 0x183   : > { %3334 = vst.msk [vmem:[#allocation5 + $0x8] sm:$0xff] %vm385_vm2, %v3298_v11  ;;  %v2802_v32 = vadd.f32 %v11275_v16, %v2766_v56  ;;  %v2610_v19 = vpop.f32.mrb[79].mxu0  ;;  %387 = vst.msk [vmem:[#allocation2 + $0x8] sm:$0xff] %vm385_vm2, %v12579_v10  ;;  %12405 = vmatprep.subr.bf16.mxu0 %v12578_v49  ;;  %11668 = vmatprep.mubr.msk.f32.mxu0 %vm12580_vm5, %v12579_v10 }
 0x184   : > { %3333 = vst.msk [vmem:[#allocation5] sm:$0xff] %vm385_vm2, %v3297_v13  ;;  %v2801_v20 = vadd.f32 %v2765_v57, %v2610_v19  ;;  %v3264_v14 = vld [vmem:[#allocation5 + $0x18] sm:$0xff]  ;;  %v11331_v33 = vpop.f32.mrb[78].mxu1  ;;  %409 = vst.msk [vmem:[#allocation3] sm:$0xff] %vm385_vm2, %v12579_v10 }
 0x185   : > { %2838 = vst.msk [vmem:[#allocation5 + $0x38] sm:$0xff] %vm385_vm2, %v2802_v32  ;;  %v3300_v22 = vadd.f32 %v11325_v54, %v3264_v14  ;;  %v3263_v61 = vld [vmem:[#allocation5 + $0x10] sm:$0xff]  ;;  %v3112_v23 = vpop.f32.mrb[79].mxu1 }
 0x186   : > { %2837 = vst.msk [vmem:[#allocation5 + $0x30] sm:$0xff] %vm385_vm2, %v2801_v20  ;;  %v3299_v62 = vadd.f32 %v3263_v61, %v3092_v25  ;;  %v11278_v26 = vpop.f32.mrb[80].mxu0  ;;  %v2776_v20 = vld [vmem:[#allocation5 + $0x88] sm:$0xff] }
 0x187   : > { %3336 = vst.msk [vmem:[#allocation5 + $0x18] sm:$0xff] %vm385_vm2, %v3300_v22  ;;  %v2804_v63 = vadd.f32 %v11278_v26, %v2768_v27  ;;  %v2620_v36 = vpop.f32.mrb[81].mxu0  ;;  %v2775_v22 = vld [vmem:[#allocation5 + $0x80] sm:$0xff] }
 0x188   : > { %3335 = vst.msk [vmem:[#allocation5 + $0x10] sm:$0xff] %vm385_vm2, %v3299_v62  ;;  %v2803_v30 = vadd.f32 %v2767_v17, %v2620_v36  ;;  %v3266_v0 = vld [vmem:[#allocation5 + $0x28] sm:$0xff]  ;;  %v11334_v37 = vpop.f32.mrb[80].mxu1 }
 0x189   : > { %2840 = vst.msk [vmem:[#allocation5 + $0x48] sm:$0xff] %vm385_vm2, %v2804_v63  ;;  %v3302_v31 = vadd.f32 %v11328_v53, %v3266_v0  ;;  %v3265_v18 = vld [vmem:[#allocation5 + $0x20] sm:$0xff]  ;;  %v3122_v34 = vpop.f32.mrb[81].mxu1 }
 0x18a   : > { %2839 = vst.msk [vmem:[#allocation5 + $0x40] sm:$0xff] %vm385_vm2, %v2803_v30  ;;  %v3301_v60 = vadd.f32 %v3265_v18, %v3102_v15  ;;  %v11281_v1 = vpop.f32.mrb[82].mxu0  ;;  %v10116_v15 = vld [vmem:[%s15365_s3 + $0x58] sm:$0xff]  ;;  %v5010_v36 = vld [vmem:[#allocation2] ss:$2 sm:$0xff] }
 0x18b   : > { %3338 = vst.msk [vmem:[#allocation5 + $0x28] sm:$0xff] %vm385_vm2, %v3302_v31  ;;  %v2806_v35 = vadd.f32 %v11281_v1, %v2770_v40  ;;  %v2630_v38 = vpop.f32.mrb[83].mxu0  ;;  %v12406_v32 = vpack.c.bf16 %v10116_v15, %v10115_v12  ;;  %11551 = vmatmul.mubr.msk.f32.vlgmr.msra.gmra.mrb[144].mxu1 %vm385_vm2, %v5010_v36 }
 0x18c   : > { %3337 = vst.msk [vmem:[#allocation5 + $0x20] sm:$0xff] %vm385_vm2, %v3301_v60  ;;  %v2805_v41 = vadd.f32 %v2769_v8, %v2630_v38  ;;  %v3268_v39 = vld [vmem:[#allocation5 + $0x38] sm:$0xff]  ;;  %v11337_v42 = vpop.f32.mrb[82].mxu1  ;;  %11553 = vmatprep.mubr.msk.f32.mxu1 %vm12580_vm5, %v12579_v10 }
 0x18d   : > { %2842 = vst.msk [vmem:[#allocation5 + $0x58] sm:$0xff] %vm385_vm2, %v2806_v35  ;;  %v3304_v4 = vadd.f32 %v11331_v33, %v3268_v39  ;;  %v3267_v21 = vld [vmem:[#allocation5 + $0x30] sm:$0xff]  ;;  %v3132_v43 = vpop.f32.mrb[83].mxu1  ;;  %12407 = vmatpush3.bf16.msra.mxu0 %v12406_v32 }
 0x18e   : > { %2841 = vst.msk [vmem:[#allocation5 + $0x50] sm:$0xff] %vm385_vm2, %v2805_v41  ;;  %v3303_v44 = vadd.f32 %v3267_v21, %v3112_v23  ;;  %v11284_v46 = vpop.f32.mrb[84].mxu0  ;;  %12414 = vmatprep.subr.bf16.mxu0 %v12578_v49 }
 0x18f   : > { %3340 = vst.msk [vmem:[#allocation5 + $0x38] sm:$0xff] %vm385_vm2, %v3304_v4  ;;  %v2808_v5 = vadd.f32 %v11284_v46, %v2772_v47  ;;  %v2640_v45 = vpop.f32.mrb[85].mxu0 }
 0x190   : > { %3339 = vst.msk [vmem:[#allocation5 + $0x30] sm:$0xff] %vm385_vm2, %v3303_v44  ;;  %v2807_v24 = vadd.f32 %v2771_v50, %v2640_v45  ;;  %v3270_v51 = vld [vmem:[#allocation5 + $0x48] sm:$0xff]  ;;  %v11340_v54 = vpop.f32.mrb[84].mxu1 }
 0x191   : > { %2844 = vst.msk [vmem:[#allocation5 + $0x68] sm:$0xff] %vm385_vm2, %v2808_v5  ;;  %v3306_v25 = vadd.f32 %v11334_v37, %v3270_v51  ;;  %v3269_v58 = vld [vmem:[#allocation5 + $0x40] sm:$0xff]  ;;  %v3142_v9 = vpop.f32.mrb[85].mxu1  ;;  %v2778_v37 = vld [vmem:[#allocation5 + $0x98] sm:$0xff] }
 0x192   : > { %2843 = vst.msk [vmem:[#allocation5 + $0x60] sm:$0xff] %vm385_vm2, %v2807_v24  ;;  %v3305_v2 = vadd.f32 %v3269_v58, %v3122_v34  ;;  %v11287_v3 = vpop.f32.mrb[86].mxu0  ;;  %v2777_v34 = vld [vmem:[#allocation5 + $0x90] sm:$0xff] }
 0x193   : > { %389 = vst.msk [vmem:[#allocation2 + $0x10] sm:$0x7] %vm388_vm4, %v12579_v10  ;;  %410 = vst.msk [vmem:[#allocation3 + $0x8] sm:$0x7] %vm388_vm4, %v12579_v10  ;;  %v2810_v52 = vadd.f32 %v11287_v3, %v2774_v28  ;;  %v2650_v6 = vpop.f32.mrb[87].mxu0 }
 0x194   : > { %3342 = vst.msk [vmem:[#allocation5 + $0x48] sm:$0xff] %vm385_vm2, %v3306_v25  ;;  %3341 = vst.msk [vmem:[#allocation5 + $0x40] sm:$0xff] %vm385_vm2, %v3305_v2  ;;  %v2809_v29 = vadd.f32 %v2773_v7, %v2650_v6  ;;  %v3272_v53 = vld [vmem:[#allocation5 + $0x58] sm:$0xff]  ;;  %v11343_v11 = vpop.f32.mrb[86].mxu1  ;;  %v2781_v25 = vld [vmem:[#allocation5 + $0xb0] sm:$0xff] }
 0x195   : > { %2846 = vst.msk [vmem:[#allocation5 + $0x78] sm:$0xff] %vm385_vm2, %v2810_v52  ;;  %v3308_v13 = vadd.f32 %v11337_v42, %v3272_v53  ;;  %v3271_v16 = vld [vmem:[#allocation5 + $0x50] sm:$0xff]  ;;  %v3152_v56 = vpop.f32.mrb[87].mxu1  ;;  %v2780_v42 = vld [vmem:[#allocation5 + $0xa8] sm:$0xff] }
 0x196   : > { %2845 = vst.msk [vmem:[#allocation5 + $0x70] sm:$0xff] %vm385_vm2, %v2809_v29  ;;  %v3307_v19 = vadd.f32 %v3271_v16, %v3132_v43  ;;  %v11290_v57 = vpop.f32.mrb[88].mxu0  ;;  %v2779_v43 = vld [vmem:[#allocation5 + $0xa0] sm:$0xff]  ;;  %v10092_v52 = vld [vmem:[%s15365_s3 + $0x20] sm:$0xff]  ;;  %v10093_v6 = vld [vmem:[%s15365_s3 + $0x28] sm:$0xff] }
 0x197   : > { %3344 = vst.msk [vmem:[#allocation5 + $0x58] sm:$0xff] %vm385_vm2, %v3308_v13  ;;  %v2812_v14 = vadd.f32 %v11290_v57, %v2776_v20  ;;  %v2660_v33 = vpop.f32.mrb[89].mxu0  ;;  %v2784_v53 = vld [vmem:[#allocation5 + $0xc8] sm:$0xff]  ;;  %v2783_v13 = vld [vmem:[#allocation5 + $0xc0] sm:$0xff] }
 0x198   : > { %3343 = vst.msk [vmem:[#allocation5 + $0x50] sm:$0xff] %vm385_vm2, %v3307_v19  ;;  %v2811_v61 = vadd.f32 %v2775_v22, %v2660_v33  ;;  %v3274_v23 = vld [vmem:[#allocation5 + $0x68] sm:$0xff]  ;;  %v13645_v62 = vpop.f32.mrb[88].mxu1  ;;  %v2786_v22 = vld [vmem:[#allocation5 + $0xd8] sm:$0xff] }
 0x199   : > { %2848 = vst.msk [vmem:[#allocation5 + $0x88] sm:$0xff] %vm385_vm2, %v2812_v14  ;;  %v3310_v26 = vadd.f32 %v11340_v54, %v3274_v23  ;;  %v3273_v27 = vld [vmem:[#allocation5 + $0x60] sm:$0xff]  ;;  %v13649_v63 = vpop.f32.mrb[89].mxu1  ;;  %v2782_v54 = vld [vmem:[#allocation5 + $0xb8] sm:$0xff] }
 0x19a   : > { %v5557_v17 = vld [vmem:[#allocation2 + $0x2] ss:$2 sm:$0xff]  ;;  %2847 = vst.msk [vmem:[#allocation5 + $0x80] sm:$0xff] %vm385_vm2, %v2811_v61  ;;  %v3309_v30 = vadd.f32 %v3273_v27, %v3142_v9  ;;  %v11293_v0 = vpop.f32.mrb[90].mxu0 }
 0x19b   : > { %11669 = vmatmul.mubr.msk.f32.vlgmr.msra.gmra.mrb[180].mxu0 %vm385_vm2, %v5557_v17  ;;  %3346 = vst.msk [vmem:[#allocation5 + $0x68] sm:$0xff] %vm385_vm2, %v3310_v26  ;;  %v2814_v31 = vadd.f32 %v11293_v0, %v2778_v37  ;;  %v2670_v18 = vpop.f32.mrb[91].mxu0 }
 0x19c   : > { %11671 = vmatprep.mubr.msk.f32.mxu0 %vm12580_vm5, %v12579_v10  ;;  %3345 = vst.msk [vmem:[#allocation5 + $0x60] sm:$0xff] %vm385_vm2, %v3309_v30  ;;  %v2813_v60 = vadd.f32 %v2777_v34, %v2670_v18  ;;  %v3276_v1 = vld [vmem:[#allocation5 + $0x78] sm:$0xff]  ;;  %v11349_v40 = vpop.f32.mrb[90].mxu1 }
 0x19d   : > { %2850 = vst.msk [vmem:[#allocation5 + $0x98] sm:$0xff] %vm385_vm2, %v2814_v31  ;;  %v3312_v35 = vadd.f32 %v11343_v11, %v3276_v1  ;;  %v3275_v38 = vld [vmem:[#allocation5 + $0x70] sm:$0xff]  ;;  %v3172_v8 = vpop.f32.mrb[91].mxu1  ;;  %v12397_v11 = vpack.c.bf16 %v10093_v6, %v10092_v52  ;;  %v2788_v31 = vld [vmem:[#allocation5 + $0xe8] sm:$0xff] }
 0x19e   : > { %2849 = vst.msk [vmem:[#allocation5 + $0x90] sm:$0xff] %vm385_vm2, %v2813_v60  ;;  %v3311_v41 = vadd.f32 %v3275_v38, %v3152_v56  ;;  %v11296_v39 = vpop.f32.mrb[92].mxu0  ;;  %v2787_v60 = vld [vmem:[#allocation5 + $0xe0] sm:$0xff] }
 0x19f   : > { %3348 = vst.msk [vmem:[#allocation5 + $0x78] sm:$0xff] %vm385_vm2, %v3312_v35  ;;  %v2816_v4 = vadd.f32 %v11296_v39, %v2780_v42  ;;  %v2680_v21 = vpop.f32.mrb[93].mxu0  ;;  %12398 = vmatpush3.bf16.msra.mxu1 %v12397_v11 }
 0x1a0   : > { %391 = vst.msk [vmem:[#allocation2 + $0x23] sm:$0x3] %vm390_vm6, %v12579_v10  ;;  %392 = vst.msk [vmem:[#allocation2 + $0x35] sm:$0x3] %vm390_vm6, %v12579_v10  ;;  %v2815_v44 = vadd.f32 %v2779_v43, %v2680_v21  ;;  %v3278_v46 = vld [vmem:[#allocation5 + $0x88] sm:$0xff]  ;;  %v11352_v47 = vpop.f32.mrb[92].mxu1  ;;  %12399 = vmatprep.subr.bf16.mxu1 %v12578_v49 }
 0x1a1   : > { %393 = vst.msk [vmem:[#allocation2 + $0x47] sm:$0x3] %vm390_vm6, %v12579_v10  ;;  %394 = vst.msk [vmem:[#allocation2 + $0x59] sm:$0x3] %vm390_vm6, %v12579_v10  ;;  %v3314_v5 = vadd.f32 %v13645_v62, %v3278_v46  ;;  %v3277_v45 = vld [vmem:[#allocation5 + $0x80] sm:$0xff]  ;;  %v3182_v50 = vpop.f32.mrb[93].mxu1 }
 0x1a2   : > { %395 = vst.msk [vmem:[#allocation2 + $0x6b] sm:$0x3] %vm390_vm6, %v12579_v10  ;;  %396 = vst.msk [vmem:[#allocation2 + $0x7d] sm:$0x3] %vm390_vm6, %v12579_v10  ;;  %v3313_v24 = vadd.f32 %v3277_v45, %v13649_v63  ;;  %v11299_v51 = vpop.f32.mrb[94].mxu0  ;;  %v2785_v62 = vld [vmem:[#allocation5 + $0xd0] sm:$0xff] }
 0x1a3   : > { %397 = vst.msk [vmem:[#allocation2 + $0x8f] sm:$0x3] %vm390_vm6, %v12579_v10  ;;  %398 = vst.msk [vmem:[#allocation2 + $0xa1] sm:$0x3] %vm390_vm6, %v12579_v10  ;;  %v2818_v55 = vadd.f32 %v11299_v51, %v2782_v54  ;;  %v2690_v48 = vpop.f32.mrb[95].mxu0 }
 0x1a4   : > { %399 = vst.msk [vmem:[#allocation2 + $0xb3] sm:$0x3] %vm390_vm6, %v12579_v10  ;;  %400 = vst.msk [vmem:[#allocation2 + $0xc5] sm:$0x3] %vm390_vm6, %v12579_v10  ;;  %v2817_v58 = vadd.f32 %v2781_v25, %v2690_v48  ;;  %v3280_v9 = vld [vmem:[#allocation5 + $0x98] sm:$0xff]  ;;  %v11355_v59 = vpop.f32.mrb[94].mxu1 }
 0x1a5   : > { %401 = vst.msk [vmem:[#allocation2 + $0xd7] sm:$0x3] %vm390_vm6, %v12579_v10  ;;  %402 = vst.msk [vmem:[#allocation2 + $0xe9] sm:$0x3] %vm390_vm6, %v12579_v10  ;;  %v3316_v2 = vadd.f32 %v11349_v40, %v3280_v9  ;;  %v3279_v3 = vld [vmem:[#allocation5 + $0x90] sm:$0xff]  ;;  %v3192_v28 = vpop.f32.mrb[95].mxu1 }
 0x1a6   : > { %403 = vst.msk [vmem:[#allocation2 + $0xfb] sm:$0x3] %vm390_vm6, %v12579_v10  ;;  %404 = vst.msk [vmem:[#allocation2 + $0x10d] sm:$0x3] %vm390_vm6, %v12579_v10  ;;  %v3315_v7 = vadd.f32 %v3279_v3, %v3172_v8  ;;  %v11302_v29 = vpop.f32.mrb[96].mxu0 }
 0x1a7   : > { %405 = vst.msk [vmem:[#allocation2 + $0x11f] sm:$0x3] %vm390_vm6, %v12579_v10  ;;  %411 = vst.msk [vmem:[#allocation3 + $0x13] sm:$0x3] %vm390_vm6, %v12579_v10  ;;  %v2820_v12 = vadd.f32 %v11302_v29, %v2784_v53  ;;  %v2700_v15 = vpop.f32.mrb[97].mxu0 }
 0x1a8   : > { %412 = vst.msk [vmem:[#allocation3 + $0x1d] sm:$0x3] %vm390_vm6, %v12579_v10  ;;  %413 = vst.msk [vmem:[#allocation3 + $0x27] sm:$0x3] %vm390_vm6, %v12579_v10  ;;  %v2819_v16 = vadd.f32 %v2783_v13, %v2700_v15  ;;  %v11358_v32 = vpop.f32.mrb[96].mxu1 }
 0x1a9   : > { %414 = vst.msk [vmem:[#allocation3 + $0x31] sm:$0x3] %vm390_vm6, %v12579_v10  ;;  %415 = vst.msk [vmem:[#allocation3 + $0x3b] sm:$0x3] %vm390_vm6, %v12579_v10  ;;  %v3202_v20 = vpop.f32.mrb[97].mxu1 }
 0x1aa   : > { %416 = vst.msk [vmem:[#allocation3 + $0x45] sm:$0x3] %vm390_vm6, %v12579_v10  ;;  %417 = vst.msk [vmem:[#allocation3 + $0x4f] sm:$0x3] %vm390_vm6, %v12579_v10  ;;  %v11305_v33 = vpop.f32.mrb[98].mxu0 }
 0x1ab   : > { %422 = vst.msk [vmem:[#allocation4 + $0xb] sm:$0x3] %vm390_vm6, %v12579_v10  ;;  %423 = vst.msk [vmem:[#allocation4 + $0x11] sm:$0x3] %vm390_vm6, %v12579_v10  ;;  %v2822_v61 = vadd.f32 %v11305_v33, %v2786_v22  ;;  %v2710_v23 = vpop.f32.mrb[99].mxu0 }
 0x1ac   : > { %424 = vst.msk [vmem:[#allocation4 + $0x17] sm:$0x3] %vm390_vm6, %v12579_v10  ;;  %v2821_v26 = vadd.f32 %v2785_v62, %v2710_v23  ;;  %v11361_v63 = vpop.f32.mrb[98].mxu1  ;;  %v2794_v29 = vld [vmem:[#allocation5 + $0x118] sm:$0x3f] }
 0x1ad   : > { %3347 = vst.msk [vmem:[#allocation5 + $0x70] sm:$0xff] %vm385_vm2, %v3311_v41  ;;  %2852 = vst.msk [vmem:[#allocation5 + $0xa8] sm:$0xff] %vm385_vm2, %v2816_v4  ;;  %v3212_v30 = vpop.f32.mrb[99].mxu1  ;;  %v2790_v4 = vld [vmem:[#allocation5 + $0xf8] sm:$0xff] }
 0x1ae   : > { %2851 = vst.msk [vmem:[#allocation5 + $0xa0] sm:$0xff] %vm385_vm2, %v2815_v44  ;;  %3350 = vst.msk [vmem:[#allocation5 + $0x88] sm:$0xff] %vm385_vm2, %v3314_v5  ;;  %v11308_v37 = vpop.f32.mrb[100].mxu0  ;;  %v2789_v44 = vld [vmem:[#allocation5 + $0xf0] sm:$0xff] }
 0x1af   : > { %3349 = vst.msk [vmem:[#allocation5 + $0x80] sm:$0xff] %vm385_vm2, %v3313_v24  ;;  %2854 = vst.msk [vmem:[#allocation5 + $0xb8] sm:$0xff] %vm385_vm2, %v2818_v55  ;;  %v2824_v18 = vadd.f32 %v11308_v37, %v2788_v31  ;;  %v2720_v34 = vpop.f32.mrb[101].mxu0  ;;  %v2792_v55 = vld [vmem:[#allocation5 + $0x108] sm:$0xff] }
 0x1b0   : > { %2853 = vst.msk [vmem:[#allocation5 + $0xb0] sm:$0xff] %vm385_vm2, %v2817_v58  ;;  %3352 = vst.msk [vmem:[#allocation5 + $0x98] sm:$0xff] %vm385_vm2, %v3316_v2  ;;  %v2823_v1 = vadd.f32 %v2787_v60, %v2720_v34  ;;  %v11364_v35 = vpop.f32.mrb[100].mxu1  ;;  %v2791_v58 = vld [vmem:[#allocation5 + $0x100] sm:$0xff] }
 0x1b1   : > { %3351 = vst.msk [vmem:[#allocation5 + $0x90] sm:$0xff] %vm385_vm2, %v3315_v7  ;;  %2856 = vst.msk [vmem:[#allocation5 + $0xc8] sm:$0xff] %vm385_vm2, %v2820_v12  ;;  %v3222_v41 = vpop.f32.mrb[101].mxu1  ;;  %v2793_v12 = vld [vmem:[#allocation5 + $0x110] sm:$0xff] }
 0x1b2   : > { %2855 = vst.msk [vmem:[#allocation5 + $0xc0] sm:$0xff] %vm385_vm2, %v2819_v16  ;;  %2858 = vst.msk [vmem:[#allocation5 + $0xd8] sm:$0xff] %vm385_vm2, %v2822_v61  ;;  %v11311_v42 = vpop.f32.mrb[102].mxu0  ;;  %v3763_v61 = vld [vmem:[#allocation5] sm:$0xff] }
 0x1b3   : > { %2857 = vst.msk [vmem:[#allocation5 + $0xd0] sm:$0xff] %vm385_vm2, %v2821_v26  ;;  %2860 = vst.msk [vmem:[#allocation5 + $0xe8] sm:$0xff] %vm385_vm2, %v2824_v18  ;;  %v2826_v21 = vadd.f32 %v11311_v42, %v2790_v4  ;;  %v2730_v43 = vpop.f32.mrb[103].mxu0  ;;  %v3765_v18 = vld [vmem:[#allocation5 + $0x10] sm:$0xff] }
 0x1b4   : > { %v3282_v56 = vld [vmem:[#allocation5 + $0xa8] sm:$0xff]  ;;  %2859 = vst.msk [vmem:[#allocation5 + $0xe0] sm:$0xff] %vm385_vm2, %v2823_v1  ;;  %v2825_v46 = vadd.f32 %v2789_v44, %v2730_v43  ;;  %v11367_v5 = vpop.f32.mrb[102].mxu1 }
 0x1b5   : > { %v3318_v19 = vadd.f32 %v11352_v47, %v3282_v56  ;;  %v3281_v57 = vld [vmem:[#allocation5 + $0xa0] sm:$0xff]  ;;  %2862 = vst.msk [vmem:[#allocation5 + $0xf8] sm:$0xff] %vm385_vm2, %v2826_v21  ;;  %v3232_v24 = vpop.f32.mrb[103].mxu1 }
 0x1b6   : > { %v3317_v14 = vadd.f32 %v3281_v57, %v3182_v50  ;;  %v3284_v27 = vld [vmem:[#allocation5 + $0xb8] sm:$0xff]  ;;  %2861 = vst.msk [vmem:[#allocation5 + $0xf0] sm:$0xff] %vm385_vm2, %v2825_v46  ;;  %v11314_v54 = vpop.f32.mrb[104].mxu0  ;;  %v3767_v21 = vld [vmem:[#allocation5 + $0x20] sm:$0xff] }
 0x1b7   : > { %3354 = vst.msk [vmem:[#allocation5 + $0xa8] sm:$0xff] %vm385_vm2, %v3318_v19  ;;  %v3320_v36 = vadd.f32 %v11355_v59, %v3284_v27  ;;  %v3283_v17 = vld [vmem:[#allocation5 + $0xb0] sm:$0xff]  ;;  %v2828_v48 = vadd.f32 %v11314_v54, %v2792_v55  ;;  %v2740_v25 = vpop.f32.mrb[105].mxu0  ;;  %v3770_v55 = vld [vmem:[#allocation5 + $0x38] sm:$0xff] }
 0x1b8   : > { %3353 = vst.msk [vmem:[#allocation5 + $0xa0] sm:$0xff] %vm385_vm2, %v3317_v14  ;;  %v3319_v0 = vadd.f32 %v3283_v17, %v3192_v28  ;;  %v3286_v40 = vld [vmem:[#allocation5 + $0xc8] sm:$0xff]  ;;  %v2827_v9 = vadd.f32 %v2791_v58, %v2740_v25  ;;  %v11370_v2 = vpop.f32.mrb[104].mxu1 }
 0x1b9   : > { %3356 = vst.msk [vmem:[#allocation5 + $0xb8] sm:$0xff] %vm385_vm2, %v3320_v36  ;;  %v3322_v38 = vadd.f32 %v11358_v32, %v3286_v40  ;;  %v3285_v8 = vld [vmem:[#allocation5 + $0xc0] sm:$0xff]  ;;  %v3288_v47 = vld [vmem:[#allocation5 + $0xd8] sm:$0xff]  ;;  %2864 = vst.msk [vmem:[#allocation5 + $0x108] sm:$0xff] %vm385_vm2, %v2828_v48  ;;  %v3242_v52 = vpop.f32.mrb[105].mxu1 }
 0x1ba   : > { %3355 = vst.msk [vmem:[#allocation5 + $0xb0] sm:$0xff] %vm385_vm2, %v3319_v0  ;;  %v3321_v39 = vadd.f32 %v3285_v8, %v3202_v20  ;;  %v3324_v45 = vadd.f32 %v11361_v63, %v3288_v47  ;;  %v3287_v50 = vld [vmem:[#allocation5 + $0xd0] sm:$0xff]  ;;  %v3290_v59 = vld [vmem:[#allocation5 + $0xe8] sm:$0xff]  ;;  %2863 = vst.msk [vmem:[#allocation5 + $0x100] sm:$0xff] %vm385_vm2, %v2827_v9  ;;  %v11317_v7 = vpop.f32.mrb[106].mxu0 }
 0x1bb   : > { %3358 = vst.msk [vmem:[#allocation5 + $0xc8] sm:$0xff] %vm385_vm2, %v3322_v38  ;;  %v3323_v51 = vadd.f32 %v3287_v50, %v3212_v30  ;;  %v3326_v3 = vadd.f32 %v11364_v35, %v3290_v59  ;;  %v3289_v28 = vld [vmem:[#allocation5 + $0xe0] sm:$0xff]  ;;  %v2830_v53 = vadd.f32 %v11317_v7, %v2794_v29  ;;  %v2750_v11 = vpop.f32.mrb[107].mxu0  ;;  %v3764_v14 = vld [vmem:[#allocation5 + $0x8] sm:$0xff]  ;;  %v3766_v0 = vld [vmem:[#allocation5 + $0x18] sm:$0xff] }
 0x1bc   : > { %3357 = vst.msk [vmem:[#allocation5 + $0xc0] sm:$0xff] %vm385_vm2, %v3321_v39  ;;  %3360 = vst.msk [vmem:[#allocation5 + $0xd8] sm:$0xff] %vm385_vm2, %v3324_v45  ;;  %v3325_v6 = vadd.f32 %v3289_v28, %v3222_v41  ;;  %v2829_v15 = vadd.f32 %v2793_v12, %v2750_v11  ;;  %v3292_v13 = vld [vmem:[#allocation5 + $0xf8] sm:$0xff]  ;;  %v11373_v16 = vpop.f32.mrb[106].mxu1  ;;  %v3768_v39 = vld [vmem:[#allocation5 + $0x28] sm:$0xff] }
 0x1bd   : > { %3359 = vst.msk [vmem:[#allocation5 + $0xd0] sm:$0xff] %vm385_vm2, %v3323_v51  ;;  %3362 = vst.msk [vmem:[#allocation5 + $0xe8] sm:$0xff] %vm385_vm2, %v3326_v3  ;;  %v3328_v56 = vadd.f32 %v11367_v5, %v3292_v13  ;;  %v3291_v32 = vld [vmem:[#allocation5 + $0xf0] sm:$0xff]  ;;  %v3252_v19 = vpop.f32.mrb[107].mxu1  ;;  %v10094_v50 = vld [vmem:[%s15365_s3 + $0x30] sm:$0xff] }
 0x1be   : > { %3361 = vst.msk [vmem:[#allocation5 + $0xe0] sm:$0xff] %vm385_vm2, %v3325_v6  ;;  %2865 = vst.msk [vmem:[#allocation5 + $0x110] sm:$0xff] %vm385_vm2, %v2829_v15  ;;  %v3327_v57 = vadd.f32 %v3291_v32, %v3232_v24  ;;  %v11378_v20 = vpop.f32.mrb[108].mxu0  ;;  %v10095_v24 = vld [vmem:[%s15365_s3 + $0x38] sm:$0xff]  ;;  %v3769_v9 = vld [vmem:[#allocation5 + $0x30] sm:$0xff] }
 0x1bf   : > { %2866 = vst.msk [vmem:[#allocation5 + $0x118] sm:$0x3f] %vm857_vm3, %v2830_v53  ;;  %v3800_v33 = vadd.f32 %v11378_v20, %v3764_v14  ;;  %v3584_v22 = vpop.f32.mrb[109].mxu0  ;;  %v12400_v48 = vpack.c.bf16 %v10095_v24, %v10094_v50  ;;  %v3772_v53 = vld [vmem:[#allocation5 + $0x48] sm:$0xff]  ;;  %v3771_v15 = vld [vmem:[#allocation5 + $0x40] sm:$0xff] }
 0x1c0   : > { %3364 = vst.msk [vmem:[#allocation5 + $0xf8] sm:$0xff] %vm385_vm2, %v3328_v56  ;;  %3363 = vst.msk [vmem:[#allocation5 + $0xf0] sm:$0xff] %vm385_vm2, %v3327_v57  ;;  %v3799_v23 = vadd.f32 %v3763_v61, %v3584_v22  ;;  %v3294_v62 = vld [vmem:[#allocation5 + $0x108] sm:$0xff]  ;;  %v11434_v26 = vpop.f32.mrb[108].mxu1 }
 0x1c1   : > { %3836 = vst.msk [vmem:[#allocation5 + $0x8] sm:$0xff] %vm385_vm2, %v3800_v33  ;;  %v3330_v27 = vadd.f32 %v11370_v2, %v3294_v62  ;;  %v3293_v63 = vld [vmem:[#allocation5 + $0x100] sm:$0xff]  ;;  %v4086_v36 = vpop.f32.mrb[109].mxu1  ;;  %12401 = vmatpush3.bf16.msra.mxu1 %v12400_v48  ;;  %v3774_v33 = vld [vmem:[#allocation5 + $0x58] sm:$0xff] }
 0x1c2   : > { %3835 = vst.msk [vmem:[#allocation5] sm:$0xff] %vm385_vm2, %v3799_v23  ;;  %v3329_v17 = vadd.f32 %v3293_v63, %v3242_v52  ;;  %v11381_v30 = vpop.f32.mrb[110].mxu0  ;;  %12408 = vmatprep.subr.bf16.mxu1 %v12578_v49  ;;  %v3773_v23 = vld [vmem:[#allocation5 + $0x50] sm:$0xff]  ;;  %v10158_v48 = vld [vmem:[%s15365_s3 + $0x98] sm:$0xff] }
 0x1c3   : > { %3366 = vst.msk [vmem:[#allocation5 + $0x108] sm:$0xff] %vm385_vm2, %v3330_v27  ;;  %v3802_v37 = vadd.f32 %v11381_v30, %v3766_v0  ;;  %v3594_v31 = vpop.f32.mrb[111].mxu0 }
 0x1c4   : > { %3365 = vst.msk [vmem:[#allocation5 + $0x100] sm:$0xff] %vm385_vm2, %v3329_v17  ;;  %v3801_v34 = vadd.f32 %v3765_v18, %v3594_v31  ;;  %v11437_v1 = vpop.f32.mrb[110].mxu1 }
 0x1c5   : > { %3838 = vst.msk [vmem:[#allocation5 + $0x18] sm:$0xff] %vm385_vm2, %v3802_v37  ;;  %v3295_v35 = vld [vmem:[#allocation5 + $0x110] sm:$0xff]  ;;  %v4096_v38 = vpop.f32.mrb[111].mxu1  ;;  %v3776_v37 = vld [vmem:[#allocation5 + $0x68] sm:$0xff] }
 0x1c6   : > { %v3296_v60 = vld [vmem:[#allocation5 + $0x118] sm:$0x3f]  ;;  %3837 = vst.msk [vmem:[#allocation5 + $0x10] sm:$0xff] %vm385_vm2, %v3801_v34  ;;  %v3331_v8 = vadd.f32 %v3295_v35, %v3252_v19  ;;  %v11384_v41 = vpop.f32.mrb[112].mxu0  ;;  %v3775_v34 = vld [vmem:[#allocation5 + $0x60] sm:$0xff] }
 0x1c7   : > { %v3332_v40 = vadd.f32 %v11373_v16, %v3296_v60  ;;  %v3804_v42 = vadd.f32 %v11384_v41, %v3768_v39  ;;  %v3604_v4 = vpop.f32.mrb[113].mxu0  ;;  %v10155_v41 = vld [vmem:[%s15365_s3 + $0x80] sm:$0xff]  ;;  %v10156_v39 = vld [vmem:[%s15365_s3 + $0x88] sm:$0xff]  ;;  %421 = vst.msk [vmem:[#allocation4] sm:$0x7f] %vm420_vm7, %v12579_v10 }
 0x1c8   : > { %3367 = vst.msk [vmem:[#allocation5 + $0x110] sm:$0xff] %vm385_vm2, %v3331_v8  ;;  %v3803_v43 = vadd.f32 %v3767_v21, %v3604_v4  ;;  %v4266_v44 = vld [vmem:[#allocation5 + $0x8] sm:$0xff]  ;;  %v11440_v46 = vpop.f32.mrb[112].mxu1  ;;  %v3778_v21 = vld [vmem:[#allocation5 + $0x78] sm:$0xff] }
 0x1c9   : > { %3368 = vst.msk [vmem:[#allocation5 + $0x118] sm:$0x3f] %vm857_vm3, %v3332_v40  ;;  %v4302_v47 = vadd.f32 %v11434_v26, %v4266_v44  ;;  %v4265_v5 = vld [vmem:[#allocation5] sm:$0xff]  ;;  %v4106_v45 = vpop.f32.mrb[113].mxu1 }
 0x1ca   : > { %3840 = vst.msk [vmem:[#allocation5 + $0x28] sm:$0xff] %vm385_vm2, %v3804_v42  ;;  %3839 = vst.msk [vmem:[#allocation5 + $0x20] sm:$0xff] %vm385_vm2, %v3803_v43  ;;  %v4301_v51 = vadd.f32 %v4265_v5, %v4086_v36  ;;  %v11387_v54 = vpop.f32.mrb[114].mxu0  ;;  %v12415_v43 = vpack.c.bf16 %v10156_v39, %v10155_v41 }
 0x1cb   : > { %4338 = vst.msk [vmem:[#allocation5 + $0x8] sm:$0xff] %vm385_vm2, %v4302_v47  ;;  %v3806_v25 = vadd.f32 %v11387_v54, %v3770_v55  ;;  %v3614_v58 = vpop.f32.mrb[115].mxu0  ;;  %v3777_v47 = vld [vmem:[#allocation5 + $0x70] sm:$0xff]  ;;  %v10157_v55 = vld [vmem:[%s15365_s3 + $0x90] sm:$0xff] }
 0x1cc   : > { %4337 = vst.msk [vmem:[#allocation5] sm:$0xff] %vm385_vm2, %v4301_v51  ;;  %v3805_v59 = vadd.f32 %v3769_v9, %v3614_v58  ;;  %v4268_v2 = vld [vmem:[#allocation5 + $0x18] sm:$0xff]  ;;  %v11443_v3 = vpop.f32.mrb[114].mxu1  ;;  %12416 = vmatpush3.bf16.msra.mxu0 %v12415_v43  ;;  %v3780_v9 = vld [vmem:[#allocation5 + $0x88] sm:$0xff] }
 0x1cd   : > { %3842 = vst.msk [vmem:[#allocation5 + $0x38] sm:$0xff] %vm385_vm2, %v3806_v25  ;;  %v4304_v28 = vadd.f32 %v11437_v1, %v4268_v2  ;;  %v4267_v52 = vld [vmem:[#allocation5 + $0x10] sm:$0xff]  ;;  %v4116_v6 = vpop.f32.mrb[115].mxu1  ;;  %12417 = vmatprep.subr.bf16.mxu0 %v12578_v49 }
 0x1ce   : > { %3841 = vst.msk [vmem:[#allocation5 + $0x30] sm:$0xff] %vm385_vm2, %v3805_v59  ;;  %v4303_v7 = vadd.f32 %v4267_v52, %v4096_v38  ;;  %v11390_v29 = vpop.f32.mrb[116].mxu0  ;;  %v12418_v59 = vpack.c.bf16 %v10158_v48, %v10157_v55 }
 0x1cf   : > { %4340 = vst.msk [vmem:[#allocation5 + $0x18] sm:$0xff] %vm385_vm2, %v4304_v28  ;;  %v3808_v11 = vadd.f32 %v11390_v29, %v3772_v53  ;;  %v3624_v12 = vpop.f32.mrb[117].mxu0  ;;  %v3779_v28 = vld [vmem:[#allocation5 + $0x80] sm:$0xff] }
 0x1d0   : > { %4339 = vst.msk [vmem:[#allocation5 + $0x10] sm:$0xff] %vm385_vm2, %v4303_v7  ;;  %v3807_v13 = vadd.f32 %v3771_v15, %v3624_v12  ;;  %v11446_v56 = vpop.f32.mrb[116].mxu1  ;;  %12419 = vmatpush3.bf16.msra.mxu0 %v12418_v59 }
 0x1d1   : > { %v4270_v16 = vld [vmem:[#allocation5 + $0x28] sm:$0xff]  ;;  %3844 = vst.msk [vmem:[#allocation5 + $0x48] sm:$0xff] %vm385_vm2, %v3808_v11  ;;  %v4269_v19 = vld [vmem:[#allocation5 + $0x20] sm:$0xff]  ;;  %v4126_v57 = vpop.f32.mrb[117].mxu1  ;;  %12426 = vmatprep.subr.bf16.mxu0 %v12578_v49 }
 0x1d2   : > { %v4306_v32 = vadd.f32 %v11440_v46, %v4270_v16  ;;  %3843 = vst.msk [vmem:[#allocation5 + $0x40] sm:$0xff] %vm385_vm2, %v3807_v13  ;;  %v4305_v20 = vadd.f32 %v4269_v19, %v4106_v45  ;;  %v11393_v14 = vpop.f32.mrb[118].mxu0  ;;  %v3782_v13 = vld [vmem:[#allocation5 + $0x98] sm:$0xff] }
 0x1d3   : > { %v3810_v22 = vadd.f32 %v11393_v14, %v3774_v33  ;;  %v3634_v61 = vpop.f32.mrb[119].mxu0 }
 0x1d4   : > { %4342 = vst.msk [vmem:[#allocation5 + $0x28] sm:$0xff] %vm385_vm2, %v4306_v32  ;;  %4341 = vst.msk [vmem:[#allocation5 + $0x20] sm:$0xff] %vm385_vm2, %v4305_v20  ;;  %v3809_v62 = vadd.f32 %v3773_v23, %v3634_v61  ;;  %v4272_v26 = vld [vmem:[#allocation5 + $0x38] sm:$0xff]  ;;  %v11449_v27 = vpop.f32.mrb[118].mxu1  ;;  %v3781_v32 = vld [vmem:[#allocation5 + $0x90] sm:$0xff] }
 0x1d5   : > { %3846 = vst.msk [vmem:[#allocation5 + $0x58] sm:$0xff] %vm385_vm2, %v3810_v22  ;;  %v4308_v63 = vadd.f32 %v11443_v3, %v4272_v26  ;;  %v4271_v36 = vld [vmem:[#allocation5 + $0x30] sm:$0xff]  ;;  %v4136_v17 = vpop.f32.mrb[119].mxu1 }
 0x1d6   : > { %3845 = vst.msk [vmem:[#allocation5 + $0x50] sm:$0xff] %vm385_vm2, %v3809_v62  ;;  %v4307_v30 = vadd.f32 %v4271_v36, %v4116_v6  ;;  %v11396_v0 = vpop.f32.mrb[120].mxu0  ;;  %v3784_v62 = vld [vmem:[#allocation5 + $0xa8] sm:$0xff] }
 0x1d7   : > { %4344 = vst.msk [vmem:[#allocation5 + $0x38] sm:$0xff] %vm385_vm2, %v4308_v63  ;;  %v3812_v31 = vadd.f32 %v11396_v0, %v3776_v37  ;;  %v3644_v18 = vpop.f32.mrb[121].mxu0  ;;  %v3783_v63 = vld [vmem:[#allocation5 + $0xa0] sm:$0xff] }
 0x1d8   : > { %4343 = vst.msk [vmem:[#allocation5 + $0x30] sm:$0xff] %vm385_vm2, %v4307_v30  ;;  %v3811_v60 = vadd.f32 %v3775_v34, %v3644_v18  ;;  %v4274_v1 = vld [vmem:[#allocation5 + $0x48] sm:$0xff]  ;;  %v11452_v40 = vpop.f32.mrb[120].mxu1 }
 0x1d9   : > { %3848 = vst.msk [vmem:[#allocation5 + $0x68] sm:$0xff] %vm385_vm2, %v3812_v31  ;;  %v4310_v35 = vadd.f32 %v11446_v56, %v4274_v1  ;;  %v4273_v38 = vld [vmem:[#allocation5 + $0x40] sm:$0xff]  ;;  %v4146_v8 = vpop.f32.mrb[121].mxu1 }
 0x1da   : > { %3847 = vst.msk [vmem:[#allocation5 + $0x60] sm:$0xff] %vm385_vm2, %v3811_v60  ;;  %v4309_v42 = vadd.f32 %v4273_v38, %v4126_v57  ;;  %v11399_v4 = vpop.f32.mrb[122].mxu0  ;;  %v3786_v60 = vld [vmem:[#allocation5 + $0xb8] sm:$0xff] }
 0x1db   : > { %4346 = vst.msk [vmem:[#allocation5 + $0x48] sm:$0xff] %vm385_vm2, %v4310_v35  ;;  %v3814_v44 = vadd.f32 %v11399_v4, %v3778_v21  ;;  %v3654_v46 = vpop.f32.mrb[123].mxu0  ;;  %v3785_v35 = vld [vmem:[#allocation5 + $0xb0] sm:$0xff] }
 0x1dc   : > { %4345 = vst.msk [vmem:[#allocation5 + $0x40] sm:$0xff] %vm385_vm2, %v4309_v42  ;;  %v3813_v5 = vadd.f32 %v3777_v47, %v3654_v46  ;;  %v4276_v45 = vld [vmem:[#allocation5 + $0x58] sm:$0xff]  ;;  %v11455_v50 = vpop.f32.mrb[122].mxu1 }
 0x1dd   : > { %3850 = vst.msk [vmem:[#allocation5 + $0x78] sm:$0xff] %vm385_vm2, %v3814_v44  ;;  %v4312_v24 = vadd.f32 %v11449_v27, %v4276_v45  ;;  %v4275_v51 = vld [vmem:[#allocation5 + $0x50] sm:$0xff]  ;;  %v4156_v54 = vpop.f32.mrb[123].mxu1  ;;  %v3788_v44 = vld [vmem:[#allocation5 + $0xc8] sm:$0xff] }
 0x1de   : > { %3849 = vst.msk [vmem:[#allocation5 + $0x70] sm:$0xff] %vm385_vm2, %v3813_v5  ;;  %v4311_v25 = vadd.f32 %v4275_v51, %v4136_v17  ;;  %v11402_v58 = vpop.f32.mrb[124].mxu0  ;;  %v3787_v5 = vld [vmem:[#allocation5 + $0xc0] sm:$0xff] }
 0x1df   : > { %4348 = vst.msk [vmem:[#allocation5 + $0x58] sm:$0xff] %vm385_vm2, %v4312_v24  ;;  %v3816_v2 = vadd.f32 %v11402_v58, %v3780_v9  ;;  %v3664_v3 = vpop.f32.mrb[125].mxu0  ;;  %v3790_v58 = vld [vmem:[#allocation5 + $0xd8] sm:$0xff] }
 0x1e0   : > { %4347 = vst.msk [vmem:[#allocation5 + $0x50] sm:$0xff] %vm385_vm2, %v4311_v25  ;;  %v3815_v52 = vadd.f32 %v3779_v28, %v3664_v3  ;;  %v4278_v6 = vld [vmem:[#allocation5 + $0x68] sm:$0xff]  ;;  %v11458_v7 = vpop.f32.mrb[124].mxu1 }
 0x1e1   : > { %3852 = vst.msk [vmem:[#allocation5 + $0x88] sm:$0xff] %vm385_vm2, %v3816_v2  ;;  %v4314_v29 = vadd.f32 %v11452_v40, %v4278_v6  ;;  %v4277_v53 = vld [vmem:[#allocation5 + $0x60] sm:$0xff]  ;;  %v4166_v11 = vpop.f32.mrb[125].mxu1  ;;  %v3789_v2 = vld [vmem:[#allocation5 + $0xd0] sm:$0xff] }
 0x1e2   : > { %3851 = vst.msk [vmem:[#allocation5 + $0x80] sm:$0xff] %vm385_vm2, %v3815_v52  ;;  %v4313_v12 = vadd.f32 %v4277_v53, %v4146_v8  ;;  %v11405_v15 = vpop.f32.mrb[126].mxu0 }
 0x1e3   : > { %4350 = vst.msk [vmem:[#allocation5 + $0x68] sm:$0xff] %vm385_vm2, %v4314_v29  ;;  %v3818_v16 = vadd.f32 %v11405_v15, %v3782_v13  ;;  %v3674_v56 = vpop.f32.mrb[127].mxu0 }
 0x1e4   : > { %4349 = vst.msk [vmem:[#allocation5 + $0x60] sm:$0xff] %vm385_vm2, %v4313_v12  ;;  %v3817_v19 = vadd.f32 %v3781_v32, %v3674_v56  ;;  %v4280_v57 = vld [vmem:[#allocation5 + $0x78] sm:$0xff]  ;;  %v11461_v20 = vpop.f32.mrb[126].mxu1  ;;  %v3792_v12 = vld [vmem:[#allocation5 + $0xe8] sm:$0xff] }
 0x1e5   : > { %3854 = vst.msk [vmem:[#allocation5 + $0x98] sm:$0xff] %vm385_vm2, %v3818_v16  ;;  %v4316_v14 = vadd.f32 %v11455_v50, %v4280_v57  ;;  %v4279_v33 = vld [vmem:[#allocation5 + $0x70] sm:$0xff]  ;;  %v4176_v22 = vpop.f32.mrb[127].mxu1  ;;  %v3791_v16 = vld [vmem:[#allocation5 + $0xe0] sm:$0xff] }
 0x1e6   : > { %3853 = vst.msk [vmem:[#allocation5 + $0x90] sm:$0xff] %vm385_vm2, %v3817_v19  ;;  %v4315_v61 = vadd.f32 %v4279_v33, %v4156_v54  ;;  %v11408_v23 = vpop.f32.mrb[128].mxu0 }
 0x1e7   : > { %4352 = vst.msk [vmem:[#allocation5 + $0x78] sm:$0xff] %vm385_vm2, %v4316_v14  ;;  %v3820_v26 = vadd.f32 %v11408_v23, %v3784_v62  ;;  %v3684_v27 = vpop.f32.mrb[129].mxu0 }
 0x1e8   : > { %4351 = vst.msk [vmem:[#allocation5 + $0x70] sm:$0xff] %vm385_vm2, %v4315_v61  ;;  %v3819_v36 = vadd.f32 %v3783_v63, %v3684_v27  ;;  %v4282_v17 = vld [vmem:[#allocation5 + $0x88] sm:$0xff]  ;;  %v11464_v30 = vpop.f32.mrb[128].mxu1  ;;  %v3794_v61 = vld [vmem:[#allocation5 + $0xf8] sm:$0xff] }
 0x1e9   : > { %3856 = vst.msk [vmem:[#allocation5 + $0xa8] sm:$0xff] %vm385_vm2, %v3820_v26  ;;  %v4318_v0 = vadd.f32 %v11458_v7, %v4282_v17  ;;  %v4281_v37 = vld [vmem:[#allocation5 + $0x80] sm:$0xff]  ;;  %v4186_v31 = vpop.f32.mrb[129].mxu1  ;;  %v3793_v26 = vld [vmem:[#allocation5 + $0xf0] sm:$0xff] }
 0x1ea   : > { %3855 = vst.msk [vmem:[#allocation5 + $0xa0] sm:$0xff] %vm385_vm2, %v3819_v36  ;;  %v4317_v18 = vadd.f32 %v4281_v37, %v4166_v11  ;;  %v11411_v34 = vpop.f32.mrb[130].mxu0 }
 0x1eb   : > { %4354 = vst.msk [vmem:[#allocation5 + $0x88] sm:$0xff] %vm385_vm2, %v4318_v0  ;;  %v3822_v1 = vadd.f32 %v11411_v34, %v3786_v60  ;;  %v3694_v40 = vpop.f32.mrb[131].mxu0 }
 0x1ec   : > { %4353 = vst.msk [vmem:[#allocation5 + $0x80] sm:$0xff] %vm385_vm2, %v4317_v18  ;;  %v3821_v38 = vadd.f32 %v3785_v35, %v3694_v40  ;;  %v4284_v8 = vld [vmem:[#allocation5 + $0x98] sm:$0xff]  ;;  %v11467_v41 = vpop.f32.mrb[130].mxu1  ;;  %v3796_v18 = vld [vmem:[#allocation5 + $0x108] sm:$0xff] }
 0x1ed   : > { %3858 = vst.msk [vmem:[#allocation5 + $0xb8] sm:$0xff] %vm385_vm2, %v3822_v1  ;;  %v4320_v39 = vadd.f32 %v11461_v20, %v4284_v8  ;;  %v4283_v42 = vld [vmem:[#allocation5 + $0x90] sm:$0xff]  ;;  %v4196_v4 = vpop.f32.mrb[131].mxu1  ;;  %v3795_v1 = vld [vmem:[#allocation5 + $0x100] sm:$0xff] }
 0x1ee   : > { %3857 = vst.msk [vmem:[#allocation5 + $0xb0] sm:$0xff] %vm385_vm2, %v3821_v38  ;;  %v4319_v21 = vadd.f32 %v4283_v42, %v4176_v22  ;;  %v11414_v43 = vpop.f32.mrb[132].mxu0 }
 0x1ef   : > { %4356 = vst.msk [vmem:[#allocation5 + $0x98] sm:$0xff] %vm385_vm2, %v4320_v39  ;;  %v3824_v46 = vadd.f32 %v11414_v43, %v3788_v44  ;;  %v3704_v47 = vpop.f32.mrb[133].mxu0 }
 0x1f0   : > { %4355 = vst.msk [vmem:[#allocation5 + $0x90] sm:$0xff] %vm385_vm2, %v4319_v21  ;;  %v3823_v45 = vadd.f32 %v3787_v5, %v3704_v47  ;;  %v4286_v50 = vld [vmem:[#allocation5 + $0xa8] sm:$0xff]  ;;  %v11470_v24 = vpop.f32.mrb[132].mxu1  ;;  %v3798_v21 = vld [vmem:[#allocation5 + $0x118] sm:$0x3f] }
 0x1f1   : > { %3860 = vst.msk [vmem:[#allocation5 + $0xc8] sm:$0xff] %vm385_vm2, %v3824_v46  ;;  %v4322_v51 = vadd.f32 %v11464_v30, %v4286_v50  ;;  %v4285_v54 = vld [vmem:[#allocation5 + $0xa0] sm:$0xff]  ;;  %v4206_v55 = vpop.f32.mrb[133].mxu1  ;;  %v3797_v46 = vld [vmem:[#allocation5 + $0x110] sm:$0xff] }
 0x1f2   : > { %3859 = vst.msk [vmem:[#allocation5 + $0xc0] sm:$0xff] %vm385_vm2, %v3823_v45  ;;  %v4321_v48 = vadd.f32 %v4285_v54, %v4186_v31  ;;  %v11417_v25 = vpop.f32.mrb[134].mxu0 }
 0x1f3   : > { %4358 = vst.msk [vmem:[#allocation5 + $0xa8] sm:$0xff] %vm385_vm2, %v4322_v51  ;;  %v3826_v9 = vadd.f32 %v11417_v25, %v3790_v58  ;;  %v3714_v59 = vpop.f32.mrb[135].mxu0 }
 0x1f4   : > { %4357 = vst.msk [vmem:[#allocation5 + $0xa0] sm:$0xff] %vm385_vm2, %v4321_v48  ;;  %v3825_v3 = vadd.f32 %v3789_v2, %v3714_v59  ;;  %v4288_v28 = vld [vmem:[#allocation5 + $0xb8] sm:$0xff]  ;;  %v11473_v52 = vpop.f32.mrb[134].mxu1  ;;  %v4768_v48 = vld [vmem:[#allocation5 + $0x8] sm:$0xff] }
 0x1f5   : > { %3862 = vst.msk [vmem:[#allocation5 + $0xd8] sm:$0xff] %vm385_vm2, %v3826_v9  ;;  %v4324_v6 = vadd.f32 %v11467_v41, %v4288_v28  ;;  %v4287_v7 = vld [vmem:[#allocation5 + $0xb0] sm:$0xff]  ;;  %v4216_v29 = vpop.f32.mrb[135].mxu1  ;;  %v4767_v9 = vld [vmem:[#allocation5] sm:$0xff] }
 0x1f6   : > { %3861 = vst.msk [vmem:[#allocation5 + $0xd0] sm:$0xff] %vm385_vm2, %v3825_v3  ;;  %v4323_v53 = vadd.f32 %v4287_v7, %v4196_v4  ;;  %v11420_v11 = vpop.f32.mrb[136].mxu0  ;;  %v4770_v7 = vld [vmem:[#allocation5 + $0x18] sm:$0xff] }
 0x1f7   : > { %4360 = vst.msk [vmem:[#allocation5 + $0xb8] sm:$0xff] %vm385_vm2, %v4324_v6  ;;  %v3828_v15 = vadd.f32 %v11420_v11, %v3792_v12  ;;  %v3724_v13 = vpop.f32.mrb[137].mxu0  ;;  %v4769_v11 = vld [vmem:[#allocation5 + $0x10] sm:$0xff] }
 0x1f8   : > { %4359 = vst.msk [vmem:[#allocation5 + $0xb0] sm:$0xff] %vm385_vm2, %v4323_v53  ;;  %v3827_v56 = vadd.f32 %v3791_v16, %v3724_v13  ;;  %v4290_v32 = vld [vmem:[#allocation5 + $0xc8] sm:$0xff]  ;;  %v11476_v19 = vpop.f32.mrb[136].mxu1 }
 0x1f9   : > { %3864 = vst.msk [vmem:[#allocation5 + $0xe8] sm:$0xff] %vm385_vm2, %v3828_v15  ;;  %v4326_v57 = vadd.f32 %v11470_v24, %v4290_v32  ;;  %v4289_v20 = vld [vmem:[#allocation5 + $0xc0] sm:$0xff]  ;;  %v4226_v14 = vpop.f32.mrb[137].mxu1 }
 0x1fa   : > { %3863 = vst.msk [vmem:[#allocation5 + $0xe0] sm:$0xff] %vm385_vm2, %v3827_v56  ;;  %v4325_v33 = vadd.f32 %v4289_v20, %v4206_v55  ;;  %v11423_v22 = vpop.f32.mrb[138].mxu0 }
 0x1fb   : > { %4362 = vst.msk [vmem:[#allocation5 + $0xc8] sm:$0xff] %vm385_vm2, %v4326_v57  ;;  %v3830_v23 = vadd.f32 %v11423_v22, %v3794_v61  ;;  %v3734_v62 = vpop.f32.mrb[139].mxu0  ;;  %v13861_v57 = vld [vmem:[%s15364_s2] ss:$0 sm:$0xff] }
 0x1fc   : > { %4361 = vst.msk [vmem:[#allocation5 + $0xc0] sm:$0xff] %vm385_vm2, %v4325_v33  ;;  %v3829_v27 = vadd.f32 %v3793_v26, %v3734_v62  ;;  %v4292_v63 = vld [vmem:[#allocation5 + $0xd8] sm:$0xff]  ;;  %v11479_v36 = vpop.f32.mrb[138].mxu1  ;;  %v4771_v33 = vld [vmem:[#allocation5 + $0x20] sm:$0xff] }
 0x1fd   : > { %3866 = vst.msk [vmem:[#allocation5 + $0xf8] sm:$0xff] %vm385_vm2, %v3830_v23  ;;  %v4328_v17 = vadd.f32 %v11473_v52, %v4292_v63  ;;  %v4291_v30 = vld [vmem:[#allocation5 + $0xd0] sm:$0xff]  ;;  %v4236_v0 = vpop.f32.mrb[139].mxu1 }
 0x1fe   : > { %3865 = vst.msk [vmem:[#allocation5 + $0xf0] sm:$0xff] %vm385_vm2, %v3829_v27  ;;  %v4327_v37 = vadd.f32 %v4291_v30, %v4216_v29  ;;  %v11426_v31 = vpop.f32.mrb[140].mxu0  ;;  %v4774_v27 = vld [vmem:[#allocation5 + $0x38] sm:$0xff]  ;;  %v4773_v30 = vld [vmem:[#allocation5 + $0x30] sm:$0xff] }
 0x1ff   : > { %4364 = vst.msk [vmem:[#allocation5 + $0xd8] sm:$0xff] %vm385_vm2, %v4328_v17  ;;  %v3832_v34 = vadd.f32 %v11426_v31, %v3796_v18  ;;  %v3744_v60 = vpop.f32.mrb[141].mxu0 }
 0x200   : > { %4363 = vst.msk [vmem:[#allocation5 + $0xd0] sm:$0xff] %vm385_vm2, %v4327_v37  ;;  %v3831_v40 = vadd.f32 %v3795_v1, %v3744_v60  ;;  %v4294_v35 = vld [vmem:[#allocation5 + $0xe8] sm:$0xff]  ;;  %v11482_v38 = vpop.f32.mrb[140].mxu1 }
 0x201   : > { %3868 = vst.msk [vmem:[#allocation5 + $0x108] sm:$0xff] %vm385_vm2, %v3832_v34  ;;  %v4330_v8 = vadd.f32 %v11476_v19, %v4294_v35  ;;  %v4293_v41 = vld [vmem:[#allocation5 + $0xe0] sm:$0xff]  ;;  %v4246_v39 = vpop.f32.mrb[141].mxu1  ;;  %v4772_v19 = vld [vmem:[#allocation5 + $0x28] sm:$0xff] }
 0x202   : > { %3867 = vst.msk [vmem:[#allocation5 + $0x100] sm:$0xff] %vm385_vm2, %v3831_v40  ;;  %v4329_v42 = vadd.f32 %v4293_v41, %v4226_v14  ;;  %v11429_v4 = vpop.f32.mrb[142].mxu0  ;;  %v4776_v60 = vld [vmem:[#allocation5 + $0x48] sm:$0xff] }
 0x203   : > { %4366 = vst.msk [vmem:[#allocation5 + $0xe8] sm:$0xff] %vm385_vm2, %v4330_v8  ;;  %v3834_v43 = vadd.f32 %v11429_v4, %v3798_v21  ;;  %v3754_v44 = vpop.f32.mrb[143].mxu0  ;;  %v4778_v21 = vld [vmem:[#allocation5 + $0x58] sm:$0xff] }
 0x204   : > { %4365 = vst.msk [vmem:[#allocation5 + $0xe0] sm:$0xff] %vm385_vm2, %v4329_v42  ;;  %v3833_v47 = vadd.f32 %v3797_v46, %v3754_v44  ;;  %v4296_v5 = vld [vmem:[#allocation5 + $0xf8] sm:$0xff]  ;;  %v11485_v45 = vpop.f32.mrb[142].mxu1 }
 0x205   : > { %3870 = vst.msk [vmem:[#allocation5 + $0x118] sm:$0x3f] %vm857_vm3, %v3834_v43  ;;  %v4332_v50 = vadd.f32 %v11479_v36, %v4296_v5  ;;  %v4295_v24 = vld [vmem:[#allocation5 + $0xf0] sm:$0xff]  ;;  %v4256_v51 = vpop.f32.mrb[143].mxu1 }
 0x206   : > { %3869 = vst.msk [vmem:[#allocation5 + $0x110] sm:$0xff] %vm385_vm2, %v3833_v47  ;;  %v4331_v54 = vadd.f32 %v4295_v24, %v4236_v0  ;;  %v11490_v55 = vpop.f32.mrb[144].mxu0  ;;  %v4777_v5 = vld [vmem:[#allocation5 + $0x50] sm:$0xff] }
 0x207   : > { %4368 = vst.msk [vmem:[#allocation5 + $0xf8] sm:$0xff] %vm385_vm2, %v4332_v50  ;;  %v4804_v25 = vadd.f32 %v11490_v55, %v4768_v48  ;;  %v4588_v58 = vpop.f32.mrb[145].mxu0 }
 0x208   : > { %4367 = vst.msk [vmem:[#allocation5 + $0xf0] sm:$0xff] %vm385_vm2, %v4331_v54  ;;  %v4803_v59 = vadd.f32 %v4767_v9, %v4588_v58  ;;  %v4298_v2 = vld [vmem:[#allocation5 + $0x108] sm:$0xff] }
 0x209   : > { %4840 = vst.msk [vmem:[#allocation5 + $0x8] sm:$0xff] %vm385_vm2, %v4804_v25  ;;  %v4334_v3 = vadd.f32 %v11482_v38, %v4298_v2  ;;  %v4297_v28 = vld [vmem:[#allocation5 + $0x100] sm:$0xff]  ;;  %v4780_v25 = vld [vmem:[#allocation5 + $0x68] sm:$0xff] }
 0x20a   : > { %4839 = vst.msk [vmem:[#allocation5] sm:$0xff] %vm385_vm2, %v4803_v59  ;;  %v4333_v52 = vadd.f32 %v4297_v28, %v4246_v39  ;;  %v11493_v6 = vpop.f32.mrb[146].mxu0  ;;  %v4775_v38 = vld [vmem:[#allocation5 + $0x40] sm:$0xff] }
 0x20b   : > { %4370 = vst.msk [vmem:[#allocation5 + $0x108] sm:$0xff] %vm385_vm2, %v4334_v3  ;;  %v4806_v29 = vadd.f32 %v11493_v6, %v4770_v7  ;;  %v4598_v53 = vpop.f32.mrb[147].mxu0  ;;  %v4779_v28 = vld [vmem:[#allocation5 + $0x60] sm:$0xff] }
 0x20c   : > { %4369 = vst.msk [vmem:[#allocation5 + $0x100] sm:$0xff] %vm385_vm2, %v4333_v52  ;;  %v4805_v12 = vadd.f32 %v4769_v11, %v4598_v53  ;;  %v4300_v15 = vld [vmem:[#allocation5 + $0x118] sm:$0x3f] }
 0x20d   : > { %4842 = vst.msk [vmem:[#allocation5 + $0x18] sm:$0xff] %vm385_vm2, %v4806_v29  ;;  %v4336_v13 = vadd.f32 %v11485_v45, %v4300_v15  ;;  %v4299_v16 = vld [vmem:[#allocation5 + $0x110] sm:$0xff]  ;;  %v4782_v15 = vld [vmem:[#allocation5 + $0x78] sm:$0xff] }
 0x20e   : > { %4841 = vst.msk [vmem:[#allocation5 + $0x10] sm:$0xff] %vm385_vm2, %v4805_v12  ;;  %v4335_v56 = vadd.f32 %v4299_v16, %v4256_v51  ;;  %v11496_v32 = vpop.f32.mrb[148].mxu0 }
 0x20f   : > { %4372 = vst.msk [vmem:[#allocation5 + $0x118] sm:$0x3f] %vm857_vm3, %v4336_v13  ;;  %v4808_v20 = vadd.f32 %v11496_v32, %v4772_v19  ;;  %v4608_v14 = vpop.f32.mrb[149].mxu0  ;;  %v4781_v32 = vld [vmem:[#allocation5 + $0x70] sm:$0xff] }
 0x210   : > { %v4876_v22 = vld [vmem:[#allocation5 + $0x8] sm:$0xff]  ;;  %4371 = vst.msk [vmem:[#allocation5 + $0x110] sm:$0xff] %vm385_vm2, %v4335_v56  ;;  %v4807_v61 = vadd.f32 %v4771_v33, %v4608_v14 }
 0x211   : > { %v4875_v23 = vld [vmem:[#allocation5] sm:$0xff]  ;;  %4844 = vst.msk [vmem:[#allocation5 + $0x28] sm:$0xff] %vm385_vm2, %v4808_v20  ;;  %v4884_v62 = vadd.f32 %v13861_v57, %v4876_v22 }
 0x212   : > { %4843 = vst.msk [vmem:[#allocation5 + $0x20] sm:$0xff] %vm385_vm2, %v4807_v61  ;;  %v11499_v26 = vpop.f32.mrb[150].mxu0  ;;  %v4883_v63 = vadd.f32 %v13861_v57, %v4875_v23 }
 0x213   : > { %v4810_v36 = vadd.f32 %v11499_v26, %v4774_v27  ;;  %v4618_v17 = vpop.f32.mrb[151].mxu0  ;;  %v4886_v0 = vmax.f32 %v4884_v62, 0.0  ;;  %v4784_v62 = vld [vmem:[#allocation5 + $0x88] sm:$0xff] }
 0x214   : > { %v4809_v37 = vadd.f32 %v4773_v30, %v4618_v17  ;;  %v4885_v31 = vmax.f32 %v4883_v63, 0.0 }
 0x215   : > { %v4889_v18 = vld [vmem:[#allocation5 + $0x12] sm:$0xff]  ;;  %4846 = vst.msk [vmem:[#allocation5 + $0x38] sm:$0xff] %vm385_vm2, %v4810_v36  ;;  %4888 = vst.msk [vmem:[#allocation2 + $0x1b] sm:$0xff] %vm385_vm2, %v4886_v0  ;;  %v4783_v36 = vld [vmem:[#allocation5 + $0x80] sm:$0xff] }
 0x216   : > { %4845 = vst.msk [vmem:[#allocation5 + $0x30] sm:$0xff] %vm385_vm2, %v4809_v37  ;;  %v11502_v34 = vpop.f32.mrb[152].mxu0  ;;  %4887 = vst.msk [vmem:[#allocation2 + $0x13] sm:$0xff] %vm385_vm2, %v4885_v31  ;;  %v4891_v1 = vadd.f32 %v13861_v57, %v4889_v18 }
 0x217   : > { %v4812_v40 = vadd.f32 %v11502_v34, %v4776_v60  ;;  %v4628_v35 = vpop.f32.mrb[153].mxu0  ;;  %v4786_v60 = vld [vmem:[#allocation5 + $0x98] sm:$0xff] }
 0x218   : > { %v4811_v8 = vadd.f32 %v4775_v38, %v4628_v35  ;;  %v4893_v41 = vmax.f32 %v4891_v1, 0.0 }
 0x219   : > { %v4890_v39 = vld [vmem:[#allocation5 + $0x1a] sm:$0xff]  ;;  %v4897_v42 = vld [vmem:[#allocation5 + $0x24] sm:$0xff]  ;;  %4848 = vst.msk [vmem:[#allocation5 + $0x48] sm:$0xff] %vm385_vm2, %v4812_v40 }
 0x21a   : > { %4847 = vst.msk [vmem:[#allocation5 + $0x40] sm:$0xff] %vm385_vm2, %v4811_v8  ;;  %v11505_v4 = vpop.f32.mrb[154].mxu0  ;;  %v4892_v43 = vadd.f32 %v13861_v57, %v4890_v39  ;;  %4895 = vst.msk [vmem:[#allocation2 + $0x25] sm:$0xff] %vm385_vm2, %v4893_v41  ;;  %v4899_v44 = vadd.f32 %v13861_v57, %v4897_v42  ;;  %v4785_v8 = vld [vmem:[#allocation5 + $0x90] sm:$0xff] }
 0x21b   : > { %v4814_v46 = vadd.f32 %v11505_v4, %v4778_v21  ;;  %v4638_v47 = vpop.f32.mrb[155].mxu0 }
 0x21c   : > { %v4813_v45 = vadd.f32 %v4777_v5, %v4638_v47  ;;  %v4894_v50 = vmax.f32 %v4892_v43, 0.0  ;;  %v4901_v24 = vmax.f32 %v4899_v44, 0.0  ;;  %v4788_v47 = vld [vmem:[#allocation5 + $0xa8] sm:$0xff] }
 0x21d   : > { %v4898_v51 = vld [vmem:[#allocation5 + $0x2c] sm:$0xff]  ;;  %v4905_v54 = vld [vmem:[#allocation5 + $0x36] sm:$0xff]  ;;  %4850 = vst.msk [vmem:[#allocation5 + $0x58] sm:$0xff] %vm385_vm2, %v4814_v46 }
 0x21e   : > { %v5012_v55 = vld [vmem:[#allocation2 + $0x10] ss:$2 sm:$0xff]  ;;  %4849 = vst.msk [vmem:[#allocation5 + $0x50] sm:$0xff] %vm385_vm2, %v4813_v45  ;;  %v11508_v48 = vpop.f32.mrb[156].mxu0  ;;  %4896 = vst.msk [vmem:[#allocation2 + $0x2d] sm:$0xff] %vm385_vm2, %v4894_v50  ;;  %v4900_v9 = vadd.f32 %v13861_v57, %v4898_v51  ;;  %v4907_v59 = vadd.f32 %v13861_v57, %v4905_v54 }
 0x21f   : > { %11554 = vmatmul.mubr.msk.f32.gmra.mrb[146].mxu1 %vm385_vm2, %v5012_v55  ;;  %v5559_v58 = vld [vmem:[#allocation2 + $0x12] ss:$2 sm:$0xff]  ;;  %4903 = vst.msk [vmem:[#allocation2 + $0x37] sm:$0xff] %vm385_vm2, %v4901_v24  ;;  %v4816_v2 = vadd.f32 %v11508_v48, %v4780_v25  ;;  %v4648_v3 = vpop.f32.mrb[157].mxu0 }
 0x220   : > { %11672 = vmatmul.mubr.msk.f32.gmra.mrb[182].mxu0 %vm385_vm2, %v5559_v58  ;;  %11556 = vmatprep.mubr.msk.f32.mxu1 %vm12580_vm5, %v12579_v10  ;;  %v4913_v52 = vld [vmem:[#allocation5 + $0x48] sm:$0xff]  ;;  %v4815_v6 = vadd.f32 %v4779_v28, %v4648_v3  ;;  %v4902_v7 = vmax.f32 %v4900_v9, 0.0  ;;  %v4909_v29 = vmax.f32 %v4907_v59, 0.0  ;;  %v4787_v51 = vld [vmem:[#allocation5 + $0xa0] sm:$0xff]  ;;  %v4790_v3 = vld [vmem:[#allocation5 + $0xb8] sm:$0xff] }
 0x221   : > { %11674 = vmatprep.mubr.msk.f32.mxu0 %vm12580_vm5, %v12579_v10  ;;  %v4906_v53 = vld [vmem:[#allocation5 + $0x3e] sm:$0xff]  ;;  %4852 = vst.msk [vmem:[#allocation5 + $0x68] sm:$0xff] %vm385_vm2, %v4816_v2  ;;  %v4915_v11 = vadd.f32 %v13861_v57, %v4913_v52 }
 0x222   : > { %4851 = vst.msk [vmem:[#allocation5 + $0x60] sm:$0xff] %vm385_vm2, %v4815_v6  ;;  %v11511_v12 = vpop.f32.mrb[158].mxu0  ;;  %4904 = vst.msk [vmem:[#allocation2 + $0x3f] sm:$0xff] %vm385_vm2, %v4902_v7  ;;  %v4908_v13 = vadd.f32 %v13861_v57, %v4906_v53 }
 0x223   : > { %4911 = vst.msk [vmem:[#allocation2 + $0x49] sm:$0xff] %vm385_vm2, %v4909_v29  ;;  %v4818_v16 = vadd.f32 %v11511_v12, %v4782_v15  ;;  %v4658_v56 = vpop.f32.mrb[159].mxu0  ;;  %v4917_v19 = vmax.f32 %v4915_v11, 0.0  ;;  %v4789_v29 = vld [vmem:[#allocation5 + $0xb0] sm:$0xff] }
 0x224   : > { %v4817_v20 = vadd.f32 %v4781_v32, %v4658_v56  ;;  %v4910_v14 = vmax.f32 %v4908_v13, 0.0 }
 0x225   : > { %v4914_v33 = vld [vmem:[#allocation5 + $0x50] sm:$0xff]  ;;  %4854 = vst.msk [vmem:[#allocation5 + $0x78] sm:$0xff] %vm385_vm2, %v4818_v16  ;;  %4919 = vst.msk [vmem:[#allocation2 + $0x5b] sm:$0xff] %vm385_vm2, %v4917_v19 }
 0x226   : > { %v5014_v22 = vld [vmem:[#allocation2 + $0x20] ss:$2 sm:$0xff]  ;;  %4853 = vst.msk [vmem:[#allocation5 + $0x70] sm:$0xff] %vm385_vm2, %v4817_v20  ;;  %v11514_v23 = vpop.f32.mrb[160].mxu0  ;;  %4912 = vst.msk [vmem:[#allocation2 + $0x51] sm:$0xff] %vm385_vm2, %v4910_v14  ;;  %v4916_v26 = vadd.f32 %v13861_v57, %v4914_v33 }
 0x227   : > { %v5561_v61 = vld [vmem:[#allocation2 + $0x22] ss:$2 sm:$0xff]  ;;  %11557 = vmatmul.mubr.msk.f32.gmra.mrb[148].mxu1 %vm385_vm2, %v5014_v22  ;;  %v4820_v27 = vadd.f32 %v11514_v23, %v4784_v62  ;;  %v4668_v63 = vpop.f32.mrb[161].mxu0 }
 0x228   : > { %11675 = vmatmul.mubr.msk.f32.gmra.mrb[184].mxu0 %vm385_vm2, %v5561_v61  ;;  %11559 = vmatprep.mubr.msk.f32.mxu1 %vm12580_vm5, %v12579_v10  ;;  %v4819_v17 = vadd.f32 %v4783_v36, %v4668_v63  ;;  %v5016_v30 = vld [vmem:[#allocation2 + $0x30] ss:$2 sm:$0xff]  ;;  %v4918_v0 = vmax.f32 %v4916_v26, 0.0  ;;  %v4792_v20 = vld [vmem:[#allocation5 + $0xc8] sm:$0xff] }
 0x229   : > { %11677 = vmatprep.mubr.msk.f32.mxu0 %vm12580_vm5, %v12579_v10  ;;  %v4921_v37 = vld [vmem:[#allocation5 + $0x5a] sm:$0xff]  ;;  %v4922_v31 = vld [vmem:[#allocation5 + $0x62] sm:$0xff]  ;;  %4856 = vst.msk [vmem:[#allocation5 + $0x88] sm:$0xff] %vm385_vm2, %v4820_v27 }
 0x22a   : > { %v5563_v18 = vld [vmem:[#allocation2 + $0x32] ss:$2 sm:$0xff]  ;;  %4855 = vst.msk [vmem:[#allocation5 + $0x80] sm:$0xff] %vm385_vm2, %v4819_v17  ;;  %v11517_v34 = vpop.f32.mrb[162].mxu0  ;;  %4920 = vst.msk [vmem:[#allocation2 + $0x63] sm:$0xff] %vm385_vm2, %v4918_v0  ;;  %v4923_v1 = vadd.f32 %v13861_v57, %v4921_v37  ;;  %v4924_v40 = vadd.f32 %v13861_v57, %v4922_v31 }
 0x22b   : > { %11560 = vmatmul.mubr.msk.f32.gmra.mrb[150].mxu1 %vm385_vm2, %v5016_v30  ;;  %v4822_v35 = vadd.f32 %v11517_v34, %v4786_v60  ;;  %v4678_v38 = vpop.f32.mrb[163].mxu0  ;;  %v5018_v39 = vld [vmem:[#allocation2 + $0x40] ss:$2 sm:$0xff]  ;;  %v4791_v61 = vld [vmem:[#allocation5 + $0xc0] sm:$0xff]  ;;  %v4794_v30 = vld [vmem:[#allocation5 + $0xd8] sm:$0xff] }
 0x22c   : > { %11678 = vmatmul.mubr.msk.f32.gmra.mrb[186].mxu0 %vm385_vm2, %v5563_v18  ;;  %11562 = vmatprep.mubr.msk.f32.mxu1 %vm12580_vm5, %v12579_v10  ;;  %v4821_v41 = vadd.f32 %v4785_v8, %v4678_v38  ;;  %v4925_v42 = vmax.f32 %v4923_v1, 0.0  ;;  %v4926_v4 = vmax.f32 %v4924_v40, 0.0  ;;  %v5565_v44 = vld [vmem:[#allocation2 + $0x42] ss:$2 sm:$0xff] }
 0x22d   : > { %11680 = vmatprep.mubr.msk.f32.mxu0 %vm12580_vm5, %v12579_v10  ;;  %v4929_v21 = vld [vmem:[#allocation5 + $0x6c] sm:$0xff]  ;;  %v4930_v43 = vld [vmem:[#allocation5 + $0x74] sm:$0xff]  ;;  %4858 = vst.msk [vmem:[#allocation5 + $0x98] sm:$0xff] %vm385_vm2, %v4822_v35 }
 0x22e   : > { %4857 = vst.msk [vmem:[#allocation5 + $0x90] sm:$0xff] %vm385_vm2, %v4821_v41  ;;  %v11520_v46 = vpop.f32.mrb[164].mxu0  ;;  %4927 = vst.msk [vmem:[#allocation2 + $0x6d] sm:$0xff] %vm385_vm2, %v4925_v42  ;;  %v4931_v5 = vadd.f32 %v13861_v57, %v4929_v21  ;;  %v4932_v45 = vadd.f32 %v13861_v57, %v4930_v43  ;;  %v5020_v55 = vld [vmem:[#allocation2 + $0x50] ss:$2 sm:$0xff]  ;;  %v4793_v18 = vld [vmem:[#allocation5 + $0xd0] sm:$0xff] }
 0x22f   : > { %11563 = vmatmul.mubr.msk.f32.gmra.mrb[152].mxu1 %vm385_vm2, %v5018_v39  ;;  %4928 = vst.msk [vmem:[#allocation2 + $0x75] sm:$0xff] %vm385_vm2, %v4926_v4  ;;  %v4824_v50 = vadd.f32 %v11520_v46, %v4788_v47  ;;  %v4688_v24 = vpop.f32.mrb[165].mxu0  ;;  %v5567_v59 = vld [vmem:[#allocation2 + $0x52] ss:$2 sm:$0xff] }
 0x230   : > { %11681 = vmatmul.mubr.msk.f32.gmra.mrb[188].mxu0 %vm385_vm2, %v5565_v44  ;;  %11565 = vmatprep.mubr.msk.f32.mxu1 %vm12580_vm5, %v12579_v10  ;;  %v4823_v54 = vadd.f32 %v4787_v51, %v4688_v24  ;;  %v4933_v48 = vmax.f32 %v4931_v5, 0.0  ;;  %v4934_v25 = vmax.f32 %v4932_v45, 0.0  ;;  %v4796_v41 = vld [vmem:[#allocation5 + $0xe8] sm:$0xff]  ;;  %v4795_v43 = vld [vmem:[#allocation5 + $0xe0] sm:$0xff] }
 0x231   : > { %11683 = vmatprep.mubr.msk.f32.mxu0 %vm12580_vm5, %v12579_v10  ;;  %v4937_v58 = vld [vmem:[#allocation5 + $0x7e] sm:$0xff]  ;;  %v4938_v9 = vld [vmem:[#allocation5 + $0x86] sm:$0xff]  ;;  %4860 = vst.msk [vmem:[#allocation5 + $0xa8] sm:$0xff] %vm385_vm2, %v4824_v50 }
 0x232   : > { %4859 = vst.msk [vmem:[#allocation5 + $0xa0] sm:$0xff] %vm385_vm2, %v4823_v54  ;;  %v11523_v2 = vpop.f32.mrb[166].mxu0  ;;  %4935 = vst.msk [vmem:[#allocation2 + $0x7f] sm:$0xff] %vm385_vm2, %v4933_v48  ;;  %v4939_v28 = vadd.f32 %v13861_v57, %v4937_v58  ;;  %v4940_v52 = vadd.f32 %v13861_v57, %v4938_v9  ;;  %v4798_v54 = vld [vmem:[#allocation5 + $0xf8] sm:$0xff]  ;;  %v4797_v9 = vld [vmem:[#allocation5 + $0xf0] sm:$0xff] }
 0x233   : > { %11566 = vmatmul.mubr.msk.f32.gmra.mrb[154].mxu1 %vm385_vm2, %v5020_v55  ;;  %4936 = vst.msk [vmem:[#allocation2 + $0x87] sm:$0xff] %vm385_vm2, %v4934_v25  ;;  %v4826_v6 = vadd.f32 %v11523_v2, %v4790_v3  ;;  %v4698_v7 = vpop.f32.mrb[167].mxu0 }
 0x234   : > { %11684 = vmatmul.mubr.msk.f32.gmra.mrb[190].mxu0 %vm385_vm2, %v5567_v59  ;;  %11568 = vmatprep.mubr.msk.f32.mxu1 %vm12580_vm5, %v12579_v10  ;;  %v4946_v53 = vld [vmem:[#allocation5 + $0x98] sm:$0xff]  ;;  %v4825_v11 = vadd.f32 %v4789_v29, %v4698_v7  ;;  %v4941_v12 = vmax.f32 %v4939_v28, 0.0  ;;  %v4942_v15 = vmax.f32 %v4940_v52, 0.0 }
 0x235   : > { %11686 = vmatprep.mubr.msk.f32.mxu0 %vm12580_vm5, %v12579_v10  ;;  %v4945_v13 = vld [vmem:[#allocation5 + $0x90] sm:$0xff]  ;;  %4862 = vst.msk [vmem:[#allocation5 + $0xb8] sm:$0xff] %vm385_vm2, %v4826_v6  ;;  %v4948_v32 = vadd.f32 %v13861_v57, %v4946_v53 }
 0x236   : > { %v5022_v16 = vld [vmem:[#allocation2 + $0x60] ss:$2 sm:$0xff]  ;;  %4861 = vst.msk [vmem:[#allocation5 + $0xb0] sm:$0xff] %vm385_vm2, %v4825_v11  ;;  %v11526_v19 = vpop.f32.mrb[168].mxu0  ;;  %4943 = vst.msk [vmem:[#allocation2 + $0x91] sm:$0xff] %vm385_vm2, %v4941_v12  ;;  %v4947_v14 = vadd.f32 %v13861_v57, %v4945_v13 }
 0x237   : > { %v5569_v56 = vld [vmem:[#allocation2 + $0x62] ss:$2 sm:$0xff]  ;;  %11569 = vmatmul.mubr.msk.f32.gmra.mrb[156].mxu1 %vm385_vm2, %v5022_v16  ;;  %4944 = vst.msk [vmem:[#allocation2 + $0x99] sm:$0xff] %vm385_vm2, %v4942_v15  ;;  %v4828_v33 = vadd.f32 %v11526_v19, %v4792_v20  ;;  %v4708_v22 = vpop.f32.mrb[169].mxu0  ;;  %v4950_v23 = vmax.f32 %v4948_v32, 0.0  ;;  %v4799_v16 = vld [vmem:[#allocation5 + $0x100] sm:$0xff] }
 0x238   : > { %11687 = vmatmul.mubr.msk.f32.gmra.mrb[192].mxu0 %vm385_vm2, %v5569_v56  ;;  %11571 = vmatprep.mubr.msk.f32.mxu1 %vm12580_vm5, %v12579_v10  ;;  %v4827_v62 = vadd.f32 %v4791_v61, %v4708_v22  ;;  %v4949_v26 = vmax.f32 %v4947_v14, 0.0  ;;  %v5024_v63 = vld [vmem:[#allocation2 + $0x70] ss:$2 sm:$0xff]  ;;  %v4800_v11 = vld [vmem:[#allocation5 + $0x108] sm:$0xff] }
 0x239   : > { %11689 = vmatprep.mubr.msk.f32.mxu0 %vm12580_vm5, %v12579_v10  ;;  %v4953_v27 = vld [vmem:[#allocation5 + $0xa2] sm:$0xff]  ;;  %4864 = vst.msk [vmem:[#allocation5 + $0xc8] sm:$0xff] %vm385_vm2, %v4828_v33  ;;  %4952 = vst.msk [vmem:[#allocation2 + $0xab] sm:$0xff] %vm385_vm2, %v4950_v23  ;;  %v4802_v61 = vld [vmem:[#allocation5 + $0x118] sm:$0x3f] }
 0x23a   : > { %v5571_v36 = vld [vmem:[#allocation2 + $0x72] ss:$2 sm:$0xff]  ;;  %4863 = vst.msk [vmem:[#allocation5 + $0xc0] sm:$0xff] %vm385_vm2, %v4827_v62  ;;  %v11529_v17 = vpop.f32.mrb[170].mxu0  ;;  %4951 = vst.msk [vmem:[#allocation2 + $0xa3] sm:$0xff] %vm385_vm2, %v4949_v26  ;;  %v4955_v0 = vadd.f32 %v13861_v57, %v4953_v27  ;;  %v4801_v27 = vld [vmem:[#allocation5 + $0x110] sm:$0xff] }
 0x23b   : > { %11572 = vmatmul.mubr.msk.f32.gmra.mrb[158].mxu1 %vm385_vm2, %v5024_v63  ;;  %v4830_v37 = vadd.f32 %v11529_v17, %v4794_v30  ;;  %v4718_v31 = vpop.f32.mrb[171].mxu0  ;;  %v5026_v60 = vld [vmem:[#allocation2 + $0x80] ss:$2 sm:$0xff] }
 0x23c   : > { %11690 = vmatmul.mubr.msk.f32.gmra.mrb[194].mxu0 %vm385_vm2, %v5571_v36  ;;  %11574 = vmatprep.mubr.msk.f32.mxu1 %vm12580_vm5, %v12579_v10  ;;  %v4829_v34 = vadd.f32 %v4793_v18, %v4718_v31  ;;  %v4957_v1 = vmax.f32 %v4955_v0, 0.0  ;;  %v5573_v38 = vld [vmem:[#allocation2 + $0x82] ss:$2 sm:$0xff] }
 0x23d   : > { %11692 = vmatprep.mubr.msk.f32.mxu0 %vm12580_vm5, %v12579_v10  ;;  %v4954_v40 = vld [vmem:[#allocation5 + $0xaa] sm:$0xff]  ;;  %v4961_v35 = vld [vmem:[#allocation5 + $0xb4] sm:$0xff]  ;;  %4866 = vst.msk [vmem:[#allocation5 + $0xd8] sm:$0xff] %vm385_vm2, %v4830_v37 }
 0x23e   : > { %4865 = vst.msk [vmem:[#allocation5 + $0xd0] sm:$0xff] %vm385_vm2, %v4829_v34  ;;  %v11532_v8 = vpop.f32.mrb[172].mxu0  ;;  %v4956_v39 = vadd.f32 %v13861_v57, %v4954_v40  ;;  %4959 = vst.msk [vmem:[#allocation2 + $0xb5] sm:$0xff] %vm385_vm2, %v4957_v1  ;;  %v4963_v42 = vadd.f32 %v13861_v57, %v4961_v35  ;;  %v5028_v46 = vld [vmem:[#allocation2 + $0x90] ss:$2 sm:$0xff] }
 0x23f   : > { %11575 = vmatmul.mubr.msk.f32.gmra.mrb[160].mxu1 %vm385_vm2, %v5026_v60  ;;  %v4832_v4 = vadd.f32 %v11532_v8, %v4796_v41  ;;  %v4728_v21 = vpop.f32.mrb[173].mxu0  ;;  %v5575_v24 = vld [vmem:[#allocation2 + $0x92] ss:$2 sm:$0xff] }
 0x240   : > { %11693 = vmatmul.mubr.msk.f32.gmra.mrb[196].mxu0 %vm385_vm2, %v5573_v38  ;;  %11577 = vmatprep.mubr.msk.f32.mxu1 %vm12580_vm5, %v12579_v10  ;;  %v4831_v44 = vadd.f32 %v4795_v43, %v4728_v21  ;;  %v4958_v47 = vmax.f32 %v4956_v39, 0.0  ;;  %v4965_v5 = vmax.f32 %v4963_v42, 0.0 }
 0x241   : > { %11695 = vmatprep.mubr.msk.f32.mxu0 %vm12580_vm5, %v12579_v10  ;;  %v4962_v45 = vld [vmem:[#allocation5 + $0xbc] sm:$0xff]  ;;  %v4969_v50 = vld [vmem:[#allocation5 + $0xc6] sm:$0xff]  ;;  %4868 = vst.msk [vmem:[#allocation5 + $0xe8] sm:$0xff] %vm385_vm2, %v4832_v4 }
 0x242   : > { %4867 = vst.msk [vmem:[#allocation5 + $0xe0] sm:$0xff] %vm385_vm2, %v4831_v44  ;;  %v11535_v51 = vpop.f32.mrb[174].mxu0  ;;  %4960 = vst.msk [vmem:[#allocation2 + $0xbd] sm:$0xff] %vm385_vm2, %v4958_v47  ;;  %v4964_v55 = vadd.f32 %v13861_v57, %v4962_v45  ;;  %v4971_v48 = vadd.f32 %v13861_v57, %v4969_v50  ;;  %v5030_v6 = vld [vmem:[#allocation2 + $0xa0] ss:$2 sm:$0xff] }
 0x243   : > { %11578 = vmatmul.mubr.msk.f32.gmra.mrb[162].mxu1 %vm385_vm2, %v5028_v46  ;;  %4967 = vst.msk [vmem:[#allocation2 + $0xc7] sm:$0xff] %vm385_vm2, %v4965_v5  ;;  %v4834_v25 = vadd.f32 %v11535_v51, %v4798_v54  ;;  %v4738_v58 = vpop.f32.mrb[175].mxu0  ;;  %v5577_v7 = vld [vmem:[#allocation2 + $0xa2] ss:$2 sm:$0xff] }
 0x244   : > { %11696 = vmatmul.mubr.msk.f32.gmra.mrb[198].mxu0 %vm385_vm2, %v5575_v24  ;;  %11580 = vmatprep.mubr.msk.f32.mxu1 %vm12580_vm5, %v12579_v10  ;;  %v4977_v59 = vld [vmem:[#allocation5 + $0xd8] sm:$0xff]  ;;  %v4833_v2 = vadd.f32 %v4797_v9, %v4738_v58  ;;  %v4966_v3 = vmax.f32 %v4964_v55, 0.0  ;;  %v4973_v28 = vmax.f32 %v4971_v48, 0.0  ;;  %v10135_v51 = vld [vmem:[%s15365_s3 + $0x68] sm:$0xff]  ;;  %v10197_v48 = vld [vmem:[%s15365_s3 + $0xc0] sm:$0xff] }
 0x245   : > { %11698 = vmatprep.mubr.msk.f32.mxu0 %vm12580_vm5, %v12579_v10  ;;  %v4970_v52 = vld [vmem:[#allocation5 + $0xce] sm:$0xff]  ;;  %4870 = vst.msk [vmem:[#allocation5 + $0xf8] sm:$0xff] %vm385_vm2, %v4834_v25  ;;  %v4979_v29 = vadd.f32 %v13861_v57, %v4977_v59  ;;  %v6123_v59 = vld [vmem:[#allocation2 + $0x13] ss:$2 sm:$0xff] }
 0x246   : > { %4869 = vst.msk [vmem:[#allocation5 + $0xf0] sm:$0xff] %vm385_vm2, %v4833_v2  ;;  %v11538_v53 = vpop.f32.mrb[176].mxu0  ;;  %4968 = vst.msk [vmem:[#allocation2 + $0xcf] sm:$0xff] %vm385_vm2, %v4966_v3  ;;  %v4972_v12 = vadd.f32 %v13861_v57, %v4970_v52  ;;  %v10198_v25 = vld [vmem:[%s15365_s3 + $0xc8] sm:$0xff]  ;;  %v10136_v2 = vld [vmem:[%s15365_s3 + $0x70] sm:$0xff] }
 0x247   : > { %11581 = vmatmul.mubr.msk.f32.gmra.mrb[164].mxu1 %vm385_vm2, %v5030_v6  ;;  %4975 = vst.msk [vmem:[#allocation2 + $0xd9] sm:$0xff] %vm385_vm2, %v4973_v28  ;;  %v4836_v15 = vadd.f32 %v11538_v53, %v4800_v11  ;;  %v4748_v13 = vpop.f32.mrb[177].mxu0  ;;  %v4981_v56 = vmax.f32 %v4979_v29, 0.0  ;;  %v5266_v58 = vld [vmem:[#allocation2 + $0x1] ss:$2 sm:$0xff]  ;;  %v10137_v3 = vld [vmem:[%s15365_s3 + $0x78] sm:$0xff]  ;;  %v12427_v28 = vpack.c.bf16 %v10198_v25, %v10197_v48 }
 0x248   : > { %11699 = vmatmul.mubr.msk.f32.gmra.mrb[200].mxu0 %vm385_vm2, %v5577_v7  ;;  %11583 = vmatprep.mubr.msk.f32.mxu1 %vm12580_vm5, %v12579_v10  ;;  %v4835_v32 = vadd.f32 %v4799_v16, %v4748_v13  ;;  %v4974_v19 = vmax.f32 %v4972_v12, 0.0  ;;  %v10199_v52 = vld [vmem:[%s15365_s3 + $0xd0] sm:$0xff]  ;;  %v10200_v6 = vld [vmem:[%s15365_s3 + $0xd8] sm:$0xff]  ;;  %v12412_v7 = vpack.c.bf16 %v10137_v3, %v10136_v2  ;;  %v5270_v12 = vld [vmem:[#allocation2 + $0x21] ss:$2 sm:$0xff] }
 0x249   : > { %11701 = vmatprep.mubr.msk.f32.mxu0 %vm12580_vm5, %v12579_v10  ;;  %v4978_v20 = vld [vmem:[#allocation5 + $0xe0] sm:$0xff]  ;;  %4872 = vst.msk [vmem:[#allocation5 + $0x108] sm:$0xff] %vm385_vm2, %v4836_v15  ;;  %4983 = vst.msk [vmem:[#allocation2 + $0xeb] sm:$0xff] %vm385_vm2, %v4981_v56  ;;  %v6125_v53 = vld [vmem:[#allocation2 + $0x23] ss:$2 sm:$0xff]  ;;  %v12430_v11 = vpack.c.bf16 %v10200_v6, %v10199_v52 }
 0x24a   : > { %v5032_v14 = vld [vmem:[#allocation2 + $0xb0] ss:$2 sm:$0xff]  ;;  %4871 = vst.msk [vmem:[#allocation5 + $0x100] sm:$0xff] %vm385_vm2, %v4835_v32  ;;  %v11541_v22 = vpop.f32.mrb[178].mxu0  ;;  %4976 = vst.msk [vmem:[#allocation2 + $0xe1] sm:$0xff] %vm385_vm2, %v4974_v19  ;;  %v4980_v23 = vadd.f32 %v13861_v57, %v4978_v20 }
 0x24b   : > { %v5579_v33 = vld [vmem:[#allocation2 + $0xb2] ss:$2 sm:$0xff]  ;;  %11584 = vmatmul.mubr.msk.f32.gmra.mrb[166].mxu1 %vm385_vm2, %v5032_v14  ;;  %v4838_v62 = vadd.f32 %v11541_v22, %v4802_v61  ;;  %v4758_v26 = vpop.f32.mrb[179].mxu0  ;;  %v5268_v29 = vld [vmem:[#allocation2 + $0x11] ss:$2 sm:$0xff] }
 0x24c   : > { %11702 = vmatmul.mubr.msk.f32.gmra.mrb[202].mxu0 %vm385_vm2, %v5579_v33  ;;  %11586 = vmatprep.mubr.msk.f32.mxu1 %vm12580_vm5, %v12579_v10  ;;  %v4837_v63 = vadd.f32 %v4801_v27, %v4758_v26  ;;  %v5034_v36 = vld [vmem:[#allocation2 + $0xc0] ss:$2 sm:$0xff]  ;;  %v4982_v17 = vmax.f32 %v4980_v23, 0.0  ;;  %v6127_v15 = vld [vmem:[#allocation2 + $0x33] ss:$2 sm:$0xff] }
 0x24d   : > { %11704 = vmatprep.mubr.msk.f32.mxu0 %vm12580_vm5, %v12579_v10  ;;  %v4985_v30 = vld [vmem:[#allocation5 + $0xea] sm:$0xff]  ;;  %v4986_v0 = vld [vmem:[#allocation5 + $0xf2] sm:$0xff]  ;;  %4874 = vst.msk [vmem:[#allocation5 + $0x118] sm:$0x3f] %vm857_vm3, %v4838_v62  ;;  %v6131_v33 = vld [vmem:[#allocation2 + $0x53] ss:$2 sm:$0xff] }
 0x24e   : > { %v5581_v37 = vld [vmem:[#allocation2 + $0xc2] ss:$2 sm:$0xff]  ;;  %4873 = vst.msk [vmem:[#allocation5 + $0x110] sm:$0xff] %vm385_vm2, %v4837_v63  ;;  %4984 = vst.msk [vmem:[#allocation2 + $0xf3] sm:$0xff] %vm385_vm2, %v4982_v17  ;;  %v4987_v31 = vadd.f32 %v13861_v57, %v4985_v30  ;;  %v4988_v18 = vadd.f32 %v13861_v57, %v4986_v0  ;;  %v5583_v38 = vld [vmem:[#allocation2 + $0xd2] ss:$2 sm:$0xff] }
 0x24f   : > { %11587 = vmatmul.mubr.msk.f32.gmra.mrb[168].mxu1 %vm385_vm2, %v5034_v36  ;;  %v5036_v34 = vld [vmem:[#allocation2 + $0xd0] ss:$2 sm:$0xff]  ;;  %v5272_v13 = vld [vmem:[#allocation2 + $0x31] ss:$2 sm:$0xff]  ;;  %v5274_v14 = vld [vmem:[#allocation2 + $0x41] ss:$2 sm:$0xff] }
 0x250   : > { %11705 = vmatmul.mubr.msk.f32.gmra.mrb[204].mxu0 %vm385_vm2, %v5581_v37  ;;  %11589 = vmatprep.mubr.msk.f32.mxu1 %vm12580_vm5, %v12579_v10  ;;  %v4989_v60 = vmax.f32 %v4987_v31, 0.0  ;;  %v4990_v1 = vmax.f32 %v4988_v18, 0.0  ;;  %v6129_v16 = vld [vmem:[#allocation2 + $0x43] ss:$2 sm:$0xff]  ;;  %v6135_v62 = vld [vmem:[#allocation2 + $0x73] ss:$2 sm:$0xff] }
 0x251   : > { %11707 = vmatprep.mubr.msk.f32.mxu0 %vm12580_vm5, %v12579_v10  ;;  %v4993_v40 = vld [vmem:[#allocation5 + $0xfc] sm:$0xff]  ;;  %v4994_v35 = vld [vmem:[#allocation5 + $0x104] sm:$0xff] }
 0x252   : > { %4991 = vst.msk [vmem:[#allocation2 + $0xfd] sm:$0xff] %vm385_vm2, %v4989_v60  ;;  %4992 = vst.msk [vmem:[#allocation2 + $0x105] sm:$0xff] %vm385_vm2, %v4990_v1  ;;  %v4995_v8 = vadd.f32 %v13861_v57, %v4993_v40  ;;  %v4996_v41 = vadd.f32 %v13861_v57, %v4994_v35  ;;  %v5038_v39 = vld [vmem:[#allocation2 + $0xe0] ss:$2 sm:$0xff]  ;;  %v5276_v22 = vld [vmem:[#allocation2 + $0x51] ss:$2 sm:$0xff] }
 0x253   : > { %11590 = vmatmul.mubr.msk.f32.gmra.mrb[170].mxu1 %vm385_vm2, %v5036_v34  ;;  %v5585_v44 = vld [vmem:[#allocation2 + $0xe2] ss:$2 sm:$0xff]  ;;  %v6133_v61 = vld [vmem:[#allocation2 + $0x63] ss:$2 sm:$0xff]  ;;  %v6139_v36 = vld [vmem:[#allocation2 + $0x93] ss:$2 sm:$0xff] }
 0x254   : > { %11708 = vmatmul.mubr.msk.f32.gmra.mrb[206].mxu0 %vm385_vm2, %v5583_v38  ;;  %11592 = vmatprep.mubr.msk.f32.mxu1 %vm12580_vm5, %v12579_v10  ;;  %v4997_v42 = vmax.f32 %v4995_v8, 0.0  ;;  %v4998_v4 = vmax.f32 %v4996_v41, 0.0  ;;  %v5278_v23 = vld [vmem:[#allocation2 + $0x61] ss:$2 sm:$0xff]  ;;  %v5280_v26 = vld [vmem:[#allocation2 + $0x71] ss:$2 sm:$0xff] }
 0x255   : > { %11710 = vmatprep.mubr.msk.f32.mxu0 %vm12580_vm5, %v12579_v10  ;;  %v5001_v21 = vld [vmem:[#allocation5 + $0x10e] sm:$0xff]  ;;  %v5002_v43 = vld [vmem:[#allocation5 + $0x116] sm:$0xff] }
 0x256   : > { %v5003_v46 = vadd.f32 %v13861_v57, %v5001_v21  ;;  %v5004_v47 = vadd.f32 %v13861_v57, %v5002_v43  ;;  %4999 = vst.msk [vmem:[#allocation2 + $0x10f] sm:$0xff] %vm385_vm2, %v4997_v42  ;;  %5000 = vst.msk [vmem:[#allocation2 + $0x117] sm:$0xff] %vm385_vm2, %v4998_v4  ;;  %v10134_v57 = vld [vmem:[%s15365_s3 + $0x60] sm:$0xff]  ;;  %v5284_v17 = vld [vmem:[#allocation2 + $0x91] ss:$2 sm:$0xff] }
 0x257   : > { %11593 = vmatmul.mubr.msk.f32.gmra.mrb[172].mxu1 %vm385_vm2, %v5038_v39  ;;  %v12409_v9 = vpack.c.bf16 %v10135_v51, %v10134_v57  ;;  %v6137_v27 = vld [vmem:[#allocation2 + $0x83] ss:$2 sm:$0xff]  ;;  %v6143_v37 = vld [vmem:[#allocation2 + $0xb3] ss:$2 sm:$0xff]  ;;  %v6705_v48 = vld [vmem:[#allocation2 + $0x34] ss:$2 sm:$0xff] }
 0x258   : > { %11711 = vmatmul.mubr.msk.f32.gmra.mrb[208].mxu0 %vm385_vm2, %v5585_v44  ;;  %11595 = vmatprep.mubr.msk.f32.mxu1 %vm12580_vm5, %v12579_v10  ;;  %v5005_v5 = vmax.f32 %v5003_v46, 0.0  ;;  %v5006_v45 = vmax.f32 %v5004_v47, 0.0  ;;  %v5282_v63 = vld [vmem:[#allocation2 + $0x81] ss:$2 sm:$0xff]  ;;  %v5288_v31 = vld [vmem:[#allocation2 + $0xb1] ss:$2 sm:$0xff] }
 0x259   : > { %11713 = vmatprep.mubr.msk.f32.mxu0 %vm12580_vm5, %v12579_v10  ;;  %v5040_v50 = vld [vmem:[#allocation2 + $0xf0] ss:$2 sm:$0xff]  ;;  %v5042_v54 = vld [vmem:[#allocation2 + $0x100] ss:$2 sm:$0x3f] }
 0x25a   : > { %v5587_v24 = vld [vmem:[#allocation2 + $0xf2] ss:$2 sm:$0xff]  ;;  %5007 = vst.msk [vmem:[#allocation2 + $0x121] sm:$0xff] %vm385_vm2, %v5005_v5  ;;  %5008 = vst.msk [vmem:[#allocation2 + $0x129] sm:$0xff] %vm385_vm2, %v5006_v45  ;;  %v6141_v30 = vld [vmem:[#allocation2 + $0xa3] ss:$2 sm:$0xff] }
 0x25b   : > { %11596 = vmatmul.mubr.msk.f32.gmra.mrb[174].mxu1 %vm385_vm2, %v5040_v50  ;;  %v5589_v55 = vld [vmem:[#allocation2 + $0x102] ss:$2 sm:$0x3f]  ;;  %v5286_v0 = vld [vmem:[#allocation2 + $0xa1] ss:$2 sm:$0xff]  ;;  %v10178_v45 = vld [vmem:[%s15365_s3 + $0xb0] sm:$0xff] }
 0x25c   : > { %11714 = vmatmul.mubr.msk.f32.gmra.mrb[210].mxu0 %vm385_vm2, %v5587_v24  ;;  %11598 = vmatprep.mubr.msk.f32.mxu1 %vm12580_vm5, %v12579_v10  ;;  %v6145_v18 = vld [vmem:[#allocation2 + $0xc3] ss:$2 sm:$0xff]  ;;  %v6147_v60 = vld [vmem:[#allocation2 + $0xd3] ss:$2 sm:$0xff]  ;;  %v5847_v47 = vld [vmem:[#allocation2 + $0x12] ss:$2 sm:$0xff] }
 0x25d   : > { %11716 = vmatprep.mubr.msk.f32.mxu0 %vm12580_vm5, %v12579_v10  ;;  %v5290_v34 = vld [vmem:[#allocation2 + $0xc1] ss:$2 sm:$0xff]  ;;  %v5292_v1 = vld [vmem:[#allocation2 + $0xd1] ss:$2 sm:$0xff]  ;;  %v6704_v5 = vld [vmem:[#allocation2 + $0x24] ss:$2 sm:$0xff] }
 0x25e   : > { %v5164_v56 = vpop.f32.mrb[144].mxu1  ;;  %v6149_v40 = vld [vmem:[#allocation2 + $0xe3] ss:$2 sm:$0xff]  ;;  %v6151_v38 = vld [vmem:[#allocation2 + $0xf3] ss:$2 sm:$0xff] }
 0x25f   : > { %11599 = vmatmul.mubr.msk.f32.gmra.mrb[176].mxu1 %vm385_vm2, %v5042_v54  ;;  %5248 = vst.msk [vmem:[#allocation5] sm:$0xff] %vm385_vm2, %v5164_v56  ;;  %v11552_v19 = vpop.f32.mrb[145].mxu1  ;;  %v5294_v35 = vld [vmem:[#allocation2 + $0xe1] ss:$2 sm:$0xff]  ;;  %v5296_v8 = vld [vmem:[#allocation2 + $0xf1] ss:$2 sm:$0xff] }
 0x260   : > { %11717 = vmatmul.mubr.msk.f32.gmra.mrb[212].mxu0 %vm385_vm2, %v5589_v55  ;;  %11609 = vmatprep.mubr.msk.f32.mxu1 %vm12580_vm5, %v12579_v10  ;;  %v6153_v41 = vld [vmem:[#allocation2 + $0x103] ss:$2 sm:$0xff]  ;;  %v6155_v21 = vld [vmem:[#allocation2 + $0x113] ss:$2 sm:$0x3f] }
 0x261   : > { %11786 = vmatprep.mubr.msk.f32.mxu0 %vm12580_vm5, %v12579_v10  ;;  %v10176_v39 = vld [vmem:[%s15365_s3 + $0xa0] sm:$0xff]  ;;  %v10177_v42 = vld [vmem:[%s15365_s3 + $0xa8] sm:$0xff]  ;;  %v10179_v50 = vld [vmem:[%s15365_s3 + $0xb8] sm:$0xff] }
 0x262   : > { %v5298_v4 = vld [vmem:[#allocation2 + $0x101] ss:$2 sm:$0x3f]  ;;  %v12421_v46 = vpack.c.bf16 %v10177_v42, %v10176_v39  ;;  %v10241_v57 = vld [vmem:[%s15365_s3 + $0x110] sm:$0xff]  ;;  %v10242_v51 = vld [vmem:[%s15365_s3 + $0x118] sm:$0xff]  ;;  %v12424_v54 = vpack.c.bf16 %v10179_v50, %v10178_v45 }
 0x263   : > { %11610 = vmatmul.mubr.msk.f32.vlgmr.msra.gmra.mrb[178].mxu1 %vm385_vm2, %v5266_v58  ;;  %v10239_v43 = vld [vmem:[%s15365_s3 + $0x100] sm:$0xff]  ;;  %v10240_v44 = vld [vmem:[%s15365_s3 + $0x108] sm:$0xff]  ;;  %v12442_v25 = vpack.c.bf16 %v10242_v51, %v10241_v57 }
 0x264   : > { %11787 = vmatmul.mubr.msk.f32.vlgmr.msra.gmra.mrb[214].mxu0 %vm385_vm2, %v6123_v59  ;;  %12410 = vmatpush3.bf16.msra.mxu1 %v12409_v9  ;;  %v12439_v24 = vpack.c.bf16 %v10240_v44, %v10239_v43  ;;  %v5848_v55 = vld [vmem:[#allocation2 + $0x22] ss:$2 sm:$0xff]  ;;  %v5849_v58 = vld [vmem:[#allocation2 + $0x32] ss:$2 sm:$0xff] }
 0x265   : > { %11612 = vmatprep.mubr.msk.f32.mxu1 %vm12580_vm5, %v12579_v10  ;;  %11789 = vmatprep.mubr.msk.f32.mxu0 %vm12580_vm5, %v12579_v10  ;;  %v6706_v9 = vld [vmem:[#allocation2 + $0x44] ss:$2 sm:$0xff]  ;;  %v6707_v2 = vld [vmem:[#allocation2 + $0x54] ss:$2 sm:$0xff] }
 0x266   : > { %12411 = vmatprep.subr.bf16.mxu1 %v12578_v49  ;;  %12428 = vmatpush3.bf16.msra.mxu0 %v12427_v28  ;;  %v5850_v59 = vld [vmem:[#allocation2 + $0x42] ss:$2 sm:$0xff]  ;;  %v5851_v3 = vld [vmem:[#allocation2 + $0x52] ss:$2 sm:$0xff] }
 0x267   : > { %11613 = vmatmul.mubr.msk.f32.gmra.mrb[180].mxu1 %vm385_vm2, %v5268_v29  ;;  %12429 = vmatprep.subr.bf16.mxu0 %v12578_v49  ;;  %v6708_v28 = vld [vmem:[#allocation2 + $0x64] ss:$2 sm:$0xff]  ;;  %v6709_v6 = vld [vmem:[#allocation2 + $0x74] ss:$2 sm:$0xff] }
 0x268   : > { %11790 = vmatmul.mubr.msk.f32.gmra.mrb[216].mxu0 %vm385_vm2, %v6125_v53  ;;  %11615 = vmatprep.mubr.msk.f32.mxu1 %vm12580_vm5, %v12579_v10  ;;  %v5852_v52 = vld [vmem:[#allocation2 + $0x62] ss:$2 sm:$0xff]  ;;  %v5857_v56 = vld [vmem:[#allocation2 + $0xb2] ss:$2 sm:$0xff] }
 0x269   : > { %11792 = vmatprep.mubr.msk.f32.mxu0 %vm12580_vm5, %v12579_v10  ;;  %12413 = vmatpush3.bf16.msra.mxu1 %v12412_v7  ;;  %v5853_v7 = vld [vmem:[#allocation2 + $0x72] ss:$2 sm:$0xff]  ;;  %v5854_v53 = vld [vmem:[#allocation2 + $0x82] ss:$2 sm:$0xff] }
 0x26a   : > { %12431 = vmatpush3.bf16.msra.mxu0 %v12430_v11  ;;  %12420 = vmatprep.subr.bf16.mxu1 %v12578_v49  ;;  %v6710_v29 = vld [vmem:[#allocation2 + $0x84] ss:$2 sm:$0xff]  ;;  %v6711_v11 = vld [vmem:[#allocation2 + $0x94] ss:$2 sm:$0xff] }
 0x26b   : > { %11616 = vmatmul.mubr.msk.f32.gmra.mrb[182].mxu1 %vm385_vm2, %v5270_v12  ;;  %12438 = vmatprep.subr.bf16.mxu0 %v12578_v49  ;;  %v5855_v12 = vld [vmem:[#allocation2 + $0x92] ss:$2 sm:$0xff] }
 0x26c   : > { %11793 = vmatmul.mubr.msk.f32.gmra.mrb[218].mxu0 %vm385_vm2, %v6127_v15  ;;  %11618 = vmatprep.mubr.msk.f32.mxu1 %vm12580_vm5, %v12579_v10  ;;  %v6712_v15 = vld [vmem:[#allocation2 + $0xa4] ss:$2 sm:$0xff] }
 0x26d   : > { %11795 = vmatprep.mubr.msk.f32.mxu0 %vm12580_vm5, %v12579_v10  ;;  %v6714_v19 = vld [vmem:[#allocation2 + $0xc4] ss:$2 sm:$0xff] }
 0x26e   : > { %v14105_v32 = vpop.f32.mrb[180].mxu0  ;;  %v7277_v43 = vld [vmem:[#allocation2 + $0x56] ss:$2 sm:$0xff] }
 0x26f   : > { %11619 = vmatmul.mubr.msk.f32.gmra.mrb[184].mxu1 %vm385_vm2, %v5272_v13  ;;  %v11670_v20 = vpop.f32.mrb[181].mxu0  ;;  %v5856_v13 = vld [vmem:[#allocation2 + $0xa2] ss:$2 sm:$0xff] }
 0x270   : > { %11796 = vmatmul.mubr.msk.f32.gmra.mrb[220].mxu0 %vm385_vm2, %v6129_v16  ;;  %11621 = vmatprep.mubr.msk.f32.mxu1 %vm12580_vm5, %v12579_v10  ;;  %v6713_v16 = vld [vmem:[#allocation2 + $0xb4] ss:$2 sm:$0xff]  ;;  %v6424_v51 = vld [vmem:[#allocation2 + $0x64] ss:$2 sm:$0xff] }
 0x271   : > { %11798 = vmatprep.mubr.msk.f32.mxu0 %vm12580_vm5, %v12579_v10  ;;  %v5858_v20 = vld [vmem:[#allocation2 + $0xc2] ss:$2 sm:$0xff] }
 0x273   : > { %11622 = vmatmul.mubr.msk.f32.gmra.mrb[186].mxu1 %vm385_vm2, %v5274_v14  ;;  %v6715_v14 = vld [vmem:[#allocation2 + $0xd4] ss:$2 sm:$0xff] }
 0x274   : > { %11799 = vmatmul.mubr.msk.f32.gmra.mrb[222].mxu0 %vm385_vm2, %v6131_v33  ;;  %11624 = vmatprep.mubr.msk.f32.mxu1 %vm12580_vm5, %v12579_v10  ;;  %v5859_v33 = vld [vmem:[#allocation2 + $0xd2] ss:$2 sm:$0xff] }
 0x275   : > { %11801 = vmatprep.mubr.msk.f32.mxu0 %vm12580_vm5, %v12579_v10 }
 0x277   : > { %11625 = vmatmul.mubr.msk.f32.gmra.mrb[188].mxu1 %vm385_vm2, %v5276_v22  ;;  %v6716_v22 = vld [vmem:[#allocation2 + $0xe4] ss:$2 sm:$0xff] }
 0x278   : > { %11802 = vmatmul.mubr.msk.f32.gmra.mrb[224].mxu0 %vm385_vm2, %v6133_v61  ;;  %11627 = vmatprep.mubr.msk.f32.mxu1 %vm12580_vm5, %v12579_v10  ;;  %v5860_v61 = vld [vmem:[#allocation2 + $0xe2] ss:$2 sm:$0xff] }
 0x279   : > { %11804 = vmatprep.mubr.msk.f32.mxu0 %vm12580_vm5, %v12579_v10 }
 0x27b   : > { %11628 = vmatmul.mubr.msk.f32.gmra.mrb[190].mxu1 %vm385_vm2, %v5278_v23  ;;  %v6717_v23 = vld [vmem:[#allocation2 + $0xf4] ss:$2 sm:$0xff] }
 0x27c   : > { %11805 = vmatmul.mubr.msk.f32.gmra.mrb[226].mxu0 %vm385_vm2, %v6135_v62  ;;  %11630 = vmatprep.mubr.msk.f32.mxu1 %vm12580_vm5, %v12579_v10  ;;  %v5861_v62 = vld [vmem:[#allocation2 + $0xf2] ss:$2 sm:$0xff] }
 0x27d   : > { %11807 = vmatprep.mubr.msk.f32.mxu0 %vm12580_vm5, %v12579_v10 }
 0x27f   : > { %11631 = vmatmul.mubr.msk.f32.gmra.mrb[192].mxu1 %vm385_vm2, %v5280_v26  ;;  %v6718_v26 = vld [vmem:[#allocation2 + $0x104] ss:$2 sm:$0xff] }
 0x280   : > { %11808 = vmatmul.mubr.msk.f32.gmra.mrb[228].mxu0 %vm385_vm2, %v6137_v27  ;;  %11633 = vmatprep.mubr.msk.f32.mxu1 %vm12580_vm5, %v12579_v10  ;;  %v5862_v27 = vld [vmem:[#allocation2 + $0x102] ss:$2 sm:$0xff] }
 0x281   : > { %11810 = vmatprep.mubr.msk.f32.mxu0 %vm12580_vm5, %v12579_v10 }
 0x283   : > { %11634 = vmatmul.mubr.msk.f32.gmra.mrb[194].mxu1 %vm385_vm2, %v5282_v63  ;;  %v6719_v63 = vld [vmem:[#allocation2 + $0x114] ss:$2 sm:$0xff] }
 0x284   : > { %11811 = vmatmul.mubr.msk.f32.gmra.mrb[230].mxu0 %vm385_vm2, %v6139_v36  ;;  %11636 = vmatprep.mubr.msk.f32.mxu1 %vm12580_vm5, %v12579_v10  ;;  %v10218_v36 = vld [vmem:[%s15365_s3 + $0xe0] sm:$0xff] }
 0x285   : > { %11813 = vmatprep.mubr.msk.f32.mxu0 %vm12580_vm5, %v12579_v10 }
 0x287   : > { %11637 = vmatmul.mubr.msk.f32.gmra.mrb[196].mxu1 %vm385_vm2, %v5284_v17  ;;  %v10219_v17 = vld [vmem:[%s15365_s3 + $0xe8] sm:$0xff] }
 0x288   : > { %11814 = vmatmul.mubr.msk.f32.gmra.mrb[232].mxu0 %vm385_vm2, %v6141_v30  ;;  %11639 = vmatprep.mubr.msk.f32.mxu1 %vm12580_vm5, %v12579_v10  ;;  %v5864_v30 = vld [vmem:[#allocation2 + $0x112] ss:$2 sm:$0x3f] }
 0x289   : > { %11816 = vmatprep.mubr.msk.f32.mxu0 %vm12580_vm5, %v12579_v10 }
 0x28b   : > { %11640 = vmatmul.mubr.msk.f32.gmra.mrb[198].mxu1 %vm385_vm2, %v5286_v0  ;;  %v6721_v0 = vld [vmem:[#allocation2 + $0x124] ss:$2 sm:$0x3f] }
 0x28c   : > { %11817 = vmatmul.mubr.msk.f32.gmra.mrb[234].mxu0 %vm385_vm2, %v6143_v37  ;;  %11642 = vmatprep.mubr.msk.f32.mxu1 %vm12580_vm5, %v12579_v10  ;;  %v12433_v37 = vpack.c.bf16 %v10219_v17, %v10218_v36 }
 0x28d   : > { %11819 = vmatprep.mubr.msk.f32.mxu0 %vm12580_vm5, %v12579_v10 }
 0x28f   : > { %11643 = vmatmul.mubr.msk.f32.gmra.mrb[200].mxu1 %vm385_vm2, %v5288_v31  ;;  %v6414_v31 = vld [vmem:[#allocation2 + $0x14] ss:$2 sm:$0xff] }
 0x290   : > { %11820 = vmatmul.mubr.msk.f32.gmra.mrb[236].mxu0 %vm385_vm2, %v6145_v18  ;;  %11645 = vmatprep.mubr.msk.f32.mxu1 %vm12580_vm5, %v12579_v10  ;;  %v7271_v18 = vld [vmem:[#allocation2 + $0x26] ss:$2 sm:$0xff] }
 0x291   : > { %11822 = vmatprep.mubr.msk.f32.mxu0 %vm12580_vm5, %v12579_v10 }
 0x293   : > { %11646 = vmatmul.mubr.msk.f32.gmra.mrb[202].mxu1 %vm385_vm2, %v5290_v34  ;;  %v10220_v34 = vld [vmem:[%s15365_s3 + $0xf0] sm:$0xff] }
 0x294   : > { %11823 = vmatmul.mubr.msk.f32.gmra.mrb[238].mxu0 %vm385_vm2, %v6147_v60  ;;  %11648 = vmatprep.mubr.msk.f32.mxu1 %vm12580_vm5, %v12579_v10  ;;  %v10221_v60 = vld [vmem:[%s15365_s3 + $0xf8] sm:$0xff] }
 0x295   : > { %11825 = vmatprep.mubr.msk.f32.mxu0 %vm12580_vm5, %v12579_v10 }
 0x297   : > { %11649 = vmatmul.mubr.msk.f32.gmra.mrb[204].mxu1 %vm385_vm2, %v5292_v1  ;;  %v12436_v1 = vpack.c.bf16 %v10221_v60, %v10220_v34 }
 0x298   : > { %11826 = vmatmul.mubr.msk.f32.gmra.mrb[240].mxu0 %vm385_vm2, %v6149_v40  ;;  %11651 = vmatprep.mubr.msk.f32.mxu1 %vm12580_vm5, %v12579_v10  ;;  %v6416_v40 = vld [vmem:[#allocation2 + $0x24] ss:$2 sm:$0xff] }
 0x299   : > { %11828 = vmatprep.mubr.msk.f32.mxu0 %vm12580_vm5, %v12579_v10 }
 0x29b   : > { %11652 = vmatmul.mubr.msk.f32.gmra.mrb[206].mxu1 %vm385_vm2, %v5294_v35  ;;  %v7273_v35 = vld [vmem:[#allocation2 + $0x36] ss:$2 sm:$0xff] }
 0x29c   : > { %11829 = vmatmul.mubr.msk.f32.gmra.mrb[242].mxu0 %vm385_vm2, %v6151_v38  ;;  %11654 = vmatprep.mubr.msk.f32.mxu1 %vm12580_vm5, %v12579_v10 }
 0x29d   : > { %11831 = vmatprep.mubr.msk.f32.mxu0 %vm12580_vm5, %v12579_v10 }
 0x29f   : > { %11655 = vmatmul.mubr.msk.f32.gmra.mrb[208].mxu1 %vm385_vm2, %v5296_v8  ;;  %v6418_v8 = vld [vmem:[#allocation2 + $0x34] ss:$2 sm:$0xff] }
 0x2a0   : > { %11832 = vmatmul.mubr.msk.f32.gmra.mrb[244].mxu0 %vm385_vm2, %v6153_v41  ;;  %11657 = vmatprep.mubr.msk.f32.mxu1 %vm12580_vm5, %v12579_v10  ;;  %v7275_v41 = vld [vmem:[#allocation2 + $0x46] ss:$2 sm:$0xff] }
 0x2a1   : > { %11834 = vmatprep.mubr.msk.f32.mxu0 %vm12580_vm5, %v12579_v10 }
 0x2a3   : > { %11658 = vmatmul.mubr.msk.f32.gmra.mrb[210].mxu1 %vm385_vm2, %v5298_v4 }
 0x2a4   : > { %11835 = vmatmul.mubr.msk.f32.gmra.mrb[246].mxu0 %vm385_vm2, %v6155_v21  ;;  %11727 = vmatprep.mubr.msk.f32.mxu1 %vm12580_vm5, %v12579_v10  ;;  %v6420_v21 = vld [vmem:[#allocation2 + $0x44] ss:$2 sm:$0xff] }
 0x2a5   : > { %11904 = vmatprep.mubr.msk.f32.mxu0 %vm12580_vm5, %v12579_v10 }
 0x2a7   : > { %11728 = vmatmul.mubr.msk.f32.vlgmr.msra.gmra.mrb[212].mxu1 %vm385_vm2, %v5847_v47  ;;  %v6422_v47 = vld [vmem:[#allocation2 + $0x54] ss:$2 sm:$0xff] }
 0x2a8   : > { %11905 = vmatmul.mubr.msk.f32.vlgmr.msra.gmra.mrb[248].mxu0 %vm385_vm2, %v6704_v5  ;;  %12422 = vmatpush3.bf16.msra.mxu1 %v12421_v46  ;;  %v7279_v5 = vld [vmem:[#allocation2 + $0x66] ss:$2 sm:$0xff] }
 0x2a9   : > { %11730 = vmatprep.mubr.msk.f32.mxu1 %vm12580_vm5, %v12579_v10  ;;  %11907 = vmatprep.mubr.msk.f32.mxu0 %vm12580_vm5, %v12579_v10 }
 0x2aa   : > { %12423 = vmatprep.subr.bf16.mxu1 %v12578_v49  ;;  %12440 = vmatpush3.bf16.msra.mxu0 %v12439_v24 }
 0x2ab   : > { %11731 = vmatmul.mubr.msk.f32.gmra.mrb[214].mxu1 %vm385_vm2, %v5848_v55  ;;  %12441 = vmatprep.subr.bf16.mxu0 %v12578_v49 }
 0x2ac   : > { %11908 = vmatmul.mubr.msk.f32.gmra.mrb[250].mxu0 %vm385_vm2, %v6705_v48  ;;  %11733 = vmatprep.mubr.msk.f32.mxu1 %vm12580_vm5, %v12579_v10 }
 0x2ad   : > { %11910 = vmatprep.mubr.msk.f32.mxu0 %vm12580_vm5, %v12579_v10  ;;  %12425 = vmatpush3.bf16.msra.mxu1 %v12424_v54  ;;  %v7281_v54 = vld [vmem:[#allocation2 + $0x76] ss:$2 sm:$0xff] }
 0x2ae   : > { %12443 = vmatpush3.bf16.msra.mxu0 %v12442_v25  ;;  %12432 = vmatprep.subr.bf16.mxu1 %v12578_v49 }
 0x2af   : > { %11734 = vmatmul.mubr.msk.f32.gmra.mrb[216].mxu1 %vm385_vm2, %v5849_v58  ;;  %12450 = vmatprep.subr.bf16.mxu0 %v12578_v49 }
 0x2b0   : > { %11911 = vmatmul.mubr.msk.f32.gmra.mrb[252].mxu0 %vm385_vm2, %v6706_v9  ;;  %11736 = vmatprep.mubr.msk.f32.mxu1 %vm12580_vm5, %v12579_v10  ;;  %v6426_v9 = vld [vmem:[#allocation2 + $0x74] ss:$2 sm:$0xff] }
 0x2b1   : > { %11913 = vmatprep.mubr.msk.f32.mxu0 %vm12580_vm5, %v12579_v10 }
 0x2b3   : > { %11737 = vmatmul.mubr.msk.f32.gmra.mrb[218].mxu1 %vm385_vm2, %v5850_v59  ;;  %v7283_v59 = vld [vmem:[#allocation2 + $0x86] ss:$2 sm:$0xff] }
 0x2b4   : > { %11914 = vmatmul.mubr.msk.f32.gmra.mrb[254].mxu0 %vm385_vm2, %v6707_v2  ;;  %11739 = vmatprep.mubr.msk.f32.mxu1 %vm12580_vm5, %v12579_v10 }
 0x2b5   : > { %11916 = vmatprep.mubr.msk.f32.mxu0 %vm12580_vm5, %v12579_v10 }
 0x2b7   : > { %11740 = vmatmul.mubr.msk.f32.gmra.mrb[220].mxu1 %vm385_vm2, %v5851_v3 }
 0x2b8   : > { %11917 = vmatmul.mubr.msk.f32.gmra.mrb[0].mxu0 %vm385_vm2, %v6708_v28  ;;  %11742 = vmatprep.mubr.msk.f32.mxu1 %vm12580_vm5, %v12579_v10 }
 0x2b9   : > { %11919 = vmatprep.mubr.msk.f32.mxu0 %vm12580_vm5, %v12579_v10 }
 0x2bb   : > { %11743 = vmatmul.mubr.msk.f32.gmra.mrb[222].mxu1 %vm385_vm2, %v5852_v52 }
 0x2bc   : > { %11920 = vmatmul.mubr.msk.f32.gmra.mrb[2].mxu0 %vm385_vm2, %v6709_v6  ;;  %11745 = vmatprep.mubr.msk.f32.mxu1 %vm12580_vm5, %v12579_v10  ;;  %v6428_v6 = vld [vmem:[#allocation2 + $0x84] ss:$2 sm:$0xff] }
 0x2bd   : > { %11922 = vmatprep.mubr.msk.f32.mxu0 %vm12580_vm5, %v12579_v10 }
 0x2bf   : > { %11746 = vmatmul.mubr.msk.f32.gmra.mrb[224].mxu1 %vm385_vm2, %v5853_v7  ;;  %v7285_v7 = vld [vmem:[#allocation2 + $0x96] ss:$2 sm:$0xff] }
 0x2c0   : > { %11923 = vmatmul.mubr.msk.f32.gmra.mrb[4].mxu0 %vm385_vm2, %v6710_v29  ;;  %11748 = vmatprep.mubr.msk.f32.mxu1 %vm12580_vm5, %v12579_v10 }
 0x2c1   : > { %11925 = vmatprep.mubr.msk.f32.mxu0 %vm12580_vm5, %v12579_v10 }
 0x2c3   : > { %11749 = vmatmul.mubr.msk.f32.gmra.mrb[226].mxu1 %vm385_vm2, %v5854_v53 }
 0x2c4   : > { %11926 = vmatmul.mubr.msk.f32.gmra.mrb[6].mxu0 %vm385_vm2, %v6711_v11  ;;  %11751 = vmatprep.mubr.msk.f32.mxu1 %vm12580_vm5, %v12579_v10 }
 0x2c5   : > { %11928 = vmatprep.mubr.msk.f32.mxu0 %vm12580_vm5, %v12579_v10 }
 0x2c7   : > { %11752 = vmatmul.mubr.msk.f32.gmra.mrb[228].mxu1 %vm385_vm2, %v5855_v12 }
 0x2c8   : > { %11929 = vmatmul.mubr.msk.f32.gmra.mrb[8].mxu0 %vm385_vm2, %v6712_v15  ;;  %11754 = vmatprep.mubr.msk.f32.mxu1 %vm12580_vm5, %v12579_v10  ;;  %v6430_v15 = vld [vmem:[#allocation2 + $0x94] ss:$2 sm:$0xff] }
 0x2c9   : > { %11931 = vmatprep.mubr.msk.f32.mxu0 %vm12580_vm5, %v12579_v10 }
 0x2cb   : > { %11755 = vmatmul.mubr.msk.f32.gmra.mrb[230].mxu1 %vm385_vm2, %v5856_v13  ;;  %v7287_v13 = vld [vmem:[#allocation2 + $0xa6] ss:$2 sm:$0xff] }
 0x2cc   : > { %11932 = vmatmul.mubr.msk.f32.gmra.mrb[10].mxu0 %vm385_vm2, %v6713_v16  ;;  %11757 = vmatprep.mubr.msk.f32.mxu1 %vm12580_vm5, %v12579_v10 }
 0x2cd   : > { %11934 = vmatprep.mubr.msk.f32.mxu0 %vm12580_vm5, %v12579_v10 }
 0x2cf   : > { %11758 = vmatmul.mubr.msk.f32.gmra.mrb[232].mxu1 %vm385_vm2, %v5857_v56 }
 0x2d0   : > { %11935 = vmatmul.mubr.msk.f32.gmra.mrb[12].mxu0 %vm385_vm2, %v6714_v19  ;;  %11760 = vmatprep.mubr.msk.f32.mxu1 %vm12580_vm5, %v12579_v10 }
 0x2d1   : > { %11937 = vmatprep.mubr.msk.f32.mxu0 %vm12580_vm5, %v12579_v10 }
 0x2d3   : > { %11761 = vmatmul.mubr.msk.f32.gmra.mrb[234].mxu1 %vm385_vm2, %v5858_v20 }
 0x2d4   : > { %11938 = vmatmul.mubr.msk.f32.gmra.mrb[14].mxu0 %vm385_vm2, %v6715_v14  ;;  %11763 = vmatprep.mubr.msk.f32.mxu1 %vm12580_vm5, %v12579_v10  ;;  %v6432_v14 = vld [vmem:[#allocation2 + $0xa4] ss:$2 sm:$0xff] }
 0x2d5   : > { %11940 = vmatprep.mubr.msk.f32.mxu0 %vm12580_vm5, %v12579_v10 }
 0x2d7   : > { %11764 = vmatmul.mubr.msk.f32.gmra.mrb[236].mxu1 %vm385_vm2, %v5859_v33  ;;  %v7289_v33 = vld [vmem:[#allocation2 + $0xb6] ss:$2 sm:$0xff] }
 0x2d8   : > { %11941 = vmatmul.mubr.msk.f32.gmra.mrb[16].mxu0 %vm385_vm2, %v6716_v22  ;;  %11766 = vmatprep.mubr.msk.f32.mxu1 %vm12580_vm5, %v12579_v10 }
 0x2d9   : > { %11943 = vmatprep.mubr.msk.f32.mxu0 %vm12580_vm5, %v12579_v10 }
 0x2db   : > { %11767 = vmatmul.mubr.msk.f32.gmra.mrb[238].mxu1 %vm385_vm2, %v5860_v61 }
 0x2dc   : > { %11944 = vmatmul.mubr.msk.f32.gmra.mrb[18].mxu0 %vm385_vm2, %v6717_v23  ;;  %11769 = vmatprep.mubr.msk.f32.mxu1 %vm12580_vm5, %v12579_v10 }
 0x2dd   : > { %11946 = vmatprep.mubr.msk.f32.mxu0 %vm12580_vm5, %v12579_v10 }
 0x2df   : > { %11770 = vmatmul.mubr.msk.f32.gmra.mrb[240].mxu1 %vm385_vm2, %v5861_v62 }
 0x2e0   : > { %11947 = vmatmul.mubr.msk.f32.gmra.mrb[20].mxu0 %vm385_vm2, %v6718_v26  ;;  %11772 = vmatprep.mubr.msk.f32.mxu1 %vm12580_vm5, %v12579_v10  ;;  %v6434_v26 = vld [vmem:[#allocation2 + $0xb4] ss:$2 sm:$0xff] }
 0x2e1   : > { %11949 = vmatprep.mubr.msk.f32.mxu0 %vm12580_vm5, %v12579_v10 }
 0x2e3   : > { %11773 = vmatmul.mubr.msk.f32.gmra.mrb[242].mxu1 %vm385_vm2, %v5862_v27  ;;  %v7291_v27 = vld [vmem:[#allocation2 + $0xc6] ss:$2 sm:$0xff] }
 0x2e4   : > { %11950 = vmatmul.mubr.msk.f32.gmra.mrb[22].mxu0 %vm385_vm2, %v6719_v63  ;;  %11775 = vmatprep.mubr.msk.f32.mxu1 %vm12580_vm5, %v12579_v10 }
 0x2e5   : > { %11952 = vmatprep.mubr.msk.f32.mxu0 %vm12580_vm5, %v12579_v10 }
 0x2e7   : > { %11776 = vmatmul.mubr.msk.f32.gmra.mrb[244].mxu1 %vm385_vm2, %v5864_v30 }
 0x2e8   : > { %11953 = vmatmul.mubr.msk.f32.gmra.mrb[24].mxu0 %vm385_vm2, %v6721_v0  ;;  %11845 = vmatprep.mubr.msk.f32.mxu1 %vm12580_vm5, %v12579_v10  ;;  %v6436_v0 = vld [vmem:[#allocation2 + $0xc4] ss:$2 sm:$0xff] }
 0x2e9   : > { %12022 = vmatprep.mubr.msk.f32.mxu0 %vm12580_vm5, %v12579_v10 }
 0x2eb   : > { %11846 = vmatmul.mubr.msk.f32.vlgmr.msra.gmra.mrb[246].mxu1 %vm385_vm2, %v6414_v31 }
 0x2ec   : > { %12023 = vmatmul.mubr.msk.f32.vlgmr.msra.gmra.mrb[26].mxu0 %vm385_vm2, %v7271_v18  ;;  %12434 = vmatpush3.bf16.msra.mxu1 %v12433_v37  ;;  %v7293_v37 = vld [vmem:[#allocation2 + $0xd6] ss:$2 sm:$0xff] }
 0x2ed   : > { %11848 = vmatprep.mubr.msk.f32.mxu1 %vm12580_vm5, %v12579_v10  ;;  %12025 = vmatprep.mubr.msk.f32.mxu0 %vm12580_vm5, %v12579_v10 }
 0x2ee   : > { %12435 = vmatprep.subr.bf16.mxu1 %v12578_v49 }
 0x2ef   : > { %11849 = vmatmul.mubr.msk.f32.gmra.mrb[248].mxu1 %vm385_vm2, %v6416_v40  ;;  %v7295_v40 = vld [vmem:[#allocation2 + $0xe6] ss:$2 sm:$0xff] }
 0x2f0   : > { %12026 = vmatmul.mubr.msk.f32.gmra.mrb[28].mxu0 %vm385_vm2, %v7273_v35  ;;  %11851 = vmatprep.mubr.msk.f32.mxu1 %vm12580_vm5, %v12579_v10 }
 0x2f1   : > { %12028 = vmatprep.mubr.msk.f32.mxu0 %vm12580_vm5, %v12579_v10  ;;  %12437 = vmatpush3.bf16.msra.mxu1 %v12436_v1  ;;  %v6438_v1 = vld [vmem:[#allocation2 + $0xd4] ss:$2 sm:$0xff] }
 0x2f2   : > { %v5169_v38 = vpop.f32.mrb[146].mxu1  ;;  %12444 = vmatprep.subr.bf16.mxu1 %v12578_v49 }
 0x2f3   : > { %5249 = vst.msk [vmem:[#allocation5 + $0x8] sm:$0xff] %vm385_vm2, %v5169_v38  ;;  %v14347_v39 = vpop.f32.mrb[182].mxu0  ;;  %v11555_v42 = vpop.f32.mrb[147].mxu1  ;;  %11852 = vmatmul.mubr.msk.f32.gmra.mrb[250].mxu1 %vm385_vm2, %v6418_v8 }
 0x2f4   : > { %12029 = vmatmul.mubr.msk.f32.gmra.mrb[30].mxu0 %vm385_vm2, %v7275_v41  ;;  %v11673_v4 = vpop.f32.mrb[183].mxu0  ;;  %11854 = vmatprep.mubr.msk.f32.mxu1 %vm12580_vm5, %v12579_v10  ;;  %v6440_v42 = vld [vmem:[#allocation2 + $0xe4] ss:$2 sm:$0xff] }
 0x2f5   : > { %12031 = vmatprep.mubr.msk.f32.mxu0 %vm12580_vm5, %v12579_v10  ;;  %v7297_v4 = vld [vmem:[#allocation2 + $0xf6] ss:$2 sm:$0xff] }
 0x2f7   : > { %11855 = vmatmul.mubr.msk.f32.gmra.mrb[252].mxu1 %vm385_vm2, %v6420_v21 }
 0x2f8   : > { %12032 = vmatmul.mubr.msk.f32.gmra.mrb[32].mxu0 %vm385_vm2, %v7277_v43  ;;  %11857 = vmatprep.mubr.msk.f32.mxu1 %vm12580_vm5, %v12579_v10 }
 0x2f9   : > { %12034 = vmatprep.mubr.msk.f32.mxu0 %vm12580_vm5, %v12579_v10 }
 0x2fa   : > { %v5174_v44 = vpop.f32.mrb[148].mxu1 }
 0x2fb   : > { %v14361_v46 = vpop.f32.mrb[184].mxu0  ;;  %5250 = vst.msk [vmem:[#allocation5 + $0x10] sm:$0xff] %vm385_vm2, %v5174_v44  ;;  %v11558_v45 = vpop.f32.mrb[149].mxu1  ;;  %11858 = vmatmul.mubr.msk.f32.gmra.mrb[254].mxu1 %vm385_vm2, %v6422_v47 }
 0x2fc   : > { %v11676_v50 = vpop.f32.mrb[185].mxu0  ;;  %12035 = vmatmul.mubr.msk.f32.gmra.mrb[34].mxu0 %vm385_vm2, %v7279_v5  ;;  %11860 = vmatprep.mubr.msk.f32.mxu1 %vm12580_vm5, %v12579_v10  ;;  %v6442_v5 = vld [vmem:[#allocation2 + $0xf4] ss:$2 sm:$0xff] }
 0x2fd   : > { %12037 = vmatprep.mubr.msk.f32.mxu0 %vm12580_vm5, %v12579_v10  ;;  %v7299_v45 = vld [vmem:[#allocation2 + $0x106] ss:$2 sm:$0xff] }
 0x2fe   : > { %v5179_v24 = vpop.f32.mrb[150].mxu1 }
 0x2ff   : > { %v14370_v57 = vpop.f32.mrb[186].mxu0  ;;  %5251 = vst.msk [vmem:[#allocation5 + $0x18] sm:$0xff] %vm385_vm2, %v5179_v24  ;;  %v11561_v55 = vpop.f32.mrb[151].mxu1  ;;  %11861 = vmatmul.mubr.msk.f32.gmra.mrb[0].mxu1 %vm385_vm2, %v6424_v51 }
 0x300   : > { %v11679_v48 = vpop.f32.mrb[187].mxu0  ;;  %12038 = vmatmul.mubr.msk.f32.gmra.mrb[36].mxu0 %vm385_vm2, %v7281_v54  ;;  %11863 = vmatprep.mubr.msk.f32.mxu1 %vm12580_vm5, %v12579_v10  ;;  %v6444_v55 = vld [vmem:[#allocation2 + $0x104] ss:$2 sm:$0xff] }
 0x301   : > { %12040 = vmatprep.mubr.msk.f32.mxu0 %vm12580_vm5, %v12579_v10  ;;  %v7301_v48 = vld [vmem:[#allocation2 + $0x116] ss:$2 sm:$0xff] }
 0x302   : > { %v5184_v25 = vpop.f32.mrb[152].mxu1 }
 0x303   : > { %v14379_v58 = vpop.f32.mrb[188].mxu0  ;;  %5252 = vst.msk [vmem:[#allocation5 + $0x20] sm:$0xff] %vm385_vm2, %v5184_v25  ;;  %v11564_v2 = vpop.f32.mrb[153].mxu1  ;;  %11864 = vmatmul.mubr.msk.f32.gmra.mrb[2].mxu1 %vm385_vm2, %v6426_v9 }
 0x304   : > { %v11682_v3 = vpop.f32.mrb[189].mxu0  ;;  %12041 = vmatmul.mubr.msk.f32.gmra.mrb[38].mxu0 %vm385_vm2, %v7283_v59  ;;  %11866 = vmatprep.mubr.msk.f32.mxu1 %vm12580_vm5, %v12579_v10  ;;  %v6446_v59 = vld [vmem:[#allocation2 + $0x114] ss:$2 sm:$0x3f] }
 0x305   : > { %12043 = vmatprep.mubr.msk.f32.mxu0 %vm12580_vm5, %v12579_v10 }
 0x306   : > { %v5189_v28 = vpop.f32.mrb[154].mxu1 }
 0x307   : > { %v14388_v52 = vpop.f32.mrb[190].mxu0  ;;  %5253 = vst.msk [vmem:[#allocation5 + $0x28] sm:$0xff] %vm385_vm2, %v5189_v28  ;;  %v11567_v29 = vpop.f32.mrb[155].mxu1  ;;  %11867 = vmatmul.mubr.msk.f32.gmra.mrb[4].mxu1 %vm385_vm2, %v6428_v6  ;;  %v7303_v28 = vld [vmem:[#allocation2 + $0x126] ss:$2 sm:$0x3f] }
 0x308   : > { %v11685_v53 = vpop.f32.mrb[191].mxu0  ;;  %12044 = vmatmul.mubr.msk.f32.gmra.mrb[40].mxu0 %vm385_vm2, %v7285_v7  ;;  %11869 = vmatprep.mubr.msk.f32.mxu1 %vm12580_vm5, %v12579_v10 }
 0x309   : > { %12046 = vmatprep.mubr.msk.f32.mxu0 %vm12580_vm5, %v12579_v10 }
 0x30a   : > { %v5194_v11 = vpop.f32.mrb[156].mxu1 }
 0x30b   : > { %v14397_v12 = vpop.f32.mrb[192].mxu0  ;;  %5254 = vst.msk [vmem:[#allocation5 + $0x30] sm:$0xff] %vm385_vm2, %v5194_v11  ;;  %v11570_v16 = vpop.f32.mrb[157].mxu1  ;;  %11870 = vmatmul.mubr.msk.f32.gmra.mrb[6].mxu1 %vm385_vm2, %v6430_v15  ;;  %v6980_v11 = vld [vmem:[#allocation2 + $0x25] ss:$2 sm:$0xff] }
 0x30c   : > { %v11688_v56 = vpop.f32.mrb[193].mxu0  ;;  %12047 = vmatmul.mubr.msk.f32.gmra.mrb[42].mxu0 %vm385_vm2, %v7287_v13  ;;  %11872 = vmatprep.mubr.msk.f32.mxu1 %vm12580_vm5, %v12579_v10 }
 0x30d   : > { %12049 = vmatprep.mubr.msk.f32.mxu0 %vm12580_vm5, %v12579_v10 }
 0x30e   : > { %v5199_v19 = vpop.f32.mrb[158].mxu1 }
 0x30f   : > { %v14406_v20 = vpop.f32.mrb[194].mxu0  ;;  %5255 = vst.msk [vmem:[#allocation5 + $0x38] sm:$0xff] %vm385_vm2, %v5199_v19  ;;  %v11573_v22 = vpop.f32.mrb[159].mxu1  ;;  %11873 = vmatmul.mubr.msk.f32.gmra.mrb[8].mxu1 %vm385_vm2, %v6432_v14  ;;  %v6982_v19 = vld [vmem:[#allocation2 + $0x35] ss:$2 sm:$0xff] }
 0x310   : > { %v11691_v61 = vpop.f32.mrb[195].mxu0  ;;  %12050 = vmatmul.mubr.msk.f32.gmra.mrb[44].mxu0 %vm385_vm2, %v7289_v33  ;;  %11875 = vmatprep.mubr.msk.f32.mxu1 %vm12580_vm5, %v12579_v10 }
 0x311   : > { %12052 = vmatprep.mubr.msk.f32.mxu0 %vm12580_vm5, %v12579_v10  ;;  %v5505_v61 = vld [vmem:[#allocation5] sm:$0xff] }
 0x312   : > { %v5204_v23 = vpop.f32.mrb[160].mxu1 }
 0x313   : > { %v14415_v62 = vpop.f32.mrb[196].mxu0  ;;  %5256 = vst.msk [vmem:[#allocation5 + $0x40] sm:$0xff] %vm385_vm2, %v5204_v23  ;;  %v11576_v63 = vpop.f32.mrb[161].mxu1  ;;  %11876 = vmatmul.mubr.msk.f32.gmra.mrb[10].mxu1 %vm385_vm2, %v6434_v26  ;;  %v6984_v26 = vld [vmem:[#allocation2 + $0x45] ss:$2 sm:$0xff] }
 0x314   : > { %v11694_v36 = vpop.f32.mrb[197].mxu0  ;;  %12053 = vmatmul.mubr.msk.f32.gmra.mrb[46].mxu0 %vm385_vm2, %v7291_v27  ;;  %11878 = vmatprep.mubr.msk.f32.mxu1 %vm12580_vm5, %v12579_v10 }
 0x315   : > { %12055 = vmatprep.mubr.msk.f32.mxu0 %vm12580_vm5, %v12579_v10 }
 0x316   : > { %v5209_v17 = vpop.f32.mrb[162].mxu1 }
 0x317   : > { %v14424_v30 = vpop.f32.mrb[198].mxu0  ;;  %5257 = vst.msk [vmem:[#allocation5 + $0x48] sm:$0xff] %vm385_vm2, %v5209_v17  ;;  %v11579_v31 = vpop.f32.mrb[163].mxu1  ;;  %11879 = vmatmul.mubr.msk.f32.gmra.mrb[12].mxu1 %vm385_vm2, %v6436_v0  ;;  %v5506_v0 = vld [vmem:[#allocation5 + $0x8] sm:$0xff] }
 0x318   : > { %v11697_v18 = vpop.f32.mrb[199].mxu0  ;;  %12056 = vmatmul.mubr.msk.f32.gmra.mrb[48].mxu0 %vm385_vm2, %v7293_v37  ;;  %11881 = vmatprep.mubr.msk.f32.mxu1 %vm12580_vm5, %v12579_v10  ;;  %v6986_v31 = vld [vmem:[#allocation2 + $0x55] ss:$2 sm:$0xff] }
 0x319   : > { %12058 = vmatprep.mubr.msk.f32.mxu0 %vm12580_vm5, %v12579_v10 }
 0x31a   : > { %v5214_v34 = vpop.f32.mrb[164].mxu1 }
 0x31b   : > { %v14433_v60 = vpop.f32.mrb[200].mxu0  ;;  %5258 = vst.msk [vmem:[#allocation5 + $0x50] sm:$0xff] %vm385_vm2, %v5214_v34  ;;  %v11582_v35 = vpop.f32.mrb[165].mxu1  ;;  %11882 = vmatmul.mubr.msk.f32.gmra.mrb[14].mxu1 %vm385_vm2, %v6438_v1 }
 0x31c   : > { %v11700_v38 = vpop.f32.mrb[201].mxu0  ;;  %12059 = vmatmul.mubr.msk.f32.gmra.mrb[50].mxu0 %vm385_vm2, %v7295_v40  ;;  %11884 = vmatprep.mubr.msk.f32.mxu1 %vm12580_vm5, %v12579_v10  ;;  %v5507_v35 = vld [vmem:[#allocation5 + $0x10] sm:$0xff] }
 0x31d   : > { %12061 = vmatprep.mubr.msk.f32.mxu0 %vm12580_vm5, %v12579_v10 }
 0x31e   : > { %v5219_v8 = vpop.f32.mrb[166].mxu1 }
 0x31f   : > { %v14442_v41 = vpop.f32.mrb[202].mxu0  ;;  %5259 = vst.msk [vmem:[#allocation5 + $0x58] sm:$0xff] %vm385_vm2, %v5219_v8  ;;  %v11585_v21 = vpop.f32.mrb[167].mxu1  ;;  %11885 = vmatmul.mubr.msk.f32.gmra.mrb[16].mxu1 %vm385_vm2, %v6440_v42  ;;  %v6988_v8 = vld [vmem:[#allocation2 + $0x65] ss:$2 sm:$0xff] }
 0x320   : > { %v11703_v43 = vpop.f32.mrb[203].mxu0  ;;  %12062 = vmatmul.mubr.msk.f32.gmra.mrb[52].mxu0 %vm385_vm2, %v7297_v4  ;;  %11887 = vmatprep.mubr.msk.f32.mxu1 %vm12580_vm5, %v12579_v10 }
 0x321   : > { %12064 = vmatprep.mubr.msk.f32.mxu0 %vm12580_vm5, %v12579_v10 }
 0x322   : > { %v5224_v44 = vpop.f32.mrb[168].mxu1 }
 0x323   : > { %v14451_v47 = vpop.f32.mrb[204].mxu0  ;;  %5260 = vst.msk [vmem:[#allocation5 + $0x60] sm:$0xff] %vm385_vm2, %v5224_v44  ;;  %v11588_v50 = vpop.f32.mrb[169].mxu1  ;;  %11888 = vmatmul.mubr.msk.f32.gmra.mrb[18].mxu1 %vm385_vm2, %v6442_v5 }
 0x324   : > { %v11706_v24 = vpop.f32.mrb[205].mxu0  ;;  %12065 = vmatmul.mubr.msk.f32.gmra.mrb[54].mxu0 %vm385_vm2, %v7299_v45  ;;  %11890 = vmatprep.mubr.msk.f32.mxu1 %vm12580_vm5, %v12579_v10  ;;  %v5508_v45 = vld [vmem:[#allocation5 + $0x18] sm:$0xff] }
 0x325   : > { %12067 = vmatprep.mubr.msk.f32.mxu0 %vm12580_vm5, %v12579_v10  ;;  %v6990_v24 = vld [vmem:[#allocation2 + $0x75] ss:$2 sm:$0xff] }
 0x326   : > { %v5229_v51 = vpop.f32.mrb[170].mxu1 }
 0x327   : > { %v14460_v54 = vpop.f32.mrb[206].mxu0  ;;  %5261 = vst.msk [vmem:[#allocation5 + $0x68] sm:$0xff] %vm385_vm2, %v5229_v51  ;;  %v11591_v25 = vpop.f32.mrb[171].mxu1  ;;  %11891 = vmatmul.mubr.msk.f32.gmra.mrb[20].mxu1 %vm385_vm2, %v6444_v55 }
 0x328   : > { %v11709_v9 = vpop.f32.mrb[207].mxu0  ;;  %12068 = vmatmul.mubr.msk.f32.gmra.mrb[56].mxu0 %vm385_vm2, %v7301_v48  ;;  %11893 = vmatprep.mubr.msk.f32.mxu1 %vm12580_vm5, %v12579_v10 }
 0x329   : > { %12070 = vmatprep.mubr.msk.f32.mxu0 %vm12580_vm5, %v12579_v10 }
 0x32a   : > { %v5234_v2 = vpop.f32.mrb[172].mxu1 }
 0x32b   : > { %v14469_v3 = vpop.f32.mrb[208].mxu0  ;;  %5262 = vst.msk [vmem:[#allocation5 + $0x70] sm:$0xff] %vm385_vm2, %v5234_v2  ;;  %v11594_v6 = vpop.f32.mrb[173].mxu1  ;;  %11894 = vmatmul.mubr.msk.f32.gmra.mrb[22].mxu1 %vm385_vm2, %v6446_v59  ;;  %v5509_v59 = vld [vmem:[#allocation5 + $0x20] sm:$0xff] }
 0x32c   : > { %v11712_v7 = vpop.f32.mrb[209].mxu0  ;;  %12071 = vmatmul.mubr.msk.f32.gmra.mrb[58].mxu0 %vm385_vm2, %v7303_v28  ;;  %11963 = vmatprep.mubr.msk.f32.mxu1 %vm12580_vm5, %v12579_v10  ;;  %v6992_v28 = vld [vmem:[#allocation2 + $0x85] ss:$2 sm:$0xff] }
 0x32d   : > { %12104 = vmatprep.mubr.msk.f32.mxu0 %vm12580_vm5, %v12579_v10 }
 0x32e   : > { %v5239_v29 = vpop.f32.mrb[174].mxu1 }
 0x32f   : > { %v14478_v53 = vpop.f32.mrb[210].mxu0  ;;  %5263 = vst.msk [vmem:[#allocation5 + $0x78] sm:$0xff] %vm385_vm2, %v5239_v29  ;;  %v11597_v15 = vpop.f32.mrb[175].mxu1  ;;  %11964 = vmatmul.mubr.msk.f32.vlgmr.msra.gmra.mrb[24].mxu1 %vm385_vm2, %v6980_v11 }
 0x330   : > { %v11715_v13 = vpop.f32.mrb[211].mxu0  ;;  %11966 = vmatprep.mubr.msk.f32.mxu1 %vm12580_vm5, %v12579_v10 }
 0x331   : > { %v5510_v13 = vld [vmem:[#allocation5 + $0x28] sm:$0xff] }
 0x332   : > { %v5244_v16 = vpop.f32.mrb[176].mxu1 }
 0x333   : > { %v14484_v56 = vpop.f32.mrb[212].mxu0  ;;  %5264 = vst.msk [vmem:[#allocation5 + $0x80] sm:$0x3f] %vm857_vm3, %v5244_v16  ;;  %v11600_v14 = vpop.f32.mrb[177].mxu1  ;;  %11967 = vmatmul.mubr.msk.f32.gmra.mrb[26].mxu1 %vm385_vm2, %v6982_v19  ;;  %v6994_v19 = vld [vmem:[#allocation2 + $0x95] ss:$2 sm:$0xff] }
 0x334   : > { %v11718_v33 = vpop.f32.mrb[213].mxu0  ;;  %11969 = vmatprep.mubr.msk.f32.mxu1 %vm12580_vm5, %v12579_v10 }
 0x336   : > { %v5421_v22 = vpop.f32.mrb[178].mxu1 }
 0x337   : > { %v14490_v23 = vpop.f32.mrb[214].mxu0  ;;  %v5522_v27 = vadd.f32 %v5505_v61, %v5421_v22  ;;  %v11611_v63 = vpop.f32.mrb[179].mxu1  ;;  %11970 = vmatmul.mubr.msk.f32.gmra.mrb[28].mxu1 %vm385_vm2, %v6984_v26 }
 0x338   : > { %v11788_v36 = vpop.f32.mrb[215].mxu0  ;;  %11972 = vmatprep.mubr.msk.f32.mxu1 %vm12580_vm5, %v12579_v10 }
 0x339   : > { %5539 = vst.msk [vmem:[#allocation5] sm:$0xff] %vm385_vm2, %v5522_v27  ;;  %v5511_v27 = vld [vmem:[#allocation5 + $0x30] sm:$0xff] }
 0x33a   : > { %v5426_v17 = vpop.f32.mrb[180].mxu1  ;;  %v6996_v36 = vld [vmem:[#allocation2 + $0xa5] ss:$2 sm:$0xff] }
 0x33b   : > { %v14496_v37 = vpop.f32.mrb[216].mxu0  ;;  %v5523_v18 = vadd.f32 %v5506_v0, %v5426_v17  ;;  %v11614_v34 = vpop.f32.mrb[181].mxu1  ;;  %11973 = vmatmul.mubr.msk.f32.gmra.mrb[30].mxu1 %vm385_vm2, %v6986_v31 }
 0x33c   : > { %v11791_v1 = vpop.f32.mrb[217].mxu0  ;;  %11975 = vmatprep.mubr.msk.f32.mxu1 %vm12580_vm5, %v12579_v10 }
 0x33d   : > { %5540 = vst.msk [vmem:[#allocation5 + $0x8] sm:$0xff] %vm385_vm2, %v5523_v18  ;;  %v5512_v1 = vld [vmem:[#allocation5 + $0x38] sm:$0xff] }
 0x33e   : > { %v5431_v40 = vpop.f32.mrb[182].mxu1 }
 0x33f   : > { %v14502_v38 = vpop.f32.mrb[218].mxu0  ;;  %v5524_v42 = vadd.f32 %v5507_v35, %v5431_v40  ;;  %v11617_v4 = vpop.f32.mrb[183].mxu1  ;;  %11976 = vmatmul.mubr.msk.f32.gmra.mrb[32].mxu1 %vm385_vm2, %v6988_v8  ;;  %v6998_v35 = vld [vmem:[#allocation2 + $0xb5] ss:$2 sm:$0xff] }
 0x340   : > { %v11794_v21 = vpop.f32.mrb[219].mxu0  ;;  %11978 = vmatprep.mubr.msk.f32.mxu1 %vm12580_vm5, %v12579_v10  ;;  %v5796_v43 = vld [vmem:[#allocation5] sm:$0xff] }
 0x341   : > { %5541 = vst.msk [vmem:[#allocation5 + $0x10] sm:$0xff] %vm385_vm2, %v5524_v42  ;;  %v5813_v44 = vadd.f32 %v5796_v43, %v14105_v32 }
 0x342   : > { %v5436_v5 = vpop.f32.mrb[184].mxu1 }
 0x343   : > { %v14509_v50 = vpop.f32.mrb[220].mxu0  ;;  %v5525_v51 = vadd.f32 %v5508_v45, %v5436_v5  ;;  %v11620_v55 = vpop.f32.mrb[185].mxu1  ;;  %11979 = vmatmul.mubr.msk.f32.gmra.mrb[34].mxu1 %vm385_vm2, %v6990_v24  ;;  %5830 = vst.msk [vmem:[#allocation5] sm:$0xff] %vm385_vm2, %v5813_v44  ;;  %v5513_v44 = vld [vmem:[#allocation5 + $0x40] sm:$0xff]  ;;  %v7000_v45 = vld [vmem:[#allocation2 + $0xc5] ss:$2 sm:$0xff] }
 0x344   : > { %v11797_v48 = vpop.f32.mrb[221].mxu0  ;;  %11981 = vmatprep.mubr.msk.f32.mxu1 %vm12580_vm5, %v12579_v10  ;;  %v5797_v25 = vld [vmem:[#allocation5 + $0x8] sm:$0xff] }
 0x345   : > { %5542 = vst.msk [vmem:[#allocation5 + $0x18] sm:$0xff] %vm385_vm2, %v5525_v51  ;;  %v5814_v32 = vadd.f32 %v5797_v25, %v14347_v39 }
 0x346   : > { %v5441_v9 = vpop.f32.mrb[186].mxu1 }
 0x347   : > { %v14517_v2 = vpop.f32.mrb[222].mxu0  ;;  %v5526_v6 = vadd.f32 %v5509_v59, %v5441_v9  ;;  %v11623_v7 = vpop.f32.mrb[187].mxu1  ;;  %11982 = vmatmul.mubr.msk.f32.gmra.mrb[36].mxu1 %vm385_vm2, %v6992_v28  ;;  %5831 = vst.msk [vmem:[#allocation5 + $0x8] sm:$0xff] %vm385_vm2, %v5814_v32  ;;  %v5514_v32 = vld [vmem:[#allocation5 + $0x48] sm:$0xff] }
 0x348   : > { %v11800_v29 = vpop.f32.mrb[223].mxu0  ;;  %11984 = vmatprep.mubr.msk.f32.mxu1 %vm12580_vm5, %v12579_v10  ;;  %v5798_v11 = vld [vmem:[#allocation5 + $0x10] sm:$0xff]  ;;  %v7002_v59 = vld [vmem:[#allocation2 + $0xd5] ss:$2 sm:$0xff] }
 0x349   : > { %5543 = vst.msk [vmem:[#allocation5 + $0x20] sm:$0xff] %vm385_vm2, %v5526_v6  ;;  %v5815_v39 = vadd.f32 %v5798_v11, %v14361_v46 }
 0x34a   : > { %v5446_v15 = vpop.f32.mrb[188].mxu1 }
 0x34b   : > { %v14525_v16 = vpop.f32.mrb[224].mxu0  ;;  %v5527_v14 = vadd.f32 %v5510_v13, %v5446_v15  ;;  %v11626_v33 = vpop.f32.mrb[189].mxu1  ;;  %11985 = vmatmul.mubr.msk.f32.gmra.mrb[38].mxu1 %vm385_vm2, %v6994_v19  ;;  %5832 = vst.msk [vmem:[#allocation5 + $0x10] sm:$0xff] %vm385_vm2, %v5815_v39  ;;  %v5515_v39 = vld [vmem:[#allocation5 + $0x50] sm:$0xff] }
 0x34c   : > { %v11803_v22 = vpop.f32.mrb[225].mxu0  ;;  %11987 = vmatprep.mubr.msk.f32.mxu1 %vm12580_vm5, %v12579_v10  ;;  %v5799_v61 = vld [vmem:[#allocation5 + $0x18] sm:$0xff] }
 0x34d   : > { %5544 = vst.msk [vmem:[#allocation5 + $0x28] sm:$0xff] %vm385_vm2, %v5527_v14  ;;  %v5816_v46 = vadd.f32 %v5799_v61, %v14370_v57  ;;  %v7004_v13 = vld [vmem:[#allocation2 + $0xe5] ss:$2 sm:$0xff] }
 0x34e   : > { %v5451_v26 = vpop.f32.mrb[190].mxu1 }
 0x34f   : > { %v14533_v63 = vpop.f32.mrb[226].mxu0  ;;  %v5528_v17 = vadd.f32 %v5511_v27, %v5451_v26  ;;  %v11629_v0 = vpop.f32.mrb[191].mxu1  ;;  %11988 = vmatmul.mubr.msk.f32.gmra.mrb[40].mxu1 %vm385_vm2, %v6996_v36  ;;  %5833 = vst.msk [vmem:[#allocation5 + $0x18] sm:$0xff] %vm385_vm2, %v5816_v46  ;;  %v5516_v46 = vld [vmem:[#allocation5 + $0x58] sm:$0xff] }
 0x350   : > { %v11806_v31 = vpop.f32.mrb[227].mxu0  ;;  %11990 = vmatprep.mubr.msk.f32.mxu1 %vm12580_vm5, %v12579_v10  ;;  %v5800_v18 = vld [vmem:[#allocation5 + $0x20] sm:$0xff] }
 0x351   : > { %5545 = vst.msk [vmem:[#allocation5 + $0x30] sm:$0xff] %vm385_vm2, %v5528_v17  ;;  %v5817_v57 = vadd.f32 %v5800_v18, %v14379_v58  ;;  %v7006_v27 = vld [vmem:[#allocation2 + $0xf5] ss:$2 sm:$0xff] }
 0x352   : > { %v5456_v34 = vpop.f32.mrb[192].mxu1 }
 0x353   : > { %v14541_v40 = vpop.f32.mrb[228].mxu0  ;;  %v5529_v8 = vadd.f32 %v5512_v1, %v5456_v34  ;;  %v11632_v42 = vpop.f32.mrb[193].mxu1  ;;  %11991 = vmatmul.mubr.msk.f32.gmra.mrb[42].mxu1 %vm385_vm2, %v6998_v35  ;;  %5834 = vst.msk [vmem:[#allocation5 + $0x20] sm:$0xff] %vm385_vm2, %v5817_v57  ;;  %v5517_v57 = vld [vmem:[#allocation5 + $0x60] sm:$0xff]  ;;  %v7008_v1 = vld [vmem:[#allocation2 + $0x105] ss:$2 sm:$0xff] }
 0x354   : > { %v11809_v4 = vpop.f32.mrb[229].mxu0  ;;  %11993 = vmatprep.mubr.msk.f32.mxu1 %vm12580_vm5, %v12579_v10  ;;  %v5801_v21 = vld [vmem:[#allocation5 + $0x28] sm:$0xff] }
 0x355   : > { %5546 = vst.msk [vmem:[#allocation5 + $0x38] sm:$0xff] %vm385_vm2, %v5529_v8  ;;  %v5818_v58 = vadd.f32 %v5801_v21, %v14388_v52 }
 0x356   : > { %v5461_v43 = vpop.f32.mrb[194].mxu1 }
 0x357   : > { %v14549_v5 = vpop.f32.mrb[230].mxu0  ;;  %v5530_v24 = vadd.f32 %v5513_v44, %v5461_v43  ;;  %v11635_v51 = vpop.f32.mrb[195].mxu1  ;;  %11994 = vmatmul.mubr.msk.f32.gmra.mrb[44].mxu1 %vm385_vm2, %v7000_v45  ;;  %5835 = vst.msk [vmem:[#allocation5 + $0x28] sm:$0xff] %vm385_vm2, %v5818_v58  ;;  %v5518_v58 = vld [vmem:[#allocation5 + $0x68] sm:$0xff] }
 0x358   : > { %v11812_v55 = vpop.f32.mrb[231].mxu0  ;;  %11996 = vmatprep.mubr.msk.f32.mxu1 %vm12580_vm5, %v12579_v10  ;;  %v5802_v48 = vld [vmem:[#allocation5 + $0x30] sm:$0xff]  ;;  %v7010_v44 = vld [vmem:[#allocation2 + $0x115] ss:$2 sm:$0xff] }
 0x359   : > { %5547 = vst.msk [vmem:[#allocation5 + $0x40] sm:$0xff] %vm385_vm2, %v5530_v24  ;;  %v5819_v52 = vadd.f32 %v5802_v48, %v14397_v12 }
 0x35a   : > { %v5466_v25 = vpop.f32.mrb[196].mxu1 }
 0x35b   : > { %v14557_v9 = vpop.f32.mrb[232].mxu0  ;;  %v5531_v28 = vadd.f32 %v5514_v32, %v5466_v25  ;;  %v11638_v6 = vpop.f32.mrb[197].mxu1  ;;  %11997 = vmatmul.mubr.msk.f32.gmra.mrb[46].mxu1 %vm385_vm2, %v7002_v59  ;;  %5836 = vst.msk [vmem:[#allocation5 + $0x30] sm:$0xff] %vm385_vm2, %v5819_v52  ;;  %v5519_v52 = vld [vmem:[#allocation5 + $0x70] sm:$0xff] }
 0x35c   : > { %v11815_v7 = vpop.f32.mrb[233].mxu0  ;;  %11999 = vmatprep.mubr.msk.f32.mxu1 %vm12580_vm5, %v12579_v10  ;;  %v5803_v29 = vld [vmem:[#allocation5 + $0x38] sm:$0xff]  ;;  %v7012_v32 = vld [vmem:[#allocation2 + $0x125] ss:$2 sm:$0x3f] }
 0x35d   : > { %5548 = vst.msk [vmem:[#allocation5 + $0x48] sm:$0xff] %vm385_vm2, %v5531_v28  ;;  %v5820_v12 = vadd.f32 %v5803_v29, %v14406_v20 }
 0x35e   : > { %v5471_v11 = vpop.f32.mrb[198].mxu1 }
 0x35f   : > { %v14565_v15 = vpop.f32.mrb[234].mxu0  ;;  %v5532_v19 = vadd.f32 %v5515_v39, %v5471_v11  ;;  %v11641_v14 = vpop.f32.mrb[199].mxu1  ;;  %12000 = vmatmul.mubr.msk.f32.gmra.mrb[48].mxu1 %vm385_vm2, %v7004_v13  ;;  %5837 = vst.msk [vmem:[#allocation5 + $0x38] sm:$0xff] %vm385_vm2, %v5820_v12  ;;  %v5520_v12 = vld [vmem:[#allocation5 + $0x78] sm:$0xff] }
 0x360   : > { %v11818_v33 = vpop.f32.mrb[235].mxu0  ;;  %12002 = vmatprep.mubr.msk.f32.mxu1 %vm12580_vm5, %v12579_v10  ;;  %v5804_v22 = vld [vmem:[#allocation5 + $0x40] sm:$0xff] }
 0x361   : > { %5549 = vst.msk [vmem:[#allocation5 + $0x50] sm:$0xff] %vm385_vm2, %v5532_v19  ;;  %v5821_v20 = vadd.f32 %v5804_v22, %v14415_v62 }
 0x362   : > { %v5476_v61 = vpop.f32.mrb[200].mxu1 }
 0x363   : > { %v14573_v26 = vpop.f32.mrb[236].mxu0  ;;  %v5533_v36 = vadd.f32 %v5516_v46, %v5476_v61  ;;  %v11644_v17 = vpop.f32.mrb[201].mxu1  ;;  %12003 = vmatmul.mubr.msk.f32.gmra.mrb[50].mxu1 %vm385_vm2, %v7006_v27  ;;  %5838 = vst.msk [vmem:[#allocation5 + $0x40] sm:$0xff] %vm385_vm2, %v5821_v20  ;;  %v5521_v20 = vld [vmem:[#allocation5 + $0x80] sm:$0x3f] }
 0x364   : > { %v11821_v0 = vpop.f32.mrb[237].mxu0  ;;  %12005 = vmatprep.mubr.msk.f32.mxu1 %vm12580_vm5, %v12579_v10  ;;  %v5805_v31 = vld [vmem:[#allocation5 + $0x48] sm:$0xff] }
 0x365   : > { %5550 = vst.msk [vmem:[#allocation5 + $0x58] sm:$0xff] %vm385_vm2, %v5533_v36  ;;  %v5822_v62 = vadd.f32 %v5805_v31, %v14424_v30  ;;  %v6071_v31 = vld [vmem:[#allocation5] sm:$0xff] }
 0x366   : > { %v5481_v18 = vpop.f32.mrb[202].mxu1 }
 0x367   : > { %v14581_v34 = vpop.f32.mrb[238].mxu0  ;;  %v5534_v35 = vadd.f32 %v5517_v57, %v5481_v18  ;;  %v11647_v8 = vpop.f32.mrb[203].mxu1  ;;  %12006 = vmatmul.mubr.msk.f32.gmra.mrb[52].mxu1 %vm385_vm2, %v7008_v1  ;;  %5839 = vst.msk [vmem:[#allocation5 + $0x48] sm:$0xff] %vm385_vm2, %v5822_v62 }
 0x368   : > { %v11824_v42 = vpop.f32.mrb[239].mxu0  ;;  %12008 = vmatprep.mubr.msk.f32.mxu1 %vm12580_vm5, %v12579_v10  ;;  %v5806_v4 = vld [vmem:[#allocation5 + $0x50] sm:$0xff] }
 0x369   : > { %5551 = vst.msk [vmem:[#allocation5 + $0x60] sm:$0xff] %vm385_vm2, %v5534_v35  ;;  %v5823_v30 = vadd.f32 %v5806_v4, %v14433_v60  ;;  %v6072_v42 = vld [vmem:[#allocation5 + $0x8] sm:$0xff] }
 0x36a   : > { %v5486_v21 = vpop.f32.mrb[204].mxu1 }
 0x36b   : > { %v14589_v43 = vpop.f32.mrb[240].mxu0  ;;  %v5535_v45 = vadd.f32 %v5518_v58, %v5486_v21  ;;  %v11650_v24 = vpop.f32.mrb[205].mxu1  ;;  %12009 = vmatmul.mubr.msk.f32.gmra.mrb[54].mxu1 %vm385_vm2, %v7010_v44  ;;  %5840 = vst.msk [vmem:[#allocation5 + $0x50] sm:$0xff] %vm385_vm2, %v5823_v30 }
 0x36c   : > { %v11827_v51 = vpop.f32.mrb[241].mxu0  ;;  %12011 = vmatprep.mubr.msk.f32.mxu1 %vm12580_vm5, %v12579_v10  ;;  %v5807_v55 = vld [vmem:[#allocation5 + $0x58] sm:$0xff]  ;;  %v6073_v24 = vld [vmem:[#allocation5 + $0x10] sm:$0xff] }
 0x36d   : > { %5552 = vst.msk [vmem:[#allocation5 + $0x68] sm:$0xff] %vm385_vm2, %v5535_v45  ;;  %v5824_v60 = vadd.f32 %v5807_v55, %v14442_v41 }
 0x36e   : > { %v5491_v48 = vpop.f32.mrb[206].mxu1 }
 0x36f   : > { %v14597_v25 = vpop.f32.mrb[242].mxu0  ;;  %v5536_v59 = vadd.f32 %v5519_v52, %v5491_v48  ;;  %v11653_v28 = vpop.f32.mrb[207].mxu1  ;;  %12012 = vmatmul.mubr.msk.f32.gmra.mrb[56].mxu1 %vm385_vm2, %v7012_v32  ;;  %5841 = vst.msk [vmem:[#allocation5 + $0x58] sm:$0xff] %vm385_vm2, %v5824_v60 }
 0x370   : > { %v11830_v6 = vpop.f32.mrb[243].mxu0  ;;  %v5808_v7 = vld [vmem:[#allocation5 + $0x60] sm:$0xff]  ;;  %12081 = vmatprep.mubr.msk.f32.mxu1 %vm12580_vm5, %v12579_v10 }
 0x371   : > { %5553 = vst.msk [vmem:[#allocation5 + $0x70] sm:$0xff] %vm385_vm2, %v5536_v59  ;;  %v5825_v41 = vadd.f32 %v5808_v7, %v14451_v47  ;;  %v6074_v59 = vld [vmem:[#allocation5 + $0x18] sm:$0xff] }
 0x372   : > { %v5496_v29 = vpop.f32.mrb[208].mxu1 }
 0x373   : > { %v14605_v11 = vpop.f32.mrb[244].mxu0  ;;  %v5537_v39 = vadd.f32 %v5520_v12, %v5496_v29  ;;  %v11656_v13 = vpop.f32.mrb[209].mxu1  ;;  %5842 = vst.msk [vmem:[#allocation5 + $0x60] sm:$0xff] %vm385_vm2, %v5825_v41 }
 0x374   : > { %v11833_v19 = vpop.f32.mrb[245].mxu0  ;;  %v5809_v14 = vld [vmem:[#allocation5 + $0x68] sm:$0xff] }
 0x375   : > { %5554 = vst.msk [vmem:[#allocation5 + $0x78] sm:$0xff] %vm385_vm2, %v5537_v39  ;;  %v5826_v33 = vadd.f32 %v5809_v14, %v14460_v54  ;;  %v6075_v39 = vld [vmem:[#allocation5 + $0x20] sm:$0xff] }
 0x376   : > { %v5501_v22 = vpop.f32.mrb[210].mxu1 }
 0x377   : > { %v14610_v61 = vpop.f32.mrb[246].mxu0  ;;  %v5538_v46 = vadd.f32 %v5521_v20, %v5501_v22  ;;  %v11659_v47 = vpop.f32.mrb[211].mxu1  ;;  %5843 = vst.msk [vmem:[#allocation5 + $0x68] sm:$0xff] %vm385_vm2, %v5826_v33 }
 0x378   : > { %v11836_v27 = vpop.f32.mrb[247].mxu0  ;;  %v5810_v36 = vld [vmem:[#allocation5 + $0x70] sm:$0xff] }
 0x379   : > { %5555 = vst.msk [vmem:[#allocation5 + $0x80] sm:$0x3f] %vm857_vm3, %v5538_v46  ;;  %v5827_v17 = vadd.f32 %v5810_v36, %v14469_v3  ;;  %v6076_v46 = vld [vmem:[#allocation5 + $0x28] sm:$0xff] }
 0x37a   : > { %v5987_v0 = vpop.f32.mrb[212].mxu1 }
 0x37b   : > { %v14615_v62 = vpop.f32.mrb[248].mxu0  ;;  %v6088_v18 = vadd.f32 %v6071_v31, %v5987_v0  ;;  %v11729_v54 = vpop.f32.mrb[213].mxu1  ;;  %5844 = vst.msk [vmem:[#allocation5 + $0x70] sm:$0xff] %vm385_vm2, %v5827_v17 }
 0x37c   : > { %v11906_v57 = vpop.f32.mrb[249].mxu0  ;;  %v5811_v1 = vld [vmem:[#allocation5 + $0x78] sm:$0xff] }
 0x37d   : > { %6105 = vst.msk [vmem:[#allocation5] sm:$0xff] %vm385_vm2, %v6088_v18  ;;  %v5828_v35 = vadd.f32 %v5811_v1, %v14478_v53  ;;  %v6077_v18 = vld [vmem:[#allocation5 + $0x30] sm:$0xff] }
 0x37e   : > { %v5992_v8 = vpop.f32.mrb[214].mxu1 }
 0x37f   : > { %v14620_v4 = vpop.f32.mrb[250].mxu0  ;;  %v6089_v30 = vadd.f32 %v6072_v42, %v5992_v8  ;;  %v11732_v3 = vpop.f32.mrb[215].mxu1  ;;  %5845 = vst.msk [vmem:[#allocation5 + $0x78] sm:$0xff] %vm385_vm2, %v5828_v35 }
 0x380   : > { %v11909_v21 = vpop.f32.mrb[251].mxu0  ;;  %v5812_v58 = vld [vmem:[#allocation5 + $0x80] sm:$0x3f] }
 0x381   : > { %v5829_v44 = vadd.f32 %v5812_v58, %v14484_v56  ;;  %6106 = vst.msk [vmem:[#allocation5 + $0x8] sm:$0xff] %vm385_vm2, %v6089_v30  ;;  %v6078_v30 = vld [vmem:[#allocation5 + $0x38] sm:$0xff] }
 0x382   : > { %v5997_v45 = vpop.f32.mrb[216].mxu1 }
 0x383   : > { %v14625_v51 = vpop.f32.mrb[252].mxu0  ;;  %5846 = vst.msk [vmem:[#allocation5 + $0x80] sm:$0x3f] %vm857_vm3, %v5829_v44  ;;  %v6090_v53 = vadd.f32 %v6073_v24, %v5997_v45  ;;  %v11735_v55 = vpop.f32.mrb[217].mxu1 }
 0x384   : > { %v11912_v60 = vpop.f32.mrb[253].mxu0  ;;  %v6362_v48 = vld [vmem:[#allocation5] sm:$0xff] }
 0x385   : > { %6107 = vst.msk [vmem:[#allocation5 + $0x10] sm:$0xff] %vm385_vm2, %v6090_v53  ;;  %v6379_v52 = vadd.f32 %v6362_v48, %v14490_v23  ;;  %v6079_v53 = vld [vmem:[#allocation5 + $0x40] sm:$0xff] }
 0x386   : > { %v6002_v32 = vpop.f32.mrb[218].mxu1 }
 0x387   : > { %v14630_v28 = vpop.f32.mrb[254].mxu0  ;;  %v6091_v56 = vadd.f32 %v6074_v59, %v6002_v32  ;;  %v11738_v6 = vpop.f32.mrb[219].mxu1  ;;  %6396 = vst.msk [vmem:[#allocation5] sm:$0xff] %vm385_vm2, %v6379_v52  ;;  %v7609_v52 = vld [vmem:[%s15367_s5] sm:$0xff]  ;;  %v7610_v32 = vld [vmem:[%s15367_s5 + $0x8] sm:$0xff] }
 0x388   : > { %v11915_v7 = vpop.f32.mrb[255].mxu0  ;;  %v6363_v41 = vld [vmem:[#allocation5 + $0x8] sm:$0xff]  ;;  %v10267_v6 = vld [vmem:[%s15367_s5 + $0x28] sm:$0xff] }
 0x389   : > { %6108 = vst.msk [vmem:[#allocation5 + $0x18] sm:$0xff] %vm385_vm2, %v6091_v56  ;;  %v6380_v29 = vadd.f32 %v6363_v41, %v14496_v37  ;;  %v12445_v56 = vpack.c.bf16 %v7610_v32, %v7609_v52  ;;  %v6084_v32 = vld [vmem:[#allocation5 + $0x68] sm:$0xff] }
 0x38a   : > { %v6007_v12 = vpop.f32.mrb[220].mxu1 }
 0x38b   : > { %v14635_v13 = vpop.f32.mrb[0].mxu0  ;;  %v6092_v19 = vadd.f32 %v6075_v39, %v6007_v12  ;;  %v11741_v23 = vpop.f32.mrb[221].mxu1  ;;  %6397 = vst.msk [vmem:[#allocation5 + $0x8] sm:$0xff] %vm385_vm2, %v6380_v29  ;;  %v6080_v12 = vld [vmem:[#allocation5 + $0x48] sm:$0xff]  ;;  %12446 = vmatpush3.bf16.msra.mxu1 %v12445_v56 }
 0x38c   : > { %v11918_v14 = vpop.f32.mrb[1].mxu0  ;;  %v6364_v33 = vld [vmem:[#allocation5 + $0x10] sm:$0xff]  ;;  %12447 = vmatprep.subr.bf16.mxu1 %v12578_v49 }
 0x38d   : > { %6109 = vst.msk [vmem:[#allocation5 + $0x20] sm:$0xff] %vm385_vm2, %v6092_v19  ;;  %v6381_v22 = vadd.f32 %v6364_v33, %v14502_v38 }
 0x38e   : > { %v6012_v20 = vpop.f32.mrb[222].mxu1 }
 0x38f   : > { %v14640_v47 = vpop.f32.mrb[2].mxu0  ;;  %v6093_v27 = vadd.f32 %v6076_v46, %v6012_v20  ;;  %v11744_v37 = vpop.f32.mrb[223].mxu1  ;;  %6398 = vst.msk [vmem:[#allocation5 + $0x10] sm:$0xff] %vm385_vm2, %v6381_v22  ;;  %v6081_v20 = vld [vmem:[#allocation5 + $0x50] sm:$0xff] }
 0x390   : > { %v11921_v36 = vpop.f32.mrb[3].mxu0  ;;  %v6365_v17 = vld [vmem:[#allocation5 + $0x18] sm:$0xff] }
 0x391   : > { %6110 = vst.msk [vmem:[#allocation5 + $0x28] sm:$0xff] %vm385_vm2, %v6093_v27  ;;  %v6382_v0 = vadd.f32 %v6365_v17, %v14509_v50 }
 0x392   : > { %v6017_v31 = vpop.f32.mrb[224].mxu1 }
 0x393   : > { %v14645_v54 = vpop.f32.mrb[4].mxu0  ;;  %v6094_v57 = vadd.f32 %v6077_v18, %v6017_v31  ;;  %v11747_v38 = vpop.f32.mrb[225].mxu1  ;;  %6399 = vst.msk [vmem:[#allocation5 + $0x18] sm:$0xff] %vm385_vm2, %v6382_v0  ;;  %v6082_v18 = vld [vmem:[#allocation5 + $0x58] sm:$0xff] }
 0x394   : > { %v11924_v1 = vpop.f32.mrb[5].mxu0  ;;  %v6366_v35 = vld [vmem:[#allocation5 + $0x20] sm:$0xff] }
 0x395   : > { %6111 = vst.msk [vmem:[#allocation5 + $0x30] sm:$0xff] %vm385_vm2, %v6094_v57  ;;  %v6383_v8 = vadd.f32 %v6366_v35, %v14517_v2 }
 0x396   : > { %v6022_v42 = vpop.f32.mrb[226].mxu1 }
 0x397   : > { %v14650_v3 = vpop.f32.mrb[6].mxu0  ;;  %v6095_v21 = vadd.f32 %v6078_v30, %v6022_v42  ;;  %v11750_v50 = vpop.f32.mrb[227].mxu1  ;;  %6400 = vst.msk [vmem:[#allocation5 + $0x20] sm:$0xff] %vm385_vm2, %v6383_v8  ;;  %v6083_v30 = vld [vmem:[#allocation5 + $0x60] sm:$0xff] }
 0x398   : > { %v11927_v58 = vpop.f32.mrb[7].mxu0  ;;  %v6367_v44 = vld [vmem:[#allocation5 + $0x28] sm:$0xff] }
 0x399   : > { %6112 = vst.msk [vmem:[#allocation5 + $0x38] sm:$0xff] %vm385_vm2, %v6095_v21  ;;  %v6384_v45 = vadd.f32 %v6367_v44, %v14525_v16  ;;  %v10266_v16 = vld [vmem:[%s15367_s5 + $0x20] sm:$0xff]  ;;  %v7611_v44 = vld [vmem:[%s15367_s5 + $0x10] sm:$0xff] }
 0x39a   : > { %v6027_v24 = vpop.f32.mrb[228].mxu1  ;;  %v12451_v41 = vpack.c.bf16 %v10267_v6, %v10266_v16 }
 0x39b   : > { %v14655_v55 = vpop.f32.mrb[8].mxu0  ;;  %v6096_v60 = vadd.f32 %v6079_v53, %v6027_v24  ;;  %v11753_v2 = vpop.f32.mrb[229].mxu1  ;;  %6401 = vst.msk [vmem:[#allocation5 + $0x28] sm:$0xff] %vm385_vm2, %v6384_v45  ;;  %v7612_v45 = vld [vmem:[%s15367_s5 + $0x18] sm:$0xff] }
 0x39c   : > { %v11930_v48 = vpop.f32.mrb[9].mxu0  ;;  %v6368_v59 = vld [vmem:[#allocation5 + $0x30] sm:$0xff]  ;;  %12452 = vmatpush3.bf16.msra.mxu0 %v12451_v41  ;;  %v12448_v53 = vpack.c.bf16 %v7612_v45, %v7611_v44 }
 0x39d   : > { %6113 = vst.msk [vmem:[#allocation5 + $0x40] sm:$0xff] %vm385_vm2, %v6096_v60  ;;  %v6385_v7 = vadd.f32 %v6368_v59, %v14533_v63  ;;  %12453 = vmatprep.subr.bf16.mxu0 %v12578_v49  ;;  %v10269_v60 = vld [vmem:[%s15367_s5 + $0x38] sm:$0xff] }
 0x39e   : > { %v6032_v29 = vpop.f32.mrb[230].mxu1  ;;  %12449 = vmatpush3.bf16.msra.mxu1 %v12448_v53 }
 0x39f   : > { %v14672_v39 = vpop.f32.mrb[10].mxu0  ;;  %v6097_v19 = vadd.f32 %v6080_v12, %v6032_v29  ;;  %v11756_v23 = vpop.f32.mrb[231].mxu1  ;;  %6402 = vst.msk [vmem:[#allocation5 + $0x30] sm:$0xff] %vm385_vm2, %v6385_v7  ;;  %12456 = vmatprep.subr.bf16.mxu1 %v12578_v49  ;;  %v6085_v29 = vld [vmem:[#allocation5 + $0x70] sm:$0xff] }
 0x3a0   : > { %v11933_v14 = vpop.f32.mrb[11].mxu0  ;;  %v6369_v33 = vld [vmem:[#allocation5 + $0x38] sm:$0xff] }
 0x3a1   : > { %6114 = vst.msk [vmem:[#allocation5 + $0x48] sm:$0xff] %vm385_vm2, %v6097_v19  ;;  %v6386_v63 = vadd.f32 %v6369_v33, %v14541_v40 }
 0x3a2   : > { %v6037_v22 = vpop.f32.mrb[232].mxu1 }
 0x3a3   : > { %v14679_v46 = vpop.f32.mrb[12].mxu0  ;;  %v6098_v27 = vadd.f32 %v6081_v20, %v6037_v22  ;;  %v11759_v37 = vpop.f32.mrb[233].mxu1  ;;  %6403 = vst.msk [vmem:[#allocation5 + $0x38] sm:$0xff] %vm385_vm2, %v6386_v63  ;;  %v6086_v20 = vld [vmem:[#allocation5 + $0x78] sm:$0xff] }
 0x3a4   : > { %v11936_v36 = vpop.f32.mrb[13].mxu0  ;;  %v6370_v17 = vld [vmem:[#allocation5 + $0x40] sm:$0xff] }
 0x3a5   : > { %6115 = vst.msk [vmem:[#allocation5 + $0x50] sm:$0xff] %vm385_vm2, %v6098_v27  ;;  %v6387_v0 = vadd.f32 %v6370_v17, %v14549_v5 }
 0x3a6   : > { %v6042_v31 = vpop.f32.mrb[234].mxu1 }
 0x3a7   : > { %v14684_v57 = vpop.f32.mrb[14].mxu0  ;;  %v6099_v38 = vadd.f32 %v6082_v18, %v6042_v31  ;;  %v11762_v40 = vpop.f32.mrb[235].mxu1  ;;  %6404 = vst.msk [vmem:[#allocation5 + $0x40] sm:$0xff] %vm385_vm2, %v6387_v0  ;;  %v6087_v18 = vld [vmem:[#allocation5 + $0x80] sm:$0x3f] }
 0x3a8   : > { %v11939_v1 = vpop.f32.mrb[15].mxu0  ;;  %v6371_v35 = vld [vmem:[#allocation5 + $0x48] sm:$0xff] }
 0x3a9   : > { %6116 = vst.msk [vmem:[#allocation5 + $0x58] sm:$0xff] %vm385_vm2, %v6099_v38  ;;  %v6388_v8 = vadd.f32 %v6371_v35, %v14557_v9  ;;  %v10268_v9 = vld [vmem:[%s15367_s5 + $0x30] sm:$0xff] }
 0x3aa   : > { %v6047_v42 = vpop.f32.mrb[236].mxu1  ;;  %v12454_v48 = vpack.c.bf16 %v10269_v60, %v10268_v9 }
 0x3ab   : > { %v14689_v21 = vpop.f32.mrb[16].mxu0  ;;  %v6100_v50 = vadd.f32 %v6083_v30, %v6047_v42  ;;  %v11765_v5 = vpop.f32.mrb[237].mxu1  ;;  %6405 = vst.msk [vmem:[#allocation5 + $0x48] sm:$0xff] %vm385_vm2, %v6388_v8  ;;  %v6653_v30 = vld [vmem:[#allocation5] sm:$0xff] }
 0x3ac   : > { %v11942_v58 = vpop.f32.mrb[17].mxu0  ;;  %v6372_v24 = vld [vmem:[#allocation5 + $0x50] sm:$0xff]  ;;  %12455 = vmatpush3.bf16.msra.mxu0 %v12454_v48 }
 0x3ad   : > { %6117 = vst.msk [vmem:[#allocation5 + $0x60] sm:$0xff] %vm385_vm2, %v6100_v50  ;;  %v6389_v2 = vadd.f32 %v6372_v24, %v14565_v15  ;;  %12462 = vmatprep.subr.bf16.mxu0 %v12578_v49  ;;  %v6654_v24 = vld [vmem:[#allocation5 + $0x8] sm:$0xff] }
 0x3ae   : > { %v6052_v52 = vpop.f32.mrb[238].mxu1 }
 0x3af   : > { %v14706_v16 = vpop.f32.mrb[18].mxu0  ;;  %v6101_v59 = vadd.f32 %v6084_v32, %v6052_v52  ;;  %v11768_v56 = vpop.f32.mrb[239].mxu1  ;;  %6406 = vst.msk [vmem:[#allocation5 + $0x50] sm:$0xff] %vm385_vm2, %v6389_v2 }
 0x3b0   : > { %v11945_v6 = vpop.f32.mrb[19].mxu0  ;;  %v6373_v7 = vld [vmem:[#allocation5 + $0x58] sm:$0xff] }
 0x3b1   : > { %6118 = vst.msk [vmem:[#allocation5 + $0x68] sm:$0xff] %vm385_vm2, %v6101_v59  ;;  %v6390_v15 = vadd.f32 %v6373_v7, %v14573_v26  ;;  %v6655_v59 = vld [vmem:[#allocation5 + $0x10] sm:$0xff] }
 0x3b2   : > { %v6057_v41 = vpop.f32.mrb[240].mxu1 }
 0x3b3   : > { %v14713_v12 = vpop.f32.mrb[20].mxu0  ;;  %v6102_v19 = vadd.f32 %v6085_v29, %v6057_v41  ;;  %v11771_v23 = vpop.f32.mrb[241].mxu1  ;;  %6407 = vst.msk [vmem:[#allocation5 + $0x58] sm:$0xff] %vm385_vm2, %v6390_v15 }
 0x3b4   : > { %v11948_v14 = vpop.f32.mrb[21].mxu0  ;;  %v6374_v33 = vld [vmem:[#allocation5 + $0x60] sm:$0xff] }
 0x3b5   : > { %6119 = vst.msk [vmem:[#allocation5 + $0x70] sm:$0xff] %vm385_vm2, %v6102_v19  ;;  %v6391_v63 = vadd.f32 %v6374_v33, %v14581_v34  ;;  %v6656_v19 = vld [vmem:[#allocation5 + $0x18] sm:$0xff] }
 0x3b6   : > { %v6062_v22 = vpop.f32.mrb[242].mxu1 }
 0x3b7   : > { %v14718_v27 = vpop.f32.mrb[22].mxu0  ;;  %v6103_v37 = vadd.f32 %v6086_v20, %v6062_v22  ;;  %v11774_v26 = vpop.f32.mrb[243].mxu1  ;;  %6408 = vst.msk [vmem:[#allocation5 + $0x60] sm:$0xff] %vm385_vm2, %v6391_v63 }
 0x3b8   : > { %v11951_v36 = vpop.f32.mrb[23].mxu0  ;;  %v6375_v17 = vld [vmem:[#allocation5 + $0x68] sm:$0xff] }
 0x3b9   : > { %6120 = vst.msk [vmem:[#allocation5 + $0x78] sm:$0xff] %vm385_vm2, %v6103_v37  ;;  %v6392_v0 = vadd.f32 %v6375_v17, %v14589_v43  ;;  %v6657_v37 = vld [vmem:[#allocation5 + $0x20] sm:$0xff] }
 0x3ba   : > { %v6067_v31 = vpop.f32.mrb[244].mxu1 }
 0x3bb   : > { %v14723_v38 = vpop.f32.mrb[24].mxu0  ;;  %v6104_v40 = vadd.f32 %v6087_v18, %v6067_v31  ;;  %v11777_v34 = vpop.f32.mrb[245].mxu1  ;;  %6409 = vst.msk [vmem:[#allocation5 + $0x68] sm:$0xff] %vm385_vm2, %v6392_v0 }
 0x3bc   : > { %v11954_v1 = vpop.f32.mrb[25].mxu0  ;;  %v6376_v35 = vld [vmem:[#allocation5 + $0x70] sm:$0xff] }
 0x3bd   : > { %6121 = vst.msk [vmem:[#allocation5 + $0x80] sm:$0x3f] %vm857_vm3, %v6104_v40  ;;  %v6393_v8 = vadd.f32 %v6376_v35, %v14597_v25  ;;  %v6658_v40 = vld [vmem:[#allocation5 + $0x28] sm:$0xff] }
 0x3be   : > { %v6569_v42 = vpop.f32.mrb[246].mxu1 }
 0x3bf   : > { %v14728_v50 = vpop.f32.mrb[26].mxu0  ;;  %v6670_v5 = vadd.f32 %v6653_v30, %v6569_v42  ;;  %v11847_v43 = vpop.f32.mrb[247].mxu1  ;;  %6410 = vst.msk [vmem:[#allocation5 + $0x70] sm:$0xff] %vm385_vm2, %v6393_v8 }
 0x3c0   : > { %v12024_v58 = vpop.f32.mrb[27].mxu0  ;;  %v6377_v44 = vld [vmem:[#allocation5 + $0x78] sm:$0xff] }
 0x3c1   : > { %6687 = vst.msk [vmem:[#allocation5] sm:$0xff] %vm385_vm2, %v6670_v5  ;;  %v6394_v45 = vadd.f32 %v6377_v44, %v14605_v11  ;;  %v6659_v5 = vld [vmem:[#allocation5 + $0x30] sm:$0xff] }
 0x3c2   : > { %v6574_v9 = vpop.f32.mrb[248].mxu1 }
 0x3c3   : > { %v14733_v53 = vpop.f32.mrb[28].mxu0  ;;  %v6671_v60 = vadd.f32 %v6654_v24, %v6574_v9  ;;  %v11850_v25 = vpop.f32.mrb[249].mxu1  ;;  %6411 = vst.msk [vmem:[#allocation5 + $0x78] sm:$0xff] %vm385_vm2, %v6394_v45 }
 0x3c4   : > { %v12027_v2 = vpop.f32.mrb[29].mxu0  ;;  %v6378_v48 = vld [vmem:[#allocation5 + $0x80] sm:$0x3f] }
 0x3c5   : > { %v6395_v52 = vadd.f32 %v6378_v48, %v14610_v61  ;;  %6688 = vst.msk [vmem:[#allocation5 + $0x8] sm:$0xff] %vm385_vm2, %v6671_v60  ;;  %v6660_v60 = vld [vmem:[#allocation5 + $0x38] sm:$0xff] }
 0x3c6   : > { %v6579_v32 = vpop.f32.mrb[250].mxu1 }
 0x3c7   : > { %v14738_v56 = vpop.f32.mrb[30].mxu0  ;;  %6412 = vst.msk [vmem:[#allocation5 + $0x80] sm:$0x3f] %vm857_vm3, %v6395_v52  ;;  %v6672_v11 = vadd.f32 %v6655_v59, %v6579_v32  ;;  %v11853_v6 = vpop.f32.mrb[251].mxu1 }
 0x3c8   : > { %v12030_v7 = vpop.f32.mrb[31].mxu0  ;;  %v6928_v15 = vld [vmem:[#allocation5] sm:$0xff] }
 0x3c9   : > { %6689 = vst.msk [vmem:[#allocation5 + $0x10] sm:$0xff] %vm385_vm2, %v6672_v11  ;;  %v6945_v41 = vadd.f32 %v6928_v15, %v14615_v62  ;;  %v6661_v11 = vld [vmem:[#allocation5 + $0x40] sm:$0xff] }
 0x3ca   : > { %v6584_v29 = vpop.f32.mrb[252].mxu1 }
 0x3cb   : > { %v14743_v23 = vpop.f32.mrb[32].mxu0  ;;  %v6673_v61 = vadd.f32 %v6656_v19, %v6584_v29  ;;  %v11856_v14 = vpop.f32.mrb[253].mxu1  ;;  %6962 = vst.msk [vmem:[#allocation5] sm:$0xff] %vm385_vm2, %v6945_v41 }
 0x3cc   : > { %v12033_v33 = vpop.f32.mrb[33].mxu0  ;;  %v6929_v63 = vld [vmem:[#allocation5 + $0x8] sm:$0xff] }
 0x3cd   : > { %6690 = vst.msk [vmem:[#allocation5 + $0x18] sm:$0xff] %vm385_vm2, %v6673_v61  ;;  %v6946_v22 = vadd.f32 %v6929_v63, %v14620_v4  ;;  %v6662_v61 = vld [vmem:[#allocation5 + $0x48] sm:$0xff] }
 0x3ce   : > { %v6589_v20 = vpop.f32.mrb[254].mxu1 }
 0x3cf   : > { %v14748_v26 = vpop.f32.mrb[34].mxu0  ;;  %v6674_v36 = vadd.f32 %v6657_v37, %v6589_v20  ;;  %v11859_v62 = vpop.f32.mrb[255].mxu1  ;;  %6963 = vst.msk [vmem:[#allocation5 + $0x8] sm:$0xff] %vm385_vm2, %v6946_v22 }
 0x3d0   : > { %v12036_v17 = vpop.f32.mrb[35].mxu0  ;;  %v6930_v0 = vld [vmem:[#allocation5 + $0x10] sm:$0xff] }
 0x3d1   : > { %6691 = vst.msk [vmem:[#allocation5 + $0x20] sm:$0xff] %vm385_vm2, %v6674_v36  ;;  %v6947_v31 = vadd.f32 %v6930_v0, %v14625_v51  ;;  %v6663_v36 = vld [vmem:[#allocation5 + $0x50] sm:$0xff] }
 0x3d2   : > { %v6594_v18 = vpop.f32.mrb[0].mxu1 }
 0x3d3   : > { %v14753_v34 = vpop.f32.mrb[36].mxu0  ;;  %v6675_v1 = vadd.f32 %v6658_v40, %v6594_v18  ;;  %v11862_v4 = vpop.f32.mrb[1].mxu1  ;;  %6964 = vst.msk [vmem:[#allocation5 + $0x10] sm:$0xff] %vm385_vm2, %v6947_v31 }
 0x3d4   : > { %v12039_v35 = vpop.f32.mrb[37].mxu0  ;;  %v6931_v8 = vld [vmem:[#allocation5 + $0x18] sm:$0xff] }
 0x3d5   : > { %6692 = vst.msk [vmem:[#allocation5 + $0x28] sm:$0xff] %vm385_vm2, %v6675_v1  ;;  %v6948_v42 = vadd.f32 %v6931_v8, %v14630_v28  ;;  %v6664_v1 = vld [vmem:[#allocation5 + $0x58] sm:$0xff] }
 0x3d6   : > { %v6599_v30 = vpop.f32.mrb[2].mxu1 }
 0x3d7   : > { %v14758_v43 = vpop.f32.mrb[38].mxu0  ;;  %v6676_v58 = vadd.f32 %v6659_v5, %v6599_v30  ;;  %v11865_v51 = vpop.f32.mrb[3].mxu1  ;;  %6965 = vst.msk [vmem:[#allocation5 + $0x18] sm:$0xff] %vm385_vm2, %v6948_v42 }
 0x3d8   : > { %v12042_v44 = vpop.f32.mrb[39].mxu0  ;;  %v6932_v45 = vld [vmem:[#allocation5 + $0x20] sm:$0xff] }
 0x3d9   : > { %6693 = vst.msk [vmem:[#allocation5 + $0x30] sm:$0xff] %vm385_vm2, %v6676_v58  ;;  %v6949_v9 = vadd.f32 %v6932_v45, %v14635_v13  ;;  %v6665_v58 = vld [vmem:[#allocation5 + $0x60] sm:$0xff] }
 0x3da   : > { %v6604_v24 = vpop.f32.mrb[4].mxu1 }
 0x3db   : > { %v14763_v25 = vpop.f32.mrb[40].mxu0  ;;  %v6677_v2 = vadd.f32 %v6660_v60, %v6604_v24  ;;  %v11868_v28 = vpop.f32.mrb[5].mxu1  ;;  %6966 = vst.msk [vmem:[#allocation5 + $0x20] sm:$0xff] %vm385_vm2, %v6949_v9 }
 0x3dc   : > { %v12045_v48 = vpop.f32.mrb[41].mxu0  ;;  %v6933_v52 = vld [vmem:[#allocation5 + $0x28] sm:$0xff] }
 0x3dd   : > { %6694 = vst.msk [vmem:[#allocation5 + $0x38] sm:$0xff] %vm385_vm2, %v6677_v2  ;;  %v6950_v32 = vadd.f32 %v6933_v52, %v14640_v47  ;;  %v6666_v2 = vld [vmem:[#allocation5 + $0x68] sm:$0xff] }
 0x3de   : > { %v6609_v59 = vpop.f32.mrb[6].mxu1 }
 0x3df   : > { %v14768_v6 = vpop.f32.mrb[42].mxu0  ;;  %v6678_v7 = vadd.f32 %v6661_v11, %v6609_v59  ;;  %v11871_v13 = vpop.f32.mrb[7].mxu1  ;;  %6967 = vst.msk [vmem:[#allocation5 + $0x28] sm:$0xff] %vm385_vm2, %v6950_v32 }
 0x3e0   : > { %v12048_v15 = vpop.f32.mrb[43].mxu0  ;;  %v6934_v41 = vld [vmem:[#allocation5 + $0x30] sm:$0xff] }
 0x3e1   : > { %6695 = vst.msk [vmem:[#allocation5 + $0x40] sm:$0xff] %vm385_vm2, %v6678_v7  ;;  %v6951_v29 = vadd.f32 %v6934_v41, %v14645_v54  ;;  %v6667_v7 = vld [vmem:[#allocation5 + $0x70] sm:$0xff] }
 0x3e2   : > { %v6614_v19 = vpop.f32.mrb[8].mxu1 }
 0x3e3   : > { %v14773_v14 = vpop.f32.mrb[44].mxu0  ;;  %v6679_v33 = vadd.f32 %v6662_v61, %v6614_v19  ;;  %v11874_v47 = vpop.f32.mrb[9].mxu1  ;;  %6968 = vst.msk [vmem:[#allocation5 + $0x30] sm:$0xff] %vm385_vm2, %v6951_v29 }
 0x3e4   : > { %v12051_v63 = vpop.f32.mrb[45].mxu0  ;;  %v6935_v22 = vld [vmem:[#allocation5 + $0x38] sm:$0xff] }
 0x3e5   : > { %6696 = vst.msk [vmem:[#allocation5 + $0x48] sm:$0xff] %vm385_vm2, %v6679_v33  ;;  %v6952_v20 = vadd.f32 %v6935_v22, %v14650_v3  ;;  %v6668_v33 = vld [vmem:[#allocation5 + $0x78] sm:$0xff] }
 0x3e6   : > { %v6619_v37 = vpop.f32.mrb[10].mxu1 }
 0x3e7   : > { %v14778_v62 = vpop.f32.mrb[46].mxu0  ;;  %v6680_v17 = vadd.f32 %v6663_v36, %v6619_v37  ;;  %v11877_v54 = vpop.f32.mrb[11].mxu1  ;;  %6969 = vst.msk [vmem:[#allocation5 + $0x38] sm:$0xff] %vm385_vm2, %v6952_v20 }
 0x3e8   : > { %v12054_v0 = vpop.f32.mrb[47].mxu0  ;;  %v6936_v31 = vld [vmem:[#allocation5 + $0x40] sm:$0xff] }
 0x3e9   : > { %6697 = vst.msk [vmem:[#allocation5 + $0x50] sm:$0xff] %vm385_vm2, %v6680_v17  ;;  %v6953_v18 = vadd.f32 %v6936_v31, %v14655_v55  ;;  %v6669_v17 = vld [vmem:[#allocation5 + $0x80] sm:$0x3f] }
 0x3ea   : > { %v6624_v40 = vpop.f32.mrb[12].mxu1 }
 0x3eb   : > { %v14783_v4 = vpop.f32.mrb[48].mxu0  ;;  %v6681_v35 = vadd.f32 %v6664_v1, %v6624_v40  ;;  %v11880_v3 = vpop.f32.mrb[13].mxu1  ;;  %6970 = vst.msk [vmem:[#allocation5 + $0x40] sm:$0xff] %vm385_vm2, %v6953_v18 }
 0x3ec   : > { %v12057_v8 = vpop.f32.mrb[49].mxu0  ;;  %v6937_v42 = vld [vmem:[#allocation5 + $0x48] sm:$0xff] }
 0x3ed   : > { %6698 = vst.msk [vmem:[#allocation5 + $0x58] sm:$0xff] %vm385_vm2, %v6681_v35  ;;  %v6954_v30 = vadd.f32 %v6937_v42, %v14672_v39  ;;  %v7219_v35 = vld [vmem:[#allocation5] sm:$0xff] }
 0x3ee   : > { %v6629_v5 = vpop.f32.mrb[14].mxu1 }
 0x3ef   : > { %v14788_v51 = vpop.f32.mrb[50].mxu0  ;;  %v6682_v44 = vadd.f32 %v6665_v58, %v6629_v5  ;;  %v11883_v55 = vpop.f32.mrb[15].mxu1  ;;  %6971 = vst.msk [vmem:[#allocation5 + $0x48] sm:$0xff] %vm385_vm2, %v6954_v30  ;;  %v7220_v5 = vld [vmem:[#allocation5 + $0x8] sm:$0xff] }
 0x3f0   : > { %v12060_v45 = vpop.f32.mrb[51].mxu0  ;;  %v6938_v9 = vld [vmem:[#allocation5 + $0x50] sm:$0xff] }
 0x3f1   : > { %6699 = vst.msk [vmem:[#allocation5 + $0x60] sm:$0xff] %vm385_vm2, %v6682_v44  ;;  %v6955_v24 = vadd.f32 %v6938_v9, %v14679_v46  ;;  %v7221_v9 = vld [vmem:[#allocation5 + $0x10] sm:$0xff] }
 0x3f2   : > { %v6634_v60 = vpop.f32.mrb[16].mxu1 }
 0x3f3   : > { %v14793_v28 = vpop.f32.mrb[52].mxu0  ;;  %v6683_v48 = vadd.f32 %v6666_v2, %v6634_v60  ;;  %v11886_v39 = vpop.f32.mrb[17].mxu1  ;;  %6972 = vst.msk [vmem:[#allocation5 + $0x50] sm:$0xff] %vm385_vm2, %v6955_v24 }
 0x3f4   : > { %v12063_v52 = vpop.f32.mrb[53].mxu0  ;;  %v6939_v32 = vld [vmem:[#allocation5 + $0x58] sm:$0xff] }
 0x3f5   : > { %6700 = vst.msk [vmem:[#allocation5 + $0x68] sm:$0xff] %vm385_vm2, %v6683_v48  ;;  %v6956_v59 = vadd.f32 %v6939_v32, %v14684_v57  ;;  %v7222_v39 = vld [vmem:[#allocation5 + $0x18] sm:$0xff] }
 0x3f6   : > { %v6639_v11 = vpop.f32.mrb[18].mxu1 }
 0x3f7   : > { %v14798_v13 = vpop.f32.mrb[54].mxu0  ;;  %v6684_v15 = vadd.f32 %v6667_v7, %v6639_v11  ;;  %v11889_v46 = vpop.f32.mrb[19].mxu1  ;;  %6973 = vst.msk [vmem:[#allocation5 + $0x58] sm:$0xff] %vm385_vm2, %v6956_v59  ;;  %v7223_v7 = vld [vmem:[#allocation5 + $0x20] sm:$0xff] }
 0x3f8   : > { %v12066_v41 = vpop.f32.mrb[55].mxu0  ;;  %v6940_v29 = vld [vmem:[#allocation5 + $0x60] sm:$0xff] }
 0x3f9   : > { %6701 = vst.msk [vmem:[#allocation5 + $0x70] sm:$0xff] %vm385_vm2, %v6684_v15  ;;  %v6957_v19 = vadd.f32 %v6940_v29, %v14689_v21 }
 0x3fa   : > { %v6644_v61 = vpop.f32.mrb[20].mxu1 }
 0x3fb   : > { %v14803_v47 = vpop.f32.mrb[56].mxu0  ;;  %v6685_v63 = vadd.f32 %v6668_v33, %v6644_v61  ;;  %v11892_v57 = vpop.f32.mrb[21].mxu1  ;;  %6974 = vst.msk [vmem:[#allocation5 + $0x60] sm:$0xff] %vm385_vm2, %v6957_v19  ;;  %v7224_v33 = vld [vmem:[#allocation5 + $0x28] sm:$0xff] }
 0x3fc   : > { %v12069_v22 = vpop.f32.mrb[57].mxu0  ;;  %v6941_v20 = vld [vmem:[#allocation5 + $0x68] sm:$0xff] }
 0x3fd   : > { %6702 = vst.msk [vmem:[#allocation5 + $0x78] sm:$0xff] %vm385_vm2, %v6685_v63  ;;  %v6958_v37 = vadd.f32 %v6941_v20, %v14706_v16 }
 0x3fe   : > { %v6649_v36 = vpop.f32.mrb[22].mxu1 }
 0x3ff   : > { %v14808_v54 = vpop.f32.mrb[58].mxu0  ;;  %v6686_v0 = vadd.f32 %v6669_v17, %v6649_v36  ;;  %v11895_v21 = vpop.f32.mrb[23].mxu1  ;;  %6975 = vst.msk [vmem:[#allocation5 + $0x68] sm:$0xff] %vm385_vm2, %v6958_v37  ;;  %v7225_v17 = vld [vmem:[#allocation5 + $0x30] sm:$0xff] }
 0x400   : > { %v12072_v31 = vpop.f32.mrb[59].mxu0  ;;  %v6942_v18 = vld [vmem:[#allocation5 + $0x70] sm:$0xff] }
 0x401   : > { %6703 = vst.msk [vmem:[#allocation5 + $0x80] sm:$0x3f] %vm857_vm3, %v6686_v0  ;;  %v6959_v40 = vadd.f32 %v6942_v18, %v14713_v12  ;;  %v10275_v18 = vld [vmem:[%s15367_s5 + $0x40] sm:$0xff] }
 0x402   : > { %v7135_v1 = vpop.f32.mrb[24].mxu1 }
 0x403   : > { %v7236_v3 = vadd.f32 %v7219_v35, %v7135_v1  ;;  %v11965_v8 = vpop.f32.mrb[25].mxu1  ;;  %6976 = vst.msk [vmem:[#allocation5 + $0x70] sm:$0xff] %vm385_vm2, %v6959_v40  ;;  %v7226_v1 = vld [vmem:[#allocation5 + $0x38] sm:$0xff]  ;;  %v10284_v35 = vld [vmem:[%s15367_s5 + $0x60] sm:$0xff] }
 0x404   : > { %v6943_v16 = vld [vmem:[#allocation5 + $0x78] sm:$0xff] }
 0x405   : > { %7253 = vst.msk [vmem:[#allocation5] sm:$0xff] %vm385_vm2, %v7236_v3  ;;  %v6960_v42 = vadd.f32 %v6943_v16, %v14718_v27 }
 0x406   : > { %v7140_v30 = vpop.f32.mrb[26].mxu1 }
 0x407   : > { %v7237_v58 = vadd.f32 %v7220_v5, %v7140_v30  ;;  %v11968_v44 = vpop.f32.mrb[27].mxu1  ;;  %6977 = vst.msk [vmem:[#allocation5 + $0x78] sm:$0xff] %vm385_vm2, %v6960_v42  ;;  %v10277_v42 = vld [vmem:[%s15367_s5 + $0x50] sm:$0xff]  ;;  %v10278_v30 = vld [vmem:[%s15367_s5 + $0x58] sm:$0xff] }
 0x408   : > { %v6944_v55 = vld [vmem:[#allocation5 + $0x80] sm:$0x3f] }
 0x409   : > { %v6961_v12 = vadd.f32 %v6944_v55, %v14723_v38  ;;  %7254 = vst.msk [vmem:[#allocation5 + $0x8] sm:$0xff] %vm385_vm2, %v7237_v58  ;;  %v7227_v58 = vld [vmem:[#allocation5 + $0x40] sm:$0xff] }
 0x40a   : > { %v7145_v45 = vpop.f32.mrb[28].mxu1 }
 0x40b   : > { %6978 = vst.msk [vmem:[#allocation5 + $0x80] sm:$0x3f] %vm857_vm3, %v6961_v12  ;;  %v7238_v24 = vadd.f32 %v7221_v9, %v7145_v45  ;;  %v11971_v60 = vpop.f32.mrb[29].mxu1  ;;  %v10286_v12 = vld [vmem:[%s15367_s5 + $0x70] sm:$0xff]  ;;  %v10287_v45 = vld [vmem:[%s15367_s5 + $0x78] sm:$0xff] }
 0x40c   : > { %v7510_v2 = vld [vmem:[#allocation5] sm:$0xff] }
 0x40d   : > { %v7527_v27 = vadd.f32 %v7510_v2, %v14728_v50  ;;  %7255 = vst.msk [vmem:[#allocation5 + $0x10] sm:$0xff] %vm385_vm2, %v7238_v24  ;;  %v14829_v50 = vld [vmem:[%s15366_s4] ss:$0 sm:$0xff] }
 0x40e   : > { %v7150_v48 = vpop.f32.mrb[30].mxu1 }
 0x40f   : > { %7544 = vst.msk [vmem:[#allocation5] sm:$0xff] %vm385_vm2, %v7527_v27  ;;  %v7239_v52 = vadd.f32 %v7222_v39, %v7150_v48  ;;  %v11974_v32 = vpop.f32.mrb[31].mxu1 }
 0x410   : > { %v7511_v38 = vld [vmem:[#allocation5 + $0x8] sm:$0xff] }
 0x411   : > { %7256 = vst.msk [vmem:[#allocation5 + $0x18] sm:$0xff] %vm385_vm2, %v7239_v52  ;;  %v7528_v59 = vadd.f32 %v7511_v38, %v14733_v53  ;;  %v12460_v38 = vpack.c.bf16 %v10278_v30, %v10277_v42 }
 0x412   : > { %v7155_v11 = vpop.f32.mrb[32].mxu1 }
 0x413   : > { %v7240_v15 = vadd.f32 %v7223_v7, %v7155_v11  ;;  %v11977_v46 = vpop.f32.mrb[33].mxu1  ;;  %7545 = vst.msk [vmem:[#allocation5 + $0x8] sm:$0xff] %vm385_vm2, %v7528_v59  ;;  %v12466_v59 = vpack.c.bf16 %v10287_v45, %v10286_v12  ;;  %v7228_v7 = vld [vmem:[#allocation5 + $0x48] sm:$0xff] }
 0x414   : > { %v7512_v41 = vld [vmem:[#allocation5 + $0x10] sm:$0xff] }
 0x415   : > { %v7529_v29 = vadd.f32 %v7512_v41, %v14738_v56  ;;  %7257 = vst.msk [vmem:[#allocation5 + $0x20] sm:$0xff] %vm385_vm2, %v7240_v15 }
 0x416   : > { %v7561_v19 = vld [vmem:[#allocation5] sm:$0xff]  ;;  %v7160_v61 = vpop.f32.mrb[34].mxu1 }
 0x417   : > { %v7568_v53 = vadd.f32 %v14829_v50, %v7561_v19  ;;  %7546 = vst.msk [vmem:[#allocation5 + $0x10] sm:$0xff] %vm385_vm2, %v7529_v29  ;;  %v7241_v63 = vadd.f32 %v7224_v33, %v7160_v61  ;;  %v11980_v57 = vpop.f32.mrb[35].mxu1  ;;  %v7229_v19 = vld [vmem:[#allocation5 + $0x50] sm:$0xff] }
 0x418   : > { %v7513_v22 = vld [vmem:[#allocation5 + $0x18] sm:$0xff] }
 0x419   : > { %v7569_v20 = vmax.f32 %v7568_v53, 0.0  ;;  %v7530_v37 = vadd.f32 %v7513_v22, %v14743_v23  ;;  %7258 = vst.msk [vmem:[#allocation5 + $0x28] sm:$0xff] %vm385_vm2, %v7241_v63  ;;  %v10276_v23 = vld [vmem:[%s15367_s5 + $0x48] sm:$0xff] }
 0x41a   : > { %v7165_v36 = vpop.f32.mrb[36].mxu1  ;;  %v12457_v44 = vpack.c.bf16 %v10276_v23, %v10275_v18 }
 0x41b   : > { %7570 = vst.msk [vmem:[#allocation3 + $0xb] sm:$0xff] %vm385_vm2, %v7569_v20  ;;  %7547 = vst.msk [vmem:[#allocation5 + $0x18] sm:$0xff] %vm385_vm2, %v7530_v37  ;;  %v7242_v56 = vadd.f32 %v7225_v17, %v7165_v36  ;;  %v11983_v0 = vpop.f32.mrb[37].mxu1  ;;  %v7230_v37 = vld [vmem:[#allocation5 + $0x58] sm:$0xff] }
 0x41c   : > { %v7514_v21 = vld [vmem:[#allocation5 + $0x20] sm:$0xff] }
 0x41d   : > { %v7531_v31 = vadd.f32 %v7514_v21, %v14748_v26  ;;  %7259 = vst.msk [vmem:[#allocation5 + $0x30] sm:$0xff] %vm385_vm2, %v7242_v56  ;;  %v10285_v26 = vld [vmem:[%s15367_s5 + $0x68] sm:$0xff] }
 0x41e   : > { %v7170_v40 = vpop.f32.mrb[38].mxu1  ;;  %v12463_v55 = vpack.c.bf16 %v10285_v26, %v10284_v35 }
 0x41f   : > { %7548 = vst.msk [vmem:[#allocation5 + $0x20] sm:$0xff] %vm385_vm2, %v7531_v31  ;;  %v7243_v3 = vadd.f32 %v7226_v1, %v7170_v40  ;;  %v11986_v8 = vpop.f32.mrb[39].mxu1  ;;  %v7231_v31 = vld [vmem:[#allocation5 + $0x60] sm:$0xff] }
 0x420   : > { %v7515_v16 = vld [vmem:[#allocation5 + $0x28] sm:$0xff] }
 0x421   : > { %v7532_v5 = vadd.f32 %v7515_v16, %v14753_v34  ;;  %7260 = vst.msk [vmem:[#allocation5 + $0x38] sm:$0xff] %vm385_vm2, %v7243_v3  ;;  %v7232_v16 = vld [vmem:[#allocation5 + $0x68] sm:$0xff] }
 0x422   : > { %v7571_v9 = vld [vmem:[#allocation5 + $0x12] sm:$0xff]  ;;  %v7175_v24 = vpop.f32.mrb[40].mxu1 }
 0x423   : > { %v7600_v60 = vld [vmem:[#allocation3] ss:$2 sm:$0xff]  ;;  %v7724_v2 = vld [vmem:[#allocation3 + $0x1] ss:$2 sm:$0xff]  ;;  %7549 = vst.msk [vmem:[#allocation5 + $0x28] sm:$0xff] %vm385_vm2, %v7532_v5  ;;  %v7244_v34 = vadd.f32 %v7227_v58, %v7175_v24  ;;  %v11989_v27 = vpop.f32.mrb[41].mxu1  ;;  %v7572_v48 = vadd.f32 %v14829_v50, %v7571_v9 }
 0x424   : > { %12082 = vmatmul.mubr.msk.f32.vlgmr.msra.gmra.mrb[58].mxu1 %vm385_vm2, %v7600_v60  ;;  %12105 = vmatmul.mubr.msk.f32.vlgmr.msra.gmra.mrb[60].mxu0 %vm385_vm2, %v7724_v2  ;;  %v7516_v39 = vld [vmem:[#allocation5 + $0x30] sm:$0xff]  ;;  %v7234_v27 = vld [vmem:[#allocation5 + $0x78] sm:$0xff] }
 0x425   : > { %12084 = vmatprep.mubr.msk.f32.mxu1 %vm12580_vm5, %v12579_v10  ;;  %12107 = vmatprep.mubr.msk.f32.mxu0 %vm12580_vm5, %v12579_v10  ;;  %v7533_v52 = vadd.f32 %v7516_v39, %v14758_v43  ;;  %7261 = vst.msk [vmem:[#allocation5 + $0x40] sm:$0xff] %vm385_vm2, %v7244_v34  ;;  %v7573_v32 = vmax.f32 %v7572_v48, 0.0 }
 0x426   : > { %12458 = vmatpush3.bf16.msra.mxu1 %v12457_v44  ;;  %12464 = vmatpush3.bf16.msra.mxu0 %v12463_v55  ;;  %v7180_v11 = vpop.f32.mrb[42].mxu1  ;;  %v7233_v55 = vld [vmem:[#allocation5 + $0x70] sm:$0xff] }
 0x427   : > { %12459 = vmatprep.subr.bf16.mxu1 %v12578_v49  ;;  %12465 = vmatprep.subr.bf16.mxu0 %v12578_v49  ;;  %7550 = vst.msk [vmem:[#allocation5 + $0x30] sm:$0xff] %vm385_vm2, %v7533_v52  ;;  %v7245_v15 = vadd.f32 %v7228_v7, %v7180_v11  ;;  %v11992_v46 = vpop.f32.mrb[43].mxu1  ;;  %7574 = vst.msk [vmem:[#allocation3 + $0x15] sm:$0xff] %vm385_vm2, %v7573_v32 }
 0x428   : > { %v7517_v43 = vld [vmem:[#allocation5 + $0x38] sm:$0xff] }
 0x429   : > { %v7534_v41 = vadd.f32 %v7517_v43, %v14763_v25  ;;  %7262 = vst.msk [vmem:[#allocation5 + $0x48] sm:$0xff] %vm385_vm2, %v7245_v15 }
 0x42a   : > { %12461 = vmatpush3.bf16.msra.mxu1 %v12460_v38  ;;  %12467 = vmatpush3.bf16.msra.mxu0 %v12466_v59  ;;  %v7185_v29 = vpop.f32.mrb[44].mxu1  ;;  %v7575_v61 = vld [vmem:[#allocation5 + $0x24] sm:$0xff] }
 0x42b   : > { %12468 = vmatprep.subr.bf16.mxu1 %v12578_v49  ;;  %12474 = vmatprep.subr.bf16.mxu0 %v12578_v49  ;;  %7551 = vst.msk [vmem:[#allocation5 + $0x38] sm:$0xff] %vm385_vm2, %v7534_v41  ;;  %v7246_v33 = vadd.f32 %v7229_v19, %v7185_v29  ;;  %v11995_v53 = vpop.f32.mrb[45].mxu1  ;;  %v7576_v63 = vadd.f32 %v14829_v50, %v7575_v61  ;;  %v7235_v59 = vld [vmem:[#allocation5 + $0x80] sm:$0x3f] }
 0x42c   : > { %v7518_v57 = vld [vmem:[#allocation5 + $0x40] sm:$0xff] }
 0x42d   : > { %v7535_v25 = vadd.f32 %v7518_v57, %v14768_v6  ;;  %7263 = vst.msk [vmem:[#allocation5 + $0x50] sm:$0xff] %vm385_vm2, %v7246_v33  ;;  %v7577_v22 = vmax.f32 %v7576_v63, 0.0 }
 0x42e   : > { %v7190_v20 = vpop.f32.mrb[46].mxu1  ;;  %v7602_v36 = vld [vmem:[#allocation3 + $0x10] ss:$2 sm:$0xff] }
 0x42f   : > { %7552 = vst.msk [vmem:[#allocation5 + $0x40] sm:$0xff] %vm385_vm2, %v7535_v25  ;;  %v7247_v17 = vadd.f32 %v7230_v37, %v7190_v20  ;;  %v11998_v56 = vpop.f32.mrb[47].mxu1  ;;  %12085 = vmatmul.mubr.msk.f32.gmra.mrb[60].mxu1 %vm385_vm2, %v7602_v36  ;;  %7578 = vst.msk [vmem:[#allocation3 + $0x1f] sm:$0xff] %vm385_vm2, %v7577_v22  ;;  %v10294_v22 = vld [vmem:[%s15367_s5 + $0x88] sm:$0xff]  ;;  %v10302_v36 = vld [vmem:[%s15367_s5 + $0xa0] sm:$0xff] }
 0x430   : > { %v7519_v0 = vld [vmem:[#allocation5 + $0x48] sm:$0xff]  ;;  %12087 = vmatprep.mubr.msk.f32.mxu1 %vm12580_vm5, %v12579_v10 }
 0x431   : > { %v7536_v6 = vadd.f32 %v7519_v0, %v14773_v14  ;;  %7264 = vst.msk [vmem:[#allocation5 + $0x58] sm:$0xff] %vm385_vm2, %v7247_v17  ;;  %v10303_v17 = vld [vmem:[%s15367_s5 + $0xa8] sm:$0xff] }
 0x432   : > { %v7195_v21 = vpop.f32.mrb[48].mxu1  ;;  %v7579_v18 = vld [vmem:[#allocation5 + $0x36] sm:$0xff] }
 0x433   : > { %7553 = vst.msk [vmem:[#allocation5 + $0x48] sm:$0xff] %vm385_vm2, %v7536_v6  ;;  %v7248_v23 = vadd.f32 %v7231_v31, %v7195_v21  ;;  %v12001_v40 = vpop.f32.mrb[49].mxu1  ;;  %v7580_v1 = vadd.f32 %v14829_v50, %v7579_v18  ;;  %v10295_v6 = vld [vmem:[%s15367_s5 + $0x90] sm:$0xff] }
 0x434   : > { %v7520_v35 = vld [vmem:[#allocation5 + $0x50] sm:$0xff]  ;;  %v7994_v18 = vld [vmem:[#allocation3 + $0xa] ss:$2 sm:$0xff]  ;;  %v12475_v40 = vpack.c.bf16 %v10303_v17, %v10302_v36 }
 0x435   : > { %v7537_v26 = vadd.f32 %v7520_v35, %v14778_v62  ;;  %7265 = vst.msk [vmem:[#allocation5 + $0x60] sm:$0xff] %vm385_vm2, %v7248_v23  ;;  %v7581_v3 = vmax.f32 %v7580_v1, 0.0  ;;  %v7859_v31 = vld [vmem:[#allocation3 + $0x2] ss:$2 sm:$0xff] }
 0x436   : > { %v7200_v8 = vpop.f32.mrb[50].mxu1  ;;  %v7726_v14 = vld [vmem:[#allocation3 + $0x11] ss:$2 sm:$0xff] }
 0x437   : > { %7554 = vst.msk [vmem:[#allocation5 + $0x50] sm:$0xff] %vm385_vm2, %v7537_v26  ;;  %v7249_v42 = vadd.f32 %v7232_v16, %v7200_v8  ;;  %v12004_v30 = vpop.f32.mrb[51].mxu1  ;;  %12108 = vmatmul.mubr.msk.f32.gmra.mrb[62].mxu0 %vm385_vm2, %v7726_v14  ;;  %7582 = vst.msk [vmem:[#allocation3 + $0x29] sm:$0xff] %vm385_vm2, %v7581_v3  ;;  %v10296_v23 = vld [vmem:[%s15367_s5 + $0x98] sm:$0xff]  ;;  %v7996_v3 = vld [vmem:[#allocation3 + $0x1a] ss:$2 sm:$0xff] }
 0x438   : > { %v7521_v5 = vld [vmem:[#allocation5 + $0x58] sm:$0xff]  ;;  %12110 = vmatprep.mubr.msk.f32.mxu0 %vm12580_vm5, %v12579_v10  ;;  %v10305_v1 = vld [vmem:[%s15367_s5 + $0xb8] sm:$0xff]  ;;  %v12472_v35 = vpack.c.bf16 %v10296_v23, %v10295_v6  ;;  %v8829_v23 = vld [vmem:[%s15369_s7 + $0x8] sm:$0xff] }
 0x439   : > { %v7538_v62 = vadd.f32 %v7521_v5, %v14783_v4  ;;  %7266 = vst.msk [vmem:[#allocation5 + $0x68] sm:$0xff] %vm385_vm2, %v7249_v42  ;;  %v7861_v26 = vld [vmem:[#allocation3 + $0x12] ss:$2 sm:$0xff] }
 0x43a   : > { %v7583_v58 = vld [vmem:[#allocation5 + $0x48] sm:$0xff]  ;;  %v7205_v44 = vpop.f32.mrb[52].mxu1 }
 0x43b   : > { %v7584_v12 = vadd.f32 %v14829_v50, %v7583_v58  ;;  %7555 = vst.msk [vmem:[#allocation5 + $0x58] sm:$0xff] %vm385_vm2, %v7538_v62  ;;  %v7250_v45 = vadd.f32 %v7233_v55, %v7205_v44  ;;  %v12007_v9 = vpop.f32.mrb[53].mxu1  ;;  %v10311_v5 = vld [vmem:[%s15367_s5 + $0xc0] sm:$0xff]  ;;  %v10312_v62 = vld [vmem:[%s15367_s5 + $0xc8] sm:$0xff] }
 0x43c   : > { %v7522_v24 = vld [vmem:[#allocation5 + $0x60] sm:$0xff]  ;;  %v10320_v55 = vld [vmem:[%s15367_s5 + $0xe0] sm:$0xff]  ;;  %v10313_v9 = vld [vmem:[%s15367_s5 + $0xd0] sm:$0xff] }
 0x43d   : > { %v7539_v60 = vadd.f32 %v7522_v24, %v14788_v51  ;;  %7267 = vst.msk [vmem:[#allocation5 + $0x70] sm:$0xff] %vm385_vm2, %v7250_v45  ;;  %v7585_v2 = vmax.f32 %v7584_v12, 0.0  ;;  %v10321_v12 = vld [vmem:[%s15367_s5 + $0xe8] sm:$0xff]  ;;  %v12481_v45 = vpack.c.bf16 %v10312_v62, %v10311_v5  ;;  %v8129_v24 = vld [vmem:[#allocation3 + $0xb] ss:$2 sm:$0xff] }
 0x43e   : > { %v7210_v34 = vpop.f32.mrb[54].mxu1  ;;  %v7604_v4 = vld [vmem:[#allocation3 + $0x20] ss:$2 sm:$0xff]  ;;  %v7728_v48 = vld [vmem:[#allocation3 + $0x21] ss:$2 sm:$0xff]  ;;  %v10353_v62 = vld [vmem:[%s15369_s7 + $0x78] sm:$0xff] }
 0x43f   : > { %7556 = vst.msk [vmem:[#allocation5 + $0x60] sm:$0xff] %vm385_vm2, %v7539_v60  ;;  %v7251_v39 = vadd.f32 %v7234_v27, %v7210_v34  ;;  %v12010_v52 = vpop.f32.mrb[55].mxu1  ;;  %12088 = vmatmul.mubr.msk.f32.gmra.mrb[62].mxu1 %vm385_vm2, %v7604_v4  ;;  %12111 = vmatmul.mubr.msk.f32.gmra.mrb[64].mxu0 %vm385_vm2, %v7728_v48  ;;  %7586 = vst.msk [vmem:[#allocation3 + $0x33] sm:$0xff] %vm385_vm2, %v7585_v2  ;;  %v7863_v16 = vld [vmem:[#allocation3 + $0x22] ss:$2 sm:$0xff]  ;;  %v12487_v34 = vpack.c.bf16 %v10321_v12, %v10320_v55 }
 0x440   : > { %v7523_v32 = vld [vmem:[#allocation5 + $0x68] sm:$0xff]  ;;  %12090 = vmatprep.mubr.msk.f32.mxu1 %vm12580_vm5, %v12579_v10  ;;  %12113 = vmatprep.mubr.msk.f32.mxu0 %vm12580_vm5, %v12579_v10  ;;  %v10314_v2 = vld [vmem:[%s15367_s5 + $0xd8] sm:$0xff]  ;;  %v10322_v27 = vld [vmem:[%s15367_s5 + $0xf0] sm:$0xff] }
 0x441   : > { %v7540_v51 = vadd.f32 %v7523_v32, %v14793_v28  ;;  %7268 = vst.msk [vmem:[#allocation5 + $0x78] sm:$0xff] %vm385_vm2, %v7251_v39  ;;  %v8264_v60 = vld [vmem:[#allocation3 + $0xc] ss:$2 sm:$0xff]  ;;  %v12484_v48 = vpack.c.bf16 %v10314_v2, %v10313_v9  ;;  %v8131_v39 = vld [vmem:[#allocation3 + $0x1b] ss:$2 sm:$0xff] }
 0x442   : > { %v7215_v38 = vpop.f32.mrb[56].mxu1  ;;  %v10323_v4 = vld [vmem:[%s15367_s5 + $0xf8] sm:$0xff]  ;;  %v8266_v52 = vld [vmem:[#allocation3 + $0x1c] ss:$2 sm:$0xff] }
 0x443   : > { %7557 = vst.msk [vmem:[#allocation5 + $0x68] sm:$0xff] %vm385_vm2, %v7540_v51  ;;  %v7252_v11 = vadd.f32 %v7235_v59, %v7215_v38  ;;  %v12013_v7 = vpop.f32.mrb[57].mxu1  ;;  %v12490_v32 = vpack.c.bf16 %v10323_v4, %v10322_v27  ;;  %v10352_v5 = vld [vmem:[%s15369_s7 + $0x70] sm:$0xff] }
 0x444   : > { %v7524_v15 = vld [vmem:[#allocation5 + $0x70] sm:$0xff]  ;;  %v10329_v7 = vld [vmem:[%s15367_s5 + $0x100] sm:$0xff] }
 0x445   : > { %v7541_v46 = vadd.f32 %v7524_v15, %v14798_v13  ;;  %7269 = vst.msk [vmem:[#allocation5 + $0x80] sm:$0x3f] %vm857_vm3, %v7252_v11  ;;  %v10330_v15 = vld [vmem:[%s15367_s5 + $0x108] sm:$0xff] }
 0x446   : > { %v7587_v43 = vld [vmem:[#allocation5 + $0x5a] sm:$0xff] }
 0x447   : > { %7558 = vst.msk [vmem:[#allocation5 + $0x70] sm:$0xff] %vm385_vm2, %v7541_v46  ;;  %v7588_v41 = vadd.f32 %v14829_v50, %v7587_v43  ;;  %v7998_v14 = vld [vmem:[#allocation3 + $0x2a] ss:$2 sm:$0xff]  ;;  %v8133_v51 = vld [vmem:[#allocation3 + $0x2b] ss:$2 sm:$0xff] }
 0x448   : > { %v7525_v29 = vld [vmem:[#allocation5 + $0x78] sm:$0xff] }
 0x449   : > { %v7542_v28 = vadd.f32 %v7525_v29, %v14803_v47  ;;  %v7589_v19 = vmax.f32 %v7588_v41, 0.0  ;;  %v8268_v38 = vld [vmem:[#allocation3 + $0x2c] ss:$2 sm:$0xff]  ;;  %v12493_v41 = vpack.c.bf16 %v10330_v15, %v10329_v7 }
 0x44a   : > { %v10331_v29 = vld [vmem:[%s15367_s5 + $0x110] sm:$0xff] }
 0x44b   : > { %7559 = vst.msk [vmem:[#allocation5 + $0x78] sm:$0xff] %vm385_vm2, %v7542_v28  ;;  %7590 = vst.msk [vmem:[#allocation3 + $0x3d] sm:$0xff] %vm385_vm2, %v7589_v19  ;;  %v8399_v28 = vld [vmem:[#allocation3 + $0x14] ss:$2 sm:$0xff]  ;;  %v8534_v19 = vld [vmem:[#allocation3 + $0x15] ss:$2 sm:$0xff] }
 0x44c   : > { %v7526_v61 = vld [vmem:[#allocation5 + $0x80] sm:$0x3f] }
 0x44d   : > { %v7543_v33 = vadd.f32 %v7526_v61, %v14808_v54  ;;  %v10293_v54 = vld [vmem:[%s15367_s5 + $0x80] sm:$0xff]  ;;  %v10332_v61 = vld [vmem:[%s15367_s5 + $0x118] sm:$0xff] }
 0x44e   : > { %v7591_v53 = vld [vmem:[#allocation5 + $0x6c] sm:$0xff]  ;;  %v12469_v0 = vpack.c.bf16 %v10294_v22, %v10293_v54 }
 0x44f   : > { %7560 = vst.msk [vmem:[#allocation5 + $0x80] sm:$0x3f] %vm857_vm3, %v7543_v33  ;;  %v7592_v13 = vadd.f32 %v14829_v50, %v7591_v53  ;;  %v12496_v33 = vpack.c.bf16 %v10332_v61, %v10331_v29  ;;  %v8401_v53 = vld [vmem:[#allocation3 + $0x24] ss:$2 sm:$0xff] }
 0x451   : > { %v7593_v63 = vmax.f32 %v7592_v13, 0.0  ;;  %v8536_v13 = vld [vmem:[#allocation3 + $0x25] ss:$2 sm:$0xff] }
 0x452   : > { %v7606_v57 = vld [vmem:[#allocation3 + $0x30] ss:$2 sm:$0xff]  ;;  %v7730_v25 = vld [vmem:[#allocation3 + $0x31] ss:$2 sm:$0xff] }
 0x453   : > { %12091 = vmatmul.mubr.msk.f32.gmra.mrb[64].mxu1 %vm385_vm2, %v7606_v57  ;;  %12114 = vmatmul.mubr.msk.f32.gmra.mrb[66].mxu0 %vm385_vm2, %v7730_v25  ;;  %7594 = vst.msk [vmem:[#allocation3 + $0x47] sm:$0xff] %vm385_vm2, %v7593_v63  ;;  %v7608_v47 = vld [vmem:[#allocation3 + $0x40] ss:$2 sm:$0x3]  ;;  %v8538_v57 = vld [vmem:[#allocation3 + $0x35] ss:$2 sm:$0xff] }
 0x454   : > { %12093 = vmatprep.mubr.msk.f32.mxu1 %vm12580_vm5, %v12579_v10  ;;  %12116 = vmatprep.mubr.msk.f32.mxu0 %vm12580_vm5, %v12579_v10  ;;  %v7732_v20 = vld [vmem:[#allocation3 + $0x41] ss:$2 sm:$0x3]  ;;  %v7865_v42 = vld [vmem:[#allocation3 + $0x32] ss:$2 sm:$0xff] }
 0x455   : > { %v7867_v58 = vld [vmem:[#allocation3 + $0x42] ss:$2 sm:$0x3] }
 0x456   : > { %v7595_v37 = vld [vmem:[#allocation5 + $0x7e] sm:$0xff]  ;;  %v8673_v36 = vld [vmem:[#allocation3 + $0x36] ss:$2 sm:$0xff] }
 0x457   : > { %12094 = vmatmul.mubr.msk.f32.gmra.mrb[66].mxu1 %vm385_vm2, %v7608_v47  ;;  %12117 = vmatmul.mubr.msk.f32.gmra.mrb[68].mxu0 %vm385_vm2, %v7732_v20  ;;  %v7596_v56 = vadd.f32 %v14829_v50, %v7595_v37  ;;  %v10304_v50 = vld [vmem:[%s15367_s5 + $0xb0] sm:$0xff]  ;;  %v8403_v63 = vld [vmem:[#allocation3 + $0x34] ss:$2 sm:$0xff] }
 0x458   : > { %12127 = vmatprep.mubr.msk.f32.mxu1 %vm12580_vm5, %v12579_v10  ;;  %12150 = vmatprep.mubr.msk.f32.mxu0 %vm12580_vm5, %v12579_v10  ;;  %v12478_v8 = vpack.c.bf16 %v10305_v1, %v10304_v50  ;;  %v8669_v20 = vld [vmem:[#allocation3 + $0x16] ss:$2 sm:$0xff]  ;;  %v8671_v37 = vld [vmem:[#allocation3 + $0x26] ss:$2 sm:$0xff] }
 0x459   : > { %v7597_v21 = vmax.f32 %v7596_v56, 0.0 }
 0x45a   : > { %v8000_v30 = vld [vmem:[#allocation3 + $0x3a] ss:$2 sm:$0xff]  ;;  %v8002_v44 = vld [vmem:[#allocation3 + $0x4a] ss:$2 sm:$0x3] }
 0x45b   : > { %12128 = vmatmul.mubr.msk.f32.vlgmr.msra.gmra.mrb[68].mxu1 %vm385_vm2, %v7859_v31  ;;  %12151 = vmatmul.mubr.msk.f32.vlgmr.msra.gmra.mrb[70].mxu0 %vm385_vm2, %v7994_v18  ;;  %7598 = vst.msk [vmem:[#allocation3 + $0x51] sm:$0xff] %vm385_vm2, %v7597_v21  ;;  %v8135_v59 = vld [vmem:[#allocation3 + $0x3b] ss:$2 sm:$0xff]  ;;  %v8270_v11 = vld [vmem:[#allocation3 + $0x3c] ss:$2 sm:$0xff] }
 0x45c   : > { %12470 = vmatpush3.bf16.msra.mxu1 %v12469_v0  ;;  %12130 = vmatprep.mubr.msk.f32.mxu1 %vm12580_vm5, %v12579_v10  ;;  %v8137_v46 = vld [vmem:[#allocation3 + $0x4b] ss:$2 sm:$0x3]  ;;  %v8272_v43 = vld [vmem:[#allocation3 + $0x4c] ss:$2 sm:$0x3] }
 0x45d   : > { %12153 = vmatprep.mubr.msk.f32.mxu0 %vm12580_vm5, %v12579_v10  ;;  %12471 = vmatprep.subr.bf16.mxu1 %v12578_v49  ;;  %v8828_v18 = vld [vmem:[%s15369_s7] sm:$0xff] }
 0x45e   : > { %12476 = vmatpush3.bf16.msra.mxu0 %v12475_v40  ;;  %v12499_v50 = vpack.c.bf16 %v8829_v23, %v8828_v18 }
 0x45f   : > { %12131 = vmatmul.mubr.msk.f32.gmra.mrb[70].mxu1 %vm385_vm2, %v7861_v26  ;;  %12154 = vmatmul.mubr.msk.f32.gmra.mrb[72].mxu0 %vm385_vm2, %v7996_v3  ;;  %v8831_v26 = vld [vmem:[%s15369_s7 + $0x18] sm:$0xff]  ;;  %v10350_v3 = vld [vmem:[%s15369_s7 + $0x60] sm:$0xff] }
 0x460   : > { %12133 = vmatprep.mubr.msk.f32.mxu1 %vm12580_vm5, %v12579_v10  ;;  %12156 = vmatprep.mubr.msk.f32.mxu0 %vm12580_vm5, %v12579_v10 }
 0x461   : > { %12473 = vmatpush3.bf16.msra.mxu1 %v12472_v35  ;;  %12477 = vmatprep.subr.bf16.mxu0 %v12578_v49  ;;  %v8830_v35 = vld [vmem:[%s15369_s7 + $0x10] sm:$0xff] }
 0x462   : > { %12479 = vmatpush3.bf16.msra.mxu0 %v12478_v8  ;;  %12480 = vmatprep.subr.bf16.mxu1 %v12578_v49  ;;  %v8405_v25 = vld [vmem:[#allocation3 + $0x44] ss:$2 sm:$0xff]  ;;  %v8540_v47 = vld [vmem:[#allocation3 + $0x45] ss:$2 sm:$0xff] }
 0x463   : > { %12134 = vmatmul.mubr.msk.f32.gmra.mrb[72].mxu1 %vm385_vm2, %v7863_v16  ;;  %12157 = vmatmul.mubr.msk.f32.gmra.mrb[74].mxu0 %vm385_vm2, %v7998_v14  ;;  %v8407_v54 = vld [vmem:[#allocation3 + $0x54] ss:$2 sm:$0x3]  ;;  %v8542_v22 = vld [vmem:[#allocation3 + $0x55] ss:$2 sm:$0x3]  ;;  %v12502_v16 = vpack.c.bf16 %v8831_v26, %v8830_v35 }
 0x464   : > { %12136 = vmatprep.mubr.msk.f32.mxu1 %vm12580_vm5, %v12579_v10  ;;  %12159 = vmatprep.mubr.msk.f32.mxu0 %vm12580_vm5, %v12579_v10  ;;  %v8675_v17 = vld [vmem:[#allocation3 + $0x46] ss:$2 sm:$0xff]  ;;  %v8677_v56 = vld [vmem:[#allocation3 + $0x56] ss:$2 sm:$0x3] }
 0x465   : > { %12486 = vmatprep.subr.bf16.mxu0 %v12578_v49  ;;  %v10351_v14 = vld [vmem:[%s15369_s7 + $0x68] sm:$0xff] }
 0x467   : > { %12137 = vmatmul.mubr.msk.f32.gmra.mrb[74].mxu1 %vm385_vm2, %v7865_v42  ;;  %12160 = vmatmul.mubr.msk.f32.gmra.mrb[76].mxu0 %vm385_vm2, %v8000_v30  ;;  %v12517_v30 = vpack.c.bf16 %v10351_v14, %v10350_v3 }
 0x468   : > { %12139 = vmatprep.mubr.msk.f32.mxu1 %vm12580_vm5, %v12579_v10  ;;  %12162 = vmatprep.mubr.msk.f32.mxu0 %vm12580_vm5, %v12579_v10 }
 0x46b   : > { %12140 = vmatmul.mubr.msk.f32.gmra.mrb[76].mxu1 %vm385_vm2, %v7867_v58  ;;  %12163 = vmatmul.mubr.msk.f32.gmra.mrb[78].mxu0 %vm385_vm2, %v8002_v44  ;;  %v12520_v58 = vpack.c.bf16 %v10353_v62, %v10352_v5 }
 0x46c   : > { %12173 = vmatprep.mubr.msk.f32.mxu1 %vm12580_vm5, %v12579_v10  ;;  %12196 = vmatprep.mubr.msk.f32.mxu0 %vm12580_vm5, %v12579_v10 }
 0x46f   : > { %12174 = vmatmul.mubr.msk.f32.vlgmr.msra.gmra.mrb[78].mxu1 %vm385_vm2, %v8129_v24  ;;  %12197 = vmatmul.mubr.msk.f32.vlgmr.msra.gmra.mrb[80].mxu0 %vm385_vm2, %v8264_v60 }
 0x470   : > { %12482 = vmatpush3.bf16.msra.mxu1 %v12481_v45  ;;  %12176 = vmatprep.mubr.msk.f32.mxu1 %vm12580_vm5, %v12579_v10 }
 0x471   : > { %12199 = vmatprep.mubr.msk.f32.mxu0 %vm12580_vm5, %v12579_v10  ;;  %12483 = vmatprep.subr.bf16.mxu1 %v12578_v49 }
 0x472   : > { %12488 = vmatpush3.bf16.msra.mxu0 %v12487_v34 }
 0x473   : > { %12177 = vmatmul.mubr.msk.f32.gmra.mrb[80].mxu1 %vm385_vm2, %v8131_v39  ;;  %12200 = vmatmul.mubr.msk.f32.gmra.mrb[82].mxu0 %vm385_vm2, %v8266_v52 }
 0x474   : > { %12179 = vmatprep.mubr.msk.f32.mxu1 %vm12580_vm5, %v12579_v10  ;;  %12202 = vmatprep.mubr.msk.f32.mxu0 %vm12580_vm5, %v12579_v10 }
 0x475   : > { %12485 = vmatpush3.bf16.msra.mxu1 %v12484_v48  ;;  %12489 = vmatprep.subr.bf16.mxu0 %v12578_v49 }
 0x476   : > { %12491 = vmatpush3.bf16.msra.mxu0 %v12490_v32  ;;  %12492 = vmatprep.subr.bf16.mxu1 %v12578_v49 }
 0x477   : > { %12180 = vmatmul.mubr.msk.f32.gmra.mrb[82].mxu1 %vm385_vm2, %v8133_v51  ;;  %12203 = vmatmul.mubr.msk.f32.gmra.mrb[84].mxu0 %vm385_vm2, %v8268_v38 }
 0x478   : > { %12182 = vmatprep.mubr.msk.f32.mxu1 %vm12580_vm5, %v12579_v10  ;;  %12205 = vmatprep.mubr.msk.f32.mxu0 %vm12580_vm5, %v12579_v10 }
 0x479   : > { %12498 = vmatprep.subr.bf16.mxu0 %v12578_v49 }
 0x47b   : > { %12183 = vmatmul.mubr.msk.f32.gmra.mrb[84].mxu1 %vm385_vm2, %v8135_v59  ;;  %12206 = vmatmul.mubr.msk.f32.gmra.mrb[86].mxu0 %vm385_vm2, %v8270_v11 }
 0x47c   : > { %12185 = vmatprep.mubr.msk.f32.mxu1 %vm12580_vm5, %v12579_v10  ;;  %12208 = vmatprep.mubr.msk.f32.mxu0 %vm12580_vm5, %v12579_v10 }
 0x47f   : > { %12186 = vmatmul.mubr.msk.f32.gmra.mrb[86].mxu1 %vm385_vm2, %v8137_v46  ;;  %12209 = vmatmul.mubr.msk.f32.gmra.mrb[88].mxu0 %vm385_vm2, %v8272_v43 }
 0x480   : > { %12219 = vmatprep.mubr.msk.f32.mxu1 %vm12580_vm5, %v12579_v10  ;;  %12242 = vmatprep.mubr.msk.f32.mxu0 %vm12580_vm5, %v12579_v10 }
 0x483   : > { %12220 = vmatmul.mubr.msk.f32.vlgmr.msra.gmra.mrb[88].mxu1 %vm385_vm2, %v8399_v28  ;;  %12243 = vmatmul.mubr.msk.f32.vlgmr.msra.gmra.mrb[90].mxu0 %vm385_vm2, %v8534_v19 }
 0x484   : > { %12494 = vmatpush3.bf16.msra.mxu1 %v12493_v41  ;;  %12222 = vmatprep.mubr.msk.f32.mxu1 %vm12580_vm5, %v12579_v10 }
 0x485   : > { %12245 = vmatprep.mubr.msk.f32.mxu0 %vm12580_vm5, %v12579_v10  ;;  %12495 = vmatprep.subr.bf16.mxu1 %v12578_v49 }
 0x486   : > { %12500 = vmatpush3.bf16.msra.mxu0 %v12499_v50 }
 0x487   : > { %12223 = vmatmul.mubr.msk.f32.gmra.mrb[90].mxu1 %vm385_vm2, %v8401_v53  ;;  %12246 = vmatmul.mubr.msk.f32.gmra.mrb[92].mxu0 %vm385_vm2, %v8536_v13 }
 0x488   : > { %12225 = vmatprep.mubr.msk.f32.mxu1 %vm12580_vm5, %v12579_v10  ;;  %12248 = vmatprep.mubr.msk.f32.mxu0 %vm12580_vm5, %v12579_v10 }
 0x489   : > { %12497 = vmatpush3.bf16.msra.mxu1 %v12496_v33  ;;  %12501 = vmatprep.subr.bf16.mxu0 %v12578_v49 }
 0x48a   : > { %12516 = vmatprep.subr.bf16.mxu1 %v12578_v49  ;;  %12503 = vmatpush3.bf16.msra.mxu0 %v12502_v16 }
 0x48b   : > { %12226 = vmatmul.mubr.msk.f32.gmra.mrb[92].mxu1 %vm385_vm2, %v8403_v63  ;;  %12249 = vmatmul.mubr.msk.f32.gmra.mrb[94].mxu0 %vm385_vm2, %v8538_v57 }
 0x48c   : > { %12228 = vmatprep.mubr.msk.f32.mxu1 %vm12580_vm5, %v12579_v10  ;;  %12251 = vmatprep.mubr.msk.f32.mxu0 %vm12580_vm5, %v12579_v10 }
 0x48d   : > { %12504 = vmatprep.subr.bf16.mxu0 %v12578_v49 }
 0x48f   : > { %12229 = vmatmul.mubr.msk.f32.gmra.mrb[94].mxu1 %vm385_vm2, %v8405_v25  ;;  %12252 = vmatmul.mubr.msk.f32.gmra.mrb[96].mxu0 %vm385_vm2, %v8540_v47 }
 0x490   : > { %12231 = vmatprep.mubr.msk.f32.mxu1 %vm12580_vm5, %v12579_v10  ;;  %12254 = vmatprep.mubr.msk.f32.mxu0 %vm12580_vm5, %v12579_v10 }
 0x493   : > { %12232 = vmatmul.mubr.msk.f32.gmra.mrb[96].mxu1 %vm385_vm2, %v8407_v54  ;;  %12255 = vmatmul.mubr.msk.f32.gmra.mrb[98].mxu0 %vm385_vm2, %v8542_v22 }
 0x494   : > { %12265 = vmatprep.mubr.msk.f32.mxu1 %vm12580_vm5, %v12579_v10  ;;  %12288 = vmatprep.mubr.msk.f32.mxu0 %vm12580_vm5, %v12579_v10 }
 0x497   : > { %12266 = vmatmul.mubr.msk.f32.vlgmr.msra.gmra.mrb[98].mxu1 %vm385_vm2, %v8669_v20 }
 0x498   : > { %12268 = vmatprep.mubr.msk.f32.mxu1 %vm12580_vm5, %v12579_v10  ;;  %12518 = vmatpush3.bf16.msra.mxu1 %v12517_v30 }
 0x499   : > { %12519 = vmatprep.subr.bf16.mxu1 %v12578_v49 }
 0x49b   : > { %12269 = vmatmul.mubr.msk.f32.gmra.mrb[100].mxu1 %vm385_vm2, %v8671_v37 }
 0x49c   : > { %12271 = vmatprep.mubr.msk.f32.mxu1 %vm12580_vm5, %v12579_v10  ;;  %12521 = vmatpush3.bf16.msra.mxu1 %v12520_v58 }
 0x49d   : > { %12528 = vmatprep.subr.bf16.mxu1 %v12578_v49 }
 0x49f   : > { %12272 = vmatmul.mubr.msk.f32.gmra.mrb[102].mxu1 %vm385_vm2, %v8673_v36 }
 0x4a0   : > { %12274 = vmatprep.mubr.msk.f32.mxu1 %vm12580_vm5, %v12579_v10 }
 0x4a3   : > { %12275 = vmatmul.mubr.msk.f32.gmra.mrb[104].mxu1 %vm385_vm2, %v8675_v17 }
 0x4a4   : > { %12277 = vmatprep.mubr.msk.f32.mxu1 %vm12580_vm5, %v12579_v10 }
 0x4a7   : > { %12278 = vmatmul.mubr.msk.f32.gmra.mrb[106].mxu1 %vm385_vm2, %v8677_v56 }
 0x4a8   : > { %12321 = vmatprep.mubr.msk.f32.mxu1 %vm12580_vm5, %v12579_v10 }
 0x4f7   : > { %v7694_v0 = vpop.f32.mrb[58].mxu1  ;;  %v7819_v6 = vpop.f32.mrb[60].mxu0 }
 0x4f8   : > { %7718 = vst.msk [vmem:[#allocation5] sm:$0xff] %vm385_vm2, %v7694_v0  ;;  %v12083_v21 = vpop.f32.mrb[59].mxu1  ;;  %v12106_v31 = vpop.f32.mrb[61].mxu0 }
 0x4ff   : > { %v7843_v40 = vld [vmem:[#allocation5] sm:$0xff] }
 0x500   : > { %v7848_v1 = vadd.f32 %v7843_v40, %v7819_v6 }
 0x502   : > { %7853 = vst.msk [vmem:[#allocation5] sm:$0xff] %vm385_vm2, %v7848_v1  ;;  %v7699_v8 = vpop.f32.mrb[60].mxu1 }
 0x503   : > { %7719 = vst.msk [vmem:[#allocation5 + $0x8] sm:$0xff] %vm385_vm2, %v7699_v8  ;;  %v12086_v42 = vpop.f32.mrb[61].mxu1 }
 0x509   : > { %v7978_v15 = vld [vmem:[#allocation5] sm:$0xff] }
 0x50a   : > { %v7824_v44 = vpop.f32.mrb[62].mxu0  ;;  %v7844_v55 = vld [vmem:[#allocation5 + $0x8] sm:$0xff] }
 0x50b   : > { %v7849_v12 = vadd.f32 %v7844_v55, %v7824_v44  ;;  %v12109_v45 = vpop.f32.mrb[63].mxu0 }
 0x50d   : > { %7854 = vst.msk [vmem:[#allocation5 + $0x8] sm:$0xff] %vm385_vm2, %v7849_v12 }
 0x512   : > { %v7704_v9 = vpop.f32.mrb[62].mxu1  ;;  %v7829_v24 = vpop.f32.mrb[64].mxu0 }
 0x513   : > { %7720 = vst.msk [vmem:[#allocation5 + $0x10] sm:$0xff] %vm385_vm2, %v7704_v9  ;;  %v12089_v60 = vpop.f32.mrb[63].mxu1  ;;  %v12112_v2 = vpop.f32.mrb[65].mxu0 }
 0x514   : > { %v7979_v33 = vld [vmem:[#allocation5 + $0x8] sm:$0xff] }
 0x51a   : > { %v7845_v34 = vld [vmem:[#allocation5 + $0x10] sm:$0xff] }
 0x51b   : > { %v7850_v27 = vadd.f32 %v7845_v34, %v7829_v24 }
 0x51d   : > { %7855 = vst.msk [vmem:[#allocation5 + $0x10] sm:$0xff] %vm385_vm2, %v7850_v27 }
 0x524   : > { %v7980_v54 = vld [vmem:[#allocation5 + $0x10] sm:$0xff] }
 0x526   : > { %v7709_v4 = vpop.f32.mrb[64].mxu1  ;;  %v7834_v48 = vpop.f32.mrb[66].mxu0 }
 0x527   : > { %7721 = vst.msk [vmem:[#allocation5 + $0x18] sm:$0xff] %vm385_vm2, %v7709_v4  ;;  %v12092_v39 = vpop.f32.mrb[65].mxu1  ;;  %v12115_v52 = vpop.f32.mrb[67].mxu0 }
 0x52a   : > { %v7714_v32 = vpop.f32.mrb[66].mxu1  ;;  %v7839_v51 = vpop.f32.mrb[68].mxu0 }
 0x52b   : > { %7722 = vst.msk [vmem:[#allocation5 + $0x20] sm:$0x3] %vm390_vm6, %v7714_v32  ;;  %v12095_v38 = vpop.f32.mrb[67].mxu1  ;;  %v12118_v59 = vpop.f32.mrb[69].mxu0 }
 0x52e   : > { %v7846_v11 = vld [vmem:[#allocation5 + $0x18] sm:$0xff]  ;;  %v7954_v7 = vpop.f32.mrb[68].mxu1  ;;  %v8089_v46 = vpop.f32.mrb[70].mxu0 }
 0x52f   : > { %v7851_v43 = vadd.f32 %v7846_v11, %v7834_v48  ;;  %v7983_v41 = vadd.f32 %v7978_v15, %v7954_v7  ;;  %v12129_v29 = vpop.f32.mrb[69].mxu1  ;;  %v12152_v28 = vpop.f32.mrb[71].mxu0 }
 0x531   : > { %7856 = vst.msk [vmem:[#allocation5 + $0x18] sm:$0xff] %vm385_vm2, %v7851_v43  ;;  %7988 = vst.msk [vmem:[#allocation5] sm:$0xff] %vm385_vm2, %v7983_v41 }
 0x532   : > { %v7847_v19 = vld [vmem:[#allocation5 + $0x20] sm:$0x3]  ;;  %v7959_v61 = vpop.f32.mrb[70].mxu1  ;;  %v8094_v53 = vpop.f32.mrb[72].mxu0 }
 0x533   : > { %v7852_v13 = vadd.f32 %v7847_v19, %v7839_v51  ;;  %v7984_v63 = vadd.f32 %v7979_v33, %v7959_v61  ;;  %v12132_v57 = vpop.f32.mrb[71].mxu1  ;;  %v12155_v25 = vpop.f32.mrb[73].mxu0 }
 0x535   : > { %7857 = vst.msk [vmem:[#allocation5 + $0x20] sm:$0x3] %vm390_vm6, %v7852_v13 }
 0x536   : > { %7989 = vst.msk [vmem:[#allocation5 + $0x8] sm:$0xff] %vm385_vm2, %v7984_v63  ;;  %v7964_v47 = vpop.f32.mrb[72].mxu1  ;;  %v8099_v22 = vpop.f32.mrb[74].mxu0 }
 0x537   : > { %v7985_v20 = vadd.f32 %v7980_v54, %v7964_v47  ;;  %v12135_v37 = vpop.f32.mrb[73].mxu1  ;;  %v12158_v36 = vpop.f32.mrb[75].mxu0 }
 0x538   : > { %v8113_v17 = vld [vmem:[#allocation5] sm:$0xff]  ;;  %v7981_v6 = vld [vmem:[#allocation5 + $0x18] sm:$0xff] }
 0x539   : > { %v8118_v56 = vadd.f32 %v8113_v17, %v8089_v46  ;;  %7990 = vst.msk [vmem:[#allocation5 + $0x10] sm:$0xff] %vm385_vm2, %v7985_v20 }
 0x53a   : > { %v7969_v0 = vpop.f32.mrb[74].mxu1  ;;  %v8104_v21 = vpop.f32.mrb[76].mxu0 }
 0x53b   : > { %8123 = vst.msk [vmem:[#allocation5] sm:$0xff] %vm385_vm2, %v8118_v56  ;;  %v7986_v31 = vadd.f32 %v7981_v6, %v7969_v0  ;;  %v12138_v18 = vpop.f32.mrb[75].mxu1  ;;  %v12161_v23 = vpop.f32.mrb[77].mxu0 }
 0x53c   : > { %v7982_v35 = vld [vmem:[#allocation5 + $0x20] sm:$0x3] }
 0x53d   : > { %v8114_v40 = vld [vmem:[#allocation5 + $0x8] sm:$0xff]  ;;  %7991 = vst.msk [vmem:[#allocation5 + $0x18] sm:$0xff] %vm385_vm2, %v7986_v31 }
 0x53e   : > { %v8119_v50 = vadd.f32 %v8114_v40, %v8094_v53  ;;  %v7974_v1 = vpop.f32.mrb[76].mxu1  ;;  %v8109_v26 = vpop.f32.mrb[78].mxu0 }
 0x53f   : > { %v7987_v3 = vadd.f32 %v7982_v35, %v7974_v1  ;;  %v12141_v8 = vpop.f32.mrb[77].mxu1  ;;  %v12164_v16 = vpop.f32.mrb[79].mxu0 }
 0x540   : > { %8124 = vst.msk [vmem:[#allocation5 + $0x8] sm:$0xff] %vm385_vm2, %v8119_v50  ;;  %v8115_v14 = vld [vmem:[#allocation5 + $0x10] sm:$0xff] }
 0x541   : > { %v8120_v42 = vadd.f32 %v8115_v14, %v8099_v22  ;;  %7992 = vst.msk [vmem:[#allocation5 + $0x20] sm:$0x3] %vm390_vm6, %v7987_v3 }
 0x542   : > { %v8224_v30 = vpop.f32.mrb[78].mxu1  ;;  %v8248_v5 = vld [vmem:[#allocation5] sm:$0xff]  ;;  %v8359_v62 = vpop.f32.mrb[80].mxu0 }
 0x543   : > { %8125 = vst.msk [vmem:[#allocation5 + $0x10] sm:$0xff] %vm385_vm2, %v8120_v42  ;;  %v8253_v58 = vadd.f32 %v8248_v5, %v8224_v30  ;;  %v12175_v44 = vpop.f32.mrb[79].mxu1  ;;  %v12198_v55 = vpop.f32.mrb[81].mxu0 }
 0x544   : > { %v8116_v12 = vld [vmem:[#allocation5 + $0x18] sm:$0xff] }
 0x545   : > { %v8121_v45 = vadd.f32 %v8116_v12, %v8104_v21  ;;  %8258 = vst.msk [vmem:[#allocation5] sm:$0xff] %vm385_vm2, %v8253_v58 }
 0x546   : > { %v8229_v9 = vpop.f32.mrb[80].mxu1  ;;  %v8364_v60 = vpop.f32.mrb[82].mxu0 }
 0x547   : > { %v8249_v24 = vld [vmem:[#allocation5 + $0x8] sm:$0xff]  ;;  %8126 = vst.msk [vmem:[#allocation5 + $0x18] sm:$0xff] %vm385_vm2, %v8121_v45  ;;  %v12178_v34 = vpop.f32.mrb[81].mxu1  ;;  %v12201_v27 = vpop.f32.mrb[83].mxu0 }
 0x548   : > { %v8254_v2 = vadd.f32 %v8249_v24, %v8229_v9  ;;  %v8117_v4 = vld [vmem:[#allocation5 + $0x20] sm:$0x3] }
 0x549   : > { %v8122_v48 = vadd.f32 %v8117_v4, %v8109_v26 }
 0x54a   : > { %8259 = vst.msk [vmem:[#allocation5 + $0x8] sm:$0xff] %vm385_vm2, %v8254_v2  ;;  %v8234_v39 = vpop.f32.mrb[82].mxu1  ;;  %v8250_v52 = vld [vmem:[#allocation5 + $0x10] sm:$0xff]  ;;  %v8369_v32 = vpop.f32.mrb[84].mxu0 }
 0x54b   : > { %8127 = vst.msk [vmem:[#allocation5 + $0x20] sm:$0x3] %vm390_vm6, %v8122_v48  ;;  %v8255_v51 = vadd.f32 %v8250_v52, %v8234_v39  ;;  %v12181_v38 = vpop.f32.mrb[83].mxu1  ;;  %v12204_v59 = vpop.f32.mrb[85].mxu0 }
 0x54c   : > { %v8383_v11 = vld [vmem:[#allocation5] sm:$0xff] }
 0x54d   : > { %v8388_v7 = vadd.f32 %v8383_v11, %v8359_v62  ;;  %8260 = vst.msk [vmem:[#allocation5 + $0x10] sm:$0xff] %vm385_vm2, %v8255_v51 }
 0x54e   : > { %v8239_v15 = vpop.f32.mrb[84].mxu1  ;;  %v8251_v46 = vld [vmem:[#allocation5 + $0x18] sm:$0xff]  ;;  %v8374_v43 = vpop.f32.mrb[86].mxu0 }
 0x54f   : > { %8393 = vst.msk [vmem:[#allocation5] sm:$0xff] %vm385_vm2, %v8388_v7  ;;  %v8256_v41 = vadd.f32 %v8251_v46, %v8239_v15  ;;  %v12184_v29 = vpop.f32.mrb[85].mxu1  ;;  %v12207_v28 = vpop.f32.mrb[87].mxu0 }
 0x551   : > { %v8384_v19 = vld [vmem:[#allocation5 + $0x8] sm:$0xff]  ;;  %8261 = vst.msk [vmem:[#allocation5 + $0x18] sm:$0xff] %vm385_vm2, %v8256_v41 }
 0x552   : > { %v8389_v61 = vadd.f32 %v8384_v19, %v8364_v60  ;;  %v8244_v33 = vpop.f32.mrb[86].mxu1  ;;  %v8252_v53 = vld [vmem:[#allocation5 + $0x20] sm:$0x3]  ;;  %v8379_v13 = vpop.f32.mrb[88].mxu0  ;;  %v10338_v19 = vld [vmem:[%s15368_s6] ss:$0 sm:$0xff] }
 0x553   : > { %v8257_v63 = vadd.f32 %v8252_v53, %v8244_v33  ;;  %v12187_v57 = vpop.f32.mrb[87].mxu1  ;;  %v12210_v25 = vpop.f32.mrb[89].mxu0 }
 0x554   : > { %8394 = vst.msk [vmem:[#allocation5 + $0x8] sm:$0xff] %vm385_vm2, %v8389_v61  ;;  %v8385_v47 = vld [vmem:[#allocation5 + $0x10] sm:$0xff] }
 0x555   : > { %v8390_v54 = vadd.f32 %v8385_v47, %v8369_v32  ;;  %8262 = vst.msk [vmem:[#allocation5 + $0x20] sm:$0x3] %vm390_vm6, %v8257_v63 }
 0x556   : > { %v8494_v22 = vpop.f32.mrb[88].mxu1  ;;  %v8518_v20 = vld [vmem:[#allocation5] sm:$0xff]  ;;  %v8629_v37 = vpop.f32.mrb[90].mxu0 }
 0x557   : > { %8395 = vst.msk [vmem:[#allocation5 + $0x10] sm:$0xff] %vm385_vm2, %v8390_v54  ;;  %v8523_v36 = vadd.f32 %v8518_v20, %v8494_v22  ;;  %v12221_v17 = vpop.f32.mrb[89].mxu1  ;;  %v12244_v56 = vpop.f32.mrb[91].mxu0 }
 0x558   : > { %v8386_v0 = vld [vmem:[#allocation5 + $0x18] sm:$0xff] }
 0x559   : > { %v8391_v6 = vadd.f32 %v8386_v0, %v8374_v43  ;;  %8528 = vst.msk [vmem:[#allocation5] sm:$0xff] %vm385_vm2, %v8523_v36 }
 0x55a   : > { %v8499_v21 = vpop.f32.mrb[90].mxu1  ;;  %v8634_v18 = vpop.f32.mrb[92].mxu0 }
 0x55b   : > { %v8519_v31 = vld [vmem:[#allocation5 + $0x8] sm:$0xff]  ;;  %8396 = vst.msk [vmem:[#allocation5 + $0x18] sm:$0xff] %vm385_vm2, %v8391_v6  ;;  %v12224_v40 = vpop.f32.mrb[91].mxu1  ;;  %v12247_v50 = vpop.f32.mrb[93].mxu0 }
 0x55c   : > { %v8524_v23 = vadd.f32 %v8519_v31, %v8499_v21  ;;  %v8387_v1 = vld [vmem:[#allocation5 + $0x20] sm:$0x3]  ;;  %v10340_v40 = vld [vmem:[%s15369_s7 + $0x20] sm:$0xff]  ;;  %v10341_v50 = vld [vmem:[%s15369_s7 + $0x28] sm:$0xff] }
 0x55d   : > { %v8392_v35 = vadd.f32 %v8387_v1, %v8379_v13  ;;  %v12505_v1 = vpack.c.bf16 %v10341_v50, %v10340_v40 }
 0x55e   : > { %8529 = vst.msk [vmem:[#allocation5 + $0x8] sm:$0xff] %vm385_vm2, %v8524_v23  ;;  %v8504_v26 = vpop.f32.mrb[92].mxu1  ;;  %v8520_v3 = vld [vmem:[#allocation5 + $0x10] sm:$0xff]  ;;  %v8639_v8 = vpop.f32.mrb[94].mxu0 }
 0x55f   : > { %8397 = vst.msk [vmem:[#allocation5 + $0x20] sm:$0x3] %vm390_vm6, %v8392_v35  ;;  %v8525_v16 = vadd.f32 %v8520_v3, %v8504_v26  ;;  %v12227_v14 = vpop.f32.mrb[93].mxu1  ;;  %v12250_v42 = vpop.f32.mrb[95].mxu0  ;;  %v10342_v35 = vld [vmem:[%s15369_s7 + $0x30] sm:$0xff]  ;;  %v10343_v26 = vld [vmem:[%s15369_s7 + $0x38] sm:$0xff] }
 0x560   : > { %v8653_v30 = vld [vmem:[#allocation5] sm:$0xff]  ;;  %v10360_v3 = vld [vmem:[%s15369_s7 + $0xa0] sm:$0xff]  ;;  %v12508_v42 = vpack.c.bf16 %v10343_v26, %v10342_v35 }
 0x561   : > { %v8658_v5 = vadd.f32 %v8653_v30, %v8629_v37  ;;  %8530 = vst.msk [vmem:[#allocation5 + $0x10] sm:$0xff] %vm385_vm2, %v8525_v16 }
 0x562   : > { %v8509_v62 = vpop.f32.mrb[94].mxu1  ;;  %v8521_v58 = vld [vmem:[#allocation5 + $0x18] sm:$0xff]  ;;  %v8644_v44 = vpop.f32.mrb[96].mxu0 }
 0x563   : > { %8663 = vst.msk [vmem:[#allocation5] sm:$0xff] %vm385_vm2, %v8658_v5  ;;  %v8526_v55 = vadd.f32 %v8521_v58, %v8509_v62  ;;  %v12230_v12 = vpop.f32.mrb[95].mxu1  ;;  %v12253_v45 = vpop.f32.mrb[97].mxu0  ;;  %v10345_v5 = vld [vmem:[%s15369_s7 + $0x40] sm:$0xff]  ;;  %v10346_v58 = vld [vmem:[%s15369_s7 + $0x48] sm:$0xff] }
 0x565   : > { %v8654_v9 = vld [vmem:[#allocation5 + $0x8] sm:$0xff]  ;;  %8531 = vst.msk [vmem:[#allocation5 + $0x18] sm:$0xff] %vm385_vm2, %v8526_v55  ;;  %v10363_v55 = vld [vmem:[%s15369_s7 + $0xb8] sm:$0xff] }
 0x566   : > { %v8659_v24 = vadd.f32 %v8654_v9, %v8634_v18  ;;  %v8514_v60 = vpop.f32.mrb[96].mxu1  ;;  %v8522_v2 = vld [vmem:[#allocation5 + $0x20] sm:$0x3]  ;;  %v8649_v34 = vpop.f32.mrb[98].mxu0  ;;  %v12511_v9 = vpack.c.bf16 %v10346_v58, %v10345_v5 }
 0x567   : > { %v8527_v27 = vadd.f32 %v8522_v2, %v8514_v60  ;;  %v12233_v4 = vpop.f32.mrb[97].mxu1  ;;  %v12256_v48 = vpop.f32.mrb[99].mxu0  ;;  %v10347_v60 = vld [vmem:[%s15369_s7 + $0x50] sm:$0xff]  ;;  %v10348_v2 = vld [vmem:[%s15369_s7 + $0x58] sm:$0xff] }
 0x568   : > { %8664 = vst.msk [vmem:[#allocation5 + $0x8] sm:$0xff] %vm385_vm2, %v8659_v24  ;;  %v8655_v39 = vld [vmem:[#allocation5 + $0x10] sm:$0xff]  ;;  %v12514_v48 = vpack.c.bf16 %v10348_v2, %v10347_v60 }
 0x569   : > { %v8660_v52 = vadd.f32 %v8655_v39, %v8639_v8  ;;  %8532 = vst.msk [vmem:[#allocation5 + $0x20] sm:$0x3] %vm390_vm6, %v8527_v27  ;;  %v10361_v8 = vld [vmem:[%s15369_s7 + $0xa8] sm:$0xff] }
 0x56a   : > { %v8764_v32 = vpop.f32.mrb[98].mxu1  ;;  %v8788_v51 = vld [vmem:[#allocation5] sm:$0xff]  ;;  %v12529_v30 = vpack.c.bf16 %v10361_v8, %v10360_v3  ;;  %v10371_v27 = vld [vmem:[%s15369_s7 + $0xe8] sm:$0xff] }
 0x56b   : > { %8665 = vst.msk [vmem:[#allocation5 + $0x10] sm:$0xff] %vm385_vm2, %v8660_v52  ;;  %v8793_v38 = vadd.f32 %v8788_v51, %v8764_v32  ;;  %v12267_v59 = vpop.f32.mrb[99].mxu1  ;;  %v10355_v52 = vld [vmem:[%s15369_s7 + $0x80] sm:$0xff]  ;;  %v10356_v32 = vld [vmem:[%s15369_s7 + $0x88] sm:$0xff]  ;;  %v10372_v51 = vld [vmem:[%s15369_s7 + $0xf0] sm:$0xff] }
 0x56c   : > { %v8656_v11 = vld [vmem:[#allocation5 + $0x18] sm:$0xff] }
 0x56d   : > { %v8661_v7 = vadd.f32 %v8656_v11, %v8644_v44  ;;  %8798 = vst.msk [vmem:[#allocation5] sm:$0xff] %vm385_vm2, %v8793_v38  ;;  %v10362_v44 = vld [vmem:[%s15369_s7 + $0xb0] sm:$0xff]  ;;  %v10373_v38 = vld [vmem:[%s15369_s7 + $0xf8] sm:$0xff]  ;;  %v12523_v11 = vpack.c.bf16 %v10356_v32, %v10355_v52 }
 0x56e   : > { %v8769_v15 = vpop.f32.mrb[100].mxu1  ;;  %v12532_v24 = vpack.c.bf16 %v10363_v55, %v10362_v44 }
 0x56f   : > { %v8789_v46 = vld [vmem:[#allocation5 + $0x8] sm:$0xff]  ;;  %8666 = vst.msk [vmem:[#allocation5 + $0x18] sm:$0xff] %vm385_vm2, %v8661_v7  ;;  %v12270_v41 = vpop.f32.mrb[101].mxu1  ;;  %v12544_v7 = vpack.c.bf16 %v10373_v38, %v10372_v51 }
 0x570   : > { %v8794_v43 = vadd.f32 %v8789_v46, %v8769_v15  ;;  %v8657_v29 = vld [vmem:[#allocation5 + $0x20] sm:$0x3]  ;;  %v10357_v15 = vld [vmem:[%s15369_s7 + $0x90] sm:$0xff]  ;;  %v10380_v38 = vld [vmem:[%s15370_s8] ss:$0 sm:$0xff] }
 0x571   : > { %v8662_v28 = vadd.f32 %v8657_v29, %v8649_v34  ;;  %v10370_v34 = vld [vmem:[%s15369_s7 + $0xe0] sm:$0xff]  ;;  %v10358_v46 = vld [vmem:[%s15369_s7 + $0x98] sm:$0xff] }
 0x572   : > { %8799 = vst.msk [vmem:[#allocation5 + $0x8] sm:$0xff] %vm385_vm2, %v8794_v43  ;;  %v8774_v61 = vpop.f32.mrb[102].mxu1  ;;  %v8790_v33 = vld [vmem:[#allocation5 + $0x10] sm:$0xff]  ;;  %v12541_v39 = vpack.c.bf16 %v10371_v27, %v10370_v34  ;;  %v12526_v41 = vpack.c.bf16 %v10358_v46, %v10357_v15  ;;  %v10365_v29 = vld [vmem:[%s15369_s7 + $0xc0] sm:$0xff] }
 0x573   : > { %8667 = vst.msk [vmem:[#allocation5 + $0x20] sm:$0x3] %vm390_vm6, %v8662_v28  ;;  %v8795_v53 = vadd.f32 %v8790_v33, %v8774_v61  ;;  %v12273_v13 = vpop.f32.mrb[103].mxu1  ;;  %v10366_v28 = vld [vmem:[%s15369_s7 + $0xc8] sm:$0xff]  ;;  %v10367_v33 = vld [vmem:[%s15369_s7 + $0xd0] sm:$0xff] }
 0x574   : > { %v8803_v63 = vld [vmem:[#allocation5] sm:$0xf]  ;;  %v12535_v61 = vpack.c.bf16 %v10366_v28, %v10365_v29  ;;  %v10381_v28 = vld [vmem:[%s15372_s10] ss:$0 sm:$0xff] }
 0x575   : > { %v8810_v57 = vadd.f32 %v10338_v19, %v8803_v63  ;;  %8800 = vst.msk [vmem:[#allocation5 + $0x10] sm:$0xff] %vm385_vm2, %v8795_v53  ;;  %v10368_v53 = vld [vmem:[%s15369_s7 + $0xd8] sm:$0xff] }
 0x576   : > { %v8779_v25 = vpop.f32.mrb[104].mxu1  ;;  %v8791_v47 = vld [vmem:[#allocation5 + $0x18] sm:$0xff]  ;;  %v12538_v63 = vpack.c.bf16 %v10368_v53, %v10367_v33 }
 0x577   : > { %v8811_v54 = vmax.f32 %v8810_v57, 0.0  ;;  %v8796_v22 = vadd.f32 %v8791_v47, %v8779_v25  ;;  %v12276_v20 = vpop.f32.mrb[105].mxu1  ;;  %v10375_v57 = vld [vmem:[%s15369_s7 + $0x100] sm:$0xff]  ;;  %v10376_v25 = vld [vmem:[%s15369_s7 + $0x108] sm:$0xff] }
 0x578   : > { %v12547_v47 = vpack.c.bf16 %v10376_v25, %v10375_v57 }
 0x579   : > { %v8814_v37 = vld [vmem:[#allocation5 + $0xa] sm:$0xf]  ;;  %8813 = vst.msk [vmem:[#allocation4 + $0x7] sm:$0xf] %vm8812_vm8, %v8811_v54  ;;  %v10377_v54 = vld [vmem:[%s15369_s7 + $0x110] sm:$0xff] }
 0x57a   : > { %v8815_v36 = vadd.f32 %v10338_v19, %v8814_v37  ;;  %8801 = vst.msk [vmem:[#allocation5 + $0x18] sm:$0xff] %vm385_vm2, %v8796_v22  ;;  %v8784_v17 = vpop.f32.mrb[106].mxu1  ;;  %v8792_v56 = vld [vmem:[#allocation5 + $0x20] sm:$0x3] }
 0x57b   : > { %v8797_v6 = vadd.f32 %v8792_v56, %v8784_v17  ;;  %v12279_v21 = vpop.f32.mrb[107].mxu1  ;;  %v10378_v22 = vld [vmem:[%s15369_s7 + $0x118] sm:$0xff]  ;;  %v9587_v17 = vld [vmem:[%s15371_s9] sm:$0xff]  ;;  %v9588_v56 = vld [vmem:[%s15371_s9 + $0x8] sm:$0xff] }
 0x57c   : > { %v8816_v0 = vmax.f32 %v8815_v36, 0.0  ;;  %v8818_v31 = vld [vmem:[#allocation5 + $0x14] sm:$0xf]  ;;  %v12550_v37 = vpack.c.bf16 %v10378_v22, %v10377_v54 }
 0x57d   : > { %v8819_v18 = vadd.f32 %v10338_v19, %v8818_v31  ;;  %8802 = vst.msk [vmem:[#allocation5 + $0x20] sm:$0x3] %vm390_vm6, %v8797_v6  ;;  %v12553_v6 = vpack.c.bf16 %v9588_v56, %v9587_v17 }
 0x57e   : > { %8817 = vst.msk [vmem:[#allocation4 + $0xd] sm:$0xf] %vm8812_vm8, %v8816_v0  ;;  %v9589_v0 = vld [vmem:[%s15371_s9 + $0x10] sm:$0xff] }
 0x57f   : > { %v8820_v23 = vmax.f32 %v8819_v18, 0.0 }
 0x581   : > { %8821 = vst.msk [vmem:[#allocation4 + $0x13] sm:$0xf] %vm8812_vm8, %v8820_v23 }
 0x584   : > { %v8822_v14 = vld [vmem:[#allocation5 + $0x1e] sm:$0xf] }
 0x585   : > { %v8827_v16 = vld [vmem:[#allocation4] ss:$2 sm:$0xff]  ;;  %v8823_v62 = vadd.f32 %v10338_v19, %v8822_v14  ;;  %v8907_v4 = vld [vmem:[#allocation4 + $0x1] ss:$2 sm:$0xff] }
 0x586   : > { %12289 = vmatmul.mubr.msk.f32.vlgmr.msra.gmra.mrb[100].mxu0 %vm385_vm2, %v8827_v16  ;;  %v8990_v43 = vld [vmem:[#allocation4 + $0x2] ss:$2 sm:$0xff] }
 0x587   : > { %12506 = vmatpush3.bf16.msra.mxu0 %v12505_v1  ;;  %12299 = vmatprep.mubr.msk.f32.mxu0 %vm12580_vm5, %v12579_v10  ;;  %v8824_v45 = vmax.f32 %v8823_v62, 0.0 }
 0x588   : > { %12507 = vmatprep.subr.bf16.mxu0 %v12578_v49  ;;  %v9073_v12 = vld [vmem:[#allocation4 + $0x6] ss:$2 sm:$0xff]  ;;  %v9156_v13 = vld [vmem:[#allocation4 + $0x7] ss:$2 sm:$0xff] }
 0x589   : > { %12322 = vmatmul.mubr.msk.f32.vlgmr.msra.gmra.mrb[108].mxu1 %vm385_vm2, %v9073_v12  ;;  %8825 = vst.msk [vmem:[#allocation4 + $0x19] sm:$0xf] %vm8812_vm8, %v8824_v45  ;;  %v9239_v59 = vld [vmem:[#allocation4 + $0x8] ss:$2 sm:$0xff] }
 0x58a   : > { %12530 = vmatpush3.bf16.msra.mxu1 %v12529_v30  ;;  %12343 = vmatprep.mubr.msk.f32.mxu1 %vm12580_vm5, %v12579_v10 }
 0x58b   : > { %12509 = vmatpush3.bf16.msra.mxu0 %v12508_v42  ;;  %12531 = vmatprep.subr.bf16.mxu1 %v12578_v49 }
 0x58c   : > { %12510 = vmatprep.subr.bf16.mxu0 %v12578_v49 }
 0x58e   : > { %12300 = vmatmul.mubr.msk.f32.vlgmr.msra.gmra.mrb[102].mxu0 %vm385_vm2, %v8907_v4  ;;  %12533 = vmatpush3.bf16.msra.mxu1 %v12532_v24 }
 0x58f   : > { %12512 = vmatpush3.bf16.msra.mxu0 %v12511_v9  ;;  %12540 = vmatprep.subr.bf16.mxu1 %v12578_v49 }
 0x590   : > { %12513 = vmatprep.subr.bf16.mxu0 %v12578_v49  ;;  %12310 = vmatprep.mubr.msk.f32.mxu0 %vm12580_vm5, %v12579_v10  ;;  %v9405_v19 = vld [vmem:[#allocation4 + $0xd] ss:$2 sm:$0xff]  ;;  %v9322_v20 = vld [vmem:[#allocation4 + $0xc] ss:$2 sm:$0xff] }
 0x591   : > { %12344 = vmatmul.mubr.msk.f32.vlgmr.msra.gmra.mrb[110].mxu1 %vm385_vm2, %v9239_v59  ;;  %v9488_v36 = vld [vmem:[#allocation4 + $0xe] ss:$2 sm:$0xff] }
 0x592   : > { %12542 = vmatpush3.bf16.msra.mxu1 %v12541_v39  ;;  %12365 = vmatprep.mubr.msk.f32.mxu1 %vm12580_vm5, %v12579_v10 }
 0x593   : > { %12515 = vmatpush3.bf16.msra.mxu0 %v12514_v48  ;;  %12543 = vmatprep.subr.bf16.mxu1 %v12578_v49 }
 0x594   : > { %12522 = vmatprep.subr.bf16.mxu0 %v12578_v49 }
 0x596   : > { %12311 = vmatmul.mubr.msk.f32.vlgmr.msra.gmra.mrb[104].mxu0 %vm385_vm2, %v8990_v43  ;;  %12545 = vmatpush3.bf16.msra.mxu1 %v12544_v7 }
 0x597   : > { %12524 = vmatpush3.bf16.msra.mxu0 %v12523_v11  ;;  %12332 = vmatprep.mubr.msk.f32.mxu0 %vm12580_vm5, %v12579_v10 }
 0x598   : > { %12525 = vmatprep.subr.bf16.mxu0 %v12578_v49  ;;  %12552 = vmatprep.subr.bf16.mxu1 %v12578_v49 }
 0x599   : > { %12366 = vmatmul.mubr.msk.f32.vlgmr.msra.gmra.mrb[112].mxu1 %vm385_vm2, %v9405_v19 }
 0x59a   : > { %12387 = vmatprep.mubr.msk.f32.mxu1 %vm12580_vm5, %v12579_v10  ;;  %12554 = vmatpush3.bf16.msra.mxu1 %v12553_v6 }
 0x59b   : > { %12527 = vmatpush3.bf16.msra.mxu0 %v12526_v41  ;;  %12555 = vmatprep.subr.bf16.mxu1 %v12578_v49 }
 0x59c   : > { %12534 = vmatprep.subr.bf16.mxu0 %v12578_v49 }
 0x59e   : > { %12333 = vmatmul.mubr.msk.f32.vlgmr.msra.gmra.mrb[106].mxu0 %vm385_vm2, %v9156_v13 }
 0x59f   : > { %12536 = vmatpush3.bf16.msra.mxu0 %v12535_v61  ;;  %12354 = vmatprep.mubr.msk.f32.mxu0 %vm12580_vm5, %v12579_v10 }
 0x5a0   : > { %12537 = vmatprep.subr.bf16.mxu0 %v12578_v49 }
 0x5a3   : > { %12539 = vmatpush3.bf16.msra.mxu0 %v12538_v63 }
 0x5a4   : > { %12546 = vmatprep.subr.bf16.mxu0 %v12578_v49 }
 0x5a6   : > { %12355 = vmatmul.mubr.msk.f32.vlgmr.msra.gmra.mrb[108].mxu0 %vm385_vm2, %v9322_v20 }
 0x5a7   : > { %12548 = vmatpush3.bf16.msra.mxu0 %v12547_v47  ;;  %12376 = vmatprep.mubr.msk.f32.mxu0 %vm12580_vm5, %v12579_v10  ;;  %v9590_v10 = vld [vmem:[%s15371_s9 + $0x18] sm:$0xff] }
 0x5a8   : > { %12549 = vmatprep.subr.bf16.mxu0 %v12578_v49  ;;  %v12556_v21 = vpack.c.bf16 %v9590_v10, %v9589_v0 }
 0x5aa   : > { %12557 = vmatpush3.bf16.msra.mxu1 %v12556_v21 }
 0x5ab   : > { %12551 = vmatpush3.bf16.msra.mxu0 %v12550_v37 }
 0x5ae   : > { %12377 = vmatmul.mubr.msk.f32.vlgmr.msra.gmra.mrb[110].mxu0 %vm385_vm2, %v9488_v36 }
 0x659   : > { %v8901_v31 = vpop.f32.mrb[100].mxu0 }
 0x65a   : > { %8905 = vst.msk [vmem:[#allocation5] sm:$0xff] %vm385_vm2, %v8901_v31  ;;  %v12290_v18 = vpop.f32.mrb[101].mxu0 }
 0x65c   : > { %v9148_v23 = vpop.f32.mrb[108].mxu1 }
 0x65d   : > { %v12323_v40 = vpop.f32.mrb[109].mxu1 }
 0x661   : > { %v8982_v50 = vpop.f32.mrb[102].mxu0  ;;  %v8986_v1 = vld [vmem:[#allocation5] sm:$0xff] }
 0x662   : > { %v8987_v35 = vadd.f32 %v8986_v1, %v8982_v50  ;;  %v12301_v26 = vpop.f32.mrb[103].mxu0 }
 0x664   : > { %8988 = vst.msk [vmem:[#allocation5] sm:$0xff] %vm385_vm2, %v8987_v35  ;;  %v9314_v3 = vpop.f32.mrb[110].mxu1 }
 0x665   : > { %v12345_v8 = vpop.f32.mrb[111].mxu1 }
 0x669   : > { %v9065_v16 = vpop.f32.mrb[104].mxu0 }
 0x66a   : > { %v12312_v14 = vpop.f32.mrb[105].mxu0 }
 0x66b   : > { %v9069_v42 = vld [vmem:[#allocation5] sm:$0xff] }
 0x66c   : > { %v9070_v30 = vadd.f32 %v9069_v42, %v9065_v16  ;;  %v9480_v49 = vpop.f32.mrb[112].mxu1 }
 0x66d   : > { %v12367_v5 = vpop.f32.mrb[113].mxu1 }
 0x66e   : > { %9071 = vst.msk [vmem:[#allocation5] sm:$0xff] %vm385_vm2, %v9070_v30 }
 0x671   : > { %v9231_v62 = vpop.f32.mrb[106].mxu0 }
 0x672   : > { %v12334_v58 = vpop.f32.mrb[107].mxu0 }
 0x675   : > { %v9152_v44 = vld [vmem:[#allocation5] sm:$0xff] }
 0x676   : > { %v9153_v55 = vadd.f32 %v9152_v44, %v9148_v23 }
 0x678   : > { %9154 = vst.msk [vmem:[#allocation5] sm:$0xff] %vm385_vm2, %v9153_v55 }
 0x679   : > { %v9397_v12 = vpop.f32.mrb[108].mxu0 }
 0x67a   : > { %v12356_v45 = vpop.f32.mrb[109].mxu0 }
 0x67f   : > { %v9235_v9 = vld [vmem:[#allocation5] sm:$0xff] }
 0x680   : > { %v9236_v24 = vadd.f32 %v9235_v9, %v9231_v62 }
 0x681   : > { %v9563_v60 = vpop.f32.mrb[110].mxu0 }
 0x682   : > { %9237 = vst.msk [vmem:[#allocation5] sm:$0xff] %vm385_vm2, %v9236_v24  ;;  %v12378_v2 = vpop.f32.mrb[111].mxu0 }
 0x689   : > { %v9318_v34 = vld [vmem:[#allocation5] sm:$0xff] }
 0x68a   : > { %v9319_v27 = vadd.f32 %v9318_v34, %v9314_v3 }
 0x68c   : > { %9320 = vst.msk [vmem:[#allocation5] sm:$0xff] %vm385_vm2, %v9319_v27 }
 0x693   : > { %v9401_v4 = vld [vmem:[#allocation5] sm:$0xff] }
 0x694   : > { %v9402_v48 = vadd.f32 %v9401_v4, %v9397_v12 }
 0x696   : > { %9403 = vst.msk [vmem:[#allocation5] sm:$0xff] %vm385_vm2, %v9402_v48 }
 0x69d   : > { %v9484_v39 = vld [vmem:[#allocation5] sm:$0xff] }
 0x69e   : > { %v9485_v52 = vadd.f32 %v9484_v39, %v9480_v49 }
 0x6a0   : > { %9486 = vst.msk [vmem:[#allocation5] sm:$0xff] %vm385_vm2, %v9485_v52 }
 0x6a7   : > { %v9567_v32 = vld [vmem:[#allocation5] sm:$0xff] }
 0x6a8   : > { %v9568_v51 = vadd.f32 %v9567_v32, %v9563_v60 }
 0x6aa   : > { %9569 = vst.msk [vmem:[#allocation5] sm:$0xff] %vm385_vm2, %v9568_v51 }
 0x6b1   : > { %v9570_v59 = vld [vmem:[#allocation5] sm:$0x3]  ;;  %v9579_v11 = vld [vmem:[#allocation5 + $0x6] sm:$0x3] }
 0x6b2   : > { %v9577_v7 = vadd.f32 %v10380_v38, %v9570_v59  ;;  %v9580_v15 = vadd.f32 %v10380_v38, %v9579_v11 }
 0x6b4   : > { %v9581_v46 = vmax.f32 %v9580_v15, 0.0  ;;  %v9578_v43 = vmax.f32 %v9577_v7, 0.0 }
 0x6b6   : > { %v9583_v41 = vrot.slane %v9581_v46, 6 }
 0x6b8   : > { %v9586_v29 = vsel %vm9585_vm9, %v9578_v43, %v9583_v41 }
 0x6b9   : > { %12388 = vmatmul.mubr.msk.f32.vlgmr.msra.gmra.mrb[114].mxu1 %vm385_vm2, %v9586_v29 }
 0x78c   : > { %v9667_v19 = vpop.f32.mrb[114].mxu1 }
 0x78d   : > { %v9668_v61 = vadd.f32 %v10381_v28, %v9667_v19  ;;  %v12389_v33 = vpop.f32.mrb[115].mxu1 }
 0x78f   : > { %9672 = vst.msk [vmem:[%s384_s23] sm:$0xf] %vm9671_vm10, %v9668_v61 }
 0x790 PF: > { %s21_s17 = sadd.s32 1, %s12576_s17  }
 0x791   : > { %p18_p4 = scmp.ge.s32.totalorder %s21_s17, 4  }
 0x793   :  { %20 = sbr.rel (!%p18_p4) target bundleno = 1 (0x1), region = 298 }

</bundles_post_ra>
